<compile_context>
chip_gen: v7x
topology: tpu7x:2x2x1
jax: 0.10.0
libtpu: 0.0.40
codegen_flags: <defaults>
</compile_context>

<pallas_src>
import functools

import numpy as np
import jax
import jax.numpy as jnp
from jax.experimental import pallas as pl
from jax.experimental.pallas import tpu as pltpu


# ---------------------------------------------------------------------------
# Fused Pallas kernel (one batch element per grid step)
# ---------------------------------------------------------------------------

def _lut_fused_kernel(fea_ref, mrow_ref, mcol_ref, img_ref,
                      wc_ref, bc_ref, dt_ref, wfc_ref, bfc_ref,
                      lut_ref, gb_ref, kr_ref, sel_ref, o_ref,
                      *, dim, n_lut):
    f32 = jnp.float32
    hw = dt_ref.shape[1]          # feature-map pixels (h*w)
    P = img_ref.shape[1]          # image pixels (H*W)

    # ---------------- Weight_predictor_issam ----------------
    fea = fea_ref[0]                                                        # (hw, Cin)
    x = jnp.dot(fea, wc_ref[...], preferred_element_type=f32) + bc_ref[...] # (hw, 256)

    # bilinear (align_corners=True) mask downsample via precomputed Kronecker matrix
    dm = jnp.dot(mrow_ref[0], dt_ref[...], preferred_element_type=f32)      # (1, hw)
    m_fg = jnp.sum(dm, axis=1, keepdims=True)                               # (1, 1)
    m_bg = float(hw) - m_fg
    pool_w = jnp.concatenate([
        dm / (m_fg + 1e-6),
        (1.0 - dm) / (m_bg + 1e-6),
        jnp.full_like(dm, 1.0 / (float(hw) + 1e-6)),
    ], axis=0)                                                              # (3, hw)
    pooled = jnp.dot(pool_w, x, preferred_element_type=f32)                 # (3, 256)

    logits = bfc_ref[...]                                                   # (1, n_lut)
    for s in range(3):                                                      # fg / bg / full
        logits = logits + jnp.dot(pooled[s:s + 1], wfc_ref[s],
                                  preferred_element_type=f32)
    logits = logits - jnp.max(logits, axis=1, keepdims=True)
    e = jnp.exp(logits)
    wts = e / jnp.sum(e, axis=1, keepdims=True)                             # softmax (1, n_lut)

    # ---------------- fold the n_lut LUTs into one effective LUT matrix ----------------
    # lut_ref[l] is LUT_l laid out as (dim*dim, 3*dim): row = b_id*dim + g_id,
    # column = c*dim + r_id.  Trilinear interp is linear in the LUT, so mix first.
    m_eff = wts[:, 0:1] * lut_ref[0]
    for l in range(1, n_lut):
        m_eff = m_eff + wts[:, l:l + 1] * lut_ref[l]                        # (dim*dim, 3*dim)

    # ---------------- trilinear interpolation as a hat-weight matmul ----------------
    img = img_ref[0]                                                        # (P, 3) in [0, 1]
    binsize = 1.000001 / (dim - 1)
    inv_bin = 1.0 / binsize
    t_max = float(dim - 1)
    t_r = jnp.clip(img[:, 0:1] * inv_bin, 0.0, t_max)                       # (P, 1)
    t_g = jnp.clip(img[:, 1:2] * inv_bin, 0.0, t_max)
    t_b = jnp.clip(img[:, 2:3] * inv_bin, 0.0, t_max)

    i_b = gb_ref[0:1, :]                                                    # (1, dim*dim) blue bin
    j_g = gb_ref[1:2, :]                                                    # (1, dim*dim) green bin
    a_gb = (jnp.maximum(1.0 - jnp.abs(t_b - i_b), 0.0)
            * jnp.maximum(1.0 - jnp.abs(t_g - j_g), 0.0))                   # (P, dim*dim)

    tmat = jnp.dot(a_gb, m_eff, preferred_element_type=f32)                 # (P, 3*dim)

    k_r = kr_ref[...]                                                       # (1, 3*dim) red bin
    u = jnp.maximum(1.0 - jnp.abs(t_r - k_r), 0.0) * tmat                   # (P, 3*dim)
    combine = jnp.dot(u, sel_ref[...], preferred_element_type=f32)          # (P, 3)

    # ---------------- final mask blend ----------------
    m = mcol_ref[0]                                                         # (P, 1)
    out = combine * m + img * (1.0 - m)
    o_ref[...] = out.reshape(1, P, 3).astype(o_ref.dtype)


# ---------------------------------------------------------------------------
# Wrapper
# ---------------------------------------------------------------------------

def lut_forward(params, fea, mask, image):
    """fea: (B, h, w, Cin) NHWC encoder feature, mask: (B, H, W), image: (B, H, W, 3)."""
    B, H, W, _ = image.shape
    _, h, w, cin = fea.shape
    P = H * W
    hw = h * w
    dim = params['dim']
    n_lut = params['n_lut']
    mid = params['wc'].shape[1]

    fea_flat = fea.reshape(B, hw, cin)
    mask_row = mask.reshape(B, 1, P)
    mask_col = mask.reshape(B, P, 1)
    img_flat = image.reshape(B, P, 3)

    kern = functools.partial(_lut_fused_kernel, dim=dim, n_lut=n_lut)
    out = pl.pallas_call(
        kern,
        out_shape=jax.ShapeDtypeStruct((B, P, 3), jnp.float32),
        grid=(B,),
        in_specs=[
            pl.BlockSpec((1, hw, cin), lambda b: (b, 0, 0)),                 # features
            pl.BlockSpec((1, 1, P), lambda b: (b, 0, 0)),                    # mask (row)
            pl.BlockSpec((1, P, 1), lambda b: (b, 0, 0)),                    # mask (col)
            pl.BlockSpec((1, P, 3), lambda b: (b, 0, 0)),                    # image
            pl.BlockSpec((cin, mid), lambda b: (0, 0)),                      # 1x1 conv W
            pl.BlockSpec((1, mid), lambda b: (0, 0)),                        # 1x1 conv b
            pl.BlockSpec((P, hw), lambda b: (0, 0)),                         # mask-downsample mat
            pl.BlockSpec((3, mid, n_lut), lambda b: (0, 0, 0)),              # fc W (fg/bg/full)
            pl.BlockSpec((1, n_lut), lambda b: (0, 0)),                      # fc b
            pl.BlockSpec((n_lut, dim * dim, 3 * dim), lambda b: (0, 0, 0)),  # LUT matrices
            pl.BlockSpec((2, dim * dim), lambda b: (0, 0)),                  # (b,g) bin ramps
            pl.BlockSpec((1, 3 * dim), lambda b: (0, 0)),                    # r bin ramp
            pl.BlockSpec((3 * dim, 3), lambda b: (0, 0)),                    # channel selector
        ],
        out_specs=pl.BlockSpec((1, P, 3), lambda b: (b, 0, 0)),
        compiler_params=pltpu.CompilerParams(
            dimension_semantics=("parallel",),          # 2-way split across v7x TensorCores
            vmem_limit_bytes=32 * 1024 * 1024),
    )(fea_flat, mask_row, mask_col, img_flat,
      params['wc'], params['bc'], params['dt'],
      params['wfc3'], params['bfc'], params['lut_mat'],
      params['gb_idx'], params['kr_idx'], params['selT'])
    return out.reshape(B, H, W, 3)


# ---------------------------------------------------------------------------
# Parameter construction (deterministic; identity LUT built analytically)
# ---------------------------------------------------------------------------

def _interp_matrix(n_in, n_out):
    """Bilinear align_corners=True interpolation matrix of shape (n_out, n_in)."""
    if n_out == 1 or n_in == 1:
        A = np.zeros((n_out, n_in), np.float32)
        A[:, 0] = 1.0
        return A
    src = np.arange(n_out, dtype=np.float64) * (n_in - 1) / (n_out - 1)
    lo = np.minimum(np.floor(src).astype(np.int64), n_in - 2)
    frac = src - lo
    A = np.zeros((n_out, n_in), np.float64)
    A[np.arange(n_out), lo] = 1.0 - frac
    A[np.arange(n_out), lo + 1] = frac
    return A.astype(np.float32)


def build_params(key, cin, mid, n_lut, dim, H, W, h, w):
    k1, k2, k3, k4 = jax.random.split(key, 4)
    wc = 0.1 * jax.random.normal(k1, (cin, mid), jnp.float32)
    bc = 0.1 * jax.random.normal(k2, (mid,), jnp.float32)
    wfc = 0.1 * jax.random.normal(k3, (3 * mid, n_lut), jnp.float32)
    bfc = 0.1 * jax.random.normal(k4, (n_lut,), jnp.float32)

    ahd = _interp_matrix(H, h)                       # (h, H)
    awd = _interp_matrix(W, w)                       # (w, W)
    dt = np.kron(ahd, awd).T                         # (H*W, h*w): flat-mask -> flat-down-mask

    # LUT0 = identity (values of IdentityLUT33.txt built analytically), LUT1..5 = zero.
    ramp = np.arange(dim, dtype=np.float32) / (dim - 1)
    ident = np.zeros((3, dim, dim, dim), np.float32)  # axes: (channel, b_id, g_id, r_id)
    ident[0] = ramp[None, None, :]
    ident[1] = ramp[None, :, None]
    ident[2] = ramp[:, None, None]
    luts = np.zeros((n_lut, 3, dim, dim, dim), np.float32)
    luts[0] = ident
    # (l,c,b,g,r) -> (l,b,g,c,r) -> (l, dim*dim, 3*dim): row = b*dim+g, col = c*dim+r
    lut_mat = np.transpose(luts, (0, 2, 3, 1, 4)).reshape(n_lut, dim * dim, 3 * dim)

    idx = np.arange(dim * dim)
    gb_idx = np.stack([idx // dim, idx % dim]).astype(np.float32)           # (2, dim*dim)
    mcol = np.arange(3 * dim)
    kr_idx = (mcol % dim).astype(np.float32).reshape(1, 3 * dim)            # (1, 3*dim)
    selT = np.zeros((3 * dim, 3), np.float32)
    selT[np.arange(3 * dim), mcol // dim] = 1.0                             # channel selector

    return dict(
        wc=wc, bc=bc.reshape(1, mid),
        wfc3=wfc.reshape(3, mid, n_lut), bfc=bfc.reshape(1, n_lut),
        dt=jnp.asarray(dt, jnp.float32),
        lut_mat=jnp.asarray(lut_mat),
        gb_idx=jnp.asarray(gb_idx), kr_idx=jnp.asarray(kr_idx), selT=jnp.asarray(selT),
        luts=jnp.asarray(luts),                       # original layout for the JAX reference
        ahd=jnp.asarray(ahd), awd=jnp.asarray(awd),
        dim=dim, n_lut=n_lut,
    )


# ---------------------------------------------------------------------------
# Pure-JAX reference (mirrors the PyTorch forward, gather-based trilinear)
# ---------------------------------------------------------------------------

def lut_forward_ref(params, fea, mask, image):
    dim = params['dim']
    mid = params['wc'].shape[1]
    x = jnp.einsum('bhwi,io->bhwo', fea, params['wc']) + params['bc'].reshape(1, 1, 1, mid)
    dm = jnp.einsum('hH,bHW,wW->bhw', params['ahd'], mask, params['awd'])
    m_fg = jnp.sum(dm, axis=(1, 2))[:, None]
    m_bg = jnp.sum(1.0 - dm, axis=(1, 2))[:, None]
    m_full = float(dm.shape[1] * dm.shape[2])
    fg = jnp.einsum('bhw,bhwo->bo', dm, x) / (m_fg + 1e-6)
    bg = jnp.einsum('bhw,bhwo->bo', 1.0 - dm, x) / (m_bg + 1e-6)
    full = jnp.sum(x, axis=(1, 2)) / (m_full + 1e-6)
    feat = jnp.concatenate([fg, bg, full], axis=1)
    logits = feat @ params['wfc3'].reshape(3 * mid, -1) + params['bfc']
    wts = jax.nn.softmax(logits, axis=1)

    binsize = 1.000001 / (dim - 1)
    t = image / binsize
    tid = jnp.clip(jnp.floor(t).astype(jnp.int32), 0, dim - 2)
    frac = t - tid.astype(jnp.float32)
    r_id, g_id, b_id = tid[..., 0], tid[..., 1], tid[..., 2]
    rd, gd, bd = frac[..., 0], frac[..., 1], frac[..., 2]
    gen = []
    for l in range(params['luts'].shape[0]):
        lut = params['luts'][l]                               # (3, dim, dim, dim) = (c, b, g, r)
        acc = jnp.zeros(image.shape, image.dtype)
        for db in (0, 1):
            for dg in (0, 1):
                for dr in (0, 1):
                    wgt = ((bd if db else 1.0 - bd) * (gd if dg else 1.0 - gd)
                           * (rd if dr else 1.0 - rd))
                    val = lut[:, b_id + db, g_id + dg, r_id + dr]   # (3, B, H, W)
                    acc = acc + wgt[..., None] * jnp.moveaxis(val, 0, -1)
        gen.append(acc)
    gen = jnp.stack(gen, axis=1)                               # (B, n_lut, H, W, 3)
    combine = jnp.einsum('bl,blhwc->bhwc', wts, gen)
    m = mask[..., None]
    return combine * m + image * (1.0 - m)


# ---------------------------------------------------------------------------
# Main
# ---------------------------------------------------------------------------

if __name__ == "__main__":
    # TODO(synk): the 3-D (L, bz, d) encoder-feature permute path of Weight_predictor_issam
    #             is not implemented (4-D NHWC features only); clamp=True path unused (default).
    B = 2
    H = W = 16          # image resolution
    h = w = 8           # encoder feature resolution
    CIN = 64            # classifier in_channels (small test value; module default is 1024)
    MID = 256           # hard-coded mid_ch of Weight_predictor_issam
    N_LUT = 6
    DIM = 33

    key = jax.random.PRNGKey(0)
    kp, kf, km, ki = jax.random.split(key, 4)
    params = build_params(kp, CIN, MID, N_LUT, DIM, H, W, h, w)

    fea = jax.random.normal(kf, (B, h, w, CIN), jnp.float32)
    mask = jax.random.uniform(km, (B, H, W), jnp.float32)           # soft fg mask in [0, 1)
    image = jax.random.uniform(ki, (B, H, W, 3), jnp.float32)       # RGB in [0, 1)

    out = lut_forward(params, fea, mask, image)
    out = jax.block_until_ready(out)

    assert out.shape == (B, H, W, 3), out.shape
    assert bool(jnp.all(jnp.isfinite(out)))

    with jax.default_matmul_precision("highest"):
        ref = lut_forward_ref(params, fea, mask, image)
    ref = jax.block_until_ready(ref)
    err = float(jnp.max(jnp.abs(out - ref)))
    assert err < 2e-2, f"max abs err vs reference: {err}"

    print("KERNEL_OK")
</pallas_src>

<mosaic_0001>
module attributes {stable_mosaic.version = 11 : i64} {
  func.func @_lut_fused_kernel(%arg0: i32, %arg1: memref<1x64x64xf32, #tpu.memory_space<vmem>>, %arg2: memref<1x1x256xf32, #tpu.memory_space<vmem>>, %arg3: memref<1x256x1xf32, #tpu.memory_space<vmem>>, %arg4: memref<1x256x3xf32, #tpu.memory_space<vmem>>, %arg5: memref<64x256xf32, #tpu.memory_space<vmem>>, %arg6: memref<1x256xf32, #tpu.memory_space<vmem>>, %arg7: memref<256x64xf32, #tpu.memory_space<vmem>>, %arg8: memref<3x256x6xf32, #tpu.memory_space<vmem>>, %arg9: memref<1x6xf32, #tpu.memory_space<vmem>>, %arg10: memref<6x1089x99xf32, #tpu.memory_space<vmem>>, %arg11: memref<2x1089xf32, #tpu.memory_space<vmem>>, %arg12: memref<1x99xf32, #tpu.memory_space<vmem>>, %arg13: memref<99x3xf32, #tpu.memory_space<vmem>>, %arg14: memref<1x256x3xf32, #tpu.memory_space<vmem>>) attributes {dimension_semantics = [#tpu.dimension_semantics<parallel>], iteration_bounds = array<i64: 2>, scalar_prefetch = 0 : i64, scratch_operands = 0 : i64, tpu.core_type = #tpu.core_type<tc>, window_params = [{transform_indices = @transform_0, window_bounds = array<i64: 1, 64, 64>}, {transform_indices = @transform_1, window_bounds = array<i64: 1, 1, 256>}, {transform_indices = @transform_2, window_bounds = array<i64: 1, 256, 1>}, {transform_indices = @transform_3, window_bounds = array<i64: 1, 256, 3>}, {pipeline_mode = #tpu.pipeline_mode<synchronous>, transform_indices = @transform_4, window_bounds = array<i64: 64, 256>}, {pipeline_mode = #tpu.pipeline_mode<synchronous>, transform_indices = @transform_5, window_bounds = array<i64: 1, 256>}, {pipeline_mode = #tpu.pipeline_mode<synchronous>, transform_indices = @transform_6, window_bounds = array<i64: 256, 64>}, {pipeline_mode = #tpu.pipeline_mode<synchronous>, transform_indices = @transform_7, window_bounds = array<i64: 3, 256, 6>}, {pipeline_mode = #tpu.pipeline_mode<synchronous>, transform_indices = @transform_8, window_bounds = array<i64: 1, 6>}, {pipeline_mode = #tpu.pipeline_mode<synchronous>, transform_indices = @transform_9, window_bounds = array<i64: 6, 1089, 99>}, {pipeline_mode = #tpu.pipeline_mode<synchronous>, transform_indices = @transform_10, window_bounds = array<i64: 2, 1089>}, {pipeline_mode = #tpu.pipeline_mode<synchronous>, transform_indices = @transform_11, window_bounds = array<i64: 1, 99>}, {pipeline_mode = #tpu.pipeline_mode<synchronous>, transform_indices = @transform_12, window_bounds = array<i64: 99, 3>}, {transform_indices = @transform_13, window_bounds = array<i64: 1, 256, 3>}]} {
    %c0 = arith.constant 0 : index
    %c0_0 = arith.constant 0 : index
    %c0_1 = arith.constant 0 : index
    %0 = vector.load %arg1[%c0, %c0_0, %c0_1] : memref<1x64x64xf32, #tpu.memory_space<vmem>>, vector<1x64x64xf32>
    %1 = vector.shape_cast %0 : vector<1x64x64xf32> to vector<64x64xf32>
    %c0_2 = arith.constant 0 : index
    %c0_3 = arith.constant 0 : index
    %2 = vector.load %arg5[%c0_2, %c0_3] : memref<64x256xf32, #tpu.memory_space<vmem>>, vector<64x256xf32>
    %cst = arith.constant dense<0.000000e+00> : vector<64x256xf32>
    %3 = tpu.matmul %1, %2, %cst {dimension_numbers = #tpu.dot_dimension_numbers<[1], [0], [0], [1], [0, 0, 1, 1], [], []>} : vector<64x64xf32>, vector<64x256xf32>, vector<64x256xf32> -> vector<64x256xf32>
    %c0_4 = arith.constant 0 : index
    %c0_5 = arith.constant 0 : index
    %4 = vector.load %arg6[%c0_4, %c0_5] : memref<1x256xf32, #tpu.memory_space<vmem>>, vector<1x256xf32>
    %5 = vector.broadcast %4 : vector<1x256xf32> to vector<64x256xf32>
    %6 = arith.addf %3, %5 : vector<64x256xf32>
    %c0_6 = arith.constant 0 : index
    %c0_7 = arith.constant 0 : index
    %c0_8 = arith.constant 0 : index
    %7 = vector.load %arg2[%c0_6, %c0_7, %c0_8] : memref<1x1x256xf32, #tpu.memory_space<vmem>>, vector<1x1x256xf32>
    %8 = vector.shape_cast %7 : vector<1x1x256xf32> to vector<1x256xf32>
    %c0_9 = arith.constant 0 : index
    %c0_10 = arith.constant 0 : index
    %9 = vector.load %arg7[%c0_9, %c0_10] : memref<256x64xf32, #tpu.memory_space<vmem>>, vector<256x64xf32>
    %cst_11 = arith.constant dense<0.000000e+00> : vector<1x64xf32>
    %10 = tpu.matmul %8, %9, %cst_11 {dimension_numbers = #tpu.dot_dimension_numbers<[1], [0], [0], [1], [0, 0, 1, 1], [], []>} : vector<1x256xf32>, vector<256x64xf32>, vector<1x64xf32> -> vector<1x64xf32>
    %cst_12 = arith.constant dense<0.000000e+00> : vector<1xf32>
    %11 = vector.multi_reduction <add>, %10, %cst_12 [1] : vector<1x64xf32> to vector<1xf32>
    %12 = vector.shape_cast %11 : vector<1xf32> to vector<1x1xf32>
    %cst_13 = arith.constant 6.400000e+01 : f32
    %13 = vector.broadcast %cst_13 : f32 to vector<1x1xf32>
    %14 = arith.subf %13, %12 : vector<1x1xf32>
    %cst_14 = arith.constant 9.99999997E-7 : f32
    %15 = vector.broadcast %cst_14 : f32 to vector<1x1xf32>
    %16 = arith.addf %12, %15 : vector<1x1xf32>
    %17 = vector.broadcast %16 : vector<1x1xf32> to vector<1x64xf32>
    %18 = arith.divf %10, %17 : vector<1x64xf32>
    %cst_15 = arith.constant 1.000000e+00 : f32
    %19 = vector.broadcast %cst_15 : f32 to vector<1x64xf32>
    %20 = arith.subf %19, %10 : vector<1x64xf32>
    %cst_16 = arith.constant 9.99999997E-7 : f32
    %21 = vector.broadcast %cst_16 : f32 to vector<1x1xf32>
    %22 = arith.addf %14, %21 : vector<1x1xf32>
    %23 = vector.broadcast %22 : vector<1x1xf32> to vector<1x64xf32>
    %24 = arith.divf %20, %23 : vector<1x64xf32>
    %cst_17 = arith.constant 1.562500e-02 : f32
    %25 = vector.broadcast %cst_17 : f32 to vector<1x64xf32>
    %26 = tpu.concatenate %18, %24, %25 in 0 : vector<1x64xf32>, vector<1x64xf32>, vector<1x64xf32> -> vector<3x64xf32>
    %cst_18 = arith.constant dense<0.000000e+00> : vector<3x256xf32>
    %27 = tpu.matmul %26, %6, %cst_18 {dimension_numbers = #tpu.dot_dimension_numbers<[1], [0], [0], [1], [0, 0, 1, 1], [], []>} : vector<3x64xf32>, vector<64x256xf32>, vector<3x256xf32> -> vector<3x256xf32>
    %c0_19 = arith.constant 0 : index
    %c0_20 = arith.constant 0 : index
    %28 = vector.load %arg9[%c0_19, %c0_20] : memref<1x6xf32, #tpu.memory_space<vmem>>, vector<1x6xf32>
    %29 = vector.extract_strided_slice %27 {offsets = [0, 0], sizes = [1, 256], strides = [1, 1]} : vector<3x256xf32> to vector<1x256xf32>
    %c0_21 = arith.constant 0 : index
    %c0_22 = arith.constant 0 : index
    %c0_23 = arith.constant 0 : index
    %30 = vector.load %arg8[%c0_21, %c0_22, %c0_23] : memref<3x256x6xf32, #tpu.memory_space<vmem>>, vector<1x256x6xf32>
    %31 = vector.shape_cast %30 : vector<1x256x6xf32> to vector<256x6xf32>
    %cst_24 = arith.constant dense<0.000000e+00> : vector<1x6xf32>
    %32 = tpu.matmul %29, %31, %cst_24 {dimension_numbers = #tpu.dot_dimension_numbers<[1], [0], [0], [1], [0, 0, 1, 1], [], []>} : vector<1x256xf32>, vector<256x6xf32>, vector<1x6xf32> -> vector<1x6xf32>
    %33 = arith.addf %28, %32 : vector<1x6xf32>
    %34 = vector.extract_strided_slice %27 {offsets = [1, 0], sizes = [1, 256], strides = [1, 1]} : vector<3x256xf32> to vector<1x256xf32>
    %c1 = arith.constant 1 : index
    %c0_25 = arith.constant 0 : index
    %c0_26 = arith.constant 0 : index
    %35 = vector.load %arg8[%c1, %c0_25, %c0_26] : memref<3x256x6xf32, #tpu.memory_space<vmem>>, vector<1x256x6xf32>
    %36 = vector.shape_cast %35 : vector<1x256x6xf32> to vector<256x6xf32>
    %cst_27 = arith.constant dense<0.000000e+00> : vector<1x6xf32>
    %37 = tpu.matmul %34, %36, %cst_27 {dimension_numbers = #tpu.dot_dimension_numbers<[1], [0], [0], [1], [0, 0, 1, 1], [], []>} : vector<1x256xf32>, vector<256x6xf32>, vector<1x6xf32> -> vector<1x6xf32>
    %38 = arith.addf %33, %37 : vector<1x6xf32>
    %39 = vector.extract_strided_slice %27 {offsets = [2, 0], sizes = [1, 256], strides = [1, 1]} : vector<3x256xf32> to vector<1x256xf32>
    %c2 = arith.constant 2 : index
    %c0_28 = arith.constant 0 : index
    %c0_29 = arith.constant 0 : index
    %40 = vector.load %arg8[%c2, %c0_28, %c0_29] : memref<3x256x6xf32, #tpu.memory_space<vmem>>, vector<1x256x6xf32>
    %41 = vector.shape_cast %40 : vector<1x256x6xf32> to vector<256x6xf32>
    %cst_30 = arith.constant dense<0.000000e+00> : vector<1x6xf32>
    %42 = tpu.matmul %39, %41, %cst_30 {dimension_numbers = #tpu.dot_dimension_numbers<[1], [0], [0], [1], [0, 0, 1, 1], [], []>} : vector<1x256xf32>, vector<256x6xf32>, vector<1x6xf32> -> vector<1x6xf32>
    %43 = arith.addf %38, %42 : vector<1x6xf32>
    %cst_31 = arith.constant dense<0xFF800000> : vector<1xf32>
    %44 = vector.multi_reduction <maximumf>, %43, %cst_31 [1] : vector<1x6xf32> to vector<1xf32>
    %45 = vector.shape_cast %44 : vector<1xf32> to vector<1x1xf32>
    %46 = vector.broadcast %45 : vector<1x1xf32> to vector<1x6xf32>
    %47 = arith.subf %43, %46 : vector<1x6xf32>
    %48 = math.exp %47 : vector<1x6xf32>
    %cst_32 = arith.constant dense<0.000000e+00> : vector<1xf32>
    %49 = vector.multi_reduction <add>, %48, %cst_32 [1] : vector<1x6xf32> to vector<1xf32>
    %50 = vector.shape_cast %49 : vector<1xf32> to vector<1x1xf32>
    %51 = vector.broadcast %50 : vector<1x1xf32> to vector<1x6xf32>
    %52 = arith.divf %48, %51 : vector<1x6xf32>
    %53 = vector.extract_strided_slice %52 {offsets = [0, 0], sizes = [1, 1], strides = [1, 1]} : vector<1x6xf32> to vector<1x1xf32>
    %c0_33 = arith.constant 0 : index
    %c0_34 = arith.constant 0 : index
    %c0_35 = arith.constant 0 : index
    %54 = vector.load %arg10[%c0_33, %c0_34, %c0_35] : memref<6x1089x99xf32, #tpu.memory_space<vmem>>, vector<1x1089x99xf32>
    %55 = vector.shape_cast %54 : vector<1x1089x99xf32> to vector<1089x99xf32>
    %56 = vector.broadcast %53 : vector<1x1xf32> to vector<1089x99xf32>
    %57 = arith.mulf %56, %55 : vector<1089x99xf32>
    %58 = vector.extract_strided_slice %52 {offsets = [0, 1], sizes = [1, 1], strides = [1, 1]} : vector<1x6xf32> to vector<1x1xf32>
    %c1_36 = arith.constant 1 : index
    %c0_37 = arith.constant 0 : index
    %c0_38 = arith.constant 0 : index
    %59 = vector.load %arg10[%c1_36, %c0_37, %c0_38] : memref<6x1089x99xf32, #tpu.memory_space<vmem>>, vector<1x1089x99xf32>
    %60 = vector.shape_cast %59 : vector<1x1089x99xf32> to vector<1089x99xf32>
    %61 = vector.broadcast %58 : vector<1x1xf32> to vector<1089x99xf32>
    %62 = arith.mulf %61, %60 : vector<1089x99xf32>
    %63 = arith.addf %57, %62 : vector<1089x99xf32>
    %64 = vector.extract_strided_slice %52 {offsets = [0, 2], sizes = [1, 1], strides = [1, 1]} : vector<1x6xf32> to vector<1x1xf32>
    %c2_39 = arith.constant 2 : index
    %c0_40 = arith.constant 0 : index
    %c0_41 = arith.constant 0 : index
    %65 = vector.load %arg10[%c2_39, %c0_40, %c0_41] : memref<6x1089x99xf32, #tpu.memory_space<vmem>>, vector<1x1089x99xf32>
    %66 = vector.shape_cast %65 : vector<1x1089x99xf32> to vector<1089x99xf32>
    %67 = vector.broadcast %64 : vector<1x1xf32> to vector<1089x99xf32>
    %68 = arith.mulf %67, %66 : vector<1089x99xf32>
    %69 = arith.addf %63, %68 : vector<1089x99xf32>
    %70 = vector.extract_strided_slice %52 {offsets = [0, 3], sizes = [1, 1], strides = [1, 1]} : vector<1x6xf32> to vector<1x1xf32>
    %c3 = arith.constant 3 : index
    %c0_42 = arith.constant 0 : index
    %c0_43 = arith.constant 0 : index
    %71 = vector.load %arg10[%c3, %c0_42, %c0_43] : memref<6x1089x99xf32, #tpu.memory_space<vmem>>, vector<1x1089x99xf32>
    %72 = vector.shape_cast %71 : vector<1x1089x99xf32> to vector<1089x99xf32>
    %73 = vector.broadcast %70 : vector<1x1xf32> to vector<1089x99xf32>
    %74 = arith.mulf %73, %72 : vector<1089x99xf32>
    %75 = arith.addf %69, %74 : vector<1089x99xf32>
    %76 = vector.extract_strided_slice %52 {offsets = [0, 4], sizes = [1, 1], strides = [1, 1]} : vector<1x6xf32> to vector<1x1xf32>
    %c4 = arith.constant 4 : index
    %c0_44 = arith.constant 0 : index
    %c0_45 = arith.constant 0 : index
    %77 = vector.load %arg10[%c4, %c0_44, %c0_45] : memref<6x1089x99xf32, #tpu.memory_space<vmem>>, vector<1x1089x99xf32>
    %78 = vector.shape_cast %77 : vector<1x1089x99xf32> to vector<1089x99xf32>
    %79 = vector.broadcast %76 : vector<1x1xf32> to vector<1089x99xf32>
    %80 = arith.mulf %79, %78 : vector<1089x99xf32>
    %81 = arith.addf %75, %80 : vector<1089x99xf32>
    %82 = vector.extract_strided_slice %52 {offsets = [0, 5], sizes = [1, 1], strides = [1, 1]} : vector<1x6xf32> to vector<1x1xf32>
    %c5 = arith.constant 5 : index
    %c0_46 = arith.constant 0 : index
    %c0_47 = arith.constant 0 : index
    %83 = vector.load %arg10[%c5, %c0_46, %c0_47] : memref<6x1089x99xf32, #tpu.memory_space<vmem>>, vector<1x1089x99xf32>
    %84 = vector.shape_cast %83 : vector<1x1089x99xf32> to vector<1089x99xf32>
    %85 = vector.broadcast %82 : vector<1x1xf32> to vector<1089x99xf32>
    %86 = arith.mulf %85, %84 : vector<1089x99xf32>
    %87 = arith.addf %81, %86 : vector<1089x99xf32>
    %c0_48 = arith.constant 0 : index
    %c0_49 = arith.constant 0 : index
    %c0_50 = arith.constant 0 : index
    %88 = vector.load %arg4[%c0_48, %c0_49, %c0_50] : memref<1x256x3xf32, #tpu.memory_space<vmem>>, vector<1x256x3xf32>
    %89 = vector.shape_cast %88 : vector<1x256x3xf32> to vector<256x3xf32>
    %90 = vector.extract_strided_slice %89 {offsets = [0, 0], sizes = [256, 1], strides = [1, 1]} : vector<256x3xf32> to vector<256x1xf32>
    %cst_51 = arith.constant 31.9999676 : f32
    %91 = vector.broadcast %cst_51 : f32 to vector<256x1xf32>
    %92 = arith.mulf %90, %91 : vector<256x1xf32>
    %cst_52 = arith.constant 0.000000e+00 : f32
    %cst_53 = arith.constant 3.200000e+01 : f32
    %93 = vector.broadcast %cst_52 : f32 to vector<256x1xf32>
    %94 = arith.maximumf %93, %92 : vector<256x1xf32>
    %95 = vector.broadcast %cst_53 : f32 to vector<256x1xf32>
    %96 = arith.minimumf %95, %94 : vector<256x1xf32>
    %97 = vector.extract_strided_slice %89 {offsets = [0, 1], sizes = [256, 1], strides = [1, 1]} : vector<256x3xf32> to vector<256x1xf32>
    %cst_54 = arith.constant 31.9999676 : f32
    %98 = vector.broadcast %cst_54 : f32 to vector<256x1xf32>
    %99 = arith.mulf %97, %98 : vector<256x1xf32>
    %cst_55 = arith.constant 0.000000e+00 : f32
    %cst_56 = arith.constant 3.200000e+01 : f32
    %100 = vector.broadcast %cst_55 : f32 to vector<256x1xf32>
    %101 = arith.maximumf %100, %99 : vector<256x1xf32>
    %102 = vector.broadcast %cst_56 : f32 to vector<256x1xf32>
    %103 = arith.minimumf %102, %101 : vector<256x1xf32>
    %104 = vector.extract_strided_slice %89 {offsets = [0, 2], sizes = [256, 1], strides = [1, 1]} : vector<256x3xf32> to vector<256x1xf32>
    %cst_57 = arith.constant 31.9999676 : f32
    %105 = vector.broadcast %cst_57 : f32 to vector<256x1xf32>
    %106 = arith.mulf %104, %105 : vector<256x1xf32>
    %cst_58 = arith.constant 0.000000e+00 : f32
    %cst_59 = arith.constant 3.200000e+01 : f32
    %107 = vector.broadcast %cst_58 : f32 to vector<256x1xf32>
    %108 = arith.maximumf %107, %106 : vector<256x1xf32>
    %109 = vector.broadcast %cst_59 : f32 to vector<256x1xf32>
    %110 = arith.minimumf %109, %108 : vector<256x1xf32>
    %c0_60 = arith.constant 0 : index
    %c0_61 = arith.constant 0 : index
    %111 = vector.load %arg11[%c0_60, %c0_61] : memref<2x1089xf32, #tpu.memory_space<vmem>>, vector<1x1089xf32>
    %c1_62 = arith.constant 1 : index
    %c0_63 = arith.constant 0 : index
    %112 = vector.load %arg11[%c1_62, %c0_63] : memref<2x1089xf32, #tpu.memory_space<vmem>>, vector<1x1089xf32>
    %113 = vector.broadcast %110 : vector<256x1xf32> to vector<256x1089xf32>
    %114 = vector.broadcast %111 : vector<1x1089xf32> to vector<256x1089xf32>
    %115 = arith.subf %113, %114 : vector<256x1089xf32>
    %116 = math.absf %115 : vector<256x1089xf32>
    %cst_64 = arith.constant 1.000000e+00 : f32
    %117 = vector.broadcast %cst_64 : f32 to vector<256x1089xf32>
    %118 = arith.subf %117, %116 : vector<256x1089xf32>
    %cst_65 = arith.constant 0.000000e+00 : f32
    %119 = vector.broadcast %cst_65 : f32 to vector<256x1089xf32>
    %120 = arith.maximumf %118, %119 : vector<256x1089xf32>
    %121 = vector.broadcast %103 : vector<256x1xf32> to vector<256x1089xf32>
    %122 = vector.broadcast %112 : vector<1x1089xf32> to vector<256x1089xf32>
    %123 = arith.subf %121, %122 : vector<256x1089xf32>
    %124 = math.absf %123 : vector<256x1089xf32>
    %cst_66 = arith.constant 1.000000e+00 : f32
    %125 = vector.broadcast %cst_66 : f32 to vector<256x1089xf32>
    %126 = arith.subf %125, %124 : vector<256x1089xf32>
    %cst_67 = arith.constant 0.000000e+00 : f32
    %127 = vector.broadcast %cst_67 : f32 to vector<256x1089xf32>
    %128 = arith.maximumf %126, %127 : vector<256x1089xf32>
    %129 = arith.mulf %120, %128 : vector<256x1089xf32>
    %cst_68 = arith.constant dense<0.000000e+00> : vector<256x99xf32>
    %130 = tpu.matmul %129, %87, %cst_68 {dimension_numbers = #tpu.dot_dimension_numbers<[1], [0], [0], [1], [0, 0, 1, 1], [], []>} : vector<256x1089xf32>, vector<1089x99xf32>, vector<256x99xf32> -> vector<256x99xf32>
    %c0_69 = arith.constant 0 : index
    %c0_70 = arith.constant 0 : index
    %131 = vector.load %arg12[%c0_69, %c0_70] : memref<1x99xf32, #tpu.memory_space<vmem>>, vector<1x99xf32>
    %132 = vector.broadcast %96 : vector<256x1xf32> to vector<256x99xf32>
    %133 = vector.broadcast %131 : vector<1x99xf32> to vector<256x99xf32>
    %134 = arith.subf %132, %133 : vector<256x99xf32>
    %135 = math.absf %134 : vector<256x99xf32>
    %cst_71 = arith.constant 1.000000e+00 : f32
    %136 = vector.broadcast %cst_71 : f32 to vector<256x99xf32>
    %137 = arith.subf %136, %135 : vector<256x99xf32>
    %cst_72 = arith.constant 0.000000e+00 : f32
    %138 = vector.broadcast %cst_72 : f32 to vector<256x99xf32>
    %139 = arith.maximumf %137, %138 : vector<256x99xf32>
    %140 = arith.mulf %139, %130 : vector<256x99xf32>
    %c0_73 = arith.constant 0 : index
    %c0_74 = arith.constant 0 : index
    %141 = vector.load %arg13[%c0_73, %c0_74] : memref<99x3xf32, #tpu.memory_space<vmem>>, vector<99x3xf32>
    %cst_75 = arith.constant dense<0.000000e+00> : vector<256x3xf32>
    %142 = tpu.matmul %140, %141, %cst_75 {dimension_numbers = #tpu.dot_dimension_numbers<[1], [0], [0], [1], [0, 0, 1, 1], [], []>} : vector<256x99xf32>, vector<99x3xf32>, vector<256x3xf32> -> vector<256x3xf32>
    %c0_76 = arith.constant 0 : index
    %c0_77 = arith.constant 0 : index
    %c0_78 = arith.constant 0 : index
    %143 = vector.load %arg3[%c0_76, %c0_77, %c0_78] : memref<1x256x1xf32, #tpu.memory_space<vmem>>, vector<1x256x1xf32>
    %144 = vector.shape_cast %143 : vector<1x256x1xf32> to vector<256x1xf32>
    %145 = vector.broadcast %144 : vector<256x1xf32> to vector<256x3xf32>
    %146 = arith.mulf %142, %145 : vector<256x3xf32>
    %cst_79 = arith.constant 1.000000e+00 : f32
    %147 = vector.broadcast %cst_79 : f32 to vector<256x1xf32>
    %148 = arith.subf %147, %144 : vector<256x1xf32>
    %149 = vector.broadcast %148 : vector<256x1xf32> to vector<256x3xf32>
    %150 = arith.mulf %89, %149 : vector<256x3xf32>
    %151 = arith.addf %146, %150 : vector<256x3xf32>
    %152 = vector.shape_cast %151 : vector<256x3xf32> to vector<1x256x3xf32>
    %c0_80 = arith.constant 0 : index
    %c0_81 = arith.constant 0 : index
    %c0_82 = arith.constant 0 : index
    %153 = vector.load %arg14[%c0_80, %c0_81, %c0_82] : memref<1x256x3xf32, #tpu.memory_space<vmem>>, vector<1x256x3xf32>
    tpu.vector_store %arg14[%c0_80, %c0_81, %c0_82], %152 {strides = array<i32>} : memref<1x256x3xf32, #tpu.memory_space<vmem>>, vector<1x256x3xf32>,
    return
  }
  func.func @transform_0(%arg0: i32) -> (i32, i32, i32) {
    %c0_i32 = arith.constant 0 : i32
    %c0_i32_0 = arith.constant 0 : i32
    %c0_i32_1 = arith.constant 0 : i32
    return %arg0, %c0_i32, %c0_i32_0 : i32, i32, i32
  }
  func.func @transform_1(%arg0: i32) -> (i32, i32, i32) {
    %c0_i32 = arith.constant 0 : i32
    %c0_i32_0 = arith.constant 0 : i32
    %c0_i32_1 = arith.constant 0 : i32
    return %arg0, %c0_i32, %c0_i32_0 : i32, i32, i32
  }
  func.func @transform_2(%arg0: i32) -> (i32, i32, i32) {
    %c0_i32 = arith.constant 0 : i32
    %c0_i32_0 = arith.constant 0 : i32
    %c0_i32_1 = arith.constant 0 : i32
    return %arg0, %c0_i32, %c0_i32_0 : i32, i32, i32
  }
  func.func @transform_3(%arg0: i32) -> (i32, i32, i32) {
    %c0_i32 = arith.constant 0 : i32
    %c0_i32_0 = arith.constant 0 : i32
    %c0_i32_1 = arith.constant 0 : i32
    return %arg0, %c0_i32, %c0_i32_0 : i32, i32, i32
  }
  func.func @transform_4(%arg0: i32) -> (i32, i32) {
    %c0_i32 = arith.constant 0 : i32
    %c0_i32_0 = arith.constant 0 : i32
    %c0_i32_1 = arith.constant 0 : i32
    return %c0_i32, %c0_i32_0 : i32, i32
  }
  func.func @transform_5(%arg0: i32) -> (i32, i32) {
    %c0_i32 = arith.constant 0 : i32
    %c0_i32_0 = arith.constant 0 : i32
    %c0_i32_1 = arith.constant 0 : i32
    return %c0_i32, %c0_i32_0 : i32, i32
  }
  func.func @transform_6(%arg0: i32) -> (i32, i32) {
    %c0_i32 = arith.constant 0 : i32
    %c0_i32_0 = arith.constant 0 : i32
    %c0_i32_1 = arith.constant 0 : i32
    return %c0_i32, %c0_i32_0 : i32, i32
  }
  func.func @transform_7(%arg0: i32) -> (i32, i32, i32) {
    %c0_i32 = arith.constant 0 : i32
    %c0_i32_0 = arith.constant 0 : i32
    %c0_i32_1 = arith.constant 0 : i32
    %c0_i32_2 = arith.constant 0 : i32
    return %c0_i32, %c0_i32_0, %c0_i32_1 : i32, i32, i32
  }
  func.func @transform_8(%arg0: i32) -> (i32, i32) {
    %c0_i32 = arith.constant 0 : i32
    %c0_i32_0 = arith.constant 0 : i32
    %c0_i32_1 = arith.constant 0 : i32
    return %c0_i32, %c0_i32_0 : i32, i32
  }
  func.func @transform_9(%arg0: i32) -> (i32, i32, i32) {
    %c0_i32 = arith.constant 0 : i32
    %c0_i32_0 = arith.constant 0 : i32
    %c0_i32_1 = arith.constant 0 : i32
    %c0_i32_2 = arith.constant 0 : i32
    return %c0_i32, %c0_i32_0, %c0_i32_1 : i32, i32, i32
  }
  func.func @transform_10(%arg0: i32) -> (i32, i32) {
    %c0_i32 = arith.constant 0 : i32
    %c0_i32_0 = arith.constant 0 : i32
    %c0_i32_1 = arith.constant 0 : i32
    return %c0_i32, %c0_i32_0 : i32, i32
  }
  func.func @transform_11(%arg0: i32) -> (i32, i32) {
    %c0_i32 = arith.constant 0 : i32
    %c0_i32_0 = arith.constant 0 : i32
    %c0_i32_1 = arith.constant 0 : i32
    return %c0_i32, %c0_i32_0 : i32, i32
  }
  func.func @transform_12(%arg0: i32) -> (i32, i32) {
    %c0_i32 = arith.constant 0 : i32
    %c0_i32_0 = arith.constant 0 : i32
    %c0_i32_1 = arith.constant 0 : i32
    return %c0_i32, %c0_i32_0 : i32, i32
  }
  func.func @transform_13(%arg0: i32) -> (i32, i32, i32) {
    %c0_i32 = arith.constant 0 : i32
    %c0_i32_0 = arith.constant 0 : i32
    %c0_i32_1 = arith.constant 0 : i32
    return %arg0, %c0_i32, %c0_i32_0 : i32, i32, i32
  }
}

</mosaic_0001>

<bundles_post_ra>
// kernel: tpu_custom_call.1
= control target key start
LH: loop header
LB: loop body
LE: loop exit
PB: predicated region body
PF: predicated region fallthrough
CT: control target
= control target key end

     0   :  { %s11168_s25 = smov 0   ;;  %s17365_s0 = inlined_call_operand.vmem [shape: f32[2,64,64], index: 0, kind: input, shape index: {}]   ;;  %s17366_s1 = inlined_call_operand.vmem [shape: f32[2,1,256], index: 1, kind: input, shape index: {}]   ;;  %s17367_s2 = inlined_call_operand.vmem [shape: f32[2,256,1], index: 2, kind: input, shape index: {}]   ;;  %s17368_s3 = inlined_call_operand.vmem [shape: f32[2,256,3], index: 3, kind: input, shape index: {}]   ;;  %s17369_s4 = inlined_call_operand.vmem [shape: f32[64,256], index: 4, kind: input, shape index: {}]   ;;  %s17370_s5 = inlined_call_operand.vmem [shape: f32[1,256], index: 5, kind: input, shape index: {}]   ;;  %s17371_s6 = inlined_call_operand.vmem [shape: f32[256,64], index: 6, kind: input, shape index: {}]   ;;  %s17372_s7 = inlined_call_operand.vmem [shape: f32[3,256,6], index: 7, kind: input, shape index: {}]   ;;  %s17373_s8 = inlined_call_operand.vmem [shape: f32[1,6], index: 8, kind: input, shape index: {}]   ;;  %s17374_s9 = inlined_call_operand.vmem [shape: f32[6,1089,99], index: 9, kind: input, shape index: {}]   ;;  %s17375_s10 = inlined_call_operand.vmem [shape: f32[2,1089], index: 10, kind: input, shape index: {}]   ;;  %s17376_s11 = inlined_call_operand.vmem [shape: f32[1,99], index: 11, kind: input, shape index: {}]   ;;  %s17377_s12 = inlined_call_operand.vmem [shape: f32[99,3], index: 12, kind: input, shape index: {}]   ;;  %s17378_s13 = inlined_call_operand.vmem [shape: f32[2,256,3], index: 13, kind: output, shape index: {}]  }
   0x1 LB: > { %s9148_s26 = sadd.s32 4294967295, %s11088_s25   ;;  %p9152_p0 = scmp.ge.s32.totalorder %s11088_s25, 1  ;;  %s11088_s25 = sphi %s11168_s25, %s23_s25  }
   0x2   : > { %p416_p1 = scmp.lt.s32.totalorder %s11088_s25, 3 }
   0x4   : > { %p417_p2 = pnand %p9152_p0, %p416_p1 }
   0x6   : > { %420 = sbr.rel (%p417_p2) target bundleno = 2841 (0xb19), region = 72 }
   0xd   : > { %v689_v0 = vld [vmem:[%s17371_s6 + $0x80] sm:$0xff]  ;;  %v690_v1 = vld [vmem:[%s17371_s6 + $0x88] sm:$0xff]  ;;  %p474_p3 = scmp.lt.s32.totalorder %s9148_s26, 1  ;;  %v524_v3 = vlaneseq  ;;  %v691_v6 = vld [vmem:[%s17371_s6 + $0x90] sm:$0xff]  ;;  %v11090_v8 = vmov 0.0   ;;  %vm534_vm0 = vcmask 523264  }
   0xe   : > { %v673_v2 = vld [vmem:[%s17371_s6] sm:$0xff]  ;;  %v10378_v4 = vpack.c.bf16 %v690_v1, %v689_v0  ;;  %v674_v5 = vld [vmem:[%s17371_s6 + $0x8] sm:$0xff]  ;;  %v692_v7 = vld [vmem:[%s17371_s6 + $0x98] sm:$0xff]  ;;  %623 = vmatprep.mubr.f32.mxu0 %v11090_v8  ;;  %vm786_vm1 = vcmask 516096   ;;  %vm801_vm2 = vcmask 1040384   ;;  %vm803_vm3 = vcmask 1041408  }
   0xf   : > { %v10380_v9 = vpack.c.bf16 %v674_v5, %v673_v2  ;;  %v10382_v10 = vpack.c.bf16 %v692_v7, %v691_v6  ;;  %v675_v11 = vld [vmem:[%s17371_s6 + $0x10] sm:$0xff]  ;;  %v676_v12 = vld [vmem:[%s17371_s6 + $0x18] sm:$0xff]  ;;  %v693_v13 = vld [vmem:[%s17371_s6 + $0xa0] sm:$0xff]  ;;  %s17814_s26 = smov (!%p474_p3, %s9148_s26), 1  ;;  %v11209_v16 = vshrl.u32 %v524_v3, 7  ;;  %vm1201_vm4 = vcmask 40960  }
  0x10   : > { %10379 = vmatprep.subr.bf16.mxu1 %v10378_v4  ;;  %v694_v14 = vld [vmem:[%s17371_s6 + $0xa8] sm:$0xff]  ;;  %v10384_v15 = vpack.c.bf16 %v676_v12, %v675_v11  ;;  %v677_v18 = vld [vmem:[%s17371_s6 + $0x20] sm:$0xff]  ;;  %s9155_s19 = sshll.u32 %s17814_s26, 1  ;;  %v695_v20 = vld [vmem:[%s17371_s6 + $0xb0] sm:$0xff]  ;;  %s9992_s24 = sshll.u32 %s17814_s26, 6  ;;  %vm6685_vm5 = vcmask 531456  }
  0x11   : > { %10381 = vmatpush3.bf16.msra.mxu1 %v10380_v9  ;;  %v10386_v17 = vpack.c.bf16 %v694_v14, %v693_v13  ;;  %v678_v19 = vld [vmem:[%s17371_s6 + $0x28] sm:$0xff]  ;;  %v696_v21 = vld [vmem:[%s17371_s6 + $0xb8] sm:$0xff]  ;;  %s482_s28 = scalar_lea.vmem %s17366_s1, %s9155_s19  ;;  %v11228_v23 = vsub.s32 1, %v11209_v16  ;;  %v679_v25 = vld [vmem:[%s17371_s6 + $0x30] sm:$0xff]  ;;  %v3883_v29 = vsub.s32 2, %v11209_v16  ;;  %v3891_v34 = vsub.s32 4, %v11209_v16  ;;  %s478_s30 = scalar_lea.vmem %s17365_s0, %s9992_s24 }
  0x12   : > { %10383 = vmatprep.subr.bf16.mxu1 %v10382_v10  ;;  %v10388_v22 = vpack.c.bf16 %v678_v19, %v677_v18  ;;  %v10390_v24 = vpack.c.bf16 %v696_v21, %v695_v20  ;;  %v680_v26 = vld [vmem:[%s17371_s6 + $0x38] sm:$0xff]  ;;  %v697_v27 = vld [vmem:[%s17371_s6 + $0xc0] sm:$0xff]  ;;  %v698_v28 = vld [vmem:[%s17371_s6 + $0xc8] sm:$0xff]  ;;  %v3895_v35 = vsub.s32 5, %v11209_v16  ;;  %v3899_v41 = vsub.s32 6, %v11209_v16  ;;  %s11703_s15 = sshll.u32 %s17814_s26, 8 }
  0x13   : > { %v681_v30 = vld [vmem:[%s17371_s6 + $0x40] sm:$0xff]  ;;  %v682_v31 = vld [vmem:[%s17371_s6 + $0x48] sm:$0xff]  ;;  %v10392_v36 = vpack.c.bf16 %v680_v26, %v679_v25  ;;  %v699_v37 = vld [vmem:[%s17371_s6 + $0xd0] sm:$0xff]  ;;  %v3903_v42 = vsub.s32 7, %v11209_v16  ;;  %v10394_v43 = vpack.c.bf16 %v698_v28, %v697_v27  ;;  %s11709_s17 = scalar_lea.vmem %s17368_s3, %s11703_s15  ;;  %s16226_s20 = scalar_lea.vmem %s17367_s2, %s11703_s15  ;;  %vm8218_vm6 = vcmask 809984  }
  0x14   : > { %v11249_v32 = vld [vmem:[%s482_s28] sm:$0x3]  ;;  %v700_v38 = vld [vmem:[%s17371_s6 + $0xd8] sm:$0xff]  ;;  %v507_v47 = vld [vmem:[%s17369_s4 + $0x8] sm:$0xff]  ;;  %v10396_v57 = vpack.c.bf16 %v682_v31, %v681_v30  ;;  %vm8315_vm7 = vcmask 1042432   ;;  %s17234_s22 = scalar_lea.vmem %s17378_s13, %s11703_s15  ;;  %vm9024_vm8 = vcmask 23552  }
  0x15   : > { %10385 = vmatpush3.bf16.msra.mxu1 %v10384_v15  ;;  %v3704_v33 = vld [vmem:[%s17375_s10] ss:$2 sm:$0xff]  ;;  %v713_v39 = vrot.slane %v11249_v32, %v11228_v23  ;;  %v9921_v40 = vld [vmem:[%s17375_s10 + $0x1] ss:$2 sm:$0xff]  ;;  %v509_v48 = vld [vmem:[%s17369_s4 + $0x18] sm:$0xff]  ;;  %v10398_v63 = vpack.c.bf16 %v700_v38, %v699_v37 }
  0x16   : > { %10387 = vmatprep.subr.bf16.mxu1 %v10386_v17  ;;  %v11269_v44 = vrot.slane %v3704_v33, %v3883_v29  ;;  %v11271_v45 = vrot.slane %v3704_v33, %v3891_v34  ;;  %v11273_v46 = vrot.slane %v3704_v33, %v3895_v35  ;;  %v506_v49 = vld [vmem:[%s17369_s4] sm:$0xff]  ;;  %v11284_v50 = vrot.slane %v3704_v33, %v3899_v41  ;;  %v508_v52 = vld [vmem:[%s17369_s4 + $0x10] sm:$0xff]  ;;  %v511_v53 = vld [vmem:[%s17369_s4 + $0x28] sm:$0xff] }
  0x17   : > { %780 = vmatprep.mubr.f32.mxu1 %v713_v39  ;;  %v11286_v51 = vrot.slane %v3704_v33, %v3903_v42  ;;  %v513_v54 = vld [vmem:[%s17369_s4 + $0x38] sm:$0xff]  ;;  %v11297_v55 = vrot.slane %v9921_v40, %v3883_v29  ;;  %v11299_v56 = vrot.slane %v9921_v40, %v3891_v34  ;;  %v683_v58 = vld [vmem:[%s17371_s6 + $0x50] sm:$0xff]  ;;  %v11307_v60 = vrot.slane %v9921_v40, %v3895_v35  ;;  %v701_v0 = vld [vmem:[%s17371_s6 + $0xe0] sm:$0xff] }
  0x18   : > { %17554 = vst [vmem:[#allocation2_spill] sm:$0xff] %v11271_v45  ;;  %17555 = vst [vmem:[#allocation3_spill] sm:$0xff] %v11273_v46  ;;  %v684_v59 = vld [vmem:[%s17371_s6 + $0x58] sm:$0xff]  ;;  %v11309_v61 = vrot.slane %v9921_v40, %v3899_v41  ;;  %v11311_v62 = vrot.slane %v9921_v40, %v3903_v42  ;;  %v10362_v1 = vpack.c.bf16 %v509_v48, %v507_v47  ;;  %v510_v4 = vld [vmem:[%s17369_s4 + $0x20] sm:$0xff]  ;;  %v11369_v33 = vsub.s32 0, %v11209_v16 }
  0x19   : > { %10389 = vmatpush3.bf16.msra.mxu1 %v10388_v22  ;;  %17556 = vst [vmem:[#allocation4_spill] sm:$0xff] %v11284_v50  ;;  %17557 = vst [vmem:[#allocation5_spill] sm:$0xff] %v11286_v51  ;;  %v10364_v2 = vpack.c.bf16 %v508_v52, %v506_v49  ;;  %v10366_v3 = vpack.c.bf16 %v513_v54, %v511_v53  ;;  %v512_v5 = vld [vmem:[%s17369_s4 + $0x30] sm:$0xff]  ;;  %v702_v6 = vld [vmem:[%s17371_s6 + $0xe8] sm:$0xff]  ;;  %v10400_v10 = vpack.c.bf16 %v684_v59, %v683_v58 }
  0x1a   : > { %10391 = vmatprep.subr.bf16.mxu1 %v10390_v24  ;;  %17558 = vst [vmem:[#allocation6_spill] sm:$0xff] %v11299_v56  ;;  %17559 = vst [vmem:[#allocation7_spill] sm:$0xff] %v11307_v60  ;;  %v515_v7 = vld [vmem:[%s17369_s4 + $0x48] sm:$0xff]  ;;  %v517_v9 = vld [vmem:[%s17369_s4 + $0x58] sm:$0xff]  ;;  %10363 = vmatprep.subr.bf16.mxu0 %v10362_v1  ;;  %v10368_v13 = vpack.c.bf16 %v512_v5, %v510_v4  ;;  %v10402_v14 = vpack.c.bf16 %v702_v6, %v701_v0 }
  0x1b   : > { %17560 = vst [vmem:[#allocation8_spill] sm:$0xff] %v11309_v61  ;;  %17561 = vst [vmem:[#allocation9_spill] sm:$0xff] %v11311_v62  ;;  %v685_v11 = vld [vmem:[%s17371_s6 + $0x60] sm:$0xff]  ;;  %v686_v12 = vld [vmem:[%s17371_s6 + $0x68] sm:$0xff]  ;;  %10365 = vmatpush1.bf16.msra.mxu0 %v10364_v2  ;;  %v10370_v17 = vpack.c.bf16 %v517_v9, %v515_v7 }
  0x1c   : > { %v703_v15 = vld [vmem:[%s17371_s6 + $0xf0] sm:$0xff]  ;;  %10367 = vmatprep.subr.bf16.mxu0 %v10366_v3  ;;  %v514_v18 = vld [vmem:[%s17369_s4 + $0x40] sm:$0xff]  ;;  %v704_v20 = vld [vmem:[%s17371_s6 + $0xf8] sm:$0xff]  ;;  %v10404_v24 = vpack.c.bf16 %v686_v12, %v685_v11 }
  0x1d   : > { %10393 = vmatpush3.bf16.msra.mxu1 %v10392_v36  ;;  %v516_v19 = vld [vmem:[%s17369_s4 + $0x50] sm:$0xff]  ;;  %v519_v21 = vld [vmem:[%s17369_s4 + $0x68] sm:$0xff]  ;;  %v521_v22 = vld [vmem:[%s17369_s4 + $0x78] sm:$0xff]  ;;  %v10406_v27 = vpack.c.bf16 %v704_v20, %v703_v15  ;;  %v709_v36 = vrot.slane %v11249_v32, %v11369_v33 }
  0x1e   : > { %10395 = vmatprep.subr.bf16.mxu1 %v10394_v43  ;;  %v687_v25 = vld [vmem:[%s17371_s6 + $0x70] sm:$0xff]  ;;  %v10372_v26 = vpack.c.bf16 %v516_v19, %v514_v18  ;;  %v688_v28 = vld [vmem:[%s17371_s6 + $0x78] sm:$0xff]  ;;  %v10374_v29 = vpack.c.bf16 %v521_v22, %v519_v21  ;;  %v518_v30 = vld [vmem:[%s17369_s4 + $0x60] sm:$0xff] }
  0x1f   : > { %10369 = vmatpush1.bf16.msra.mxu0 %v10368_v13  ;;  %v520_v31 = vld [vmem:[%s17369_s4 + $0x70] sm:$0xff]  ;;  %v10408_v34 = vpack.c.bf16 %v688_v28, %v687_v25  ;;  %v498_v37 = vld [vmem:[%s478_s30] sm:$0xff]  ;;  %v499_v38 = vld [vmem:[%s478_s30 + $0x8] sm:$0xff] }
  0x20   : > { %10371 = vmatprep.subr.bf16.mxu0 %v10370_v17  ;;  %v10376_v35 = vpack.c.bf16 %v520_v31, %v518_v30  ;;  %v500_v39 = vld [vmem:[%s478_s30 + $0x10] sm:$0xff]  ;;  %v501_v32 = vld [vmem:[%s478_s30 + $0x18] sm:$0xff]  ;;  %v502_v40 = vld [vmem:[%s478_s30 + $0x20] sm:$0xff] }
  0x21   : > { %10397 = vmatpush3.bf16.msra.mxu1 %v10396_v57  ;;  %v503_v41 = vld [vmem:[%s478_s30 + $0x28] sm:$0xff]  ;;  %v504_v42 = vld [vmem:[%s478_s30 + $0x30] sm:$0xff]  ;;  %v505_v43 = vld [vmem:[%s478_s30 + $0x38] sm:$0xff] }
  0x22   : > { %10399 = vmatprep.subr.bf16.mxu1 %v10398_v63  ;;  %v522_v47 = vld [vmem:[%s17370_s5] sm:$0x3] }
  0x23   : > { %10373 = vmatpush1.bf16.msra.mxu0 %v10372_v26  ;;  %v531_v48 = vrot.slane %v522_v47, %v11228_v23  ;;  %v527_v49 = vrot.slane %v522_v47, %v11369_v33  ;;  %v881_v47 = vld [vmem:[%s17372_s7 + $0x8] sm:$0xff]  ;;  %v9238_v50 = vld [vmem:[%s17374_s9 + $0x460] sm:$0xff] }
  0x24   : > { %10375 = vmatprep.subr.bf16.mxu0 %v10374_v29 }
  0x25   : > { %10401 = vmatpush3.bf16.msra.mxu1 %v10400_v10 }
  0x26   : > { %10403 = vmatprep.subr.bf16.mxu1 %v10402_v14 }
  0x27   : > { %10377 = vmatpush1.bf16.msra.mxu0 %v10376_v35 }
  0x29   : > { %10405 = vmatpush3.bf16.msra.mxu1 %v10404_v24 }
  0x2a   : > { %10407 = vmatprep.subr.bf16.mxu1 %v10406_v27  ;;  %9162 = vmatmul.mubr.msk.f32.vlgmr.msra.gmra.mrb[0].mxu0 %vm534_vm0, %v498_v37 }
  0x2b   : > { %629 = vmatprep.mubr.f32.mxu0 %v11090_v8 }
  0x2d   : > { %10409 = vmatpush3.bf16.msra.mxu1 %v10408_v34 }
  0x2e   : > { %9163 = vmatmul.mubr.msk.f32.gmra.mrb[2].mxu0 %vm534_vm0, %v499_v38 }
  0x2f   : > { %635 = vmatprep.mubr.f32.mxu0 %v11090_v8 }
  0x30   : > { %781 = vmatmul.mubr.f32.vlgmr.msra.gmra.mrb[0].mxu1 %v709_v36 }
  0x32   : > { %9164 = vmatmul.mubr.msk.f32.gmra.mrb[4].mxu0 %vm534_vm0, %v500_v39 }
  0x33   : > { %641 = vmatprep.mubr.f32.mxu0 %v11090_v8 }
  0x36   : > { %9165 = vmatmul.mubr.msk.f32.gmra.mrb[6].mxu0 %vm534_vm0, %v501_v32 }
  0x37   : > { %647 = vmatprep.mubr.f32.mxu0 %v11090_v8 }
  0x3a   : > { %9166 = vmatmul.mubr.msk.f32.gmra.mrb[8].mxu0 %vm534_vm0, %v502_v40  ;;  %v896_v40 = vld [vmem:[%s17372_s7 + $0x80] sm:$0xff] }
  0x3b   : > { %653 = vmatprep.mubr.f32.mxu0 %v11090_v8 }
  0x3e   : > { %9167 = vmatmul.mubr.msk.f32.gmra.mrb[10].mxu0 %vm534_vm0, %v503_v41  ;;  %v897_v41 = vld [vmem:[%s17372_s7 + $0x88] sm:$0xff] }
  0x3f   : > { %659 = vmatprep.mubr.f32.mxu0 %v11090_v8 }
  0x42   : > { %9168 = vmatmul.mubr.msk.f32.gmra.mrb[12].mxu0 %vm534_vm0, %v504_v42  ;;  %v880_v42 = vld [vmem:[%s17372_s7] sm:$0xff] }
  0x43   : > { %665 = vmatprep.mubr.f32.mxu0 %v11090_v8 }
  0x46   : > { %9169 = vmatmul.mubr.msk.f32.gmra.mrb[14].mxu0 %vm534_vm0, %v505_v43  ;;  %v10426_v43 = vpack.c.bf16 %v897_v41, %v896_v40 }
  0x47   : > { %872 = vmatprep.mubr.f32.mxu0 %v11090_v8 }
  0x48   : > { %10427 = vmatprep.subr.bf16.mxu1 %v10426_v43 }
  0xfd   : > { %v625_v53 = vpop.f32.mrb[0].mxu0 }
  0xfe   : > { %v627_v57 = vpop.f32.mrb[1].mxu0  ;;  %v626_v63 = vadd.f32 %v625_v53, %v527_v49 }
  0xff   : > { %v628_v59 = vadd.f32 %v627_v57, %v531_v48  ;;  %v899_v57 = vld [vmem:[%s17372_s7 + $0x98] sm:$0xff] }
 0x101   : > { %v631_v8 = vpop.f32.mrb[2].mxu0 }
 0x102   : > { %v632_v1 = vadd.f32 %v631_v8, %v527_v49  ;;  %v633_v2 = vpop.f32.mrb[3].mxu0 }
 0x103   : > { %v10028_v52 = vpop.f32.mrb[0].mxu1  ;;  %v634_v3 = vadd.f32 %v633_v2, %v531_v48  ;;  %v901_v2 = vld [vmem:[%s17372_s7 + $0xa8] sm:$0xff] }
 0x104   : > { %v10029_v54 = vpop.f32.mrb[1].mxu1  ;;  %v10412_v4 = vpack.c.bf16 %v632_v1, %v626_v63  ;;  %v882_v63 = vld [vmem:[%s17372_s7 + $0x10] sm:$0xff]  ;;  %v900_v1 = vld [vmem:[%s17372_s7 + $0xa0] sm:$0xff] }
 0x105   : > { %v11397_v58 = vadd.f32 %v10029_v54, %v10028_v52  ;;  %v10410_v5 = vpack.c.bf16 %v634_v3, %v628_v59  ;;  %v637_v6 = vpop.f32.mrb[4].mxu0  ;;  %v10428_v52 = vpack.c.bf16 %v881_v47, %v880_v42  ;;  %v898_v54 = vld [vmem:[%s17372_s7 + $0x90] sm:$0xff]  ;;  %v10434_v3 = vpack.c.bf16 %v901_v2, %v900_v1 }
 0x106   : > { %v639_v7 = vpop.f32.mrb[5].mxu0  ;;  %v638_v10 = vadd.f32 %v637_v6, %v527_v49  ;;  %v10430_v59 = vpack.c.bf16 %v899_v57, %v898_v54  ;;  %v902_v6 = vld [vmem:[%s17372_s7 + $0xb0] sm:$0xff]  ;;  %v9171_v54 = vld [vmem:[%s17372_s7 + $0x100] sm:$0xff]  ;;  %v9172_v57 = vld [vmem:[%s17372_s7 + $0x108] sm:$0xff] }
 0x107   : > { %v787_v0 = vsel %vm786_vm1, %v11397_v58, 0.0  ;;  %10411 = vmatprep.subr.bf16.mxu0 %v10410_v5  ;;  %v640_v9 = vadd.f32 %v639_v7, %v531_v48  ;;  %10429 = vmatpush3.bf16.msra.mxu1 %v10428_v52  ;;  %v885_v5 = vld [vmem:[%s17372_s7 + $0x28] sm:$0xff]  ;;  %v903_v7 = vld [vmem:[%s17372_s7 + $0xb8] sm:$0xff]  ;;  %v10460_v1 = vpack.c.bf16 %v9172_v57, %v9171_v54  ;;  %v9203_v57 = vld [vmem:[%s17372_s7 + $0x200] sm:$0xff] }
 0x108   : > { %788 = vadd.xlane.f32.xlu0 %v787_v0  ;;  %10413 = vmatpush1.bf16.msra.mxu0 %v10412_v4  ;;  %v883_v0 = vld [vmem:[%s17372_s7 + $0x18] sm:$0xff]  ;;  %v884_v4 = vld [vmem:[%s17372_s7 + $0x20] sm:$0xff] }
 0x109   : > { %v643_v11 = vpop.f32.mrb[6].mxu0  ;;  %v10432_v8 = vpack.c.bf16 %v883_v0, %v882_v63  ;;  %10431 = vmatprep.subr.bf16.mxu1 %v10430_v59  ;;  %v9189_v59 = vld [vmem:[%s17372_s7 + $0x190] sm:$0xff]  ;;  %v9190_v63 = vld [vmem:[%s17372_s7 + $0x198] sm:$0xff] }
 0x10a   : > { %v644_v12 = vadd.f32 %v643_v11, %v527_v49  ;;  %v645_v13 = vpop.f32.mrb[7].mxu0  ;;  %v886_v11 = vld [vmem:[%s17372_s7 + $0x30] sm:$0xff] }
 0x10b   : > { %v646_v14 = vadd.f32 %v645_v13, %v531_v48  ;;  %10433 = vmatpush3.bf16.msra.mxu1 %v10432_v8  ;;  %v904_v13 = vld [vmem:[%s17372_s7 + $0xc0] sm:$0xff] }
 0x10c   : > { %v10416_v15 = vpack.c.bf16 %v644_v12, %v638_v10  ;;  %10435 = vmatprep.subr.bf16.mxu1 %v10434_v3  ;;  %v10438_v10 = vpack.c.bf16 %v903_v7, %v902_v6  ;;  %v887_v12 = vld [vmem:[%s17372_s7 + $0x38] sm:$0xff]  ;;  %v10462_v3 = vpack.c.bf16 %v9190_v63, %v9189_v59  ;;  %v9191_v7 = vld [vmem:[%s17372_s7 + $0x1a0] sm:$0xff]  ;;  %v9204_v59 = vld [vmem:[%s17372_s7 + $0x208] sm:$0xff] }
 0x10d   : > { %v10414_v17 = vpack.c.bf16 %v646_v14, %v640_v9  ;;  %v649_v18 = vpop.f32.mrb[8].mxu0  ;;  %v10436_v9 = vpack.c.bf16 %v885_v5, %v884_v4  ;;  %v905_v14 = vld [vmem:[%s17372_s7 + $0xc8] sm:$0xff]  ;;  %v9173_v4 = vld [vmem:[%s17372_s7 + $0x110] sm:$0xff]  ;;  %v9174_v5 = vld [vmem:[%s17372_s7 + $0x118] sm:$0xff] }
 0x10e   : > { %v651_v19 = vpop.f32.mrb[9].mxu0  ;;  %v650_v21 = vadd.f32 %v649_v18, %v527_v49  ;;  %v888_v18 = vld [vmem:[%s17372_s7 + $0x40] sm:$0xff]  ;;  %v9221_v63 = vld [vmem:[%s17372_s7 + $0x290] sm:$0xff] }
 0x10f   : > { %10415 = vmatprep.subr.bf16.mxu0 %v10414_v17  ;;  %v652_v20 = vadd.f32 %v651_v19, %v531_v48  ;;  %10437 = vmatpush3.bf16.msra.mxu1 %v10436_v9  ;;  %v10442_v17 = vpack.c.bf16 %v905_v14, %v904_v13  ;;  %v889_v19 = vld [vmem:[%s17372_s7 + $0x48] sm:$0xff]  ;;  %v10464_v9 = vpack.c.bf16 %v9174_v5, %v9173_v4  ;;  %v9193_v13 = vld [vmem:[%s17372_s7 + $0x1b0] sm:$0xff]  ;;  %v9194_v14 = vld [vmem:[%s17372_s7 + $0x1b8] sm:$0xff] }
 0x110   : > { %10417 = vmatpush1.bf16.msra.mxu0 %v10416_v15  ;;  %v10440_v15 = vpack.c.bf16 %v887_v12, %v886_v11  ;;  %10439 = vmatprep.subr.bf16.mxu1 %v10438_v10  ;;  %v9175_v11 = vld [vmem:[%s17372_s7 + $0x120] sm:$0xff]  ;;  %v9176_v12 = vld [vmem:[%s17372_s7 + $0x128] sm:$0xff]  ;;  %v9206_v4 = vld [vmem:[%s17372_s7 + $0x218] sm:$0xff] }
 0x111   : > { %v655_v22 = vpop.f32.mrb[10].mxu0 }
 0x112   : > { %v656_v24 = vadd.f32 %v655_v22, %v527_v49  ;;  %v657_v25 = vpop.f32.mrb[11].mxu0  ;;  %v10444_v22 = vpack.c.bf16 %v889_v19, %v888_v18  ;;  %v9177_v18 = vld [vmem:[%s17372_s7 + $0x130] sm:$0xff]  ;;  %v9178_v19 = vld [vmem:[%s17372_s7 + $0x138] sm:$0xff] }
 0x113   : > { %v658_v26 = vadd.f32 %v657_v25, %v531_v48  ;;  %10441 = vmatpush3.bf16.msra.mxu1 %v10440_v15  ;;  %v890_v25 = vld [vmem:[%s17372_s7 + $0x50] sm:$0xff]  ;;  %v10468_v15 = vpack.c.bf16 %v9176_v12, %v9175_v11 }
 0x114   : > { %v10420_v27 = vpack.c.bf16 %v656_v24, %v650_v21  ;;  %v907_v21 = vld [vmem:[%s17372_s7 + $0xd8] sm:$0xff]  ;;  %10443 = vmatprep.subr.bf16.mxu1 %v10442_v17  ;;  %v10470_v17 = vpack.c.bf16 %v9194_v14, %v9193_v13  ;;  %v9207_v13 = vld [vmem:[%s17372_s7 + $0x220] sm:$0xff]  ;;  %v9208_v14 = vld [vmem:[%s17372_s7 + $0x228] sm:$0xff] }
 0x115   : > { %v10418_v28 = vpack.c.bf16 %v658_v26, %v652_v20  ;;  %v661_v29 = vpop.f32.mrb[12].mxu0  ;;  %v906_v20 = vld [vmem:[%s17372_s7 + $0xd0] sm:$0xff]  ;;  %v891_v26 = vld [vmem:[%s17372_s7 + $0x58] sm:$0xff] }
 0x116   : > { %v663_v30 = vpop.f32.mrb[13].mxu0  ;;  %v662_v34 = vadd.f32 %v661_v29, %v527_v49  ;;  %v10446_v24 = vpack.c.bf16 %v907_v21, %v906_v20  ;;  %v10448_v29 = vpack.c.bf16 %v891_v26, %v890_v25  ;;  %v9195_v20 = vld [vmem:[%s17372_s7 + $0x1c0] sm:$0xff]  ;;  %v9196_v21 = vld [vmem:[%s17372_s7 + $0x1c8] sm:$0xff] }
 0x117   : > { %10419 = vmatprep.subr.bf16.mxu0 %v10418_v28  ;;  %v664_v31 = vadd.f32 %v663_v30, %v531_v48  ;;  %v909_v28 = vld [vmem:[%s17372_s7 + $0xe8] sm:$0xff]  ;;  %10445 = vmatpush3.bf16.msra.mxu1 %v10444_v22  ;;  %v10472_v22 = vpack.c.bf16 %v9178_v19, %v9177_v18  ;;  %v9179_v25 = vld [vmem:[%s17372_s7 + $0x140] sm:$0xff]  ;;  %v10500_v18 = vpack.c.bf16 %v9208_v14, %v9207_v13 }
 0x118   : > { %10421 = vmatpush1.bf16.msra.mxu0 %v10420_v27  ;;  %v908_v27 = vld [vmem:[%s17372_s7 + $0xe0] sm:$0xff]  ;;  %10447 = vmatprep.subr.bf16.mxu1 %v10446_v24  ;;  %v10474_v24 = vpack.c.bf16 %v9196_v21, %v9195_v20  ;;  %v9180_v26 = vld [vmem:[%s17372_s7 + $0x148] sm:$0xff]  ;;  %v9209_v20 = vld [vmem:[%s17372_s7 + $0x230] sm:$0xff] }
 0x119   : > { %v667_v35 = vpop.f32.mrb[14].mxu0  ;;  %v10450_v30 = vpack.c.bf16 %v909_v28, %v908_v27  ;;  %v9197_v27 = vld [vmem:[%s17372_s7 + $0x1d0] sm:$0xff]  ;;  %v9198_v28 = vld [vmem:[%s17372_s7 + $0x1d8] sm:$0xff] }
 0x11a   : > { %v668_v36 = vadd.f32 %v667_v35, %v527_v49  ;;  %v669_v37 = vpop.f32.mrb[15].mxu0  ;;  %v9188_v49 = vld [vmem:[%s17372_s7 + $0x188] sm:$0xff]  ;;  %v910_v35 = vld [vmem:[%s17372_s7 + $0xf0] sm:$0xff]  ;;  %v9210_v21 = vld [vmem:[%s17372_s7 + $0x238] sm:$0xff] }
 0x11b   : > { %v670_v38 = vadd.f32 %v669_v37, %v531_v48  ;;  %v9187_v48 = vld [vmem:[%s17372_s7 + $0x180] sm:$0xff]  ;;  %10449 = vmatpush3.bf16.msra.mxu1 %v10448_v29  ;;  %v10476_v29 = vpack.c.bf16 %v9180_v26, %v9179_v25  ;;  %v10504_v25 = vpack.c.bf16 %v9210_v21, %v9209_v20 }
 0x11c   : > { %v10424_v39 = vpack.c.bf16 %v668_v36, %v662_v34  ;;  %v10458_v53 = vpack.c.bf16 %v9188_v49, %v9187_v48  ;;  %v893_v34 = vld [vmem:[%s17372_s7 + $0x68] sm:$0xff]  ;;  %v911_v36 = vld [vmem:[%s17372_s7 + $0xf8] sm:$0xff]  ;;  %10451 = vmatprep.subr.bf16.mxu1 %v10450_v30  ;;  %v794_v49 = vsub.f32 1.0, %v11397_v58  ;;  %v10478_v30 = vpack.c.bf16 %v9198_v28, %v9197_v27  ;;  %v9211_v27 = vld [vmem:[%s17372_s7 + $0x240] sm:$0xff] }
 0x11d   : > { %v10422_v32 = vpack.c.bf16 %v670_v38, %v664_v31  ;;  %v892_v31 = vld [vmem:[%s17372_s7 + $0x60] sm:$0xff]  ;;  %v10454_v38 = vpack.c.bf16 %v911_v36, %v910_v35  ;;  %v9200_v36 = vld [vmem:[%s17372_s7 + $0x1e8] sm:$0xff] }
 0x11e   : > { %v10452_v37 = vpack.c.bf16 %v893_v34, %v892_v31  ;;  %v9181_v31 = vld [vmem:[%s17372_s7 + $0x150] sm:$0xff]  ;;  %v9182_v34 = vld [vmem:[%s17372_s7 + $0x158] sm:$0xff]  ;;  %v9199_v35 = vld [vmem:[%s17372_s7 + $0x1e0] sm:$0xff] }
 0x11f   : > { %10423 = vmatprep.subr.bf16.mxu0 %v10422_v32  ;;  %v895_v32 = vld [vmem:[%s17372_s7 + $0x78] sm:$0xff]  ;;  %v9212_v28 = vld [vmem:[%s17372_s7 + $0x248] sm:$0xff] }
 0x120   : > { %10425 = vmatpush1.bf16.msra.mxu0 %v10424_v39  ;;  %v894_v39 = vld [vmem:[%s17372_s7 + $0x70] sm:$0xff]  ;;  %10453 = vmatpush3.bf16.msra.mxu1 %v10452_v37  ;;  %v10480_v37 = vpack.c.bf16 %v9182_v34, %v9181_v31  ;;  %v10508_v31 = vpack.c.bf16 %v9212_v28, %v9211_v27 }
 0x121   : > { %10459 = vmatprep.subr.bf16.mxu0 %v10458_v53  ;;  %v10456_v40 = vpack.c.bf16 %v895_v32, %v894_v39  ;;  %10455 = vmatprep.subr.bf16.mxu1 %v10454_v38  ;;  %v10482_v38 = vpack.c.bf16 %v9200_v36, %v9199_v35  ;;  %v9183_v39 = vld [vmem:[%s17372_s7 + $0x160] sm:$0xff]  ;;  %v9184_v32 = vld [vmem:[%s17372_s7 + $0x168] sm:$0xff]  ;;  %v9213_v35 = vld [vmem:[%s17372_s7 + $0x250] sm:$0xff] }
 0x122   : > { %v9214_v36 = vld [vmem:[%s17372_s7 + $0x258] sm:$0xff] }
 0x124   : > { %10457 = vmatpush3.bf16.msra.mxu1 %v10456_v40  ;;  %v10484_v40 = vpack.c.bf16 %v9184_v32, %v9183_v39  ;;  %v10512_v39 = vpack.c.bf16 %v9214_v36, %v9213_v35  ;;  %v3582_v35 = vld [vmem:[%s11709_s17 + $0x30] sm:$0xff] }
 0x195   : > { %v789_v41 = vpop.xlane.xlu0 %788 }
 0x196   : > { %v790_v42 = vsub.f32 64.0, %v789_v41  ;;  %v791_v43 = vadd.f32 1e-06, %v789_v41  ;;  %v9201_v41 = vld [vmem:[%s17372_s7 + $0x1f0] sm:$0xff] }
 0x198   : > { %v795_v47 = vadd.f32 1e-06, %v790_v42  ;;  %11008 = vrcp.f32 %v791_v43  ;;  %v9202_v42 = vld [vmem:[%s17372_s7 + $0x1f8] sm:$0xff] }
 0x199   : > { %v10486_v43 = vpack.c.bf16 %v9202_v42, %v9201_v41  ;;  %v9216_v41 = vld [vmem:[%s17372_s7 + $0x268] sm:$0xff]  ;;  %v9233_v42 = vld [vmem:[%s17372_s7 + $0x2f0] sm:$0xff] }
 0x19a   : > { %11010 = vrcp.f32 %v795_v47  ;;  %v9185_v47 = vld [vmem:[%s17372_s7 + $0x170] sm:$0xff] }
 0x1a2   : > { %v11009_v48 = vpop.eup %11008 }
 0x1a3   : > { %v793_v0 = vmul.f32 %v11009_v48, %v11397_v58  ;;  %v9192_v58 = vld [vmem:[%s17372_s7 + $0x1a8] sm:$0xff]  ;;  %v9186_v48 = vld [vmem:[%s17372_s7 + $0x178] sm:$0xff] }
 0x1a4   : > { %v11011_v52 = vpop.eup %11010  ;;  %v10466_v10 = vpack.c.bf16 %v9192_v58, %v9191_v7  ;;  %v9223_v58 = vld [vmem:[%s17372_s7 + $0x2a0] sm:$0xff] }
 0x1a5   : > { %v797_v53 = vmul.f32 %v11011_v52, %v794_v49  ;;  %v9219_v49 = vld [vmem:[%s17372_s7 + $0x280] sm:$0xff]  ;;  %v10488_v52 = vpack.c.bf16 %v9186_v48, %v9185_v47 }
 0x1a7   : > { %v799_v8 = vrot.slane %v797_v53, 7  ;;  %v9220_v53 = vld [vmem:[%s17372_s7 + $0x288] sm:$0xff] }
 0x1a8   : > { %v10490_v54 = vpack.c.bf16 %v9220_v53, %v9219_v49  ;;  %v9217_v49 = vld [vmem:[%s17372_s7 + $0x270] sm:$0xff] }
 0x1a9   : > { %v802_v2 = vsel %vm801_vm2, %v793_v0, %v799_v8  ;;  %v9222_v0 = vld [vmem:[%s17372_s7 + $0x298] sm:$0xff] }
 0x1aa   : > { %v804_v6 = vsel %vm803_vm3, %v802_v2, 0.015625  ;;  %10491 = vmatprep.subr.bf16.mxu1 %v10490_v54  ;;  %v10494_v7 = vpack.c.bf16 %v9222_v0, %v9221_v63 }
 0x1ab   : > { %9170 = vmatmul.mubr.msk.f32.vlgmr.msra.gmra.mrb[16].mxu0 %vm534_vm0, %v804_v6 }
 0x1ac   : > { %10461 = vmatpush3.bf16.msra.mxu0 %v10460_v1  ;;  %v10492_v1 = vpack.c.bf16 %v9204_v59, %v9203_v57  ;;  %v879_v59 = vld [vmem:[%s17373_s8] sm:$0x1] }
 0x1ad   : > { %10463 = vmatprep.subr.bf16.mxu0 %v10462_v3  ;;  %v9205_v3 = vld [vmem:[%s17372_s7 + $0x210] sm:$0xff] }
 0x1ae   : > { %v10496_v11 = vpack.c.bf16 %v9206_v4, %v9205_v3 }
 0x1b0   : > { %10465 = vmatpush3.bf16.msra.mxu0 %v10464_v9  ;;  %v9224_v9 = vld [vmem:[%s17372_s7 + $0x2a8] sm:$0xff] }
 0x1b1   : > { %10467 = vmatprep.subr.bf16.mxu0 %v10466_v10  ;;  %v10498_v12 = vpack.c.bf16 %v9224_v9, %v9223_v58 }
 0x1b4   : > { %10469 = vmatpush3.bf16.msra.mxu0 %v10468_v15  ;;  %v9225_v15 = vld [vmem:[%s17372_s7 + $0x2b0] sm:$0xff] }
 0x1b5   : > { %10471 = vmatprep.subr.bf16.mxu0 %v10470_v17  ;;  %v9226_v17 = vld [vmem:[%s17372_s7 + $0x2b8] sm:$0xff] }
 0x1b6   : > { %v10502_v19 = vpack.c.bf16 %v9226_v17, %v9225_v15  ;;  %v17389_v15 = vmov 1   ;;  %v17379_v17 = vmov 0  }
 0x1b7   : > { %10963 = vset.pattern.permute.xlu0 %v17389_v15  ;;  %10962 = vset.pattern.permute.xlu1 %v17379_v17  ;;  %v9237_v17 = vld [vmem:[%s17374_s9 + $0x458] sm:$0xff] }
 0x1b8   : > { %10473 = vmatpush3.bf16.msra.mxu0 %v10472_v22  ;;  %v9227_v22 = vld [vmem:[%s17372_s7 + $0x2c0] sm:$0xff] }
 0x1b9   : > { %10475 = vmatprep.subr.bf16.mxu0 %v10474_v24  ;;  %v9228_v24 = vld [vmem:[%s17372_s7 + $0x2c8] sm:$0xff] }
 0x1ba   : > { %v10506_v26 = vpack.c.bf16 %v9228_v24, %v9227_v22 }
 0x1bc   : > { %10477 = vmatpush3.bf16.msra.mxu0 %v10476_v29  ;;  %v9229_v29 = vld [vmem:[%s17372_s7 + $0x2d0] sm:$0xff] }
 0x1bd   : > { %10479 = vmatprep.subr.bf16.mxu0 %v10478_v30  ;;  %v9230_v30 = vld [vmem:[%s17372_s7 + $0x2d8] sm:$0xff] }
 0x1be   : > { %v10510_v34 = vpack.c.bf16 %v9230_v30, %v9229_v29  ;;  %v3581_v29 = vld [vmem:[%s11709_s17 + $0x28] sm:$0xff] }
 0x1c0   : > { %10481 = vmatpush3.bf16.msra.mxu0 %v10480_v37  ;;  %v9231_v37 = vld [vmem:[%s17372_s7 + $0x2e0] sm:$0xff] }
 0x1c1   : > { %10483 = vmatprep.subr.bf16.mxu0 %v10482_v38  ;;  %v9232_v38 = vld [vmem:[%s17372_s7 + $0x2e8] sm:$0xff] }
 0x1c2   : > { %v10514_v32 = vpack.c.bf16 %v9232_v38, %v9231_v37  ;;  %v3585_v38 = vld [vmem:[%s11709_s17 + $0x48] sm:$0xff] }
 0x1c4   : > { %10485 = vmatpush3.bf16.msra.mxu0 %v10484_v40  ;;  %v9215_v40 = vld [vmem:[%s17372_s7 + $0x260] sm:$0xff] }
 0x1c5   : > { %10487 = vmatprep.subr.bf16.mxu0 %v10486_v43  ;;  %v9234_v43 = vld [vmem:[%s17372_s7 + $0x2f8] sm:$0xff]  ;;  %v10516_v47 = vpack.c.bf16 %v9216_v41, %v9215_v40  ;;  %v3576_v40 = vld [vmem:[%s11709_s17] sm:$0xff]  ;;  %v3617_v41 = vmul.f32 31.999968, %v3585_v38 }
 0x1c6   : > { %v10518_v48 = vpack.c.bf16 %v9234_v43, %v9233_v42 }
 0x1c8   : > { %10489 = vmatpush3.bf16.msra.mxu0 %v10488_v52  ;;  %v9218_v52 = vld [vmem:[%s17372_s7 + $0x278] sm:$0xff] }
 0x1c9   : > { %v10520_v53 = vpack.c.bf16 %v9218_v52, %v9217_v49  ;;  %v3584_v49 = vld [vmem:[%s11709_s17 + $0x40] sm:$0xff]  ;;  %v3649_v52 = vmax.f32 %v3617_v41, 0.0 }
 0x27e   : > { %v11614_v8 = vpop.f32.mrb[16].mxu0 }
 0x27f   : > { %v876_v2 = vpop.f32.mrb[17].mxu0  ;;  %v1018_v10 = vrot.slane %v11614_v8, 1  ;;  %v1126_v54 = vrot.slane %v11614_v8, 2 }
 0x280   : > { %v1019_v5 = vrot.slane %v876_v2, 1  ;;  %v1127_v6 = vrot.slane %v876_v2, 2  ;;  %976 = vmatprep.mubr.f32.mxu1 %v876_v2 }
 0x281   : > { %977 = vmatmul.mubr.f32.vlgmr.msra.gmra.mrb[2].mxu1 %v11614_v8 }
 0x282   : > { %10493 = vmatpush3.bf16.msra.mxu1 %v10492_v1  ;;  %1086 = vmatprep.mubr.f32.mxu0 %v1019_v5 }
 0x283   : > { %1194 = vmatprep.mubr.f32.mxu1 %v1127_v6  ;;  %1087 = vmatmul.mubr.f32.vlgmr.msra.gmra.mrb[18].mxu0 %v1018_v10 }
 0x284   : > { %10495 = vmatprep.subr.bf16.mxu1 %v10494_v7 }
 0x286   : > { %10497 = vmatpush3.bf16.msra.mxu1 %v10496_v11 }
 0x287   : > { %10499 = vmatprep.subr.bf16.mxu1 %v10498_v12 }
 0x28a   : > { %10501 = vmatpush3.bf16.msra.mxu1 %v10500_v18 }
 0x28b   : > { %10503 = vmatprep.subr.bf16.mxu1 %v10502_v19  ;;  %v3579_v19 = vld [vmem:[%s11709_s17 + $0x18] sm:$0xff] }
 0x28c   : > { %v3611_v20 = vmul.f32 31.999968, %v3579_v19  ;;  %v3591_v19 = vld [vmem:[%s11709_s17 + $0x78] sm:$0xff] }
 0x28e   : > { %10505 = vmatpush3.bf16.msra.mxu1 %v10504_v25  ;;  %v3643_v24 = vmax.f32 %v3611_v20, 0.0  ;;  %v3578_v25 = vld [vmem:[%s11709_s17 + $0x10] sm:$0xff] }
 0x28f   : > { %10507 = vmatprep.subr.bf16.mxu1 %v10506_v26  ;;  %v3610_v27 = vmul.f32 31.999968, %v3578_v25  ;;  %v3593_v25 = vld [vmem:[%s11709_s17 + $0x88] sm:$0xff] }
 0x290   : > { %v11714_v28 = vmin.f32 %v3643_v24, 32.0  ;;  %v3580_v24 = vld [vmem:[%s11709_s17 + $0x20] sm:$0xff] }
 0x291   : > { %v3642_v30 = vmax.f32 %v3610_v27, 0.0 }
 0x292   : > { %10509 = vmatpush3.bf16.msra.mxu1 %v10508_v31  ;;  %v3613_v31 = vmul.f32 31.999968, %v3581_v29  ;;  %v3612_v29 = vmul.f32 31.999968, %v3580_v24 }
 0x293   : > { %10511 = vmatprep.subr.bf16.mxu1 %v10510_v34  ;;  %v17383_v34 = vmov 2   ;;  %v11720_v36 = vmin.f32 %v3642_v30, 32.0  ;;  %v3625_v30 = vmul.f32 31.999968, %v3593_v25 }
 0x294   : > { %v3645_v37 = vmax.f32 %v3613_v31, 0.0  ;;  %v3594_v31 = vld [vmem:[%s11709_s17 + $0x90] sm:$0xff] }
 0x295   : > { %17562 = vst [vmem:[#allocation10_spill] sm:$0xff] %v11720_v36  ;;  %v3657_v38 = vmax.f32 %v3625_v30, 0.0 }
 0x296   : > { %10513 = vmatpush3.bf16.msra.mxu1 %v10512_v39  ;;  %v3614_v39 = vmul.f32 31.999968, %v3582_v35  ;;  %v11726_v42 = vmin.f32 %v3645_v37, 32.0  ;;  %v3644_v37 = vmax.f32 %v3612_v29, 0.0 }
 0x297   : > { %10515 = vmatprep.subr.bf16.mxu1 %v10514_v32  ;;  %v11094_v32 = vmov 3   ;;  %v11784_v41 = vmin.f32 %v3657_v38, 32.0 }
 0x298   : > { %v3646_v43 = vmax.f32 %v3614_v39, 0.0  ;;  %v3626_v39 = vmul.f32 31.999968, %v3594_v31 }
 0x299   : > { %17572 = vst [vmem:[#allocation20_spill] sm:$0xff] %v11784_v41 }
 0x29a   : > { %10517 = vmatpush3.bf16.msra.mxu1 %v10516_v47  ;;  %v3608_v47 = vmul.f32 31.999968, %v3576_v40  ;;  %v11782_v40 = vmin.f32 %v3644_v37, 32.0  ;;  %v3592_v37 = vld [vmem:[%s11709_s17 + $0x80] sm:$0xff] }
 0x29b   : > { %10519 = vmatprep.subr.bf16.mxu1 %v10518_v48  ;;  %v11095_v48 = vmov 4   ;;  %v3624_v38 = vmul.f32 31.999968, %v3592_v37  ;;  %v9235_v37 = vld [vmem:[%s17374_s9 + $0x448] sm:$0xff] }
 0x29c   : > { %17571 = vst [vmem:[#allocation19_spill] sm:$0xff] %v11782_v40 }
 0x29e   : > { %10521 = vmatpush3.bf16.msra.mxu1 %v10520_v53  ;;  %v11730_v53 = vmin.f32 %v3646_v43, 32.0  ;;  %v3658_v43 = vmax.f32 %v3626_v39, 0.0  ;;  %v3595_v39 = vld [vmem:[%s11709_s17 + $0x98] sm:$0xff] }
 0x2a0   : > { %17563 = vst [vmem:[#allocation11_spill] sm:$0xff] %v11730_v53 }
 0x2a1   : > { %1195 = vmatmul.mubr.f32.vlgmr.msra.gmra.mrb[4].mxu1 %v1126_v54  ;;  %v3640_v54 = vmax.f32 %v3608_v47, 0.0 }
 0x354   : > { %v10063_v57 = vpop.f32.mrb[2].mxu1 }
 0x355   : > { %v10064_v63 = vpop.f32.mrb[3].mxu1 }
 0x356   : > { %v10065_v0 = vadd.f32 %v10064_v63, %v10063_v57  ;;  %v10098_v1 = vpop.f32.mrb[18].mxu0  ;;  %v3616_v57 = vmul.f32 31.999968, %v3584_v49  ;;  %v3587_v63 = vld [vmem:[%s11709_s17 + $0x58] sm:$0xff]  ;;  %v11790_v49 = vmin.f32 %v3658_v43, 32.0  ;;  %v3601_v43 = vld [vmem:[%s11709_s17 + $0xc8] sm:$0xff] }
 0x357   : > { %v10099_v2 = vpop.f32.mrb[19].mxu0 }
 0x358   : > { %v982_v3 = vadd.f32 %v10065_v0, %v879_v59  ;;  %v10100_v4 = vadd.f32 %v10099_v2, %v10098_v1  ;;  %v11734_v59 = vmin.f32 %v3649_v52, 32.0  ;;  %v11096_v0 = vmov 5   ;;  %v3577_v1 = vld [vmem:[%s11709_s17 + $0x8] sm:$0xff]  ;;  %17573 = vst [vmem:[#allocation21_spill] sm:$0xff] %v11790_v49 }
 0x359   : > { %v11738_v2 = vmin.f32 %v3640_v54, 32.0  ;;  %v3583_v54 = vld [vmem:[%s11709_s17 + $0x38] sm:$0xff] }
 0x35a   : > { %v1092_v5 = vadd.f32 %v10100_v4, %v982_v3  ;;  %17564 = vst [vmem:[#allocation12_spill] sm:$0xff] %v11734_v59  ;;  %v3648_v3 = vmax.f32 %v3616_v57, 0.0  ;;  %v3619_v4 = vmul.f32 31.999968, %v3587_v63  ;;  %v3615_v63 = vmul.f32 31.999968, %v3583_v54 }
 0x35b   : > { %v3627_v54 = vmul.f32 31.999968, %v3595_v39  ;;  %v1245_v39 = vld [vmem:[%s17374_s9 + $0x100] sm:$0xff] }
 0x374   : > { %v10133_v6 = vpop.f32.mrb[4].mxu1 }
 0x375   : > { %v10134_v7 = vpop.f32.mrb[5].mxu1 }
 0x376   : > { %v10135_v58 = vadd.f32 %v10134_v7, %v10133_v6  ;;  %v3588_v6 = vld [vmem:[%s11709_s17 + $0x60] sm:$0xff]  ;;  %v11744_v7 = vmin.f32 %v3648_v3, 32.0  ;;  %v3647_v3 = vmax.f32 %v3615_v63, 0.0  ;;  %v3633_v63 = vmul.f32 31.999968, %v3601_v43 }
 0x377   : > { %v11017_v43 = vld [vmem:[%s17375_s10 + $0x1] ss:$2 sm:$0xff] }
 0x378   : > { %v1200_v9 = vadd.f32 %v10135_v58, %v1092_v5  ;;  %v3609_v5 = vmul.f32 31.999968, %v3577_v1  ;;  %17565 = vst [vmem:[#allocation13_spill] sm:$0xff] %v11744_v7  ;;  %v3651_v58 = vmax.f32 %v3619_v4, 0.0 }
 0x37a   : > { %v1202_v8 = vsel %vm1201_vm4, %v1200_v9, -inf }
 0x37b   : > { %1203 = vmax.xlane.f32.xlu0 %v1202_v8  ;;  %v3620_v8 = vmul.f32 31.999968, %v3588_v6  ;;  %v3586_v6 = vld [vmem:[%s11709_s17 + $0x50] sm:$0xff] }
 0x408   : > { %v1204_v10 = vpop.xlane.xlu0 %1203 }
 0x409   : > { %v1205_v11 = vsub.f32 %v1200_v9, %v1204_v10  ;;  %v17381_v9 = vmov 0.0|0.0   ;;  %v3641_v10 = vmax.f32 %v3609_v5, 0.0  ;;  %v11808_v5 = vmin.f32 %v3647_v3, 32.0 }
 0x40a   : > { %10522 = vmatprep.subr.bf16.mxu1 %v17381_v9  ;;  %10570 = vmatprep.subr.bf16.mxu0 %v17381_v9 }
 0x40b   : > { %v1206_v12 = vmul.f32 1.442695, %v1205_v11  ;;  %v3590_v11 = vld [vmem:[%s11709_s17 + $0x70] sm:$0xff] }
 0x40d   : > { %11012 = vpow2.f32 %v1206_v12  ;;  %v11752_v12 = vmin.f32 %v3651_v58, 32.0  ;;  %v3599_v58 = vld [vmem:[%s11709_s17 + $0xb8] sm:$0xff] }
 0x40f   : > { %17566 = vst [vmem:[#allocation14_spill] sm:$0xff] %v11752_v12 }
 0x417   : > { %v11013_v13 = vpop.eup %11012 }
 0x418   : > { %v1208_v14 = vsel %vm1201_vm4, %v11013_v13, 0.0 }
 0x419   : > { %1209 = vadd.xlane.f32.xlu1 %v1208_v14  ;;  %v11755_v14 = vmin.f32 %v3641_v10, 32.0  ;;  %v3600_v10 = vld [vmem:[%s11709_s17 + $0xc0] sm:$0xff] }
 0x41b   : > { %17567 = vst [vmem:[#allocation15_spill] sm:$0xff] %v11755_v14 }
 0x4a6   : > { %v1210_v18 = vpop.xlane.xlu1 %1209 }
 0x4a7   : > { %11014 = vrcp.f32 %v1210_v18  ;;  %v3622_v18 = vmul.f32 31.999968, %v3590_v11  ;;  %v3632_v11 = vmul.f32 31.999968, %v3600_v10  ;;  %v3659_v10 = vmax.f32 %v3627_v54, 0.0  ;;  %v1246_v54 = vld [vmem:[%s17374_s9 + $0x108] sm:$0xff] }
 0x4b1   : > { %v11015_v21 = vpop.eup %11014 }
 0x4b2   : > { %v1212_v22 = vmul.f32 %v11015_v21, %v11013_v13  ;;  %v3652_v13 = vmax.f32 %v3620_v8, 0.0  ;;  %v3654_v21 = vmax.f32 %v3622_v18, 0.0  ;;  %v3618_v8 = vmul.f32 31.999968, %v3586_v6 }
 0x4b3   : > { %v3664_v18 = vmax.f32 %v3632_v11, 0.0 }
 0x4b4   : > { %v1354_v26 = vrot.slane %v1212_v22, %v11369_v33  ;;  %v11760_v20 = vmin.f32 %v3652_v13, 32.0  ;;  %v3623_v22 = vmul.f32 31.999968, %v3591_v19  ;;  %v3631_v13 = vmul.f32 31.999968, %v3599_v58 }
 0x4b5   : > { %v3650_v19 = vmax.f32 %v3618_v8, 0.0  ;;  %v3887_v58 = vsub.s32 3, %v11209_v16  ;;  %v9920_v8 = vld [vmem:[%s17375_s10 + $0x10] ss:$2 sm:$0x1]  ;;  %v1214_v16 = vld [vmem:[%s17374_s9 + $0x8] sm:$0xff] }
 0x4b6   : > { %1635 = vperm.xlu0 %10963, %v1354_v26   ;;  %1356 = vperm.xlu1 %10962, %v1354_v26   ;;  %17568 = vst [vmem:[#allocation16_spill] sm:$0xff] %v11760_v20  ;;  %v3655_v27 = vmax.f32 %v3623_v22, 0.0  ;;  %v3663_v22 = vmax.f32 %v3631_v13, 0.0  ;;  %v3665_v13 = vmax.f32 %v3633_v63, 0.0  ;;  %v9268_v63 = vld [vmem:[%s17374_s9 + $0x550] sm:$0xff] }
 0x4b7   : > { %v11822_v24 = vmin.f32 %v3650_v19, 32.0  ;;  %v1213_v19 = vld [vmem:[%s17374_s9] sm:$0xff] }
 0x4b8   : > { %v11775_v35 = vmin.f32 %v3655_v27, 32.0  ;;  %v11824_v25 = vmin.f32 %v3663_v22, 32.0  ;;  %v3589_v27 = vld [vmem:[%s11709_s17 + $0x68] sm:$0xff] }
 0x4b9   : > { %17576 = vst [vmem:[#allocation24_spill] sm:$0xff] %v11822_v24  ;;  %v3621_v29 = vmul.f32 31.999968, %v3589_v27  ;;  %v11016_v22 = vld [vmem:[%s17375_s10] ss:$2 sm:$0xff] }
 0x4ba   : > { %10964 = vset.pattern.permute.xlu1 %v17383_v34  ;;  %5083 = vperm.xlu0 %10963, %v11714_v28   ;;  %17570 = vst [vmem:[#allocation18_spill] sm:$0xff] %v11775_v35  ;;  %17577 = vst [vmem:[#allocation25_spill] sm:$0xff] %v11824_v25  ;;  %v11870_v27 = vrot.slane %v11016_v22, %v11369_v33 }
 0x4bb   : > { %2051 = vperm.xlu1 %10964, %v1354_v26   ;;  %v3653_v30 = vmax.f32 %v3621_v29, 0.0  ;;  %v11873_v29 = vrot.slane %v11016_v22, %v11228_v23 }
 0x4bd   : > { %v11835_v31 = vmin.f32 %v3653_v30, 32.0  ;;  %v11875_v30 = vrot.slane %v11016_v22, %v3887_v58  ;;  %v1215_v22 = vld [vmem:[%s17374_s9 + $0x10] sm:$0xff] }
 0x4be   : > { %10973 = vset.pattern.permute.xlu0 %v17383_v34 }
 0x4bf   : > { %10965 = vset.pattern.permute.xlu1 %v11094_v32  ;;  %3723 = vperm.xlu0 %10973, %v11720_v36   ;;  %v3596_v32 = vld [vmem:[%s11709_s17 + $0xa0] sm:$0xff]  ;;  %17578 = vst [vmem:[#allocation26_spill] sm:$0xff] %v11835_v31 }
 0x4c0   : > { %2467 = vperm.xlu1 %10965, %v1354_v26   ;;  %v3628_v47 = vmul.f32 31.999968, %v3596_v32  ;;  %v3598_v32 = vld [vmem:[%s11709_s17 + $0xb0] sm:$0xff] }
 0x4c2   : > { %v3660_v52 = vmax.f32 %v3628_v47, 0.0  ;;  %v3602_v47 = vld [vmem:[%s11709_s17 + $0xd0] sm:$0xff] }
 0x4c3   : > { %3738 = vperm.xlu0 %10973, %v11726_v42  }
 0x4c4   : > { %10966 = vset.pattern.permute.xlu1 %v11095_v48  ;;  %v3597_v48 = vld [vmem:[%s11709_s17 + $0xa8] sm:$0xff] }
 0x4c5   : > { %2883 = vperm.xlu1 %10966, %v1354_v26   ;;  %v3629_v57 = vmul.f32 31.999968, %v3597_v48  ;;  %v3656_v48 = vmax.f32 %v3624_v38, 0.0  ;;  %v9236_v38 = vld [vmem:[%s17374_s9 + $0x450] sm:$0xff] }
 0x4c7   : > { %10976 = vset.pattern.permute.xlu0 %v17389_v15  ;;  %v3661_v1 = vmax.f32 %v3629_v57, 0.0  ;;  %v3630_v57 = vmul.f32 31.999968, %v3598_v32  ;;  %v11848_v3 = vmin.f32 %v3656_v48, 32.0  ;;  %v11888_v32 = vrot.slane %v9920_v8, %v11369_v33 }
 0x4c8   : > { %5095 = vperm.xlu0 %10976, %v11730_v53   ;;  %v11897_v48 = vrot.slane %v11017_v43, %v11228_v23 }
 0x4c9   : > { %10967 = vset.pattern.permute.xlu1 %v11096_v0  ;;  %v11797_v0 = vmin.f32 %v3660_v52, 32.0  ;;  %v11802_v4 = vmin.f32 %v3661_v1, 32.0  ;;  %v3634_v52 = vmul.f32 31.999968, %v3602_v47  ;;  %17579 = vst [vmem:[#allocation27_spill] sm:$0xff] %v11848_v3  ;;  %v3662_v11 = vmax.f32 %v3630_v57, 0.0 }
 0x4ca   : > { %3299 = vperm.xlu1 %10967, %v1354_v26   ;;  %v11768_v26 = vmin.f32 %v3654_v21, 32.0  ;;  %v11817_v21 = vmin.f32 %v3664_v18, 32.0  ;;  %v9922_v18 = vld [vmem:[%s17375_s10 + $0x11] ss:$2 sm:$0x1]  ;;  %17581 = vst [vmem:[#allocation29_spill] sm:$0xff] %v11888_v32  ;;  %v11894_v47 = vrot.slane %v11017_v43, %v11369_v33 }
 0x4cb   : > { %17574 = vst [vmem:[#allocation22_spill] sm:$0xff] %v11797_v0  ;;  %v3666_v1 = vmax.f32 %v3634_v52, 0.0  ;;  %v11899_v52 = vrot.slane %v11017_v43, %v3887_v58  ;;  %v9267_v57 = vld [vmem:[%s17374_s9 + $0x548] sm:$0xff]  ;;  %v11917_v58 = vmin.f32 %v3659_v10, 32.0  ;;  %v1216_v43 = vld [vmem:[%s17374_s9 + $0x18] sm:$0xff] }
 0x4cc   : > { %5107 = vperm.xlu0 %10976, %v11734_v59   ;;  %17569 = vst [vmem:[#allocation17_spill] sm:$0xff] %v11768_v26  ;;  %17575 = vst [vmem:[#allocation23_spill] sm:$0xff] %v11817_v21  ;;  %v9269_v32 = vld [vmem:[%s17374_s9 + $0x558] sm:$0xff] }
 0x4cd   : > { %v11850_v6 = vmin.f32 %v3666_v1, 32.0  ;;  %v11911_v1 = vrot.slane %v9922_v18, %v11369_v33  ;;  %17583 = vst [vmem:[#allocation31_spill] sm:$0xff] %v11917_v58  ;;  %v11928_v33 = vmin.f32 %v3662_v11, 32.0  ;;  %v11930_v18 = vmin.f32 %v3665_v13, 32.0  ;;  %v1247_v11 = vld [vmem:[%s17374_s9 + $0x110] sm:$0xff]  ;;  %v1248_v13 = vld [vmem:[%s17374_s9 + $0x118] sm:$0xff] }
 0x4ce   : > { %10968 = vset.pattern.permute.xlu1 %v17383_v34 }
 0x4cf   : > { %3713 = vperm.xlu1 %10968, %v11738_v2   ;;  %17580 = vst [vmem:[#allocation28_spill] sm:$0xff] %v11850_v6  ;;  %17582 = vst [vmem:[#allocation30_spill] sm:$0xff] %v11911_v1 }
 0x4d0   : > { %10979 = vset.pattern.permute.xlu0 %v17383_v34  ;;  %17584 = vst [vmem:[#allocation32_spill] sm:$0xff] %v11928_v33  ;;  %17585 = vst [vmem:[#allocation33_spill] sm:$0xff] %v11930_v18 }
 0x4d1   : > { %3753 = vperm.xlu0 %10979, %v11744_v7  }
 0x4d3   : > { %10969 = vset.pattern.permute.xlu1 %v17389_v15 }
 0x4d4   : > { %5071 = vperm.xlu1 %10969, %v11738_v2  }
 0x4d5   : > { %3768 = vperm.xlu0 %10979, %v11752_v12  }
 0x4d8   : > { %10970 = vset.pattern.permute.xlu1 %v17383_v34 }
 0x4d9   : > { %3718 = vperm.xlu1 %10970, %v11755_v14   ;;  %10982 = vset.pattern.permute.xlu0 %v17389_v15 }
 0x4da   : > { %5119 = vperm.xlu0 %10982, %v11760_v20  }
 0x4dd   : > { %10971 = vset.pattern.permute.xlu1 %v17389_v15 }
 0x4de   : > { %5075 = vperm.xlu1 %10971, %v11755_v14   ;;  %10984 = vset.pattern.permute.xlu0 %v17383_v34 }
 0x4df   : > { %3783 = vperm.xlu0 %10984, %v11768_v26  }
 0x4e2   : > { %5079 = vperm.xlu1 %10971, %v11720_v36  }
 0x4e3   : > { %10986 = vset.pattern.permute.xlu0 %v17389_v15 }
 0x4e4   : > { %5131 = vperm.xlu0 %10986, %v11775_v35  }
 0x4e6   : > { %10972 = vset.pattern.permute.xlu1 %v17383_v34 }
 0x4e7   : > { %3728 = vperm.xlu1 %10972, %v11714_v28  }
 0x4e8   : > { %10988 = vset.pattern.permute.xlu0 %v17383_v34 }
 0x4e9   : > { %3798 = vperm.xlu0 %10988, %v11784_v41  }
 0x4eb   : > { %3733 = vperm.xlu1 %10972, %v11782_v40  }
 0x4ed   : > { %10990 = vset.pattern.permute.xlu0 %v17389_v15 }
 0x4ee   : > { %5143 = vperm.xlu0 %10990, %v11790_v49  }
 0x4ef   : > { %10974 = vset.pattern.permute.xlu1 %v17389_v15 }
 0x4f0   : > { %5087 = vperm.xlu1 %10974, %v11782_v40   ;;  %v9784_v40 = vld [vmem:[%s17374_s9 + $0x1570] sm:$0xff] }
 0x4f2   : > { %10992 = vset.pattern.permute.xlu0 %v17383_v34 }
 0x4f3   : > { %3813 = vperm.xlu0 %10992, %v11797_v0  }
 0x4f4   : > { %5091 = vperm.xlu1 %10974, %v11726_v42  }
 0x4f7   : > { %10994 = vset.pattern.permute.xlu0 %v17389_v15 }
 0x4f8   : > { %10975 = vset.pattern.permute.xlu1 %v17383_v34  ;;  %5155 = vperm.xlu0 %10994, %v11802_v4  }
 0x4f9   : > { %3743 = vperm.xlu1 %10975, %v11730_v53  }
 0x4fc   : > { %5167 = vperm.xlu0 %10994, %v11817_v21  }
 0x4fd   : > { %3748 = vperm.xlu1 %10975, %v11808_v5  }
 0x500   : > { %10997 = vset.pattern.permute.xlu0 %v17383_v34 }
 0x501   : > { %10977 = vset.pattern.permute.xlu1 %v17389_v15  ;;  %3828 = vperm.xlu0 %10997, %v11824_v25  }
 0x502   : > { %5099 = vperm.xlu1 %10977, %v11808_v5  }
 0x505   : > { %3843 = vperm.xlu0 %10997, %v11850_v6  }
 0x506   : > { %5103 = vperm.xlu1 %10977, %v11744_v7  }
 0x509   : > { %11000 = vset.pattern.permute.xlu0 %v17389_v15 }
 0x50a   : > { %10978 = vset.pattern.permute.xlu1 %v17383_v34 }
 0x50b   : > { %3758 = vperm.xlu1 %10978, %v11734_v59  }
 0x50f   : > { %3763 = vperm.xlu1 %10978, %v11822_v24  }
 0x513   : > { %10980 = vset.pattern.permute.xlu1 %v17389_v15 }
 0x514   : > { %5111 = vperm.xlu1 %10980, %v11822_v24   ;;  %v9510_v24 = vld [vmem:[%s17374_s9 + $0xce0] sm:$0xff] }
 0x518   : > { %5115 = vperm.xlu1 %10980, %v11752_v12  }
 0x51c   : > { %10981 = vset.pattern.permute.xlu1 %v17383_v34 }
 0x51d   : > { %3773 = vperm.xlu1 %10981, %v11760_v20  }
 0x521   : > { %3778 = vperm.xlu1 %10981, %v11835_v31  }
 0x525   : > { %10983 = vset.pattern.permute.xlu1 %v17389_v15 }
 0x526   : > { %5123 = vperm.xlu1 %10983, %v11835_v31  }
 0x52a   : > { %5127 = vperm.xlu1 %10983, %v11768_v26  }
 0x52e   : > { %10985 = vset.pattern.permute.xlu1 %v17383_v34 }
 0x52f   : > { %3788 = vperm.xlu1 %10985, %v11775_v35   ;;  %v9647_v35 = vld [vmem:[%s17374_s9 + $0x1128] sm:$0xff] }
 0x533   : > { %3793 = vperm.xlu1 %10985, %v11848_v3  }
 0x535   : > { %v11913_v8 = vpop.permute.xlu0 %1635  ;;  %v11915_v23 = vpop.permute.xlu1 %1356 }
 0x536   : > { %v1359_v10 = vmul.f32 %v11915_v23, %v1213_v19  ;;  %v1360_v9 = vmul.f32 %v11915_v23, %v1214_v16  ;;  %v1638_v34 = vmul.f32 %v9235_v37, %v11913_v8  ;;  %v1639_v61 = vmul.f32 %v9236_v38, %v11913_v8  ;;  %v9372_v19 = vld [vmem:[%s17374_s9 + $0x890] sm:$0xff] }
 0x537   : > { %10987 = vset.pattern.permute.xlu1 %v17389_v15  ;;  %v1391_v16 = vmul.f32 %v11915_v23, %v1245_v39  ;;  %v1392_v37 = vmul.f32 %v11915_v23, %v1246_v54  ;;  %v1670_v38 = vmul.f32 %v9267_v57, %v11913_v8  ;;  %v1671_v1 = vmul.f32 %v9268_v63, %v11913_v8  ;;  %v9270_v15 = vld [vmem:[%s17374_s9 + $0x560] sm:$0xff]  ;;  %v9373_v39 = vld [vmem:[%s17374_s9 + $0x898] sm:$0xff]  ;;  %v9404_v54 = vld [vmem:[%s17374_s9 + $0x990] sm:$0xff] }
 0x538   : > { %5135 = vperm.xlu1 %10987, %v11848_v3   ;;  %v1775_v62 = vadd.f32 %v1638_v34, %v1359_v10  ;;  %v1776_v51 = vadd.f32 %v1639_v61, %v1360_v9  ;;  %v9405_v57 = vld [vmem:[%s17374_s9 + $0x998] sm:$0xff]  ;;  %v1361_v63 = vmul.f32 %v11915_v23, %v1215_v22  ;;  %v1362_v56 = vmul.f32 %v11915_v23, %v1216_v43  ;;  %v9374_v9 = vld [vmem:[%s17374_s9 + $0x8a0] sm:$0xff]  ;;  %v9375_v10 = vld [vmem:[%s17374_s9 + $0x8a8] sm:$0xff] }
 0x539   : > { %v1807_v45 = vadd.f32 %v1670_v38, %v1391_v16  ;;  %v1808_v60 = vadd.f32 %v1671_v1, %v1392_v37  ;;  %v1640_v61 = vmul.f32 %v9237_v17, %v11913_v8  ;;  %v1641_v34 = vmul.f32 %v9238_v50, %v11913_v8  ;;  %v1217_v3 = vld [vmem:[%s17374_s9 + $0x20] sm:$0xff] }
 0x53a   : > { %v11980_v46 = vpop.permute.xlu1 %2051  ;;  %v1393_v22 = vmul.f32 %v11915_v23, %v1247_v11  ;;  %v1394_v43 = vmul.f32 %v11915_v23, %v1248_v13  ;;  %v1672_v1 = vmul.f32 %v9269_v32, %v11913_v8  ;;  %v1673_v17 = vmul.f32 %v9270_v15, %v11913_v8  ;;  %v1218_v11 = vld [vmem:[%s17374_s9 + $0x28] sm:$0xff]  ;;  %v9509_v15 = vld [vmem:[%s17374_s9 + $0xcd8] sm:$0xff] }
 0x53b   : > { %v2054_v50 = vmul.f32 %v9372_v19, %v11980_v46  ;;  %v2055_v16 = vmul.f32 %v9373_v39, %v11980_v46  ;;  %v2086_v37 = vmul.f32 %v9404_v54, %v11980_v46  ;;  %v2087_v38 = vmul.f32 %v9405_v57, %v11980_v46  ;;  %v9406_v54 = vld [vmem:[%s17374_s9 + $0x9a0] sm:$0xff]  ;;  %v9407_v57 = vld [vmem:[%s17374_s9 + $0x9a8] sm:$0xff] }
 0x53c   : > { %5139 = vperm.xlu1 %10987, %v11784_v41   ;;  %v1777_v32 = vadd.f32 %v1640_v61, %v1361_v63  ;;  %v1778_v13 = vadd.f32 %v1641_v34, %v1362_v56  ;;  %v2056_v19 = vmul.f32 %v9374_v9, %v11980_v46  ;;  %v2057_v39 = vmul.f32 %v9375_v10, %v11980_v46  ;;  %v9541_v61 = vld [vmem:[%s17374_s9 + $0xdd8] sm:$0xff]  ;;  %v9542_v34 = vld [vmem:[%s17374_s9 + $0xde0] sm:$0xff] }
 0x53d   : > { %v2191_v26 = vadd.f32 %v2054_v50, %v1775_v62  ;;  %v2192_v20 = vadd.f32 %v2055_v16, %v1776_v51  ;;  %v2223_v63 = vadd.f32 %v2086_v37, %v1807_v45  ;;  %v2224_v56 = vadd.f32 %v2087_v38, %v1808_v60  ;;  %v9511_v51 = vld [vmem:[%s17374_s9 + $0xce8] sm:$0xff]  ;;  %v9512_v62 = vld [vmem:[%s17374_s9 + $0xcf0] sm:$0xff]  ;;  %v9377_v41 = vld [vmem:[%s17374_s9 + $0x8b8] sm:$0xff] }
 0x53e   : > { %v2193_v9 = vadd.f32 %v2056_v19, %v1777_v32  ;;  %v2194_v10 = vadd.f32 %v2057_v39, %v1778_v13  ;;  %v1809_v45 = vadd.f32 %v1672_v1, %v1393_v22  ;;  %v1810_v60 = vadd.f32 %v1673_v17, %v1394_v43  ;;  %v9239_v13 = vld [vmem:[%s17374_s9 + $0x468] sm:$0xff]  ;;  %v9240_v39 = vld [vmem:[%s17374_s9 + $0x470] sm:$0xff] }
 0x53f   : > { %v12023_v50 = vpop.permute.xlu1 %2467  ;;  %v2088_v16 = vmul.f32 %v9406_v54, %v11980_v46  ;;  %v2089_v37 = vmul.f32 %v9407_v57, %v11980_v46  ;;  %v12028_v38 = vmul.f32 %v11915_v23, %v1217_v3  ;;  %v12031_v32 = vmul.f32 %v11915_v23, %v1218_v11  ;;  %v9543_v3 = vld [vmem:[%s17374_s9 + $0xde8] sm:$0xff]  ;;  %v9544_v11 = vld [vmem:[%s17374_s9 + $0xdf0] sm:$0xff] }
 0x540   : > { %v17586_v19 = vmov 2   ;;  %v2470_v22 = vmul.f32 %v9509_v15, %v12023_v50  ;;  %v2471_v43 = vmul.f32 %v9510_v24, %v12023_v50  ;;  %v2502_v1 = vmul.f32 %v9541_v61, %v12023_v50  ;;  %v9646_v24 = vld [vmem:[%s17374_s9 + $0x1120] sm:$0xff] }
 0x541   : > { %10989 = vset.pattern.permute.xlu1 %v17586_v19  ;;  %v2503_v17 = vmul.f32 %v9542_v34, %v12023_v50  ;;  %v2472_v15 = vmul.f32 %v9511_v51, %v12023_v50  ;;  %v2473_v54 = vmul.f32 %v9512_v62, %v12023_v50  ;;  %v2225_v57 = vadd.f32 %v2088_v16, %v1809_v45  ;;  %v9376_v34 = vld [vmem:[%s17374_s9 + $0x8b0] sm:$0xff]  ;;  %v9678_v62 = vld [vmem:[%s17374_s9 + $0x1220] sm:$0xff]  ;;  %v9679_v45 = vld [vmem:[%s17374_s9 + $0x1228] sm:$0xff] }
 0x542   : > { %3803 = vperm.xlu1 %10989, %v11790_v49   ;;  %v2226_v61 = vadd.f32 %v2089_v37, %v1810_v60  ;;  %v2607_v7 = vadd.f32 %v2470_v22, %v2191_v26  ;;  %v2608_v49 = vadd.f32 %v2471_v43, %v2192_v20  ;;  %v2639_v53 = vadd.f32 %v2502_v1, %v2223_v63  ;;  %v9648_v20 = vld [vmem:[%s17374_s9 + $0x1130] sm:$0xff]  ;;  %v9649_v26 = vld [vmem:[%s17374_s9 + $0x1138] sm:$0xff] }
 0x543   : > { %v2640_v51 = vadd.f32 %v2503_v17, %v2224_v56  ;;  %v2609_v60 = vadd.f32 %v2472_v15, %v2193_v9  ;;  %v2610_v16 = vadd.f32 %v2473_v54, %v2194_v10  ;;  %v2504_v63 = vmul.f32 %v9543_v3, %v12023_v50 }
 0x544   : > { %v2505_v56 = vmul.f32 %v9544_v11, %v12023_v50  ;;  %v12079_v37 = vpop.permute.xlu1 %2883  ;;  %v1642_v22 = vmul.f32 %v9239_v13, %v11913_v8  ;;  %v1643_v43 = vmul.f32 %v9240_v39, %v11913_v8  ;;  %v2058_v9 = vmul.f32 %v9376_v34, %v11980_v46  ;;  %v9680_v13 = vld [vmem:[%s17374_s9 + $0x1230] sm:$0xff]  ;;  %v9681_v39 = vld [vmem:[%s17374_s9 + $0x1238] sm:$0xff] }
 0x545   : > { %v2059_v10 = vmul.f32 %v9377_v41, %v11980_v46  ;;  %v2886_v1 = vmul.f32 %v9646_v24, %v12079_v37  ;;  %v2887_v17 = vmul.f32 %v9647_v35, %v12079_v37  ;;  %v2918_v3 = vmul.f32 %v9678_v62, %v12079_v37  ;;  %v9783_v41 = vld [vmem:[%s17374_s9 + $0x1568] sm:$0xff]  ;;  %v9513_v34 = vld [vmem:[%s17374_s9 + $0xcf8] sm:$0xff]  ;;  %v9514_v62 = vld [vmem:[%s17374_s9 + $0xd00] sm:$0xff] }
 0x546   : > { %3808 = vperm.xlu1 %10989, %v11917_v58   ;;  %v2919_v11 = vmul.f32 %v9679_v45, %v12079_v37  ;;  %v2888_v24 = vmul.f32 %v9648_v20, %v12079_v37  ;;  %v2889_v35 = vmul.f32 %v9649_v26, %v12079_v37  ;;  %v2641_v15 = vadd.f32 %v2504_v63, %v2225_v57  ;;  %v9815_v57 = vld [vmem:[%s17374_s9 + $0x1668] sm:$0xff] }
 0x547   : > { %v2642_v54 = vadd.f32 %v2505_v56, %v2226_v61  ;;  %v3023_v45 = vadd.f32 %v2886_v1, %v2607_v7  ;;  %v3024_v31 = vadd.f32 %v2887_v17, %v2608_v49  ;;  %v3055_v36 = vadd.f32 %v2918_v3, %v2639_v53  ;;  %v9816_v61 = vld [vmem:[%s17374_s9 + $0x1670] sm:$0xff]  ;;  %v9785_v7 = vld [vmem:[%s17374_s9 + $0x1578] sm:$0xff]  ;;  %v9786_v49 = vld [vmem:[%s17374_s9 + $0x1580] sm:$0xff] }
 0x548   : > { %v3056_v20 = vadd.f32 %v2919_v11, %v2640_v51  ;;  %v3025_v26 = vadd.f32 %v2888_v24, %v2609_v60  ;;  %v3026_v63 = vadd.f32 %v2889_v35, %v2610_v16  ;;  %v2920_v53 = vmul.f32 %v9680_v13, %v12079_v37 }
 0x549   : > { %v2921_v51 = vmul.f32 %v9681_v39, %v12079_v37  ;;  %v17587_v56 = vmov 1   ;;  %v12125_v1 = vpop.permute.xlu1 %3299  ;;  %v1779_v17 = vadd.f32 %v1642_v22, %v12028_v38  ;;  %v1780_v60 = vadd.f32 %v1643_v43, %v12031_v32  ;;  %v9817_v38 = vld [vmem:[%s17374_s9 + $0x1678] sm:$0xff]  ;;  %v9818_v32 = vld [vmem:[%s17374_s9 + $0x1680] sm:$0xff] }
 0x54a   : > { %10991 = vset.pattern.permute.xlu1 %v17587_v56  ;;  %v2474_v16 = vmul.f32 %v9513_v34, %v12023_v50  ;;  %v2475_v3 = vmul.f32 %v9514_v62, %v12023_v50  ;;  %v3302_v11 = vmul.f32 %v9783_v41, %v12125_v1  ;;  %v3303_v13 = vmul.f32 %v9784_v40, %v12125_v1 }
 0x54b   : > { %5147 = vperm.xlu1 %10991, %v11917_v58   ;;  %v3334_v39 = vmul.f32 %v9815_v57, %v12125_v1  ;;  %v3335_v24 = vmul.f32 %v9816_v61, %v12125_v1  ;;  %v3304_v22 = vmul.f32 %v9785_v7, %v12125_v1  ;;  %v3305_v43 = vmul.f32 %v9786_v49, %v12125_v1  ;;  %v9650_v61 = vld [vmem:[%s17374_s9 + $0x1140] sm:$0xff] }
 0x54c   : > { %v3057_v41 = vadd.f32 %v2920_v53, %v2641_v15  ;;  %v3058_v35 = vadd.f32 %v2921_v51, %v2642_v54  ;;  %v3439_v40 = vadd.f32 %v3302_v11, %v3023_v45  ;;  %v3440_v34 = vadd.f32 %v3303_v13, %v3024_v31  ;;  %v9651_v15 = vld [vmem:[%s17374_s9 + $0x1148] sm:$0xff]  ;;  %v3603_v54 = vld [vmem:[%s11709_s17 + $0xd8] sm:$0xff]  ;;  %v3604_v7 = vld [vmem:[%s11709_s17 + $0xe0] sm:$0xff] }
 0x54d   : > { %v3471_v62 = vadd.f32 %v3334_v39, %v3055_v36  ;;  %v3472_v57 = vadd.f32 %v3335_v24, %v3056_v20  ;;  %v3441_v58 = vadd.f32 %v3304_v22, %v3025_v26  ;;  %v3442_v12 = vadd.f32 %v3305_v43, %v3026_v63  ;;  %v9787_v26 = vld [vmem:[%s17374_s9 + $0x1588] sm:$0xff]  ;;  %v9788_v63 = vld [vmem:[%s17374_s9 + $0x1590] sm:$0xff]  ;;  %v1249_v13 = vld [vmem:[%s17374_s9 + $0x120] sm:$0xff] }
 0x54e   : > { %v3336_v14 = vmul.f32 %v9817_v38, %v12125_v1  ;;  %v3337_v59 = vmul.f32 %v9818_v32, %v12125_v1  ;;  %v10523_v36 = vpack.c.bf16 %v3440_v34, %v3439_v40  ;;  %v2195_v45 = vadd.f32 %v2058_v9, %v1779_v17  ;;  %v1250_v9 = vld [vmem:[%s17374_s9 + $0x128] sm:$0xff]  ;;  %v9408_v17 = vld [vmem:[%s17374_s9 + $0x9b0] sm:$0xff]  ;;  %v9545_v32 = vld [vmem:[%s17374_s9 + $0xdf8] sm:$0xff] }
 0x54f   : > { %5151 = vperm.xlu1 %10991, %v11797_v0   ;;  %v12154_v31 = vpack.c.bf16 %v3472_v57, %v3471_v62  ;;  %v2196_v20 = vadd.f32 %v2059_v10, %v1780_v60  ;;  %v10526_v49 = vpack.c.bf16 %v3442_v12, %v3441_v58  ;;  %v2890_v11 = vmul.f32 %v9650_v61, %v12079_v37  ;;  %v9271_v10 = vld [vmem:[%s17374_s9 + $0x568] sm:$0xff]  ;;  %v9272_v58 = vld [vmem:[%s17374_s9 + $0x570] sm:$0xff]  ;;  %v9409_v60 = vld [vmem:[%s17374_s9 + $0x9b8] sm:$0xff] }
 0x550   : > { %v3473_v53 = vadd.f32 %v3336_v14, %v3057_v41  ;;  %v3474_v51 = vadd.f32 %v3337_v59, %v3058_v35  ;;  %10524 = vmatpush1.bf16.msra.mxu1 %v10523_v36  ;;  %v2611_v12 = vadd.f32 %v2474_v16, %v2195_v45  ;;  %v2891_v59 = vmul.f32 %v9651_v15, %v12079_v37  ;;  %v9546_v34 = vld [vmem:[%s17374_s9 + $0xe00] sm:$0xff]  ;;  %v9683_v36 = vld [vmem:[%s17374_s9 + $0x1248] sm:$0xff] }
 0x551   : > { %10572 = vmatpush1.bf16.msra.mxu0 %v12154_v31  ;;  %v2612_v14 = vadd.f32 %v2475_v3, %v2196_v20  ;;  %v12184_v39 = vmul.f32 31.999968, %v3603_v54  ;;  %v17588_v24 = vmov 0.0|0.0   ;;  %v3306_v3 = vmul.f32 %v9787_v26, %v12125_v1  ;;  %v9682_v54 = vld [vmem:[%s17374_s9 + $0x1240] sm:$0xff]  ;;  %v9819_v45 = vld [vmem:[%s17374_s9 + $0x1688] sm:$0xff] }
 0x552   : > { %10525 = vmatprep.subr.bf16.mxu1 %v17588_v24  ;;  %10573 = vmatprep.subr.bf16.mxu0 %v17588_v24  ;;  %v12188_v16 = vpack.c.bf16 %v3474_v51, %v3473_v53  ;;  %v3307_v38 = vmul.f32 %v9788_v63, %v12125_v1  ;;  %v12195_v22 = vmul.f32 31.999968, %v3604_v7  ;;  %v3027_v43 = vadd.f32 %v2890_v11, %v2611_v12  ;;  %v9820_v7 = vld [vmem:[%s17374_s9 + $0x1690] sm:$0xff]  ;;  %v1220_v51 = vld [vmem:[%s17374_s9 + $0x38] sm:$0xff]  ;;  %v9242_v12 = vld [vmem:[%s17374_s9 + $0x480] sm:$0xff] }
 0x553   : > { %10993 = vset.pattern.permute.xlu1 %v17586_v19  ;;  %v3028_v41 = vadd.f32 %v2891_v59, %v2612_v14  ;;  %v1395_v35 = vmul.f32 %v11915_v23, %v1249_v13  ;;  %v1396_v40 = vmul.f32 %v11915_v23, %v1250_v9  ;;  %v1674_v62 = vmul.f32 %v9271_v10, %v11913_v8  ;;  %v1219_v53 = vld [vmem:[%s17374_s9 + $0x30] sm:$0xff]  ;;  %v9241_v10 = vld [vmem:[%s17374_s9 + $0x478] sm:$0xff]  ;;  %v9378_v14 = vld [vmem:[%s17374_s9 + $0x8c0] sm:$0xff] }
 0x554   : > { %3818 = vperm.xlu1 %10993, %v11802_v4   ;;  %v1675_v57 = vmul.f32 %v9272_v58, %v11913_v8  ;;  %v2090_v61 = vmul.f32 %v9408_v17, %v11980_v46  ;;  %v2091_v15 = vmul.f32 %v9409_v60, %v11980_v46  ;;  %10527 = vmatpush1.bf16.msra.mxu1 %v10526_v49  ;;  %v9794_v59 = vld [vmem:[%s17374_s9 + $0x15c0] sm:$0xff] }
 0x555   : > { %10575 = vmatpush1.bf16.msra.mxu0 %v12188_v16  ;;  %v3443_v20 = vadd.f32 %v3306_v3, %v3027_v43  ;;  %v3444_v26 = vadd.f32 %v3307_v38, %v3028_v41  ;;  %v2506_v63 = vmul.f32 %v9545_v32, %v12023_v50  ;;  %10528 = vmatprep.subr.bf16.mxu1 %v17588_v24  ;;  %v9379_v38 = vld [vmem:[%s17374_s9 + $0x8c8] sm:$0xff] }
 0x556   : > { %10576 = vmatprep.subr.bf16.mxu0 %v17588_v24  ;;  %v1811_v11 = vadd.f32 %v1674_v62, %v1395_v35  ;;  %v1812_v13 = vadd.f32 %v1675_v57, %v1396_v40  ;;  %v2507_v9 = vmul.f32 %v9546_v34, %v12023_v50  ;;  %v2922_v17 = vmul.f32 %v9682_v54, %v12079_v37  ;;  %v9515_v32 = vld [vmem:[%s17374_s9 + $0xd08] sm:$0xff]  ;;  %v9516_v34 = vld [vmem:[%s17374_s9 + $0xd10] sm:$0xff] }
 0x557   : > { %v10529_v58 = vpack.c.bf16 %v3444_v26, %v3443_v20  ;;  %v2923_v60 = vmul.f32 %v9683_v36, %v12079_v37  ;;  %v3338_v3 = vmul.f32 %v9819_v45, %v12125_v1  ;;  %v3339_v35 = vmul.f32 %v9820_v7, %v12125_v1  ;;  %v9652_v62 = vld [vmem:[%s17374_s9 + $0x1150] sm:$0xff]  ;;  %v9653_v36 = vld [vmem:[%s17374_s9 + $0x1158] sm:$0xff] }
 0x558   : > { %3823 = vperm.xlu1 %10993, %v11928_v33   ;;  %v2227_v43 = vadd.f32 %v2090_v61, %v1811_v11  ;;  %v2228_v41 = vadd.f32 %v2091_v15, %v1812_v13  ;;  %v1365_v40 = vmul.f32 %v11915_v23, %v1219_v53  ;;  %v1366_v57 = vmul.f32 %v11915_v23, %v1220_v51  ;;  %v9789_v45 = vld [vmem:[%s17374_s9 + $0x1598] sm:$0xff]  ;;  %v9790_v51 = vld [vmem:[%s17374_s9 + $0x15a0] sm:$0xff]  ;;  %v1251_v11 = vld [vmem:[%s17374_s9 + $0x130] sm:$0xff] }
 0x559   : > { %10530 = vmatpush1.bf16.msra.mxu1 %v10529_v58  ;;  %v1644_v54 = vmul.f32 %v9241_v10, %v11913_v8  ;;  %v1645_v61 = vmul.f32 %v9242_v12, %v11913_v8  ;;  %v2060_v15 = vmul.f32 %v9378_v14, %v11980_v46  ;;  %v2061_v7 = vmul.f32 %v9379_v38, %v11980_v46  ;;  %v9273_v14 = vld [vmem:[%s17374_s9 + $0x578] sm:$0xff] }
 0x55a   : > { %v2643_v20 = vadd.f32 %v2506_v63, %v2227_v43  ;;  %v2644_v26 = vadd.f32 %v2507_v9, %v2228_v41  ;;  %10531 = vmatprep.subr.bf16.mxu1 %v17588_v24  ;;  %v2476_v53 = vmul.f32 %v9515_v32, %v12023_v50  ;;  %v2477_v12 = vmul.f32 %v9516_v34, %v12023_v50  ;;  %v1252_v9 = vld [vmem:[%s17374_s9 + $0x138] sm:$0xff]  ;;  %v9274_v41 = vld [vmem:[%s17374_s9 + $0x580] sm:$0xff] }
 0x55b   : > { %v1781_v13 = vadd.f32 %v1644_v54, %v1365_v40  ;;  %v1782_v10 = vadd.f32 %v1645_v61, %v1366_v57  ;;  %v2892_v63 = vmul.f32 %v9652_v62, %v12079_v37  ;;  %v2893_v32 = vmul.f32 %v9653_v36, %v12079_v37  ;;  %v9410_v40 = vld [vmem:[%s17374_s9 + $0x9c0] sm:$0xff]  ;;  %v9411_v57 = vld [vmem:[%s17374_s9 + $0x9c8] sm:$0xff] }
 0x55c   : > { %v3059_v58 = vadd.f32 %v2922_v17, %v2643_v20  ;;  %v3060_v38 = vadd.f32 %v2923_v60, %v2644_v26  ;;  %10995 = vset.pattern.permute.xlu1 %v17587_v56  ;;  %v3308_v43 = vmul.f32 %v9789_v45, %v12125_v1  ;;  %v3309_v17 = vmul.f32 %v9790_v51, %v12125_v1  ;;  %v9547_v54 = vld [vmem:[%s17374_s9 + $0xe08] sm:$0xff] }
 0x55d   : > { %5159 = vperm.xlu1 %10995, %v11928_v33   ;;  %v2197_v34 = vadd.f32 %v2060_v15, %v1781_v13  ;;  %v2198_v62 = vadd.f32 %v2061_v7, %v1782_v10  ;;  %v1397_v60 = vmul.f32 %v11915_v23, %v1251_v11  ;;  %v1398_v45 = vmul.f32 %v11915_v23, %v1252_v9  ;;  %v9548_v15 = vld [vmem:[%s17374_s9 + $0xe10] sm:$0xff] }
 0x55e   : > { %v3475_v61 = vadd.f32 %v3338_v3, %v3059_v58  ;;  %v3476_v36 = vadd.f32 %v3339_v35, %v3060_v38  ;;  %v1676_v20 = vmul.f32 %v9273_v14, %v11913_v8  ;;  %v1677_v51 = vmul.f32 %v9274_v41, %v11913_v8  ;;  %v9684_v13 = vld [vmem:[%s17374_s9 + $0x1250] sm:$0xff]  ;;  %v9685_v3 = vld [vmem:[%s17374_s9 + $0x1258] sm:$0xff]  ;;  %v9822_v14 = vld [vmem:[%s17374_s9 + $0x16a0] sm:$0xff] }
 0x55f   : > { %v2613_v26 = vadd.f32 %v2476_v53, %v2197_v34  ;;  %v2614_v7 = vadd.f32 %v2477_v12, %v2198_v62  ;;  %v2092_v11 = vmul.f32 %v9410_v40, %v11980_v46  ;;  %v9821_v35 = vld [vmem:[%s17374_s9 + $0x1698] sm:$0xff]  ;;  %v2093_v12 = vmul.f32 %v9411_v57, %v11980_v46  ;;  %v1221_v34 = vld [vmem:[%s17374_s9 + $0x40] sm:$0xff]  ;;  %v1222_v62 = vld [vmem:[%s17374_s9 + $0x48] sm:$0xff] }
 0x560   : > { %v12321_v10 = vpack.c.bf16 %v3476_v36, %v3475_v61  ;;  %v1813_v53 = vadd.f32 %v1676_v20, %v1397_v60  ;;  %v2508_v9 = vmul.f32 %v9547_v54, %v12023_v50  ;;  %v1814_v41 = vadd.f32 %v1677_v51, %v1398_v45  ;;  %v9243_v60 = vld [vmem:[%s17374_s9 + $0x488] sm:$0xff]  ;;  %v9244_v61 = vld [vmem:[%s17374_s9 + $0x490] sm:$0xff]  ;;  %v9517_v51 = vld [vmem:[%s17374_s9 + $0xd18] sm:$0xff] }
 0x561   : > { %v3029_v58 = vadd.f32 %v2892_v63, %v2613_v26  ;;  %v3030_v38 = vadd.f32 %v2893_v32, %v2614_v7  ;;  %v2509_v40 = vmul.f32 %v9548_v15, %v12023_v50  ;;  %5163 = vperm.xlu1 %10995, %v11824_v25   ;;  %v2924_v32 = vmul.f32 %v9684_v13, %v12079_v37  ;;  %v9380_v36 = vld [vmem:[%s17374_s9 + $0x8d0] sm:$0xff]  ;;  %v9381_v7 = vld [vmem:[%s17374_s9 + $0x8d8] sm:$0xff] }
 0x562   : > { %10578 = vmatpush1.bf16.msra.mxu0 %v12321_v10  ;;  %v2229_v63 = vadd.f32 %v2092_v11, %v1813_v53  ;;  %v2925_v57 = vmul.f32 %v9685_v3, %v12079_v37  ;;  %v3340_v54 = vmul.f32 %v9821_v35, %v12125_v1  ;;  %v2230_v15 = vadd.f32 %v2093_v12, %v1814_v41  ;;  %v9556_v33 = vld [vmem:[%s17374_s9 + $0xe50] sm:$0xff] }
 0x563   : > { %10579 = vmatprep.subr.bf16.mxu0 %v17588_v24  ;;  %v3445_v45 = vadd.f32 %v3308_v43, %v3029_v58  ;;  %v3446_v20 = vadd.f32 %v3309_v17, %v3030_v38  ;;  %v3341_v26 = vmul.f32 %v9822_v14, %v12125_v1  ;;  %v1367_v13 = vmul.f32 %v11915_v23, %v1221_v34  ;;  %v9518_v43 = vld [vmem:[%s17374_s9 + $0xd20] sm:$0xff]  ;;  %v9655_v58 = vld [vmem:[%s17374_s9 + $0x1168] sm:$0xff] }
 0x564   : > { %v2645_v11 = vadd.f32 %v2508_v9, %v2229_v63  ;;  %v1368_v3 = vmul.f32 %v11915_v23, %v1222_v62  ;;  %v1646_v35 = vmul.f32 %v9243_v60, %v11913_v8  ;;  %v9654_v17 = vld [vmem:[%s17374_s9 + $0x1160] sm:$0xff]  ;;  %v2646_v12 = vadd.f32 %v2509_v40, %v2230_v15  ;;  %v9791_v38 = vld [vmem:[%s17374_s9 + $0x15a8] sm:$0xff]  ;;  %v9792_v60 = vld [vmem:[%s17374_s9 + $0x15b0] sm:$0xff] }
 0x565   : > { %v10532_v53 = vpack.c.bf16 %v3446_v20, %v3445_v45  ;;  %v1647_v14 = vmul.f32 %v9244_v61, %v11913_v8  ;;  %v2062_v9 = vmul.f32 %v9380_v36, %v11980_v46  ;;  %10996 = vset.pattern.permute.xlu1 %v17586_v19  ;;  %v2063_v62 = vmul.f32 %v9381_v7, %v11980_v46  ;;  %v1253_v63 = vld [vmem:[%s17374_s9 + $0x140] sm:$0xff]  ;;  %v1254_v20 = vld [vmem:[%s17374_s9 + $0x148] sm:$0xff]  ;;  %v9276_v7 = vld [vmem:[%s17374_s9 + $0x590] sm:$0xff] }
 0x566   : > { %v3061_v41 = vadd.f32 %v2924_v32, %v2645_v11  ;;  %v1783_v34 = vadd.f32 %v1646_v35, %v1367_v13  ;;  %v2478_v40 = vmul.f32 %v9517_v51, %v12023_v50  ;;  %3833 = vperm.xlu1 %10996, %v11817_v21   ;;  %v3062_v61 = vadd.f32 %v2925_v57, %v2646_v12  ;;  %v9275_v15 = vld [vmem:[%s17374_s9 + $0x588] sm:$0xff]  ;;  %v9413_v35 = vld [vmem:[%s17374_s9 + $0x9d8] sm:$0xff] }
 0x567   : > { %10533 = vmatpush1.bf16.msra.mxu1 %v10532_v53  ;;  %v1784_v36 = vadd.f32 %v1647_v14, %v1368_v3  ;;  %v2479_v32 = vmul.f32 %v9518_v43, %v12023_v50  ;;  %v2894_v45 = vmul.f32 %v9654_v17, %v12079_v37  ;;  %v2895_v11 = vmul.f32 %v9655_v58, %v12079_v37  ;;  %v9412_v3 = vld [vmem:[%s17374_s9 + $0x9d0] sm:$0xff]  ;;  %v9549_v12 = vld [vmem:[%s17374_s9 + $0xe18] sm:$0xff] }
 0x568   : > { %v3477_v51 = vadd.f32 %v3340_v54, %v3061_v41  ;;  %10534 = vmatprep.subr.bf16.mxu1 %v17588_v24  ;;  %v2199_v57 = vadd.f32 %v2062_v9, %v1783_v34  ;;  %v3310_v13 = vmul.f32 %v9791_v38, %v12125_v1  ;;  %v3478_v43 = vadd.f32 %v3341_v26, %v3062_v61  ;;  %v9550_v26 = vld [vmem:[%s17374_s9 + $0xe20] sm:$0xff]  ;;  %v9687_v34 = vld [vmem:[%s17374_s9 + $0x1268] sm:$0xff] }
 0x569   : > { %v2200_v17 = vadd.f32 %v2063_v62, %v1784_v36  ;;  %v3311_v53 = vmul.f32 %v9792_v60, %v12125_v1  ;;  %v1399_v54 = vmul.f32 %v11915_v23, %v1253_v63  ;;  %v1400_v9 = vmul.f32 %v11915_v23, %v1254_v20  ;;  %v9686_v41 = vld [vmem:[%s17374_s9 + $0x1260] sm:$0xff]  ;;  %v9823_v61 = vld [vmem:[%s17374_s9 + $0x16a8] sm:$0xff] }
 0x56a   : > { %v2615_v14 = vadd.f32 %v2478_v40, %v2199_v57  ;;  %v1678_v58 = vmul.f32 %v9275_v15, %v11913_v8  ;;  %v1679_v38 = vmul.f32 %v9276_v7, %v11913_v8  ;;  %3838 = vperm.xlu1 %10996, %v11930_v18   ;;  %v12422_v62 = vpack.c.bf16 %v3478_v43, %v3477_v51  ;;  %v9824_v57 = vld [vmem:[%s17374_s9 + $0x16b0] sm:$0xff]  ;;  %v1224_v51 = vld [vmem:[%s17374_s9 + $0x58] sm:$0xff] }
 0x56b   : > { %v2616_v40 = vadd.f32 %v2479_v32, %v2200_v17  ;;  %v2094_v60 = vmul.f32 %v9412_v3, %v11980_v46  ;;  %v2095_v63 = vmul.f32 %v9413_v35, %v11980_v46  ;;  %v2510_v7 = vmul.f32 %v9549_v12, %v12023_v50  ;;  %v1223_v32 = vld [vmem:[%s17374_s9 + $0x50] sm:$0xff]  ;;  %v9245_v17 = vld [vmem:[%s17374_s9 + $0x498] sm:$0xff] }
 0x56c   : > { %v3031_v36 = vadd.f32 %v2894_v45, %v2615_v14  ;;  %v1815_v20 = vadd.f32 %v1678_v58, %v1399_v54  ;;  %v1816_v15 = vadd.f32 %v1679_v38, %v1400_v9  ;;  %10581 = vmatpush1.bf16.msra.mxu0 %v12422_v62  ;;  %v2511_v45 = vmul.f32 %v9550_v26, %v12023_v50  ;;  %v9246_v54 = vld [vmem:[%s17374_s9 + $0x4a0] sm:$0xff]  ;;  %v9383_v38 = vld [vmem:[%s17374_s9 + $0x8e8] sm:$0xff] }
 0x56d   : > { %v3032_v3 = vadd.f32 %v2895_v11, %v2616_v40  ;;  %v2926_v35 = vmul.f32 %v9686_v41, %v12079_v37  ;;  %v2927_v43 = vmul.f32 %v9687_v34, %v12079_v37  ;;  %10582 = vmatprep.subr.bf16.mxu0 %v17588_v24  ;;  %v3342_v11 = vmul.f32 %v9823_v61, %v12125_v1  ;;  %v9382_v58 = vld [vmem:[%s17374_s9 + $0x8e0] sm:$0xff]  ;;  %v9519_v26 = vld [vmem:[%s17374_s9 + $0xd28] sm:$0xff] }
 0x56e   : > { %v3447_v12 = vadd.f32 %v3310_v13, %v3031_v36  ;;  %v2231_v14 = vadd.f32 %v2094_v60, %v1815_v20  ;;  %v2232_v9 = vadd.f32 %v2095_v63, %v1816_v15  ;;  %v3343_v34 = vmul.f32 %v9824_v57, %v12125_v1  ;;  %v9520_v60 = vld [vmem:[%s17374_s9 + $0xd30] sm:$0xff]  ;;  %10998 = vset.pattern.permute.xlu1 %v17587_v56  ;;  %v9657_v15 = vld [vmem:[%s17374_s9 + $0x1178] sm:$0xff] }
 0x56f   : > { %v3448_v41 = vadd.f32 %v3311_v53, %v3032_v3  ;;  %v1369_v13 = vmul.f32 %v11915_v23, %v1223_v32  ;;  %v1370_v40 = vmul.f32 %v11915_v23, %v1224_v51  ;;  %v1648_v36 = vmul.f32 %v9245_v17, %v11913_v8  ;;  %v9656_v53 = vld [vmem:[%s17374_s9 + $0x1170] sm:$0xff]  ;;  %v9793_v57 = vld [vmem:[%s17374_s9 + $0x15b8] sm:$0xff]  ;;  %5171 = vperm.xlu1 %10998, %v11930_v18  }
 0x570   : > { %v2647_v63 = vadd.f32 %v2510_v7, %v2231_v14  ;;  %v2648_v61 = vadd.f32 %v2511_v45, %v2232_v9  ;;  %v1649_v20 = vmul.f32 %v9246_v54, %v11913_v8  ;;  %v2064_v32 = vmul.f32 %v9382_v58, %v11980_v46  ;;  %v1255_v45 = vld [vmem:[%s17374_s9 + $0x150] sm:$0xff]  ;;  %v9277_v58 = vld [vmem:[%s17374_s9 + $0x598] sm:$0xff] }
 0x571   : > { %v10535_v7 = vpack.c.bf16 %v3448_v41, %v3447_v12  ;;  %v2065_v51 = vmul.f32 %v9383_v38, %v11980_v46  ;;  %v2480_v3 = vmul.f32 %v9519_v26, %v12023_v50  ;;  %v1785_v14 = vadd.f32 %v1648_v36, %v1369_v13  ;;  %v1256_v12 = vld [vmem:[%s17374_s9 + $0x158] sm:$0xff]  ;;  %v9278_v41 = vld [vmem:[%s17374_s9 + $0x5a0] sm:$0xff]  ;;  %v12501_v13 = vpop.permute.xlu1 %3713  ;;  %v9804_v18 = vld [vmem:[%s17374_s9 + $0x1610] sm:$0xff] }
 0x572   : > { %v3063_v17 = vadd.f32 %v2926_v35, %v2647_v63  ;;  %v3064_v54 = vadd.f32 %v2927_v43, %v2648_v61  ;;  %v1786_v9 = vadd.f32 %v1649_v20, %v1370_v40  ;;  %v2481_v38 = vmul.f32 %v9520_v60, %v12023_v50  ;;  %17589 = vst [vmem:[#allocation34_spill] sm:$0xff] %v12501_v13  ;;  %v9414_v60 = vld [vmem:[%s17374_s9 + $0x9e0] sm:$0xff]  ;;  %v9415_v20 = vld [vmem:[%s17374_s9 + $0x9e8] sm:$0xff] }
 0x573   : > { %10536 = vmatpush1.bf16.msra.mxu1 %v10535_v7  ;;  %v2896_v35 = vmul.f32 %v9656_v53, %v12079_v37  ;;  %v2897_v43 = vmul.f32 %v9657_v15, %v12079_v37  ;;  %v3312_v26 = vmul.f32 %v9793_v57, %v12125_v1  ;;  %v2201_v61 = vadd.f32 %v2064_v32, %v1785_v14  ;;  %v9551_v53 = vld [vmem:[%s17374_s9 + $0xe28] sm:$0xff]  ;;  %v9552_v7 = vld [vmem:[%s17374_s9 + $0xe30] sm:$0xff]  ;;  %v9825_v14 = vld [vmem:[%s17374_s9 + $0x16b8] sm:$0xff] }
 0x574   : > { %v3479_v40 = vadd.f32 %v3342_v11, %v3063_v17  ;;  %v3480_v63 = vadd.f32 %v3343_v34, %v3064_v54  ;;  %10537 = vmatprep.subr.bf16.mxu1 %v17588_v24  ;;  %v2202_v36 = vadd.f32 %v2065_v51, %v1786_v9  ;;  %v3313_v15 = vmul.f32 %v9794_v59, %v12125_v1  ;;  %v9688_v59 = vld [vmem:[%s17374_s9 + $0x1270] sm:$0xff] }
 0x575   : > { %v1401_v11 = vmul.f32 %v11915_v23, %v1255_v45  ;;  %v1402_v34 = vmul.f32 %v11915_v23, %v1256_v12  ;;  %v1680_v57 = vmul.f32 %v9277_v58, %v11913_v8  ;;  %5175 = vperm.xlu1 %10998, %v11850_v6   ;;  %v2617_v51 = vadd.f32 %v2480_v3, %v2201_v61  ;;  %v9689_v45 = vld [vmem:[%s17374_s9 + $0x1278] sm:$0xff] }
 0x576   : > { %v12521_v32 = vpack.c.bf16 %v3480_v63, %v3479_v40  ;;  %v2618_v17 = vadd.f32 %v2481_v38, %v2202_v36  ;;  %v1681_v54 = vmul.f32 %v9278_v41, %v11913_v8  ;;  %v2096_v12 = vmul.f32 %v9414_v60, %v11980_v46  ;;  %v9826_v38 = vld [vmem:[%s17374_s9 + $0x16c0] sm:$0xff] }
 0x577   : > { %v1817_v9 = vadd.f32 %v1680_v57, %v1401_v11  ;;  %v2097_v3 = vmul.f32 %v9415_v20, %v11980_v46  ;;  %v2512_v58 = vmul.f32 %v9551_v53, %v12023_v50  ;;  %v3033_v41 = vadd.f32 %v2896_v35, %v2617_v51  ;;  %v1225_v11 = vld [vmem:[%s17374_s9 + $0x60] sm:$0xff]  ;;  %v12548_v57 = vpop.permute.xlu1 %5071 }
 0x578   : > { %10584 = vmatpush1.bf16.msra.mxu0 %v12521_v32  ;;  %v3034_v40 = vadd.f32 %v2897_v43, %v2618_v17  ;;  %v1818_v63 = vadd.f32 %v1681_v54, %v1402_v34  ;;  %v2513_v61 = vmul.f32 %v9552_v7, %v12023_v50  ;;  %v2928_v60 = vmul.f32 %v9688_v59, %v12079_v37 }
 0x579   : > { %10585 = vmatprep.subr.bf16.mxu0 %v17588_v24  ;;  %v2233_v36 = vadd.f32 %v2096_v12, %v1817_v9  ;;  %v2929_v20 = vmul.f32 %v9689_v45, %v12079_v37  ;;  %v3344_v53 = vmul.f32 %v9825_v14, %v12125_v1  ;;  %17590 = vst [vmem:[#allocation35_spill] sm:$0xff] %v12548_v57 }
 0x57a   : > { %v3449_v35 = vadd.f32 %v3312_v26, %v3033_v41  ;;  %v3450_v43 = vadd.f32 %v3313_v15, %v3034_v40  ;;  %v2234_v34 = vadd.f32 %v2097_v3, %v1818_v63  ;;  %v3345_v7 = vmul.f32 %v9826_v38, %v12125_v1  ;;  %10999 = vset.pattern.permute.xlu1 %v17586_v19  ;;  %v1226_v26 = vld [vmem:[%s17374_s9 + $0x68] sm:$0xff]  ;;  %v9248_v3 = vld [vmem:[%s17374_s9 + $0x4b0] sm:$0xff] }
 0x57b   : > { %v2649_v51 = vadd.f32 %v2512_v58, %v2233_v36  ;;  %v3919_v17 = vsub.f32 %v12501_v13, %v11873_v29  ;;  %v5246_v54 = vsub.f32 %v12548_v57, %v11897_v48  ;;  %v3921_v59 = vsub.f32 %v12501_v13, %v11875_v30  ;;  %v9247_v15 = vld [vmem:[%s17374_s9 + $0x4a8] sm:$0xff] }
 0x57c   : > { %v10538_v45 = vpack.c.bf16 %v3450_v43, %v3449_v35  ;;  %v2650_v14 = vadd.f32 %v2513_v61, %v2234_v34  ;;  %v5248_v9 = vsub.f32 %v12548_v57, %v11899_v52  ;;  %v1371_v12 = vmul.f32 %v11915_v23, %v1225_v11  ;;  %v9384_v35 = vld [vmem:[%s17374_s9 + $0x8f0] sm:$0xff] }
 0x57d   : > { %v3065_v58 = vadd.f32 %v2928_v60, %v2649_v51  ;;  %v4207_v38 = vand.u32 2147483647, %v3919_v17  ;;  %v5534_v41 = vand.u32 2147483647, %v5246_v54  ;;  %v4209_v40 = vand.u32 2147483647, %v3921_v59 }
 0x57e   : > { %10539 = vmatpush1.bf16.msra.mxu1 %v10538_v45  ;;  %v3066_v63 = vadd.f32 %v2929_v20, %v2650_v14  ;;  %v5536_v36 = vand.u32 2147483647, %v5248_v9  ;;  %v1372_v49 = vmul.f32 %v11915_v23, %v1226_v26  ;;  %v1650_v61 = vmul.f32 %v9247_v15, %v11913_v8  ;;  %v9385_v60 = vld [vmem:[%s17374_s9 + $0x8f8] sm:$0xff]  ;;  %v9659_v9 = vld [vmem:[%s17374_s9 + $0x1188] sm:$0xff] }
 0x57f   : > { %v3481_v11 = vadd.f32 %v3344_v53, %v3065_v58  ;;  %v4495_v43 = vsub.f32 1.0, %v4207_v38  ;;  %v5822_v34 = vsub.f32 1.0, %v5534_v41  ;;  %v4497_v6 = vsub.f32 1.0, %v4209_v40  ;;  %10540 = vmatprep.subr.bf16.mxu1 %v17588_v24  ;;  %v9521_v59 = vld [vmem:[%s17374_s9 + $0xd38] sm:$0xff]  ;;  %v9522_v53 = vld [vmem:[%s17374_s9 + $0xd40] sm:$0xff]  ;;  %v9796_v41 = vld [vmem:[%s17374_s9 + $0x15d0] sm:$0xff] }
 0x580   : > { %v3482_v20 = vadd.f32 %v3345_v7, %v3066_v63  ;;  %v5824_v51 = vsub.f32 1.0, %v5536_v36  ;;  %v1651_v17 = vmul.f32 %v9248_v3, %v11913_v8  ;;  %v1787_v54 = vadd.f32 %v1650_v61, %v1371_v12  ;;  %v9658_v7 = vld [vmem:[%s17374_s9 + $0x1180] sm:$0xff] }
 0x581   : > { %v4783_v26 = vmax.f32 %v4495_v43, 0.0  ;;  %v6110_v15 = vmax.f32 %v5822_v34, 0.0  ;;  %v4785_v45 = vmax.f32 %v4497_v6, 0.0  ;;  %v2066_v14 = vmul.f32 %v9384_v35, %v11980_v46  ;;  %v9795_v6 = vld [vmem:[%s17374_s9 + $0x15c8] sm:$0xff] }
 0x582   : > { %v12593_v12 = vpack.c.bf16 %v3482_v20, %v3481_v11  ;;  %v6112_v3 = vmax.f32 %v5824_v51, 0.0  ;;  %v1788_v58 = vadd.f32 %v1651_v17, %v1372_v49  ;;  %v2067_v38 = vmul.f32 %v9385_v60, %v11980_v46  ;;  %v1257_v49 = vld [vmem:[%s17374_s9 + $0x160] sm:$0xff]  ;;  %v1258_v35 = vld [vmem:[%s17374_s9 + $0x168] sm:$0xff]  ;;  %v9280_v51 = vld [vmem:[%s17374_s9 + $0x5b0] sm:$0xff] }
 0x583   : > { %v6398_v40 = vmul.f32 %v6110_v15, %v4783_v26  ;;  %v2203_v63 = vadd.f32 %v2066_v14, %v1787_v54  ;;  %v2482_v36 = vmul.f32 %v9521_v59, %v12023_v50  ;;  %v2483_v61 = vmul.f32 %v9522_v53, %v12023_v50  ;;  %v9279_v11 = vld [vmem:[%s17374_s9 + $0x5a8] sm:$0xff]  ;;  %v9416_v17 = vld [vmem:[%s17374_s9 + $0x9f0] sm:$0xff]  ;;  %v9417_v54 = vld [vmem:[%s17374_s9 + $0x9f8] sm:$0xff] }
 0x584   : > { %10587 = vmatpush1.bf16.msra.mxu0 %v12593_v12  ;;  %v6400_v43 = vmul.f32 %v6112_v3, %v4785_v45  ;;  %v2204_v34 = vadd.f32 %v2067_v38, %v1788_v58  ;;  %v2898_v60 = vmul.f32 %v9658_v7, %v12079_v37  ;;  %v2899_v20 = vmul.f32 %v9659_v9, %v12079_v37  ;;  %v9553_v15 = vld [vmem:[%s17374_s9 + $0xe38] sm:$0xff]  ;;  %v9554_v45 = vld [vmem:[%s17374_s9 + $0xe40] sm:$0xff] }
 0x585   : > { %6849 = vmatprep.mubr.f32.mxu1 %v6398_v40  ;;  %10588 = vmatprep.subr.bf16.mxu0 %v17588_v24  ;;  %v2619_v59 = vadd.f32 %v2482_v36, %v2203_v63  ;;  %v3314_v53 = vmul.f32 %v9795_v6, %v12125_v1  ;;  %v3315_v26 = vmul.f32 %v9796_v41, %v12125_v1  ;;  %v17591_v14 = vmax.f32 %v12184_v39, 0.0  ;;  %v9690_v6 = vld [vmem:[%s17374_s9 + $0x1280] sm:$0xff]  ;;  %v9691_v41 = vld [vmem:[%s17374_s9 + $0x1288] sm:$0xff] }
 0x586   : > { %7074 = vmatprep.mubr.f32.mxu0 %v6400_v43  ;;  %v2620_v9 = vadd.f32 %v2483_v61, %v2204_v34  ;;  %v1403_v3 = vmul.f32 %v11915_v23, %v1257_v49  ;;  %v1404_v58 = vmul.f32 %v11915_v23, %v1258_v35  ;;  %v1682_v38 = vmul.f32 %v9279_v11, %v11913_v8  ;;  %v9827_v61 = vld [vmem:[%s17374_s9 + $0x16c8] sm:$0xff]  ;;  %v9828_v49 = vld [vmem:[%s17374_s9 + $0x16d0] sm:$0xff] }
 0x587   : > { %v12636_v7 = vmin.f32 %v17591_v14, 32.0  ;;  %v3035_v40 = vadd.f32 %v2898_v60, %v2619_v59  ;;  %v1683_v39 = vmul.f32 %v9280_v51, %v11913_v8  ;;  %v2098_v63 = vmul.f32 %v9416_v17, %v11980_v46  ;;  %v1227_v60 = vld [vmem:[%s17374_s9 + $0x70] sm:$0xff]  ;;  %v1228_v51 = vld [vmem:[%s17374_s9 + $0x78] sm:$0xff]  ;;  %v9386_v14 = vld [vmem:[%s17374_s9 + $0x900] sm:$0xff] }
 0x588   : > { %v2099_v36 = vmul.f32 %v9417_v54, %v11980_v46  ;;  %v3036_v35 = vadd.f32 %v2899_v20, %v2620_v9  ;;  %v1819_v11 = vadd.f32 %v1682_v38, %v1403_v3  ;;  %v2514_v43 = vmul.f32 %v9553_v15, %v12023_v50  ;;  %v9249_v17 = vld [vmem:[%s17374_s9 + $0x4b8] sm:$0xff] }
 0x589   : > { %17592 = vst [vmem:[#allocation36_spill] sm:$0xff] %v12636_v7  ;;  %3848 = vperm.xlu1 %10999, %v12636_v7   ;;  %v2515_v34 = vmul.f32 %v9554_v45, %v12023_v50  ;;  %5179 = vperm.xlu0 %11000, %v12636_v7   ;;  %v3451_v20 = vadd.f32 %v3314_v53, %v3035_v40  ;;  %v9250_v45 = vld [vmem:[%s17374_s9 + $0x4c0] sm:$0xff]  ;;  %v9387_v53 = vld [vmem:[%s17374_s9 + $0x908] sm:$0xff]  ;;  %v9800_v7 = vld [vmem:[%s17374_s9 + $0x15f0] sm:$0xff] }
 0x58a   : > { %v1820_v54 = vadd.f32 %v1683_v39, %v1404_v58  ;;  %v2930_v59 = vmul.f32 %v9690_v6, %v12079_v37  ;;  %v2931_v15 = vmul.f32 %v9691_v41, %v12079_v37  ;;  %v3452_v9 = vadd.f32 %v3315_v26, %v3036_v35  ;;  %v9523_v58 = vld [vmem:[%s17374_s9 + $0xd48] sm:$0xff]  ;;  %v9524_v39 = vld [vmem:[%s17374_s9 + $0xd50] sm:$0xff] }
 0x58b   : > { %v2235_v3 = vadd.f32 %v2098_v63, %v1819_v11  ;;  %v3346_v38 = vmul.f32 %v9827_v61, %v12125_v1  ;;  %v3347_v21 = vmul.f32 %v9828_v49, %v12125_v1  ;;  %v1373_v41 = vmul.f32 %v11915_v23, %v1227_v60  ;;  %v9660_v63 = vld [vmem:[%s17374_s9 + $0x1190] sm:$0xff]  ;;  %v9661_v11 = vld [vmem:[%s17374_s9 + $0x1198] sm:$0xff] }
 0x58c   : > { %v2236_v6 = vadd.f32 %v2099_v36, %v1820_v54  ;;  %v1374_v40 = vmul.f32 %v11915_v23, %v1228_v51  ;;  %v1652_v26 = vmul.f32 %v9249_v17, %v11913_v8  ;;  %v10541_v61 = vpack.c.bf16 %v3452_v9, %v3451_v20  ;;  %v9797_v60 = vld [vmem:[%s17374_s9 + $0x15d8] sm:$0xff]  ;;  %v9798_v20 = vld [vmem:[%s17374_s9 + $0x15e0] sm:$0xff] }
 0x58d   : > { %v2651_v49 = vadd.f32 %v2514_v43, %v2235_v3  ;;  %v1653_v35 = vmul.f32 %v9250_v45, %v11913_v8  ;;  %v2068_v36 = vmul.f32 %v9386_v14, %v11980_v46  ;;  %11002 = vset.pattern.permute.xlu0 %v17586_v19  ;;  %v2069_v54 = vmul.f32 %v9387_v53, %v11980_v46  ;;  %v1259_v45 = vld [vmem:[%s17374_s9 + $0x170] sm:$0xff]  ;;  %v1260_v53 = vld [vmem:[%s17374_s9 + $0x178] sm:$0xff] }
 0x58e   : > { %v2652_v51 = vadd.f32 %v2515_v34, %v2236_v6  ;;  %v1789_v17 = vadd.f32 %v1652_v26, %v1373_v41  ;;  %v2484_v43 = vmul.f32 %v9523_v58, %v12023_v50  ;;  %10542 = vmatpush1.bf16.msra.mxu1 %v10541_v61  ;;  %v2485_v3 = vmul.f32 %v9524_v39, %v12023_v50  ;;  %v9281_v58 = vld [vmem:[%s17374_s9 + $0x5b8] sm:$0xff]  ;;  %v9418_v39 = vld [vmem:[%s17374_s9 + $0xa00] sm:$0xff] }
 0x58f   : > { %v3067_v14 = vadd.f32 %v2930_v59, %v2651_v49  ;;  %v1790_v9 = vadd.f32 %v1653_v35, %v1374_v40  ;;  %v2900_v34 = vmul.f32 %v9660_v63, %v12079_v37  ;;  %10543 = vmatprep.subr.bf16.mxu1 %v17588_v24  ;;  %v2901_v26 = vmul.f32 %v9661_v11, %v12079_v37  ;;  %v9282_v40 = vld [vmem:[%s17374_s9 + $0x5c0] sm:$0xff]  ;;  %v9419_v63 = vld [vmem:[%s17374_s9 + $0xa08] sm:$0xff] }
 0x590   : > { %v3068_v6 = vadd.f32 %v2931_v15, %v2652_v51  ;;  %v2205_v41 = vadd.f32 %v2068_v36, %v1789_v17  ;;  %v3316_v59 = vmul.f32 %v9797_v60, %v12125_v1  ;;  %v3317_v49 = vmul.f32 %v9798_v20, %v12125_v1  ;;  %v9555_v36 = vld [vmem:[%s17374_s9 + $0xe48] sm:$0xff] }
 0x591   : > { %v3483_v15 = vadd.f32 %v3346_v38, %v3067_v14  ;;  %v2206_v61 = vadd.f32 %v2069_v54, %v1790_v9  ;;  %v1405_v35 = vmul.f32 %v11915_v23, %v1259_v45  ;;  %v1406_v51 = vmul.f32 %v11915_v23, %v1260_v53  ;;  %v9692_v38 = vld [vmem:[%s17374_s9 + $0x1290] sm:$0xff]  ;;  %v9829_v14 = vld [vmem:[%s17374_s9 + $0x16d8] sm:$0xff] }
 0x592   : > { %v3484_v11 = vadd.f32 %v3347_v21, %v3068_v6  ;;  %v2621_v60 = vadd.f32 %v2484_v43, %v2205_v41  ;;  %v1684_v17 = vmul.f32 %v9281_v58, %v11913_v8  ;;  %v1685_v20 = vmul.f32 %v9282_v40, %v11913_v8  ;;  %v9693_v43 = vld [vmem:[%s17374_s9 + $0x1298] sm:$0xff]  ;;  %v9830_v6 = vld [vmem:[%s17374_s9 + $0x16e0] sm:$0xff] }
 0x593   : > { %v2622_v54 = vadd.f32 %v2485_v3, %v2206_v61  ;;  %v2100_v45 = vmul.f32 %v9418_v39, %v11980_v46  ;;  %v2101_v21 = vmul.f32 %v9419_v63, %v11980_v46  ;;  %v2516_v3 = vmul.f32 %v9555_v36, %v12023_v50  ;;  %v1229_v41 = vld [vmem:[%s17374_s9 + $0x80] sm:$0xff] }
 0x594   : > { %v12753_v9 = vpack.c.bf16 %v3484_v11, %v3483_v15  ;;  %v3037_v53 = vadd.f32 %v2900_v34, %v2621_v60  ;;  %v1821_v58 = vadd.f32 %v1684_v17, %v1405_v35  ;;  %v1822_v39 = vadd.f32 %v1685_v20, %v1406_v51  ;;  %v1230_v34 = vld [vmem:[%s17374_s9 + $0x88] sm:$0xff]  ;;  %v9252_v35 = vld [vmem:[%s17374_s9 + $0x4d0] sm:$0xff]  ;;  %v9389_v51 = vld [vmem:[%s17374_s9 + $0x918] sm:$0xff] }
 0x595   : > { %v3038_v40 = vadd.f32 %v2901_v26, %v2622_v54  ;;  %v2517_v63 = vmul.f32 %v9556_v33, %v12023_v50  ;;  %v2932_v61 = vmul.f32 %v9692_v38, %v12079_v37  ;;  %v9251_v15 = vld [vmem:[%s17374_s9 + $0x4c8] sm:$0xff]  ;;  %v2933_v33 = vmul.f32 %v9693_v43, %v12079_v37  ;;  %v9388_v60 = vld [vmem:[%s17374_s9 + $0x910] sm:$0xff]  ;;  %v9525_v20 = vld [vmem:[%s17374_s9 + $0xd58] sm:$0xff] }
 0x596   : > { %10590 = vmatpush1.bf16.msra.mxu0 %v12753_v9  ;;  %v3453_v26 = vadd.f32 %v3316_v59, %v3037_v53  ;;  %v2237_v36 = vadd.f32 %v2100_v45, %v1821_v58  ;;  %v3348_v11 = vmul.f32 %v9829_v14, %v12125_v1  ;;  %v2238_v38 = vadd.f32 %v2101_v21, %v1822_v39  ;;  %v9662_v21 = vld [vmem:[%s17374_s9 + $0x11a0] sm:$0xff]  ;;  %v9663_v58 = vld [vmem:[%s17374_s9 + $0x11a8] sm:$0xff] }
 0x597   : > { %10591 = vmatprep.subr.bf16.mxu0 %v17588_v24  ;;  %v3454_v17 = vadd.f32 %v3317_v49, %v3038_v40  ;;  %v3349_v54 = vmul.f32 %v9830_v6, %v12125_v1  ;;  %v1375_v59 = vmul.f32 %v11915_v23, %v1229_v41  ;;  %v1376_v43 = vmul.f32 %v11915_v23, %v1230_v34  ;;  %v9526_v49 = vld [vmem:[%s17374_s9 + $0xd60] sm:$0xff]  ;;  %v9799_v39 = vld [vmem:[%s17374_s9 + $0x15e8] sm:$0xff] }
 0x598   : > { %v2653_v45 = vadd.f32 %v2516_v3, %v2237_v36  ;;  %v1654_v14 = vmul.f32 %v9251_v15, %v11913_v8  ;;  %v1655_v53 = vmul.f32 %v9252_v35, %v11913_v8  ;;  %v2654_v3 = vadd.f32 %v2517_v63, %v2238_v38  ;;  %v1261_v63 = vld [vmem:[%s17374_s9 + $0x180] sm:$0xff]  ;;  %v9283_v38 = vld [vmem:[%s17374_s9 + $0x5c8] sm:$0xff] }
 0x599   : > { %v10544_v6 = vpack.c.bf16 %v3454_v17, %v3453_v26  ;;  %v2070_v41 = vmul.f32 %v9388_v60, %v11980_v46  ;;  %v2071_v40 = vmul.f32 %v9389_v51, %v11980_v46  ;;  %v2486_v36 = vmul.f32 %v9525_v20, %v12023_v50  ;;  %v1262_v26 = vld [vmem:[%s17374_s9 + $0x188] sm:$0xff] }
 0x59a   : > { %v3069_v34 = vadd.f32 %v2932_v61, %v2653_v45  ;;  %v1791_v15 = vadd.f32 %v1654_v14, %v1375_v59  ;;  %v1792_v35 = vadd.f32 %v1655_v53, %v1376_v43  ;;  %v3070_v60 = vadd.f32 %v2933_v33, %v2654_v3  ;;  %v9284_v59 = vld [vmem:[%s17374_s9 + $0x5d0] sm:$0xff]  ;;  %v9421_v53 = vld [vmem:[%s17374_s9 + $0xa18] sm:$0xff]  ;;  %v9558_v3 = vld [vmem:[%s17374_s9 + $0xe60] sm:$0xff] }
 0x59b   : > { %10545 = vmatpush1.bf16.msra.mxu1 %v10544_v6  ;;  %v2487_v61 = vmul.f32 %v9526_v49, %v12023_v50  ;;  %v2902_v51 = vmul.f32 %v9662_v21, %v12079_v37  ;;  %v2903_v17 = vmul.f32 %v9663_v58, %v12079_v37  ;;  %v3318_v33 = vmul.f32 %v9799_v39, %v12125_v1  ;;  %v9420_v14 = vld [vmem:[%s17374_s9 + $0xa10] sm:$0xff]  ;;  %v9557_v49 = vld [vmem:[%s17374_s9 + $0xe58] sm:$0xff] }
 0x59c   : > { %v3485_v20 = vadd.f32 %v3348_v11, %v3069_v34  ;;  %10546 = vmatprep.subr.bf16.mxu1 %v17588_v24  ;;  %v2207_v45 = vadd.f32 %v2070_v41, %v1791_v15  ;;  %v2208_v43 = vadd.f32 %v2071_v40, %v1792_v35  ;;  %v3486_v21 = vadd.f32 %v3349_v54, %v3070_v60  ;;  %v9694_v54 = vld [vmem:[%s17374_s9 + $0x12a0] sm:$0xff]  ;;  %v9831_v15 = vld [vmem:[%s17374_s9 + $0x16e8] sm:$0xff]  ;;  %v1231_v60 = vld [vmem:[%s17374_s9 + $0x90] sm:$0xff] }
 0x59d   : > { %v3319_v11 = vmul.f32 %v9800_v7, %v12125_v1  ;;  %v1407_v58 = vmul.f32 %v11915_v23, %v1261_v63  ;;  %v1408_v6 = vmul.f32 %v11915_v23, %v1262_v26  ;;  %v1686_v39 = vmul.f32 %v9283_v38, %v11913_v8  ;;  %v9695_v7 = vld [vmem:[%s17374_s9 + $0x12a8] sm:$0xff] }
 0x59e   : > { %v2623_v41 = vadd.f32 %v2486_v36, %v2207_v45  ;;  %v2624_v40 = vadd.f32 %v2487_v61, %v2208_v43  ;;  %v1687_v34 = vmul.f32 %v9284_v59, %v11913_v8  ;;  %v12852_v35 = vpack.c.bf16 %v3486_v21, %v3485_v20  ;;  %v9832_v43 = vld [vmem:[%s17374_s9 + $0x16f0] sm:$0xff]  ;;  %v1232_v20 = vld [vmem:[%s17374_s9 + $0x98] sm:$0xff]  ;;  %v9254_v21 = vld [vmem:[%s17374_s9 + $0x4e0] sm:$0xff] }
 0x59f   : > { %v2102_v36 = vmul.f32 %v9420_v14, %v11980_v46  ;;  %v2103_v63 = vmul.f32 %v9421_v53, %v11980_v46  ;;  %v2518_v26 = vmul.f32 %v9557_v49, %v12023_v50  ;;  %v1823_v59 = vadd.f32 %v1686_v39, %v1407_v58  ;;  %v9253_v14 = vld [vmem:[%s17374_s9 + $0x4d8] sm:$0xff]  ;;  %v9391_v39 = vld [vmem:[%s17374_s9 + $0x928] sm:$0xff] }
 0x5a0   : > { %v3039_v61 = vadd.f32 %v2902_v51, %v2623_v41  ;;  %v3040_v38 = vadd.f32 %v2903_v17, %v2624_v40  ;;  %v1824_v45 = vadd.f32 %v1687_v34, %v1408_v6  ;;  %10593 = vmatpush1.bf16.msra.mxu0 %v12852_v35  ;;  %v2519_v53 = vmul.f32 %v9558_v3, %v12023_v50  ;;  %v9390_v3 = vld [vmem:[%s17374_s9 + $0x920] sm:$0xff]  ;;  %v9527_v34 = vld [vmem:[%s17374_s9 + $0xd68] sm:$0xff] }
 0x5a1   : > { %v2934_v51 = vmul.f32 %v9694_v54, %v12079_v37  ;;  %v2935_v17 = vmul.f32 %v9695_v7, %v12079_v37  ;;  %v3350_v49 = vmul.f32 %v9831_v15, %v12125_v1  ;;  %10594 = vmatprep.subr.bf16.mxu0 %v17588_v24  ;;  %v2239_v41 = vadd.f32 %v2102_v36, %v1823_v59  ;;  %v9528_v15 = vld [vmem:[%s17374_s9 + $0xd70] sm:$0xff] }
 0x5a2   : > { %v3455_v58 = vadd.f32 %v3318_v33, %v3039_v61  ;;  %v3456_v6 = vadd.f32 %v3319_v11, %v3040_v38  ;;  %v2240_v40 = vadd.f32 %v2103_v63, %v1824_v45  ;;  %v3351_v54 = vmul.f32 %v9832_v43, %v12125_v1  ;;  %v9664_v59 = vld [vmem:[%s17374_s9 + $0x11b0] sm:$0xff]  ;;  %v9801_v45 = vld [vmem:[%s17374_s9 + $0x15f8] sm:$0xff] }
 0x5a3   : > { %v1377_v7 = vmul.f32 %v11915_v23, %v1231_v60  ;;  %v1378_v33 = vmul.f32 %v11915_v23, %v1232_v20  ;;  %v1656_v11 = vmul.f32 %v9253_v14, %v11913_v8  ;;  %v2655_v63 = vadd.f32 %v2518_v26, %v2239_v41  ;;  %v9665_v60 = vld [vmem:[%s17374_s9 + $0x11b8] sm:$0xff] }
 0x5a4   : > { %v10547_v36 = vpack.c.bf16 %v3456_v6, %v3455_v58  ;;  %v2656_v61 = vadd.f32 %v2519_v53, %v2240_v40  ;;  %v1657_v38 = vmul.f32 %v9254_v21, %v11913_v8  ;;  %v2072_v20 = vmul.f32 %v9390_v3, %v11980_v46  ;;  %v9802_v53 = vld [vmem:[%s17374_s9 + $0x1600] sm:$0xff]  ;;  %v1263_v40 = vld [vmem:[%s17374_s9 + $0x190] sm:$0xff]  ;;  %v1264_v3 = vld [vmem:[%s17374_s9 + $0x198] sm:$0xff] }
 0x5a5   : > { %v1793_v43 = vadd.f32 %v1656_v11, %v1377_v7  ;;  %v2073_v26 = vmul.f32 %v9391_v39, %v11980_v46  ;;  %v2488_v14 = vmul.f32 %v9527_v34, %v12023_v50  ;;  %v3071_v21 = vadd.f32 %v2934_v51, %v2655_v63  ;;  %v9285_v39 = vld [vmem:[%s17374_s9 + $0x5d8] sm:$0xff]  ;;  %v9422_v11 = vld [vmem:[%s17374_s9 + $0xa20] sm:$0xff] }
 0x5a6   : > { %10548 = vmatpush1.bf16.msra.mxu1 %v10547_v36  ;;  %v3072_v58 = vadd.f32 %v2935_v17, %v2656_v61  ;;  %v1794_v6 = vadd.f32 %v1657_v38, %v1378_v33  ;;  %v2489_v41 = vmul.f32 %v9528_v15, %v12023_v50  ;;  %v2904_v51 = vmul.f32 %v9664_v59, %v12079_v37  ;;  %v9286_v33 = vld [vmem:[%s17374_s9 + $0x5e0] sm:$0xff]  ;;  %v9423_v38 = vld [vmem:[%s17374_s9 + $0xa28] sm:$0xff] }
 0x5a7   : > { %10549 = vmatprep.subr.bf16.mxu1 %v17588_v24  ;;  %v2209_v34 = vadd.f32 %v2072_v20, %v1793_v43  ;;  %v2905_v17 = vmul.f32 %v9665_v60, %v12079_v37  ;;  %v3320_v7 = vmul.f32 %v9801_v45, %v12125_v1  ;;  %v3487_v15 = vadd.f32 %v3350_v49, %v3071_v21  ;;  %v9559_v59 = vld [vmem:[%s17374_s9 + $0xe68] sm:$0xff]  ;;  %v9560_v49 = vld [vmem:[%s17374_s9 + $0xe70] sm:$0xff] }
 0x5a8   : > { %v3488_v36 = vadd.f32 %v3351_v54, %v3072_v58  ;;  %v2210_v63 = vadd.f32 %v2073_v26, %v1794_v6  ;;  %v3321_v61 = vmul.f32 %v9802_v53, %v12125_v1  ;;  %v1409_v45 = vmul.f32 %v11915_v23, %v1263_v40  ;;  %v9696_v54 = vld [vmem:[%s17374_s9 + $0x12b0] sm:$0xff]  ;;  %v9697_v58 = vld [vmem:[%s17374_s9 + $0x12b8] sm:$0xff] }
 0x5a9   : > { %v2625_v60 = vadd.f32 %v2488_v14, %v2209_v34  ;;  %v1410_v43 = vmul.f32 %v11915_v23, %v1264_v3  ;;  %v1688_v20 = vmul.f32 %v9285_v39, %v11913_v8  ;;  %v1689_v21 = vmul.f32 %v9286_v33, %v11913_v8  ;;  %v9833_v6 = vld [vmem:[%s17374_s9 + $0x16f8] sm:$0xff]  ;;  %v1233_v33 = vld [vmem:[%s17374_s9 + $0xa0] sm:$0xff] }
 0x5aa   : > { %v12946_v26 = vpack.c.bf16 %v3488_v36, %v3487_v15  ;;  %v2626_v53 = vadd.f32 %v2489_v41, %v2210_v63  ;;  %v2104_v14 = vmul.f32 %v9422_v11, %v11980_v46  ;;  %v2105_v39 = vmul.f32 %v9423_v38, %v11980_v46  ;;  %v9834_v41 = vld [vmem:[%s17374_s9 + $0x1700] sm:$0xff]  ;;  %v1234_v63 = vld [vmem:[%s17374_s9 + $0xa8] sm:$0xff] }
 0x5ab   : > { %v3041_v40 = vadd.f32 %v2904_v51, %v2625_v60  ;;  %v1825_v3 = vadd.f32 %v1688_v20, %v1409_v45  ;;  %v2520_v34 = vmul.f32 %v9559_v59, %v12023_v50  ;;  %v1826_v15 = vadd.f32 %v1689_v21, %v1410_v43  ;;  %v9255_v38 = vld [vmem:[%s17374_s9 + $0x4e8] sm:$0xff]  ;;  %v9256_v59 = vld [vmem:[%s17374_s9 + $0x4f0] sm:$0xff] }
 0x5ac   : > { %10596 = vmatpush1.bf16.msra.mxu0 %v12946_v26  ;;  %v3042_v11 = vadd.f32 %v2905_v17, %v2626_v53  ;;  %v2521_v36 = vmul.f32 %v9560_v49, %v12023_v50  ;;  %v2936_v51 = vmul.f32 %v9696_v54, %v12079_v37  ;;  %v2937_v45 = vmul.f32 %v9697_v58, %v12079_v37  ;;  %v9392_v20 = vld [vmem:[%s17374_s9 + $0x930] sm:$0xff]  ;;  %v9393_v49 = vld [vmem:[%s17374_s9 + $0x938] sm:$0xff] }
 0x5ad   : > { %10597 = vmatprep.subr.bf16.mxu0 %v17588_v24  ;;  %v3457_v17 = vadd.f32 %v3320_v7, %v3041_v40  ;;  %v2241_v60 = vadd.f32 %v2104_v14, %v1825_v3  ;;  %v3352_v43 = vmul.f32 %v9833_v6, %v12125_v1  ;;  %v2242_v53 = vadd.f32 %v2105_v39, %v1826_v15  ;;  %v9529_v7 = vld [vmem:[%s17374_s9 + $0xd78] sm:$0xff]  ;;  %v9666_v3 = vld [vmem:[%s17374_s9 + $0x11c0] sm:$0xff]  ;;  %v9667_v39 = vld [vmem:[%s17374_s9 + $0x11c8] sm:$0xff] }
 0x5ae   : > { %v3458_v54 = vadd.f32 %v3321_v61, %v3042_v11  ;;  %v3353_v21 = vmul.f32 %v9834_v41, %v12125_v1  ;;  %v1379_v0 = vmul.f32 %v11915_v23, %v1233_v33  ;;  %v1380_v58 = vmul.f32 %v11915_v23, %v1234_v63  ;;  %v9530_v61 = vld [vmem:[%s17374_s9 + $0xd80] sm:$0xff]  ;;  %v9803_v15 = vld [vmem:[%s17374_s9 + $0x1608] sm:$0xff] }
 0x5af   : > { %v2657_v14 = vadd.f32 %v2520_v34, %v2241_v60  ;;  %v1658_v6 = vmul.f32 %v9255_v38, %v11913_v8  ;;  %v1659_v40 = vmul.f32 %v9256_v59, %v11913_v8  ;;  %v2658_v34 = vadd.f32 %v2521_v36, %v2242_v53  ;;  %v1265_v36 = vld [vmem:[%s17374_s9 + $0x1a0] sm:$0xff]  ;;  %v9288_v53 = vld [vmem:[%s17374_s9 + $0x5f0] sm:$0xff] }
 0x5b0   : > { %v10550_v41 = vpack.c.bf16 %v3458_v54, %v3457_v17  ;;  %v2074_v33 = vmul.f32 %v9392_v20, %v11980_v46  ;;  %v2075_v11 = vmul.f32 %v9393_v49, %v11980_v46  ;;  %v2490_v60 = vmul.f32 %v9529_v7, %v12023_v50  ;;  %v1266_v17 = vld [vmem:[%s17374_s9 + $0x1a8] sm:$0xff] }
 0x5b1   : > { %v3073_v63 = vadd.f32 %v2936_v51, %v2657_v14  ;;  %v1795_v38 = vadd.f32 %v1658_v6, %v1379_v0  ;;  %v1796_v59 = vadd.f32 %v1659_v40, %v1380_v58  ;;  %v3074_v20 = vadd.f32 %v2937_v45, %v2658_v34  ;;  %v9287_v54 = vld [vmem:[%s17374_s9 + $0x5e8] sm:$0xff]  ;;  %v9424_v6 = vld [vmem:[%s17374_s9 + $0xa30] sm:$0xff]  ;;  %v9425_v40 = vld [vmem:[%s17374_s9 + $0xa38] sm:$0xff] }
 0x5b2   : > { %10551 = vmatpush1.bf16.msra.mxu1 %v10550_v41  ;;  %v2491_v51 = vmul.f32 %v9530_v61, %v12023_v50  ;;  %v2906_v0 = vmul.f32 %v9666_v3, %v12079_v37  ;;  %v2907_v49 = vmul.f32 %v9667_v39, %v12079_v37  ;;  %v3322_v45 = vmul.f32 %v9803_v15, %v12125_v1  ;;  %v9561_v61 = vld [vmem:[%s17374_s9 + $0xe78] sm:$0xff]  ;;  %v9562_v34 = vld [vmem:[%s17374_s9 + $0xe80] sm:$0xff] }
 0x5b3   : > { %v3489_v7 = vadd.f32 %v3352_v43, %v3073_v63  ;;  %10552 = vmatprep.subr.bf16.mxu1 %v17588_v24  ;;  %v2211_v14 = vadd.f32 %v2074_v33, %v1795_v38  ;;  %v2212_v58 = vadd.f32 %v2075_v11, %v1796_v59  ;;  %v3490_v3 = vadd.f32 %v3353_v21, %v3074_v20  ;;  %v9698_v21 = vld [vmem:[%s17374_s9 + $0x12c0] sm:$0xff]  ;;  %v9835_v38 = vld [vmem:[%s17374_s9 + $0x1708] sm:$0xff] }
 0x5b4   : > { %v3323_v43 = vmul.f32 %v9804_v18, %v12125_v1  ;;  %v1411_v39 = vmul.f32 %v11915_v23, %v1265_v36  ;;  %v1412_v41 = vmul.f32 %v11915_v23, %v1266_v17  ;;  %v1690_v15 = vmul.f32 %v9287_v54, %v11913_v8  ;;  %v9699_v18 = vld [vmem:[%s17374_s9 + $0x12c8] sm:$0xff] }
 0x5b5   : > { %v2627_v33 = vadd.f32 %v2490_v60, %v2211_v14  ;;  %v2628_v11 = vadd.f32 %v2491_v51, %v2212_v58  ;;  %v1691_v63 = vmul.f32 %v9288_v53, %v11913_v8  ;;  %v13054_v59 = vpack.c.bf16 %v3490_v3, %v3489_v7  ;;  %v9836_v14 = vld [vmem:[%s17374_s9 + $0x1710] sm:$0xff]  ;;  %v1236_v7 = vld [vmem:[%s17374_s9 + $0xb8] sm:$0xff]  ;;  %v9258_v3 = vld [vmem:[%s17374_s9 + $0x500] sm:$0xff] }
 0x5b6   : > { %v2106_v60 = vmul.f32 %v9424_v6, %v11980_v46  ;;  %v2107_v36 = vmul.f32 %v9425_v40, %v11980_v46  ;;  %v2522_v17 = vmul.f32 %v9561_v61, %v12023_v50  ;;  %v1827_v54 = vadd.f32 %v1690_v15, %v1411_v39  ;;  %v1235_v58 = vld [vmem:[%s17374_s9 + $0xb0] sm:$0xff]  ;;  %v9257_v61 = vld [vmem:[%s17374_s9 + $0x4f8] sm:$0xff]  ;;  %v9395_v15 = vld [vmem:[%s17374_s9 + $0x948] sm:$0xff] }
 0x5b7   : > { %v3043_v20 = vadd.f32 %v2906_v0, %v2627_v33  ;;  %v3044_v51 = vadd.f32 %v2907_v49, %v2628_v11  ;;  %v1828_v53 = vadd.f32 %v1691_v63, %v1412_v41  ;;  %10599 = vmatpush1.bf16.msra.mxu0 %v13054_v59  ;;  %v2523_v6 = vmul.f32 %v9562_v34, %v12023_v50  ;;  %v9394_v11 = vld [vmem:[%s17374_s9 + $0x940] sm:$0xff]  ;;  %v9531_v63 = vld [vmem:[%s17374_s9 + $0xd88] sm:$0xff] }
 0x5b8   : > { %v2938_v0 = vmul.f32 %v9698_v21, %v12079_v37  ;;  %v2939_v49 = vmul.f32 %v9699_v18, %v12079_v37  ;;  %v3354_v40 = vmul.f32 %v9835_v38, %v12125_v1  ;;  %10600 = vmatprep.subr.bf16.mxu0 %v17588_v24  ;;  %v2243_v33 = vadd.f32 %v2106_v60, %v1827_v54  ;;  %v9532_v60 = vld [vmem:[%s17374_s9 + $0xd90] sm:$0xff] }
 0x5b9   : > { %v3459_v39 = vadd.f32 %v3322_v45, %v3043_v20  ;;  %v3460_v41 = vadd.f32 %v3323_v43, %v3044_v51  ;;  %v2244_v34 = vadd.f32 %v2107_v36, %v1828_v53  ;;  %v3355_v21 = vmul.f32 %v9836_v14, %v12125_v1  ;;  %v9668_v53 = vld [vmem:[%s17374_s9 + $0x11d0] sm:$0xff]  ;;  %v9805_v14 = vld [vmem:[%s17374_s9 + $0x1618] sm:$0xff] }
 0x5ba   : > { %v17593_v18 = vmax.f32 %v12195_v22, 0.0  ;;  %v1381_v43 = vmul.f32 %v11915_v23, %v1235_v58  ;;  %v1382_v38 = vmul.f32 %v11915_v23, %v1236_v7  ;;  %v2659_v20 = vadd.f32 %v2522_v17, %v2243_v33  ;;  %v9669_v22 = vld [vmem:[%s17374_s9 + $0x11d8] sm:$0xff] }
 0x5bb   : > { %v10553_v36 = vpack.c.bf16 %v3460_v41, %v3459_v39  ;;  %v2660_v51 = vadd.f32 %v2523_v6, %v2244_v34  ;;  %v1660_v54 = vmul.f32 %v9257_v61, %v11913_v8  ;;  %v1661_v58 = vmul.f32 %v9258_v3, %v11913_v8  ;;  %v9806_v61 = vld [vmem:[%s17374_s9 + $0x1620] sm:$0xff]  ;;  %v1267_v3 = vld [vmem:[%s17374_s9 + $0x1b0] sm:$0xff] }
 0x5bc   : > { %v13092_v45 = vmin.f32 %v17593_v18, 32.0  ;;  %v2076_v17 = vmul.f32 %v9394_v11, %v11980_v46  ;;  %v2077_v7 = vmul.f32 %v9395_v15, %v11980_v46  ;;  %v2492_v6 = vmul.f32 %v9531_v63, %v12023_v50  ;;  %v1268_v11 = vld [vmem:[%s17374_s9 + $0x1b8] sm:$0xff] }
 0x5bd   : > { %10554 = vmatpush1.bf16.msra.mxu1 %v10553_v36  ;;  %v3075_v39 = vadd.f32 %v2938_v0, %v2659_v20  ;;  %v3076_v41 = vadd.f32 %v2939_v49, %v2660_v51  ;;  %v1797_v33 = vadd.f32 %v1660_v54, %v1381_v43  ;;  %v2493_v34 = vmul.f32 %v9532_v60, %v12023_v50  ;;  %v9289_v15 = vld [vmem:[%s17374_s9 + $0x5f8] sm:$0xff]  ;;  %v9290_v43 = vld [vmem:[%s17374_s9 + $0x600] sm:$0xff] }
 0x5be   : > { %17594 = vst [vmem:[#allocation37_spill] sm:$0xff] %v13092_v45  ;;  %3853 = vperm.xlu1 %10999, %v13092_v45   ;;  %10555 = vmatprep.subr.bf16.mxu1 %v17588_v24  ;;  %v1798_v63 = vadd.f32 %v1661_v58, %v1382_v38  ;;  %v2908_v0 = vmul.f32 %v9668_v53, %v12079_v37  ;;  %v9426_v60 = vld [vmem:[%s17374_s9 + $0xa40] sm:$0xff]  ;;  %v9427_v38 = vld [vmem:[%s17374_s9 + $0xa48] sm:$0xff] }
 0x5bf   : > { %v2909_v49 = vmul.f32 %v9669_v22, %v12079_v37  ;;  %v3324_v18 = vmul.f32 %v9805_v14, %v12125_v1  ;;  %v3491_v36 = vadd.f32 %v3354_v40, %v3075_v39  ;;  %v3492_v20 = vadd.f32 %v3355_v21, %v3076_v41  ;;  %v9563_v53 = vld [vmem:[%s17374_s9 + $0xe88] sm:$0xff]  ;;  %v9564_v40 = vld [vmem:[%s17374_s9 + $0xe90] sm:$0xff]  ;;  %v9701_v41 = vld [vmem:[%s17374_s9 + $0x12d8] sm:$0xff] }
 0x5c0   : > { %v2213_v51 = vadd.f32 %v2076_v17, %v1797_v33  ;;  %v3325_v54 = vmul.f32 %v9806_v61, %v12125_v1  ;;  %v2214_v22 = vadd.f32 %v2077_v7, %v1798_v63  ;;  %v1413_v14 = vmul.f32 %v11915_v23, %v1267_v3  ;;  %v9700_v21 = vld [vmem:[%s17374_s9 + $0x12d0] sm:$0xff]  ;;  %v9837_v33 = vld [vmem:[%s17374_s9 + $0x1718] sm:$0xff]  ;;  %v9838_v63 = vld [vmem:[%s17374_s9 + $0x1720] sm:$0xff] }
 0x5c1   : > { %v1414_v58 = vmul.f32 %v11915_v23, %v1268_v11  ;;  %v1692_v25 = vmul.f32 %v9289_v15, %v11913_v8  ;;  %v13154_v17 = vpack.c.bf16 %v3492_v20, %v3491_v36  ;;  %v1693_v7 = vmul.f32 %v9290_v43, %v11913_v8  ;;  %v1237_v43 = vld [vmem:[%s17374_s9 + $0xc0] sm:$0xff] }
 0x5c2   : > { %11001 = vset.pattern.permute.xlu1 %v17587_v56  ;;  %v2629_v61 = vadd.f32 %v2492_v6, %v2213_v51  ;;  %v2108_v39 = vmul.f32 %v9426_v60, %v11980_v46  ;;  %v2630_v3 = vadd.f32 %v2493_v34, %v2214_v22  ;;  %v2109_v15 = vmul.f32 %v9427_v38, %v11980_v46  ;;  %v1238_v34 = vld [vmem:[%s17374_s9 + $0xc8] sm:$0xff] }
 0x5c3   : > { %17595 = vst [vmem:[#allocation38_spill] sm:$0xff] %v13154_v17  ;;  %5183 = vperm.xlu1 %11001, %v13092_v45   ;;  %v1829_v11 = vadd.f32 %v1692_v25, %v1413_v14  ;;  %v2524_v6 = vmul.f32 %v9563_v53, %v12023_v50  ;;  %10602 = vmatpush1.bf16.msra.mxu0 %v13154_v17  ;;  %v9259_v51 = vld [vmem:[%s17374_s9 + $0x508] sm:$0xff]  ;;  %v9260_v14 = vld [vmem:[%s17374_s9 + $0x510] sm:$0xff]  ;;  %v9534_v45 = vld [vmem:[%s17374_s9 + $0xda0] sm:$0xff] }
 0x5c4   : > { %v3045_v60 = vadd.f32 %v2908_v0, %v2629_v61  ;;  %v1830_v36 = vadd.f32 %v1693_v7, %v1414_v58  ;;  %v2525_v20 = vmul.f32 %v9564_v40, %v12023_v50  ;;  %v2940_v25 = vmul.f32 %v9700_v21, %v12079_v37  ;;  %10603 = vmatprep.subr.bf16.mxu0 %v17588_v24  ;;  %v9396_v58 = vld [vmem:[%s17374_s9 + $0x950] sm:$0xff]  ;;  %v9397_v40 = vld [vmem:[%s17374_s9 + $0x958] sm:$0xff] }
 0x5c5   : > { %v3046_v38 = vadd.f32 %v2909_v49, %v2630_v3  ;;  %v2245_v53 = vadd.f32 %v2108_v39, %v1829_v11  ;;  %v2941_v22 = vmul.f32 %v9701_v41, %v12079_v37  ;;  %v3356_v0 = vmul.f32 %v9837_v33, %v12125_v1  ;;  %v9533_v39 = vld [vmem:[%s17374_s9 + $0xd98] sm:$0xff] }
 0x5c6   : > { %v3461_v21 = vadd.f32 %v3324_v18, %v3045_v60  ;;  %v2246_v61 = vadd.f32 %v2109_v15, %v1830_v36  ;;  %v3357_v49 = vmul.f32 %v9838_v63, %v12125_v1  ;;  %v1383_v7 = vmul.f32 %v11915_v23, %v1237_v43  ;;  %v9670_v18 = vld [vmem:[%s17374_s9 + $0x11e0] sm:$0xff]  ;;  %v9807_v60 = vld [vmem:[%s17374_s9 + $0x1628] sm:$0xff] }
 0x5c7   : > { %v3462_v41 = vadd.f32 %v3325_v54, %v3046_v38  ;;  %v2661_v33 = vadd.f32 %v2524_v6, %v2245_v53  ;;  %v1384_v3 = vmul.f32 %v11915_v23, %v1238_v34  ;;  %v1662_v11 = vmul.f32 %v9259_v51, %v11913_v8  ;;  %v9671_v6 = vld [vmem:[%s17374_s9 + $0x11e8] sm:$0xff]  ;;  %v1269_v53 = vld [vmem:[%s17374_s9 + $0x1c0] sm:$0xff] }
 0x5c8   : > { %v2662_v15 = vadd.f32 %v2525_v20, %v2246_v61  ;;  %v1663_v63 = vmul.f32 %v9260_v14, %v11913_v8  ;;  %v2078_v43 = vmul.f32 %v9396_v58, %v11980_v46  ;;  %v2079_v54 = vmul.f32 %v9397_v40, %v11980_v46  ;;  %v9808_v20 = vld [vmem:[%s17374_s9 + $0x1630] sm:$0xff] }
 0x5c9   : > { %v10556_v36 = vpack.c.bf16 %v3462_v41, %v3461_v21  ;;  %v3077_v34 = vadd.f32 %v2940_v25, %v2661_v33  ;;  %v1799_v51 = vadd.f32 %v1662_v11, %v1383_v7  ;;  %v2494_v38 = vmul.f32 %v9533_v39, %v12023_v50  ;;  %v1270_v25 = vld [vmem:[%s17374_s9 + $0x1c8] sm:$0xff]  ;;  %v9292_v7 = vld [vmem:[%s17374_s9 + $0x610] sm:$0xff] }
 0x5ca   : > { %v3078_v14 = vadd.f32 %v2941_v22, %v2662_v15  ;;  %v1800_v58 = vadd.f32 %v1663_v63, %v1384_v3  ;;  %v2495_v40 = vmul.f32 %v9534_v45, %v12023_v50  ;;  %v2910_v61 = vmul.f32 %v9670_v18, %v12079_v37  ;;  %v9291_v21 = vld [vmem:[%s17374_s9 + $0x608] sm:$0xff]  ;;  %v9428_v33 = vld [vmem:[%s17374_s9 + $0xa50] sm:$0xff]  ;;  %v9429_v3 = vld [vmem:[%s17374_s9 + $0xa58] sm:$0xff] }
 0x5cb   : > { %10557 = vmatpush1.bf16.msra.mxu1 %v10556_v36  ;;  %v3493_v39 = vadd.f32 %v3356_v0, %v3077_v34  ;;  %v2215_v22 = vadd.f32 %v2078_v43, %v1799_v51  ;;  %v2911_v41 = vmul.f32 %v9671_v6, %v12079_v37  ;;  %v3326_v45 = vmul.f32 %v9807_v60, %v12125_v1  ;;  %v9565_v63 = vld [vmem:[%s17374_s9 + $0xe98] sm:$0xff]  ;;  %v9703_v34 = vld [vmem:[%s17374_s9 + $0x12e8] sm:$0xff] }
 0x5cc   : > { %v3494_v11 = vadd.f32 %v3357_v49, %v3078_v14  ;;  %10558 = vmatprep.subr.bf16.mxu1 %v17588_v24  ;;  %v2216_v18 = vadd.f32 %v2079_v54, %v1800_v58  ;;  %v3327_v15 = vmul.f32 %v9808_v20, %v12125_v1  ;;  %v1415_v0 = vmul.f32 %v11915_v23, %v1269_v53  ;;  %v9566_v49 = vld [vmem:[%s17374_s9 + $0xea0] sm:$0xff]  ;;  %v9839_v14 = vld [vmem:[%s17374_s9 + $0x1728] sm:$0xff] }
 0x5cd   : > { %v2631_v43 = vadd.f32 %v2494_v38, %v2215_v22  ;;  %v1416_v6 = vmul.f32 %v11915_v23, %v1270_v25  ;;  %v1694_v60 = vmul.f32 %v9291_v21, %v11913_v8  ;;  %v1695_v36 = vmul.f32 %v9292_v7, %v11913_v8  ;;  %v9702_v54 = vld [vmem:[%s17374_s9 + $0x12e0] sm:$0xff]  ;;  %v9840_v22 = vld [vmem:[%s17374_s9 + $0x1730] sm:$0xff] }
 0x5ce   : > { %v13260_v51 = vpack.c.bf16 %v3494_v11, %v3493_v39  ;;  %v2632_v38 = vadd.f32 %v2495_v40, %v2216_v18  ;;  %v2110_v20 = vmul.f32 %v9428_v33, %v11980_v46  ;;  %v2111_v53 = vmul.f32 %v9429_v3, %v11980_v46  ;;  %v3605_v39 = vld [vmem:[%s11709_s17 + $0xe8] sm:$0xff]  ;;  %v1239_v40 = vld [vmem:[%s17374_s9 + $0xd0] sm:$0xff]  ;;  %v1240_v18 = vld [vmem:[%s17374_s9 + $0xd8] sm:$0xff] }
 0x5cf   : > { %v3047_v58 = vadd.f32 %v2910_v61, %v2631_v43  ;;  %v1831_v25 = vadd.f32 %v1694_v60, %v1415_v0  ;;  %v1832_v21 = vadd.f32 %v1695_v36, %v1416_v6  ;;  %v2526_v7 = vmul.f32 %v9565_v63, %v12023_v50  ;;  %v9261_v0 = vld [vmem:[%s17374_s9 + $0x518] sm:$0xff]  ;;  %v9262_v60 = vld [vmem:[%s17374_s9 + $0x520] sm:$0xff] }
 0x5d0   : > { %17596 = vst [vmem:[#allocation39_spill] sm:$0xff] %v13260_v51  ;;  %10605 = vmatpush1.bf16.msra.mxu0 %v13260_v51  ;;  %v3048_v33 = vadd.f32 %v2911_v41, %v2632_v38  ;;  %v2527_v3 = vmul.f32 %v9566_v49, %v12023_v50  ;;  %v2942_v61 = vmul.f32 %v9702_v54, %v12079_v37  ;;  %v9398_v36 = vld [vmem:[%s17374_s9 + $0x960] sm:$0xff] }
 0x5d1   : > { %v2943_v11 = vmul.f32 %v9703_v34, %v12079_v37  ;;  %10606 = vmatprep.subr.bf16.mxu0 %v17588_v24  ;;  %v3463_v63 = vadd.f32 %v3326_v45, %v3047_v58  ;;  %v2247_v43 = vadd.f32 %v2110_v20, %v1831_v25  ;;  %v2248_v6 = vadd.f32 %v2111_v53, %v1832_v21  ;;  %v9399_v45 = vld [vmem:[%s17374_s9 + $0x968] sm:$0xff] }
 0x5d2   : > { %v3358_v41 = vmul.f32 %v9839_v14, %v12125_v1  ;;  %v3464_v49 = vadd.f32 %v3327_v15, %v3048_v33  ;;  %v3359_v54 = vmul.f32 %v9840_v22, %v12125_v1  ;;  %v3637_v34 = vmul.f32 31.999968, %v3605_v39  ;;  %v9535_v25 = vld [vmem:[%s17374_s9 + $0xda8] sm:$0xff]  ;;  %v9536_v15 = vld [vmem:[%s17374_s9 + $0xdb0] sm:$0xff] }
 0x5d3   : > { %v1385_v38 = vmul.f32 %v11915_v23, %v1239_v40  ;;  %v2663_v20 = vadd.f32 %v2526_v7, %v2247_v43  ;;  %v2664_v53 = vadd.f32 %v2527_v3, %v2248_v6  ;;  %v1386_v14 = vmul.f32 %v11915_v23, %v1240_v18  ;;  %v9672_v7 = vld [vmem:[%s17374_s9 + $0x11f0] sm:$0xff]  ;;  %v9673_v43 = vld [vmem:[%s17374_s9 + $0x11f8] sm:$0xff]  ;;  %v9810_v6 = vld [vmem:[%s17374_s9 + $0x1640] sm:$0xff] }
 0x5d4   : > { %v1664_v58 = vmul.f32 %v9261_v0, %v11913_v8  ;;  %v10559_v21 = vpack.c.bf16 %v3464_v49, %v3463_v63  ;;  %v3669_v22 = vmax.f32 %v3637_v34, 0.0  ;;  %v1665_v39 = vmul.f32 %v9262_v60, %v11913_v8  ;;  %v9809_v63 = vld [vmem:[%s17374_s9 + $0x1638] sm:$0xff]  ;;  %v1271_v49 = vld [vmem:[%s17374_s9 + $0x1d0] sm:$0xff] }
 0x5d5   : > { %v2080_v40 = vmul.f32 %v9398_v36, %v11980_v46  ;;  %v3079_v33 = vadd.f32 %v2942_v61, %v2663_v20  ;;  %v3080_v3 = vadd.f32 %v2943_v11, %v2664_v53  ;;  %v2081_v0 = vmul.f32 %v9399_v45, %v11980_v46  ;;  %v1272_v34 = vld [vmem:[%s17374_s9 + $0x1d8] sm:$0xff] }
 0x5d6   : > { %v1801_v18 = vadd.f32 %v1664_v58, %v1385_v38  ;;  %10560 = vmatpush1.bf16.msra.mxu1 %v10559_v21  ;;  %v13321_v60 = vmin.f32 %v3669_v22, 32.0  ;;  %v1802_v61 = vadd.f32 %v1665_v39, %v1386_v14  ;;  %v2496_v11 = vmul.f32 %v9535_v25, %v12023_v50  ;;  %v9293_v14 = vld [vmem:[%s17374_s9 + $0x618] sm:$0xff]  ;;  %v9294_v58 = vld [vmem:[%s17374_s9 + $0x620] sm:$0xff]  ;;  %v9431_v22 = vld [vmem:[%s17374_s9 + $0xa68] sm:$0xff] }
 0x5d7   : > { %v2497_v36 = vmul.f32 %v9536_v15, %v12023_v50  ;;  %v3495_v38 = vadd.f32 %v3358_v41, %v3079_v33  ;;  %v3496_v45 = vadd.f32 %v3359_v54, %v3080_v3  ;;  %10561 = vmatprep.subr.bf16.mxu1 %v17588_v24  ;;  %v2912_v53 = vmul.f32 %v9672_v7, %v12079_v37  ;;  %v9430_v25 = vld [vmem:[%s17374_s9 + $0xa60] sm:$0xff]  ;;  %v9567_v39 = vld [vmem:[%s17374_s9 + $0xea8] sm:$0xff] }
 0x5d8   : > { %17597 = vst [vmem:[#allocation40_spill] sm:$0xff] %v13321_v60  ;;  %v2217_v20 = vadd.f32 %v2080_v40, %v1801_v18  ;;  %5187 = vperm.xlu1 %11001, %v13321_v60   ;;  %v2218_v41 = vadd.f32 %v2081_v0, %v1802_v61  ;;  %v2913_v54 = vmul.f32 %v9673_v43, %v12079_v37  ;;  %v9568_v40 = vld [vmem:[%s17374_s9 + $0xeb0] sm:$0xff] }
 0x5d9   : > { %v3328_v15 = vmul.f32 %v9809_v63, %v12125_v1  ;;  %v3329_v21 = vmul.f32 %v9810_v6, %v12125_v1  ;;  %v13355_v7 = vpack.c.bf16 %v3496_v45, %v3495_v38  ;;  %v1417_v3 = vmul.f32 %v11915_v23, %v1271_v49  ;;  %v9704_v0 = vld [vmem:[%s17374_s9 + $0x12f0] sm:$0xff]  ;;  %3858 = vperm.xlu0 %11002, %v13321_v60   ;;  %v9841_v49 = vld [vmem:[%s17374_s9 + $0x1738] sm:$0xff] }
 0x5da   : > { %v2633_v33 = vadd.f32 %v2496_v11, %v2217_v20  ;;  %v1418_v18 = vmul.f32 %v11915_v23, %v1272_v34  ;;  %v2634_v43 = vadd.f32 %v2497_v36, %v2218_v41  ;;  %v1696_v63 = vmul.f32 %v9293_v14, %v11913_v8  ;;  %v9705_v11 = vld [vmem:[%s17374_s9 + $0x12f8] sm:$0xff]  ;;  %v9842_v34 = vld [vmem:[%s17374_s9 + $0x1740] sm:$0xff] }
 0x5db   : > { %17598 = vst [vmem:[#allocation41_spill] sm:$0xff] %v13355_v7  ;;  %v1697_v6 = vmul.f32 %v9294_v58, %v11913_v8  ;;  %v2112_v61 = vmul.f32 %v9430_v25, %v11980_v46  ;;  %10608 = vmatpush1.bf16.msra.mxu0 %v13355_v7  ;;  %v2113_v38 = vmul.f32 %v9431_v22, %v11980_v46  ;;  %v1241_v14 = vld [vmem:[%s17374_s9 + $0xe0] sm:$0xff]  ;;  %v1242_v58 = vld [vmem:[%s17374_s9 + $0xe8] sm:$0xff] }
 0x5dc   : > { %v3049_v36 = vadd.f32 %v2912_v53, %v2633_v33  ;;  %v2528_v45 = vmul.f32 %v9567_v39, %v12023_v50  ;;  %v2529_v20 = vmul.f32 %v9568_v40, %v12023_v50  ;;  %10609 = vmatprep.subr.bf16.mxu0 %v17588_v24  ;;  %v3050_v25 = vadd.f32 %v2913_v54, %v2634_v43  ;;  %v9263_v22 = vld [vmem:[%s17374_s9 + $0x528] sm:$0xff]  ;;  %v9264_v39 = vld [vmem:[%s17374_s9 + $0x530] sm:$0xff] }
 0x5dd   : > { %v1833_v41 = vadd.f32 %v1696_v63, %v1417_v3  ;;  %v1834_v60 = vadd.f32 %v1697_v6, %v1418_v18  ;;  %v2944_v53 = vmul.f32 %v9704_v0, %v12079_v37  ;;  %v9400_v40 = vld [vmem:[%s17374_s9 + $0x970] sm:$0xff]  ;;  %v2945_v7 = vmul.f32 %v9705_v11, %v12079_v37  ;;  %11003 = vset.pattern.permute.xlu1 %v17586_v19  ;;  %v9401_v18 = vld [vmem:[%s17374_s9 + $0x978] sm:$0xff]  ;;  %v9538_v11 = vld [vmem:[%s17374_s9 + $0xdc0] sm:$0xff] }
 0x5de   : > { %v3465_v33 = vadd.f32 %v3328_v15, %v3049_v36  ;;  %v3360_v54 = vmul.f32 %v9841_v49, %v12125_v1  ;;  %v3361_v3 = vmul.f32 %v9842_v34, %v12125_v1  ;;  %v3466_v0 = vadd.f32 %v3329_v21, %v3050_v25  ;;  %v9537_v15 = vld [vmem:[%s17374_s9 + $0xdb8] sm:$0xff]  ;;  %11004 = vset.pattern.permute.xlu0 %v17587_v56  ;;  %v9675_v34 = vld [vmem:[%s17374_s9 + $0x1208] sm:$0xff] }
 0x5df   : > { %v2249_v43 = vadd.f32 %v2112_v61, %v1833_v41  ;;  %v2250_v63 = vadd.f32 %v2113_v38, %v1834_v60  ;;  %v1387_v6 = vmul.f32 %v11915_v23, %v1241_v14  ;;  %v1388_v19 = vmul.f32 %v11915_v23, %v1242_v58  ;;  %v9674_v61 = vld [vmem:[%s17374_s9 + $0x1200] sm:$0xff]  ;;  %v9811_v58 = vld [vmem:[%s17374_s9 + $0x1648] sm:$0xff]  ;;  %v9812_v41 = vld [vmem:[%s17374_s9 + $0x1650] sm:$0xff] }
 0x5e0   : > { %v1666_v49 = vmul.f32 %v9263_v22, %v11913_v8  ;;  %v1667_v21 = vmul.f32 %v9264_v39, %v11913_v8  ;;  %v2082_v60 = vmul.f32 %v9400_v40, %v11980_v46  ;;  %v10562_v36 = vpack.c.bf16 %v3466_v0, %v3465_v33 }
 0x5e1   : > { %v2665_v38 = vadd.f32 %v2528_v45, %v2249_v43  ;;  %v2666_v14 = vadd.f32 %v2529_v20, %v2250_v63  ;;  %v2083_v25 = vmul.f32 %v9401_v18, %v11980_v46  ;;  %v2498_v40 = vmul.f32 %v9537_v15, %v12023_v50  ;;  %v1273_v45 = vld [vmem:[%s17374_s9 + $0x1e0] sm:$0xff]  ;;  %v1274_v20 = vld [vmem:[%s17374_s9 + $0x1e8] sm:$0xff] }
 0x5e2   : > { %v1803_v22 = vadd.f32 %v1666_v49, %v1387_v6  ;;  %v1804_v39 = vadd.f32 %v1667_v21, %v1388_v19  ;;  %v2499_v51 = vmul.f32 %v9538_v11, %v12023_v50  ;;  %10563 = vmatpush1.bf16.msra.mxu1 %v10562_v36  ;;  %v2914_v0 = vmul.f32 %v9674_v61, %v12079_v37  ;;  %v9295_v63 = vld [vmem:[%s17374_s9 + $0x628] sm:$0xff]  ;;  %v9296_v6 = vld [vmem:[%s17374_s9 + $0x630] sm:$0xff]  ;;  %v9433_v49 = vld [vmem:[%s17374_s9 + $0xa78] sm:$0xff] }
 0x5e3   : > { %v3081_v33 = vadd.f32 %v2944_v53, %v2665_v38  ;;  %v3082_v18 = vadd.f32 %v2945_v7, %v2666_v14  ;;  %v2915_v43 = vmul.f32 %v9675_v34, %v12079_v37  ;;  %10564 = vmatprep.subr.bf16.mxu1 %v17588_v24  ;;  %v3330_v19 = vmul.f32 %v9811_v58, %v12125_v1  ;;  %v9432_v53 = vld [vmem:[%s17374_s9 + $0xa70] sm:$0xff]  ;;  %v9569_v21 = vld [vmem:[%s17374_s9 + $0xeb8] sm:$0xff]  ;;  %v9570_v38 = vld [vmem:[%s17374_s9 + $0xec0] sm:$0xff] }
 0x5e4   : > { %v2219_v15 = vadd.f32 %v2082_v60, %v1803_v22  ;;  %v2220_v11 = vadd.f32 %v2083_v25, %v1804_v39  ;;  %v3331_v7 = vmul.f32 %v9812_v41, %v12125_v1  ;;  %v1419_v60 = vmul.f32 %v11915_v23, %v1273_v45  ;;  %v9843_v22 = vld [vmem:[%s17374_s9 + $0x1748] sm:$0xff] }
 0x5e5   : > { %v3497_v61 = vadd.f32 %v3360_v54, %v3081_v33  ;;  %v3498_v34 = vadd.f32 %v3361_v3, %v3082_v18  ;;  %v1420_v36 = vmul.f32 %v11915_v23, %v1274_v20  ;;  %v1698_v58 = vmul.f32 %v9295_v63, %v11913_v8  ;;  %v9706_v54 = vld [vmem:[%s17374_s9 + $0x1300] sm:$0xff]  ;;  %v9707_v3 = vld [vmem:[%s17374_s9 + $0x1308] sm:$0xff]  ;;  %v1243_v20 = vld [vmem:[%s17374_s9 + $0xf0] sm:$0xff] }
 0x5e6   : > { %v2635_v14 = vadd.f32 %v2498_v40, %v2219_v15  ;;  %v2636_v25 = vadd.f32 %v2499_v51, %v2220_v11  ;;  %v1699_v41 = vmul.f32 %v9296_v6, %v11913_v8  ;;  %v2114_v51 = vmul.f32 %v9432_v53, %v11980_v46  ;;  %v9844_v15 = vld [vmem:[%s17374_s9 + $0x1750] sm:$0xff]  ;;  %v1244_v53 = vld [vmem:[%s17374_s9 + $0xf8] sm:$0xff] }
 0x5e7   : > { %v13472_v39 = vpack.c.bf16 %v3498_v34, %v3497_v61  ;;  %v2115_v40 = vmul.f32 %v9433_v49, %v11980_v46  ;;  %v2530_v45 = vmul.f32 %v9569_v21, %v12023_v50  ;;  %v1835_v63 = vadd.f32 %v1698_v58, %v1419_v60  ;;  %v3606_v11 = vld [vmem:[%s11709_s17 + $0xf0] sm:$0xff]  ;;  %v9265_v61 = vld [vmem:[%s17374_s9 + $0x538] sm:$0xff]  ;;  %v9403_v58 = vld [vmem:[%s17374_s9 + $0x988] sm:$0xff] }
 0x5e8   : > { %v3051_v33 = vadd.f32 %v2914_v0, %v2635_v14  ;;  %v3052_v18 = vadd.f32 %v2915_v43, %v2636_v25  ;;  %v1836_v6 = vadd.f32 %v1699_v41, %v1420_v36  ;;  %v2531_v49 = vmul.f32 %v9570_v38, %v12023_v50  ;;  %v9266_v38 = vld [vmem:[%s17374_s9 + $0x540] sm:$0xff] }
 0x5e9   : > { %17599 = vst [vmem:[#allocation42_spill] sm:$0xff] %v13472_v39  ;;  %10611 = vmatpush1.bf16.msra.mxu0 %v13472_v39  ;;  %v2946_v21 = vmul.f32 %v9706_v54, %v12079_v37  ;;  %v2947_v0 = vmul.f32 %v9707_v3, %v12079_v37  ;;  %v3362_v43 = vmul.f32 %v9843_v22, %v12125_v1  ;;  %v9402_v25 = vld [vmem:[%s17374_s9 + $0x980] sm:$0xff]  ;;  %v3638_v54 = vmul.f32 31.999968, %v3606_v11  ;;  %v9539_v3 = vld [vmem:[%s17374_s9 + $0xdc8] sm:$0xff] }
 0x5ea   : > { %10612 = vmatprep.subr.bf16.mxu0 %v17588_v24  ;;  %v3467_v34 = vadd.f32 %v3330_v19, %v3051_v33  ;;  %v3468_v60 = vadd.f32 %v3331_v7, %v3052_v18  ;;  %v2251_v36 = vadd.f32 %v2114_v51, %v1835_v63  ;;  %v2252_v14 = vadd.f32 %v2115_v40, %v1836_v6  ;;  %v9540_v18 = vld [vmem:[%s17374_s9 + $0xdd0] sm:$0xff] }
 0x5eb   : > { %v3363_v41 = vmul.f32 %v9844_v15, %v12125_v1  ;;  %v1389_v19 = vmul.f32 %v11915_v23, %v1243_v20  ;;  %v1390_v7 = vmul.f32 %v11915_v23, %v1244_v53  ;;  %v1668_v33 = vmul.f32 %v9265_v61, %v11913_v8  ;;  %v9676_v63 = vld [vmem:[%s17374_s9 + $0x1210] sm:$0xff] }
 0x5ec   : > { %v10565_v22 = vpack.c.bf16 %v3468_v60, %v3467_v34  ;;  %v2667_v51 = vadd.f32 %v2530_v45, %v2251_v36  ;;  %v2668_v40 = vadd.f32 %v2531_v49, %v2252_v14  ;;  %v3670_v20 = vmax.f32 %v3638_v54, 0.0  ;;  %v9677_v45 = vld [vmem:[%s17374_s9 + $0x1218] sm:$0xff]  ;;  %v9814_v36 = vld [vmem:[%s17374_s9 + $0x1660] sm:$0xff]  ;;  %v1275_v14 = vld [vmem:[%s17374_s9 + $0x1f0] sm:$0xff] }
 0x5ed   : > { %v1669_v6 = vmul.f32 %v9266_v38, %v11913_v8  ;;  %v2084_v15 = vmul.f32 %v9402_v25, %v11980_v46  ;;  %v2085_v11 = vmul.f32 %v9403_v58, %v11980_v46  ;;  %v1805_v61 = vadd.f32 %v1668_v33, %v1389_v19  ;;  %v9813_v60 = vld [vmem:[%s17374_s9 + $0x1658] sm:$0xff]  ;;  %v9435_v33 = vld [vmem:[%s17374_s9 + $0xa88] sm:$0xff] }
 0x5ee   : > { %10566 = vmatpush1.bf16.msra.mxu1 %v10565_v22  ;;  %v3083_v53 = vadd.f32 %v2946_v21, %v2667_v51  ;;  %v3084_v49 = vadd.f32 %v2947_v0, %v2668_v40  ;;  %v2500_v34 = vmul.f32 %v9539_v3, %v12023_v50  ;;  %v13534_v38 = vmin.f32 %v3670_v20, 32.0  ;;  %v1276_v58 = vld [vmem:[%s17374_s9 + $0x1f8] sm:$0xff]  ;;  %v9434_v40 = vld [vmem:[%s17374_s9 + $0xa80] sm:$0xff]  ;;  %v9571_v20 = vld [vmem:[%s17374_s9 + $0xec8] sm:$0xff] }
 0x5ef   : > { %10567 = vmatprep.subr.bf16.mxu1 %v17588_v24  ;;  %v1806_v21 = vadd.f32 %v1669_v6, %v1390_v7  ;;  %v2501_v0 = vmul.f32 %v9540_v18, %v12023_v50  ;;  %v2916_v25 = vmul.f32 %v9676_v63, %v12079_v37  ;;  %v9297_v54 = vld [vmem:[%s17374_s9 + $0x638] sm:$0xff]  ;;  %v2221_v22 = vadd.f32 %v2084_v15, %v1805_v61  ;;  %v9298_v7 = vld [vmem:[%s17374_s9 + $0x640] sm:$0xff]  ;;  %v9572_v6 = vld [vmem:[%s17374_s9 + $0xed0] sm:$0xff] }
 0x5f0   : > { %17600 = vst [vmem:[#allocation43_spill] sm:$0xff] %v13534_v38  ;;  %v3499_v19 = vadd.f32 %v3362_v43, %v3083_v53  ;;  %v3500_v3 = vadd.f32 %v3363_v41, %v3084_v49  ;;  %v2917_v51 = vmul.f32 %v9677_v45, %v12079_v37  ;;  %3863 = vperm.xlu1 %11003, %v13534_v38   ;;  %v9708_v49 = vld [vmem:[%s17374_s9 + $0x1310] sm:$0xff]  ;;  %v9709_v61 = vld [vmem:[%s17374_s9 + $0x1318] sm:$0xff] }
 0x5f1   : > { %v2222_v18 = vadd.f32 %v2085_v11, %v1806_v21  ;;  %v3332_v43 = vmul.f32 %v9813_v60, %v12125_v1  ;;  %v3333_v41 = vmul.f32 %v9814_v36, %v12125_v1  ;;  %v1421_v63 = vmul.f32 %v11915_v23, %v1275_v14  ;;  %5191 = vperm.xlu0 %11004, %v13534_v38   ;;  %v9845_v21 = vld [vmem:[%s17374_s9 + $0x1758] sm:$0xff]  ;;  %v13592_v38 = vpop.permute.xlu1 %3718 }
 0x5f2   : > { %v13565_v15 = vpack.c.bf16 %v3500_v3, %v3499_v19  ;;  %v2637_v45 = vadd.f32 %v2500_v34, %v2221_v22  ;;  %v1422_v53 = vmul.f32 %v11915_v23, %v1276_v58  ;;  %v1700_v11 = vmul.f32 %v9297_v54, %v11913_v8  ;;  %v9846_v58 = vld [vmem:[%s17374_s9 + $0x1760] sm:$0xff]  ;;  %v3607_v22 = vld [vmem:[%s11709_s17 + $0xf8] sm:$0xff]  ;;  %17601 = vst [vmem:[#allocation44_spill] sm:$0xff] %v13592_v38 }
 0x5f3   : > { %v2638_v60 = vadd.f32 %v2501_v0, %v2222_v18  ;;  %v1701_v36 = vmul.f32 %v9298_v7, %v11913_v8  ;;  %v2116_v34 = vmul.f32 %v9434_v40, %v11980_v46  ;;  %v2117_v14 = vmul.f32 %v9435_v33, %v11980_v46 }
 0x5f4   : > { %10614 = vmatpush1.bf16.msra.mxu0 %v13565_v15  ;;  %v3053_v54 = vadd.f32 %v2916_v25, %v2637_v45  ;;  %v1837_v19 = vadd.f32 %v1700_v11, %v1421_v63  ;;  %v2532_v0 = vmul.f32 %v9571_v20, %v12023_v50  ;;  %v2533_v3 = vmul.f32 %v9572_v6, %v12023_v50 }
 0x5f5   : > { %10615 = vmatprep.subr.bf16.mxu0 %v17588_v24  ;;  %v3054_v7 = vadd.f32 %v2917_v51, %v2638_v60  ;;  %v1838_v40 = vadd.f32 %v1701_v36, %v1422_v53  ;;  %v2948_v33 = vmul.f32 %v9708_v49, %v12079_v37  ;;  %v2949_v18 = vmul.f32 %v9709_v61, %v12079_v37 }
 0x5f6   : > { %v3469_v39 = vadd.f32 %v3332_v43, %v3053_v54  ;;  %v2253_v17 = vadd.f32 %v2116_v34, %v1837_v19  ;;  %v3364_v25 = vmul.f32 %v9845_v21, %v12125_v1  ;;  %v3365_v63 = vmul.f32 %v9846_v58, %v12125_v1 }
 0x5f7   : > { %v17602_v20 = vmov 0   ;;  %v3470_v6 = vadd.f32 %v3333_v41, %v3054_v7  ;;  %v2254_v45 = vadd.f32 %v2117_v14, %v1838_v40  ;;  %v3639_v11 = vmul.f32 31.999968, %v3607_v22  ;;  %v13611_v22 = vpop.permute.xlu1 %5075 }
 0x5f8   : > { %11006 = vset.pattern.permute.xlu0 %v17602_v20  ;;  %v3918_v51 = vsub.f32 %v12501_v13, %v11870_v27  ;;  %v2669_v53 = vadd.f32 %v2532_v0, %v2253_v17  ;;  %v5245_v49 = vsub.f32 %v12548_v57, %v11894_v47  ;;  %v3920_v43 = vsub.f32 %v12501_v13, %v11269_v44 }
 0x5f9   : > { %7912 = vperm.xlu0 %11006, %v11738_v2   ;;  %v5247_v61 = vsub.f32 %v12548_v57, %v11297_v55  ;;  %v10568_v60 = vpack.c.bf16 %v3470_v6, %v3469_v39  ;;  %v2670_v36 = vadd.f32 %v2533_v3, %v2254_v45  ;;  %v3671_v41 = vmax.f32 %v3639_v11, 0.0  ;;  %17603 = vst [vmem:[#allocation45_spill] sm:$0xff] %v13611_v22 }
 0x5fa   : > { %v4206_v34 = vand.u32 2147483647, %v3918_v51  ;;  %v3085_v14 = vadd.f32 %v2948_v33, %v2669_v53  ;;  %v5533_v21 = vand.u32 2147483647, %v5245_v49  ;;  %v4208_v58 = vand.u32 2147483647, %v3920_v43 }
 0x5fb   : > { %v5535_v54 = vand.u32 2147483647, %v5247_v61  ;;  %10569 = vmatpush1.bf16.msra.mxu1 %v10568_v60  ;;  %v3086_v2 = vadd.f32 %v2949_v18, %v2670_v36  ;;  %v13606_v17 = vmin.f32 %v3671_v41, 32.0  ;;  %v3928_v0 = vsub.f32 %v13592_v38, %v11873_v29  ;;  %v9299_v36 = vld [vmem:[%s17374_s9 + $0x648] sm:$0xff]  ;;  %v9300_v41 = vld [vmem:[%s17374_s9 + $0x650] sm:$0xff] }
 0x5fc   : > { %v4494_v19 = vsub.f32 1.0, %v4206_v34  ;;  %v3501_v39 = vadd.f32 %v3364_v25, %v3085_v14  ;;  %v5821_v3 = vsub.f32 1.0, %v5533_v21  ;;  %10754 = vmatprep.subr.bf16.mxu1 %v17588_v24  ;;  %v4496_v7 = vsub.f32 1.0, %v4208_v58  ;;  %v9436_v34 = vld [vmem:[%s17374_s9 + $0xa90] sm:$0xff] }
 0x5fd   : > { %7924 = vperm.xlu0 %11006, %v11714_v28   ;;  %v5823_v40 = vsub.f32 1.0, %v5535_v54  ;;  %v3502_v33 = vadd.f32 %v3365_v63, %v3086_v2  ;;  %3868 = vperm.xlu1 %11003, %v13606_v17   ;;  %v4216_v6 = vand.u32 2147483647, %v3928_v0  ;;  %v5255_v45 = vsub.f32 %v13611_v22, %v11897_v48  ;;  %v1277_v28 = vld [vmem:[%s17374_s9 + $0x200] sm:$0xff]  ;;  %v1278_v63 = vld [vmem:[%s17374_s9 + $0x208] sm:$0xff]  ;;  %v9437_v2 = vld [vmem:[%s17374_s9 + $0xa98] sm:$0xff]  ;;  %v13646_v0 = vpop.permute.xlu0 %5083 }
 0x5fe   : > { %v4782_v18 = vmax.f32 %v4494_v19, 0.0  ;;  %v6109_v11 = vmax.f32 %v5821_v3, 0.0  ;;  %v4784_v51 = vmax.f32 %v4496_v7, 0.0  ;;  %v3930_v53 = vsub.f32 %v13592_v38, %v11875_v30  ;;  %v9573_v19 = vld [vmem:[%s17374_s9 + $0xed8] sm:$0xff]  ;;  %17604 = vst [vmem:[#allocation46_spill] sm:$0xff] %v13646_v0 }
 0x5ff   : > { %v6111_v25 = vmax.f32 %v5823_v40, 0.0  ;;  %v13625_v49 = vpack.c.bf16 %v3502_v33, %v3501_v39  ;;  %v4504_v43 = vsub.f32 1.0, %v4216_v6  ;;  %v5543_v61 = vand.u32 2147483647, %v5255_v45  ;;  %v9574_v40 = vld [vmem:[%s17374_s9 + $0xee0] sm:$0xff] }
 0x600   : > { %v5257_v60 = vsub.f32 %v13611_v22, %v11899_v52  ;;  %v6397_v14 = vmul.f32 %v6109_v11, %v4782_v18  ;;  %v4218_v58 = vand.u32 2147483647, %v3930_v53  ;;  %v1423_v54 = vmul.f32 %v11915_v23, %v1277_v28  ;;  %v9710_v28 = vld [vmem:[%s17374_s9 + $0x1320] sm:$0xff]  ;;  %v9711_v11 = vld [vmem:[%s17374_s9 + $0x1328] sm:$0xff] }
 0x601   : > { %7932 = vperm.xlu0 %11006, %v11726_v42   ;;  %v6399_v21 = vmul.f32 %v6111_v25, %v4784_v51  ;;  %10617 = vmatpush1.bf16.msra.mxu0 %v13625_v49  ;;  %v4792_v39 = vmax.f32 %v4504_v43, 0.0  ;;  %v5831_v3 = vsub.f32 1.0, %v5543_v61  ;;  %v1424_v7 = vmul.f32 %v11915_v23, %v1278_v63  ;;  %v9847_v63 = vld [vmem:[%s17374_s9 + $0x1768] sm:$0xff]  ;;  %v9848_v43 = vld [vmem:[%s17374_s9 + $0x1770] sm:$0xff] }
 0x602   : > { %v5545_v42 = vand.u32 2147483647, %v5257_v60  ;;  %11005 = vset.pattern.permute.xlu1 %v17587_v56  ;;  %6850 = vmatmul.mubr.f32.vlgmr.msra.gmra.mrb[6].mxu1 %v6397_v14  ;;  %v4506_v33 = vsub.f32 1.0, %v4218_v58  ;;  %v1702_v18 = vmul.f32 %v9299_v36, %v11913_v8  ;;  %v1703_v6 = vmul.f32 %v9300_v41, %v11913_v8  ;;  %v13676_v41 = vpop.permute.xlu0 %3723 }
 0x603   : > { %10618 = vmatprep.subr.bf16.mxu0 %v17588_v24  ;;  %v2118_v45 = vmul.f32 %v9436_v34, %v11980_v46  ;;  %v6119_v51 = vmax.f32 %v5831_v3, 0.0  ;;  %10770 = vmatpush1.bf16.msra.mxu1 %v12154_v31  ;;  %v2119_v25 = vmul.f32 %v9437_v2, %v11980_v46  ;;  %v2534_v53 = vmul.f32 %v9573_v19, %v12023_v50 }
 0x604   : > { %v5833_v56 = vsub.f32 1.0, %v5545_v42  ;;  %5195 = vperm.xlu1 %11005, %v13606_v17   ;;  %7075 = vmatmul.mubr.f32.vlgmr.msra.gmra.mrb[20].mxu0 %v6399_v21  ;;  %v4794_v61 = vmax.f32 %v4506_v33, 0.0  ;;  %v1839_v60 = vadd.f32 %v1702_v18, %v1423_v54  ;;  %v1840_v36 = vadd.f32 %v1703_v6, %v1424_v7  ;;  %17605 = vst [vmem:[#allocation47_spill] sm:$0xff] %v13676_v41  ;;  %v13689_v33 = vpop.permute.xlu1 %5079 }
 0x605   : > { %v2535_v31 = vmul.f32 %v9574_v40, %v12023_v50  ;;  %10755 = vmatprep.subr.bf16.mxu1 %v17588_v24  ;;  %v6407_v34 = vmul.f32 %v6119_v51, %v4792_v39  ;;  %v2950_v58 = vmul.f32 %v9710_v28, %v12079_v37  ;;  %v2951_v2 = vmul.f32 %v9711_v11, %v12079_v37 }
 0x606   : > { %v6121_v14 = vmax.f32 %v5833_v56, 0.0  ;;  %7940 = vperm.xlu0 %11006, %v11808_v5   ;;  %v2255_v19 = vadd.f32 %v2118_v45, %v1839_v60  ;;  %v2256_v3 = vadd.f32 %v2119_v25, %v1840_v36  ;;  %v3366_v21 = vmul.f32 %v9847_v63, %v12125_v1  ;;  %17606 = vst [vmem:[#allocation48_spill] sm:$0xff] %v13689_v33 }
 0x607   : > { %v3367_v54 = vmul.f32 %v9848_v43, %v12125_v1  ;;  %6854 = vmatprep.mubr.f32.mxu1 %v6407_v34  ;;  %v3927_v7 = vsub.f32 %v13592_v38, %v11870_v27  ;;  %v5254_v39 = vsub.f32 %v13611_v22, %v11894_v47  ;;  %v3929_v40 = vsub.f32 %v13592_v38, %v11269_v44  ;;  %v17608_v34 = vld [vmem:[#allocation15_spill] sm:$0xff] }
 0x608   : > { %v6409_v42 = vmul.f32 %v6121_v14, %v4794_v61  ;;  %v2671_v5 = vadd.f32 %v2534_v53, %v2255_v19  ;;  %v2672_v18 = vadd.f32 %v2535_v31, %v2256_v3  ;;  %v5256_v6 = vsub.f32 %v13611_v22, %v11297_v55  ;;  %10771 = vmatpush1.bf16.msra.mxu1 %v12188_v16  ;;  %v17607_v61 = vld [vmem:[#allocation12_spill] sm:$0xff] }
 0x609   : > { %v3937_v45 = vsub.f32 %v13676_v41, %v11873_v29  ;;  %v4215_v28 = vand.u32 2147483647, %v3927_v7  ;;  %v5542_v11 = vand.u32 2147483647, %v5254_v39  ;;  %v4217_v51 = vand.u32 2147483647, %v3929_v40  ;;  %10756 = vmatprep.subr.bf16.mxu1 %v17588_v24  ;;  %11007 = vset.pattern.permute.xlu1 %v17602_v20 }
 0x60a   : > { %7079 = vmatprep.mubr.f32.mxu0 %v6409_v42  ;;  %v5264_v56 = vsub.f32 %v13689_v33, %v11897_v48  ;;  %v3087_v25 = vadd.f32 %v2950_v58, %v2671_v5  ;;  %v3088_v53 = vadd.f32 %v2951_v2, %v2672_v18  ;;  %v5544_v63 = vand.u32 2147483647, %v5256_v6  ;;  %7948 = vperm.xlu0 %11006, %v17607_v61   ;;  %v1279_v58 = vld [vmem:[%s17374_s9 + $0x210] sm:$0xff]  ;;  %v1280_v40 = vld [vmem:[%s17374_s9 + $0x218] sm:$0xff]  ;;  %v9302_v6 = vld [vmem:[%s17374_s9 + $0x660] sm:$0xff] }
 0x60b   : > { %v4225_v43 = vand.u32 2147483647, %v3937_v45  ;;  %v4503_v60 = vsub.f32 1.0, %v4215_v28  ;;  %v5830_v36 = vsub.f32 1.0, %v5542_v11  ;;  %v4505_v16 = vsub.f32 1.0, %v4217_v51  ;;  %7916 = vperm.xlu1 %11007, %v17608_v34   ;;  %v9438_v45 = vld [vmem:[%s17374_s9 + $0xaa0] sm:$0xff] }
 0x60c   : > { %v5552_v31 = vand.u32 2147483647, %v5264_v56  ;;  %v3503_v14 = vadd.f32 %v3366_v21, %v3087_v25  ;;  %v3504_v19 = vadd.f32 %v3367_v54, %v3088_v53  ;;  %v5832_v3 = vsub.f32 1.0, %v5544_v63  ;;  %10772 = vmatpush1.bf16.msra.mxu1 %v12321_v10  ;;  %v9301_v21 = vld [vmem:[%s17374_s9 + $0x658] sm:$0xff]  ;;  %v17609_v28 = vld [vmem:[#allocation14_spill] sm:$0xff]  ;;  %v9439_v53 = vld [vmem:[%s17374_s9 + $0xaa8] sm:$0xff] }
 0x60d   : > { %v4513_v42 = vsub.f32 1.0, %v4225_v43  ;;  %v4791_v2 = vmax.f32 %v4503_v60, 0.0  ;;  %v6118_v20 = vmax.f32 %v5830_v36, 0.0  ;;  %v4793_v7 = vmax.f32 %v4505_v16, 0.0  ;;  %10757 = vmatprep.subr.bf16.mxu1 %v17588_v24  ;;  %v9575_v63 = vld [vmem:[%s17374_s9 + $0xee8] sm:$0xff]  ;;  %v17610_v43 = vld [vmem:[#allocation10_spill] sm:$0xff] }
 0x60e   : > { %v5840_v39 = vsub.f32 1.0, %v5552_v31  ;;  %v10619_v54 = vpack.c.bf16 %v3504_v19, %v3503_v14  ;;  %v6120_v5 = vmax.f32 %v5832_v3, 0.0  ;;  %v3939_v10 = vsub.f32 %v13676_v41, %v11875_v30  ;;  %7956 = vperm.xlu0 %11006, %v17609_v28   ;;  %v9576_v31 = vld [vmem:[%s17374_s9 + $0xef0] sm:$0xff] }
 0x60f   : > { %v4801_v18 = vmax.f32 %v4513_v42, 0.0  ;;  %v6406_v11 = vmul.f32 %v6118_v20, %v4791_v2  ;;  %v5266_v56 = vsub.f32 %v13689_v33, %v11899_v52  ;;  %v1425_v25 = vmul.f32 %v11915_v23, %v1279_v58  ;;  %7920 = vperm.xlu1 %11007, %v17610_v43   ;;  %v9712_v34 = vld [vmem:[%s17374_s9 + $0x1330] sm:$0xff]  ;;  %v9713_v58 = vld [vmem:[%s17374_s9 + $0x1338] sm:$0xff] }
 0x610   : > { %v6128_v51 = vmax.f32 %v5840_v39, 0.0  ;;  %10620 = vmatpush1.bf16.msra.mxu0 %v10619_v54  ;;  %v6408_v61 = vmul.f32 %v6120_v5, %v4793_v7  ;;  %v4227_v60 = vand.u32 2147483647, %v3939_v10  ;;  %v1426_v36 = vmul.f32 %v11915_v23, %v1280_v40  ;;  %10773 = vmatpush1.bf16.msra.mxu1 %v12422_v62  ;;  %v9849_v2 = vld [vmem:[%s17374_s9 + $0x1778] sm:$0xff]  ;;  %v9850_v40 = vld [vmem:[%s17374_s9 + $0x1780] sm:$0xff]  ;;  %v17611_v10 = vld [vmem:[#allocation19_spill] sm:$0xff] }
 0x611   : > { %v1704_v16 = vmul.f32 %v9301_v21, %v11913_v8  ;;  %6855 = vmatmul.mubr.f32.gmra.mrb[8].mxu1 %v6406_v11  ;;  %10621 = vmatprep.subr.bf16.mxu0 %v17588_v24  ;;  %v5554_v19 = vand.u32 2147483647, %v5266_v56  ;;  %v1705_v3 = vmul.f32 %v9302_v6, %v11913_v8  ;;  %v2120_v42 = vmul.f32 %v9438_v45, %v11980_v46  ;;  %v13759_v6 = vpop.permute.xlu1 %3728  ;;  %v17613_v56 = vld [vmem:[#allocation26_spill] sm:$0xff] }
 0x612   : > { %v6416_v14 = vmul.f32 %v6128_v51, %v4801_v18  ;;  %7080 = vmatmul.mubr.f32.gmra.mrb[22].mxu0 %v6408_v61  ;;  %v4515_v20 = vsub.f32 1.0, %v4227_v60  ;;  %v2121_v7 = vmul.f32 %v9439_v53, %v11980_v46  ;;  %v2536_v39 = vmul.f32 %v9575_v63, %v12023_v50  ;;  %10758 = vmatprep.subr.bf16.mxu1 %v17588_v24 }
 0x613   : > { %v1841_v62 = vadd.f32 %v1704_v16, %v1425_v25  ;;  %v5842_v21 = vsub.f32 1.0, %v5554_v19  ;;  %v1842_v54 = vadd.f32 %v1705_v3, %v1426_v36  ;;  %v2537_v5 = vmul.f32 %v9576_v31, %v12023_v50  ;;  %7928 = vperm.xlu1 %11007, %v17611_v10   ;;  %17612 = vst [vmem:[#allocation12_spill] sm:$0xff] %v13759_v6  ;;  %v17614_v19 = vld [vmem:[#allocation11_spill] sm:$0xff] }
 0x614   : > { %6859 = vmatprep.mubr.f32.mxu1 %v6416_v14  ;;  %v2952_v18 = vmul.f32 %v9712_v34, %v12079_v37  ;;  %v4803_v45 = vmax.f32 %v4515_v20, 0.0  ;;  %v2953_v11 = vmul.f32 %v9713_v58, %v12079_v37  ;;  %v3368_v51 = vmul.f32 %v9849_v2, %v12125_v1  ;;  %10774 = vmatpush1.bf16.msra.mxu1 %v12521_v32  ;;  %v17615_v20 = vld [vmem:[#allocation18_spill] sm:$0xff] }
 0x615   : > { %v2257_v28 = vadd.f32 %v2120_v42, %v1841_v62  ;;  %7964 = vperm.xlu0 %11006, %v17613_v56   ;;  %v6130_v25 = vmax.f32 %v5842_v21, 0.0  ;;  %v2258_v53 = vadd.f32 %v2121_v7, %v1842_v54  ;;  %v3369_v63 = vmul.f32 %v9850_v40, %v12125_v1  ;;  %10759 = vmatprep.subr.bf16.mxu1 %v17588_v24 }
 0x616   : > { %v3936_v43 = vsub.f32 %v13676_v41, %v11870_v27  ;;  %v5263_v60 = vsub.f32 %v13689_v33, %v11894_v47  ;;  %v3938_v36 = vsub.f32 %v13676_v41, %v11269_v44  ;;  %v5265_v32 = vsub.f32 %v13689_v33, %v11297_v55 }
 0x617   : > { %v2673_v61 = vadd.f32 %v2536_v39, %v2257_v28  ;;  %v6418_v16 = vmul.f32 %v6130_v25, %v4803_v45  ;;  %v2674_v31 = vadd.f32 %v2537_v5, %v2258_v53  ;;  %v3946_v14 = vsub.f32 %v13759_v6, %v11873_v29  ;;  %7936 = vperm.xlu1 %11007, %v17614_v19   ;;  %v13809_v19 = vpop.permute.xlu1 %3733 }
 0x618   : > { %v4224_v34 = vand.u32 2147483647, %v3936_v43  ;;  %v5551_v42 = vand.u32 2147483647, %v5263_v60  ;;  %v4226_v58 = vand.u32 2147483647, %v3938_v36  ;;  %10775 = vmatpush1.bf16.msra.mxu1 %v12593_v12  ;;  %v5273_v40 = vsub.f32 %v13646_v0, %v11897_v48 }
 0x619   : > { %v3089_v3 = vadd.f32 %v2952_v18, %v2673_v61  ;;  %v5553_v2 = vand.u32 2147483647, %v5265_v32  ;;  %7972 = vperm.xlu0 %11006, %v17615_v20   ;;  %7084 = vmatprep.mubr.f32.mxu0 %v6418_v16  ;;  %v3090_v62 = vadd.f32 %v2953_v11, %v2674_v31  ;;  %v4234_v39 = vand.u32 2147483647, %v3946_v14  ;;  %v1281_v12 = vld [vmem:[%s17374_s9 + $0x220] sm:$0xff]  ;;  %v17616_v11 = vld [vmem:[#allocation13_spill] sm:$0xff] }
 0x61a   : > { %v4512_v7 = vsub.f32 1.0, %v4224_v34  ;;  %10760 = vmatprep.subr.bf16.mxu1 %v17588_v24  ;;  %v5839_v54 = vsub.f32 1.0, %v5551_v42  ;;  %v4514_v5 = vsub.f32 1.0, %v4226_v58  ;;  %v5561_v56 = vand.u32 2147483647, %v5273_v40  ;;  %v17617_v60 = vld [vmem:[#allocation20_spill] sm:$0xff] }
 0x61b   : > { %v3505_v21 = vadd.f32 %v3368_v51, %v3089_v3  ;;  %v5841_v18 = vsub.f32 1.0, %v5553_v2  ;;  %v3506_v10 = vadd.f32 %v3369_v63, %v3090_v62  ;;  %v4522_v28 = vsub.f32 1.0, %v4234_v39  ;;  %7944 = vperm.xlu1 %11007, %v17616_v11   ;;  %v1282_v51 = vld [vmem:[%s17374_s9 + $0x228] sm:$0xff]  ;;  %v9304_v34 = vld [vmem:[%s17374_s9 + $0x670] sm:$0xff]  ;;  %17618 = vst [vmem:[#allocation15_spill] sm:$0xff] %v13809_v19  ;;  %v9577_v20 = vld [vmem:[%s17374_s9 + $0xef8] sm:$0xff] }
 0x61c   : > { %v4800_v45 = vmax.f32 %v4512_v7, 0.0  ;;  %v6127_v25 = vmax.f32 %v5839_v54, 0.0  ;;  %v4802_v53 = vmax.f32 %v4514_v5, 0.0  ;;  %v3948_v61 = vsub.f32 %v13759_v6, %v11875_v30  ;;  %v9303_v63 = vld [vmem:[%s17374_s9 + $0x668] sm:$0xff]  ;;  %10776 = vmatpush1.bf16.msra.mxu1 %v12753_v9  ;;  %v9440_v14 = vld [vmem:[%s17374_s9 + $0xab0] sm:$0xff]  ;;  %v9441_v9 = vld [vmem:[%s17374_s9 + $0xab8] sm:$0xff] }
 0x61d   : > { %v6129_v43 = vmax.f32 %v5841_v18, 0.0  ;;  %7980 = vperm.xlu0 %11006, %v17617_v60   ;;  %v10622_v36 = vpack.c.bf16 %v3506_v10, %v3505_v21  ;;  %v4810_v32 = vmax.f32 %v4522_v28, 0.0  ;;  %v5849_v16 = vsub.f32 1.0, %v5561_v56  ;;  %10761 = vmatprep.subr.bf16.mxu1 %v17588_v24  ;;  %v9578_v21 = vld [vmem:[%s17374_s9 + $0xf00] sm:$0xff]  ;;  %v17619_v5 = vld [vmem:[#allocation24_spill] sm:$0xff]  ;;  %v9715_v56 = vld [vmem:[%s17374_s9 + $0x1348] sm:$0xff] }
 0x61e   : > { %v5275_v31 = vsub.f32 %v13646_v0, %v11899_v52  ;;  %v6415_v3 = vmul.f32 %v6127_v25, %v4800_v45  ;;  %v4236_v58 = vand.u32 2147483647, %v3948_v61  ;;  %v1427_v2 = vmul.f32 %v11915_v23, %v1281_v12  ;;  %v9714_v54 = vld [vmem:[%s17374_s9 + $0x1340] sm:$0xff]  ;;  %v9851_v12 = vld [vmem:[%s17374_s9 + $0x1788] sm:$0xff]  ;;  %v9852_v61 = vld [vmem:[%s17374_s9 + $0x1790] sm:$0xff] }
 0x61f   : > { %v6417_v42 = vmul.f32 %v6129_v43, %v4802_v53  ;;  %10623 = vmatpush1.bf16.msra.mxu0 %v10622_v36  ;;  %v6137_v62 = vmax.f32 %v5849_v16, 0.0  ;;  %v1428_v39 = vmul.f32 %v11915_v23, %v1282_v51  ;;  %v1706_v40 = vmul.f32 %v9303_v63, %v11913_v8  ;;  %7952 = vperm.xlu1 %11007, %v17619_v5   ;;  %v17620_v16 = vld [vmem:[#allocation31_spill] sm:$0xff] }
 0x620   : > { %v5563_v7 = vand.u32 2147483647, %v5275_v31  ;;  %6860 = vmatmul.mubr.f32.gmra.mrb[10].mxu1 %v6415_v3  ;;  %v4524_v18 = vsub.f32 1.0, %v4236_v58  ;;  %v1707_v10 = vmul.f32 %v9304_v34, %v11913_v8  ;;  %v2122_v45 = vmul.f32 %v9440_v14, %v11980_v46  ;;  %10624 = vmatprep.subr.bf16.mxu0 %v17588_v24 }
 0x621   : > { %7085 = vmatmul.mubr.f32.gmra.mrb[24].mxu0 %v6417_v42  ;;  %v2123_v28 = vmul.f32 %v9441_v9, %v11980_v46  ;;  %v6425_v11 = vmul.f32 %v6137_v62, %v4810_v32  ;;  %v1843_v53 = vadd.f32 %v1706_v40, %v1427_v2  ;;  %v2538_v43 = vmul.f32 %v9577_v20, %v12023_v50  ;;  %v17621_v9 = vld [vmem:[#allocation16_spill] sm:$0xff] }
 0x622   : > { %v5851_v25 = vsub.f32 1.0, %v5563_v7  ;;  %10777 = vmatpush1.bf16.msra.mxu1 %v12852_v35  ;;  %v4812_v51 = vmax.f32 %v4524_v18, 0.0  ;;  %v1844_v63 = vadd.f32 %v1707_v10, %v1428_v39  ;;  %v2539_v60 = vmul.f32 %v9578_v21, %v12023_v50  ;;  %7988 = vperm.xlu0 %11006, %v17620_v16   ;;  %v13846_v35 = vpop.permute.xlu1 %5087  ;;  %v1283_v16 = vld [vmem:[%s17374_s9 + $0x230] sm:$0xff] }
 0x623   : > { %v2954_v36 = vmul.f32 %v9714_v54, %v12079_v37  ;;  %10762 = vmatprep.subr.bf16.mxu1 %v17588_v24  ;;  %6864 = vmatprep.mubr.f32.mxu1 %v6425_v11  ;;  %v2259_v31 = vadd.f32 %v2122_v45, %v1843_v53  ;;  %v2955_v34 = vmul.f32 %v9715_v56, %v12079_v37  ;;  %v17623_v56 = vld [vmem:[#allocation17_spill] sm:$0xff] }
 0x624   : > { %v6139_v32 = vmax.f32 %v5851_v25, 0.0  ;;  %v3370_v14 = vmul.f32 %v9851_v12, %v12125_v1  ;;  %7960 = vperm.xlu1 %11007, %v17621_v9   ;;  %17622 = vst [vmem:[#allocation14_spill] sm:$0xff] %v13846_v35  ;;  %v2260_v3 = vadd.f32 %v2123_v28, %v1844_v63  ;;  %v3371_v42 = vmul.f32 %v9852_v61, %v12125_v1 }
 0x625   : > { %v3945_v58 = vsub.f32 %v13759_v6, %v11870_v27  ;;  %v5272_v2 = vsub.f32 %v13646_v0, %v11894_v47  ;;  %v2675_v62 = vadd.f32 %v2538_v43, %v2259_v31  ;;  %v3947_v7 = vsub.f32 %v13759_v6, %v11269_v44 }
 0x626   : > { %v6427_v20 = vmul.f32 %v6139_v32, %v4812_v51  ;;  %v5274_v39 = vsub.f32 %v13646_v0, %v11297_v55  ;;  %10778 = vmatpush1.bf16.msra.mxu1 %v12946_v26  ;;  %v2676_v40 = vadd.f32 %v2539_v60, %v2260_v3  ;;  %v3955_v5 = vsub.f32 %v13809_v19, %v11873_v29  ;;  %v17624_v32 = vld [vmem:[#allocation25_spill] sm:$0xff] }
 0x627   : > { %v4233_v21 = vand.u32 2147483647, %v3945_v58  ;;  %v5560_v54 = vand.u32 2147483647, %v5272_v2  ;;  %10763 = vmatprep.subr.bf16.mxu1 %v17588_v24  ;;  %7996 = vperm.xlu0 %11006, %v11802_v4   ;;  %v3091_v18 = vadd.f32 %v2954_v36, %v2675_v62  ;;  %v4235_v10 = vand.u32 2147483647, %v3947_v7 }
 0x628   : > { %7089 = vmatprep.mubr.f32.mxu0 %v6427_v20  ;;  %v5562_v45 = vand.u32 2147483647, %v5274_v39  ;;  %v5282_v28 = vsub.f32 %v13846_v35, %v11897_v48  ;;  %7968 = vperm.xlu1 %11007, %v17623_v56   ;;  %v3092_v26 = vadd.f32 %v2955_v34, %v2676_v40  ;;  %v4243_v25 = vand.u32 2147483647, %v3955_v5  ;;  %v9305_v3 = vld [vmem:[%s17374_s9 + $0x678] sm:$0xff]  ;;  %v17625_v58 = vld [vmem:[#allocation27_spill] sm:$0xff] }
 0x629   : > { %v4521_v12 = vsub.f32 1.0, %v4233_v21  ;;  %v5848_v11 = vsub.f32 1.0, %v5560_v54  ;;  %v3507_v53 = vadd.f32 %v3370_v14, %v3091_v18  ;;  %v4523_v43 = vsub.f32 1.0, %v4235_v10  ;;  %v9442_v39 = vld [vmem:[%s17374_s9 + $0xac0] sm:$0xff]  ;;  %v9443_v40 = vld [vmem:[%s17374_s9 + $0xac8] sm:$0xff] }
 0x62a   : > { %v5850_v61 = vsub.f32 1.0, %v5562_v45  ;;  %v5570_v51 = vand.u32 2147483647, %v5282_v28  ;;  %10779 = vmatpush1.bf16.msra.mxu1 %v13054_v59  ;;  %v3508_v4 = vadd.f32 %v3371_v42, %v3092_v26  ;;  %v4531_v36 = vsub.f32 1.0, %v4243_v25  ;;  %v1284_v59 = vld [vmem:[%s17374_s9 + $0x238] sm:$0xff]  ;;  %v9306_v42 = vld [vmem:[%s17374_s9 + $0x680] sm:$0xff] }
 0x62b   : > { %v4809_v63 = vmax.f32 %v4521_v12, 0.0  ;;  %v6136_v60 = vmax.f32 %v5848_v11, 0.0  ;;  %10764 = vmatprep.subr.bf16.mxu1 %v17588_v24  ;;  %8004 = vperm.xlu0 %11006, %v17624_v32   ;;  %v4811_v31 = vmax.f32 %v4523_v43, 0.0  ;;  %v3957_v9 = vsub.f32 %v13809_v19, %v11875_v30  ;;  %v9579_v10 = vld [vmem:[%s17374_s9 + $0xf08] sm:$0xff]  ;;  %v17626_v45 = vld [vmem:[#allocation38_spill] sm:$0xff]  ;;  %v9580_v11 = vld [vmem:[%s17374_s9 + $0xf10] sm:$0xff] }
 0x62c   : > { %v6138_v34 = vmax.f32 %v5850_v61, 0.0  ;;  %v5858_v14 = vsub.f32 1.0, %v5570_v51  ;;  %7976 = vperm.xlu1 %11007, %v17625_v58   ;;  %v10625_v2 = vpack.c.bf16 %v3508_v4, %v3507_v53  ;;  %v4819_v62 = vmax.f32 %v4531_v36, 0.0  ;;  %v9716_v25 = vld [vmem:[%s17374_s9 + $0x1350] sm:$0xff]  ;;  %v9717_v53 = vld [vmem:[%s17374_s9 + $0x1358] sm:$0xff]  ;;  %v13924_v58 = vpop.permute.xlu0 %3738 }
 0x62d   : > { %v6424_v20 = vmul.f32 %v6136_v60, %v4809_v63  ;;  %v5284_v7 = vsub.f32 %v13846_v35, %v11899_v52  ;;  %v4245_v5 = vand.u32 2147483647, %v3957_v9  ;;  %v1429_v18 = vmul.f32 %v11915_v23, %v1283_v16  ;;  %v9853_v63 = vld [vmem:[%s17374_s9 + $0x1798] sm:$0xff]  ;;  %17629 = vst [vmem:[#allocation10_spill] sm:$0xff] %v13924_v58 }
 0x62e   : > { %v6426_v21 = vmul.f32 %v6138_v34, %v4811_v31  ;;  %v6146_v54 = vmax.f32 %v5858_v14, 0.0  ;;  %10780 = vmatpush1.bf16.msra.mxu1 %v17626_v45  ;;  %10626 = vmatpush1.bf16.msra.mxu0 %v10625_v2  ;;  %v1430_v56 = vmul.f32 %v11915_v23, %v1284_v59  ;;  %v1708_v26 = vmul.f32 %v9305_v3, %v11913_v8  ;;  %v9854_v31 = vld [vmem:[%s17374_s9 + $0x17a0] sm:$0xff]  ;;  %v17627_v34 = vld [vmem:[#allocation21_spill] sm:$0xff] }
 0x62f   : > { %6865 = vmatmul.mubr.f32.gmra.mrb[12].mxu1 %v6424_v20  ;;  %v5572_v28 = vand.u32 2147483647, %v5284_v7  ;;  %v1709_v12 = vmul.f32 %v9306_v42, %v11913_v8  ;;  %10627 = vmatprep.subr.bf16.mxu0 %v17588_v24  ;;  %v4533_v61 = vsub.f32 1.0, %v4245_v5  ;;  %v2124_v51 = vmul.f32 %v9442_v39, %v11980_v46  ;;  %v17628_v42 = vld [vmem:[#allocation39_spill] sm:$0xff]  ;;  %v17630_v39 = vld [vmem:[#allocation33_spill] sm:$0xff] }
 0x630   : > { %7090 = vmatmul.mubr.f32.gmra.mrb[26].mxu0 %v6426_v21  ;;  %v6434_v43 = vmul.f32 %v6146_v54, %v4819_v62  ;;  %v2125_v4 = vmul.f32 %v9443_v40, %v11980_v46  ;;  %v1845_v36 = vadd.f32 %v1708_v26, %v1429_v18  ;;  %v2540_v32 = vmul.f32 %v9579_v10, %v12023_v50  ;;  %v13939_v26 = vpop.permute.xlu1 %5091 }
 0x631   : > { %v5860_v60 = vsub.f32 1.0, %v5572_v28  ;;  %v1846_v16 = vadd.f32 %v1709_v12, %v1430_v56  ;;  %10765 = vmatprep.subr.bf16.mxu1 %v17588_v24  ;;  %7984 = vperm.xlu1 %11007, %v17627_v34   ;;  %v4821_v14 = vmax.f32 %v4533_v61, 0.0  ;;  %v2541_v9 = vmul.f32 %v9580_v11, %v12023_v50  ;;  %v17631_v56 = vld [vmem:[#allocation22_spill] sm:$0xff]  ;;  %17632 = vst [vmem:[#allocation19_spill] sm:$0xff] %v13939_v26 }
 0x632   : > { %6869 = vmatprep.mubr.f32.mxu1 %v6434_v43  ;;  %v2956_v59 = vmul.f32 %v9716_v25, %v12079_v37  ;;  %v2957_v3 = vmul.f32 %v9717_v53, %v12079_v37  ;;  %10781 = vmatpush1.bf16.msra.mxu1 %v17628_v42  ;;  %v2261_v20 = vadd.f32 %v2124_v51, %v1845_v36  ;;  %v17633_v43 = vld [vmem:[#allocation41_spill] sm:$0xff] }
 0x633   : > { %v6148_v2 = vmax.f32 %v5860_v60, 0.0  ;;  %v2262_v62 = vadd.f32 %v2125_v4, %v1846_v16  ;;  %v3372_v7 = vmul.f32 %v9853_v63, %v12125_v1  ;;  %10766 = vmatprep.subr.bf16.mxu1 %v17588_v24  ;;  %8012 = vperm.xlu0 %11006, %v17630_v39   ;;  %v3373_v40 = vmul.f32 %v9854_v31, %v12125_v1  ;;  %v17634_v31 = vld [vmem:[#allocation36_spill] sm:$0xff] }
 0x634   : > { %v3954_v21 = vsub.f32 %v13809_v19, %v11870_v27  ;;  %v5281_v54 = vsub.f32 %v13846_v35, %v11894_v47  ;;  %v3956_v5 = vsub.f32 %v13809_v19, %v11269_v44  ;;  %v2677_v10 = vadd.f32 %v2540_v32, %v2261_v20 }
 0x635   : > { %v6436_v18 = vmul.f32 %v6148_v2, %v4821_v14  ;;  %v2678_v45 = vadd.f32 %v2541_v9, %v2262_v62  ;;  %v5283_v28 = vsub.f32 %v13846_v35, %v11297_v55  ;;  %7992 = vperm.xlu1 %11007, %v17631_v56   ;;  %v3964_v53 = vsub.f32 %v13924_v58, %v11873_v29 }
 0x636   : > { %v4242_v12 = vand.u32 2147483647, %v3954_v21  ;;  %v5569_v11 = vand.u32 2147483647, %v5281_v54  ;;  %v4244_v25 = vand.u32 2147483647, %v3956_v5  ;;  %10782 = vmatpush1.bf16.msra.mxu1 %v17633_v43  ;;  %v3093_v61 = vadd.f32 %v2956_v59, %v2677_v10 }
 0x637   : > { %7094 = vmatprep.mubr.f32.mxu0 %v6436_v18  ;;  %v3094_v51 = vadd.f32 %v2957_v3, %v2678_v45  ;;  %v5571_v4 = vand.u32 2147483647, %v5283_v28  ;;  %v5291_v63 = vsub.f32 %v13939_v26, %v11897_v48  ;;  %10767 = vmatprep.subr.bf16.mxu1 %v17588_v24  ;;  %v4252_v32 = vand.u32 2147483647, %v3964_v53  ;;  %v1285_v59 = vld [vmem:[%s17374_s9 + $0x240] sm:$0xff]  ;;  %v17635_v3 = vld [vmem:[#allocation32_spill] sm:$0xff] }
 0x638   : > { %v4530_v60 = vsub.f32 1.0, %v4242_v12  ;;  %v5857_v36 = vsub.f32 1.0, %v5569_v11  ;;  %v4532_v16 = vsub.f32 1.0, %v4244_v25  ;;  %8020 = vperm.xlu0 %11006, %v17634_v31   ;;  %v3509_v34 = vadd.f32 %v3372_v7, %v3093_v61  ;;  %v1286_v21 = vld [vmem:[%s17374_s9 + $0x248] sm:$0xff]  ;;  %v17636_v54 = vld [vmem:[#allocation42_spill] sm:$0xff]  ;;  %v9308_v45 = vld [vmem:[%s17374_s9 + $0x690] sm:$0xff] }
 0x639   : > { %v3510_v14 = vadd.f32 %v3373_v40, %v3094_v51  ;;  %v5859_v9 = vsub.f32 1.0, %v5571_v4  ;;  %v5579_v42 = vand.u32 2147483647, %v5291_v63  ;;  %8000 = vperm.xlu1 %11007, %v17635_v3   ;;  %v4540_v39 = vsub.f32 1.0, %v4252_v32  ;;  %v9307_v10 = vld [vmem:[%s17374_s9 + $0x688] sm:$0xff]  ;;  %v9444_v28 = vld [vmem:[%s17374_s9 + $0xad0] sm:$0xff] }
 0x63a   : > { %v4818_v2 = vmax.f32 %v4530_v60, 0.0  ;;  %v6145_v20 = vmax.f32 %v5857_v36, 0.0  ;;  %v4820_v62 = vmax.f32 %v4532_v16, 0.0  ;;  %10783 = vmatpush1.bf16.msra.mxu1 %v17636_v54  ;;  %v3966_v18 = vsub.f32 %v13924_v58, %v11875_v30  ;;  %v9445_v53 = vld [vmem:[%s17374_s9 + $0xad8] sm:$0xff]  ;;  %v17637_v61 = vld [vmem:[#allocation40_spill] sm:$0xff]  ;;  %v9582_v36 = vld [vmem:[%s17374_s9 + $0xf20] sm:$0xff] }
 0x63b   : > { %v10628_v7 = vpack.c.bf16 %v3510_v14, %v3509_v34  ;;  %v6147_v40 = vmax.f32 %v5859_v9, 0.0  ;;  %v5867_v5 = vsub.f32 1.0, %v5579_v42  ;;  %10768 = vmatprep.subr.bf16.mxu1 %v17588_v24  ;;  %v4828_v12 = vmax.f32 %v4540_v39, 0.0  ;;  %v9581_v43 = vld [vmem:[%s17374_s9 + $0xf18] sm:$0xff]  ;;  %v17638_v16 = vld [vmem:[#allocation23_spill] sm:$0xff]  ;;  %v9718_v9 = vld [vmem:[%s17374_s9 + $0x1360] sm:$0xff] }
 0x63c   : > { %v6433_v56 = vmul.f32 %v6145_v20, %v4818_v2  ;;  %v5293_v11 = vsub.f32 %v13939_v26, %v11899_v52  ;;  %v1431_v25 = vmul.f32 %v11915_v23, %v1285_v59  ;;  %8028 = vperm.xlu0 %11006, %v17637_v61   ;;  %v4254_v63 = vand.u32 2147483647, %v3966_v18  ;;  %v9719_v42 = vld [vmem:[%s17374_s9 + $0x1368] sm:$0xff]  ;;  %v9856_v39 = vld [vmem:[%s17374_s9 + $0x17b0] sm:$0xff] }
 0x63d   : > { %10629 = vmatpush1.bf16.msra.mxu0 %v10628_v7  ;;  %v6435_v51 = vmul.f32 %v6147_v40, %v4820_v62  ;;  %v6155_v4 = vmax.f32 %v5867_v5, 0.0  ;;  %v1432_v60 = vmul.f32 %v11915_v23, %v1286_v21  ;;  %8008 = vperm.xlu1 %11007, %v17638_v16   ;;  %v1710_v31 = vmul.f32 %v9307_v10, %v11913_v8  ;;  %v9855_v59 = vld [vmem:[%s17374_s9 + $0x17a8] sm:$0xff] }
 0x63e   : > { %6870 = vmatmul.mubr.f32.gmra.mrb[14].mxu1 %v6433_v56  ;;  %10630 = vmatprep.subr.bf16.mxu0 %v17588_v24  ;;  %v5581_v32 = vand.u32 2147483647, %v5293_v11  ;;  %v1711_v34 = vmul.f32 %v9308_v45, %v11913_v8  ;;  %v2126_v14 = vmul.f32 %v9444_v28, %v11980_v46  ;;  %v4542_v2 = vsub.f32 1.0, %v4254_v63  ;;  %v17639_v28 = vld [vmem:[#allocation28_spill] sm:$0xff] }
 0x63f   : > { %7095 = vmatmul.mubr.f32.gmra.mrb[28].mxu0 %v6435_v51  ;;  %v6443_v3 = vmul.f32 %v6155_v4, %v4828_v12  ;;  %v2127_v20 = vmul.f32 %v9445_v53, %v11980_v46  ;;  %v2542_v62 = vmul.f32 %v9581_v43, %v12023_v50  ;;  %10784 = vmatpush1.bf16.msra.mxu1 %v13565_v15  ;;  %v14009_v15 = vpop.permute.xlu0 %5095  ;;  %v14012_v53 = vpop.permute.xlu1 %3743 }
 0x640   : > { %v5869_v21 = vsub.f32 1.0, %v5581_v32  ;;  %v1847_v54 = vadd.f32 %v1710_v31, %v1431_v25  ;;  %v1848_v7 = vadd.f32 %v1711_v34, %v1432_v60  ;;  %v2543_v40 = vmul.f32 %v9582_v36, %v12023_v50  ;;  %10769 = vmatprep.subr.bf16.mxu1 %v17588_v24  ;;  %8036 = vperm.xlu0 %11006, %v13606_v17  }
 0x641   : > { %6874 = vmatprep.mubr.f32.mxu1 %v6443_v3  ;;  %v4830_v5 = vmax.f32 %v4542_v2, 0.0  ;;  %v2958_v18 = vmul.f32 %v9718_v9, %v12079_v37  ;;  %v2959_v10 = vmul.f32 %v9719_v42, %v12079_v37  ;;  %v3374_v45 = vmul.f32 %v9855_v59, %v12125_v1  ;;  %8016 = vperm.xlu1 %11007, %v17639_v28  }
 0x642   : > { %17640 = vst [vmem:[#allocation26_spill] sm:$0xff] %v14009_v15  ;;  %v6157_v56 = vmax.f32 %v5869_v21, 0.0  ;;  %v2263_v12 = vadd.f32 %v2126_v14, %v1847_v54  ;;  %v2264_v11 = vadd.f32 %v2127_v20, %v1848_v7  ;;  %v3375_v25 = vmul.f32 %v9856_v39, %v12125_v1  ;;  %17641 = vst [vmem:[#allocation11_spill] sm:$0xff] %v14012_v53  ;;  %v17642_v14 = vld [vmem:[#allocation37_spill] sm:$0xff] }
 0x643   : > { %v3963_v17 = vsub.f32 %v13924_v58, %v11870_v27  ;;  %v5290_v43 = vsub.f32 %v13939_v26, %v11894_v47  ;;  %v3965_v61 = vsub.f32 %v13924_v58, %v11269_v44  ;;  %v5292_v51 = vsub.f32 %v13939_v26, %v11297_v55  ;;  %10785 = vmatpush1.bf16.msra.mxu1 %v13625_v49 }
 0x644   : > { %v6445_v4 = vmul.f32 %v6157_v56, %v4830_v5  ;;  %v2679_v63 = vadd.f32 %v2542_v62, %v2263_v12  ;;  %v2680_v60 = vadd.f32 %v2543_v40, %v2264_v11  ;;  %v3973_v36 = vsub.f32 %v14012_v53, %v11873_v29  ;;  %v1287_v40 = vld [vmem:[%s17374_s9 + $0x250] sm:$0xff]  ;;  %v14031_v5 = vpop.permute.xlu1 %3748  ;;  %v1288_v12 = vld [vmem:[%s17374_s9 + $0x258] sm:$0xff]  ;;  %v17644_v11 = vld [vmem:[#allocation43_spill] sm:$0xff] }
 0x645   : > { %v4251_v16 = vand.u32 2147483647, %v3963_v17  ;;  %v5578_v32 = vand.u32 2147483647, %v5290_v43  ;;  %v4253_v31 = vand.u32 2147483647, %v3965_v61  ;;  %v5300_v34 = vsub.f32 %v14009_v15, %v11897_v48  ;;  %8024 = vperm.xlu1 %11007, %v17642_v14  }
 0x646   : > { %7099 = vmatprep.mubr.f32.mxu0 %v6445_v4  ;;  %v3095_v9 = vadd.f32 %v2958_v18, %v2679_v63  ;;  %v3096_v42 = vadd.f32 %v2959_v10, %v2680_v60  ;;  %v5580_v59 = vand.u32 2147483647, %v5292_v51  ;;  %v4261_v3 = vand.u32 2147483647, %v3973_v36  ;;  %17643 = vst [vmem:[#allocation18_spill] sm:$0xff] %v14031_v5  ;;  %v9310_v51 = vld [vmem:[%s17374_s9 + $0x6a0] sm:$0xff] }
 0x647   : > { %v4539_v49 = vsub.f32 1.0, %v4251_v16  ;;  %v5866_v2 = vsub.f32 1.0, %v5578_v32  ;;  %v4541_v20 = vsub.f32 1.0, %v4253_v31  ;;  %v5588_v62 = vand.u32 2147483647, %v5300_v34  ;;  %v9446_v4 = vld [vmem:[%s17374_s9 + $0xae0] sm:$0xff] }
 0x648   : > { %v3511_v39 = vadd.f32 %v3374_v45, %v3095_v9  ;;  %v3512_v21 = vadd.f32 %v3375_v25, %v3096_v42  ;;  %v5868_v54 = vsub.f32 1.0, %v5580_v59  ;;  %v4549_v7 = vsub.f32 1.0, %v4261_v3  ;;  %v9309_v45 = vld [vmem:[%s17374_s9 + $0x698] sm:$0xff]  ;;  %v9447_v32 = vld [vmem:[%s17374_s9 + $0xae8] sm:$0xff]  ;;  %v9584_v59 = vld [vmem:[%s17374_s9 + $0xf30] sm:$0xff] }
 0x649   : > { %v4827_v28 = vmax.f32 %v4539_v49, 0.0  ;;  %v6154_v56 = vmax.f32 %v5866_v2, 0.0  ;;  %v4829_v18 = vmax.f32 %v4541_v20, 0.0  ;;  %v5876_v10 = vsub.f32 1.0, %v5588_v62  ;;  %8032 = vperm.xlu1 %11007, %v17644_v11   ;;  %v9583_v31 = vld [vmem:[%s17374_s9 + $0xf28] sm:$0xff]  ;;  %v9720_v3 = vld [vmem:[%s17374_s9 + $0x1370] sm:$0xff] }
 0x64a   : > { %v10631_v25 = vpack.c.bf16 %v3512_v21, %v3511_v39  ;;  %v6156_v17 = vmax.f32 %v5868_v54, 0.0  ;;  %v4837_v43 = vmax.f32 %v4549_v7, 0.0  ;;  %v3975_v61 = vsub.f32 %v14012_v53, %v11875_v30  ;;  %v9721_v39 = vld [vmem:[%s17374_s9 + $0x1378] sm:$0xff] }
 0x64b   : > { %v6442_v63 = vmul.f32 %v6154_v56, %v4827_v28  ;;  %v6164_v60 = vmax.f32 %v5876_v10, 0.0  ;;  %v5302_v36 = vsub.f32 %v14009_v15, %v11899_v52  ;;  %v1433_v16 = vmul.f32 %v11915_v23, %v1287_v40  ;;  %v9857_v21 = vld [vmem:[%s17374_s9 + $0x17b8] sm:$0xff]  ;;  %v9858_v56 = vld [vmem:[%s17374_s9 + $0x17c0] sm:$0xff] }
 0x64c   : > { %10632 = vmatpush1.bf16.msra.mxu0 %v10631_v25  ;;  %v6444_v34 = vmul.f32 %v6156_v17, %v4829_v18  ;;  %v4263_v14 = vand.u32 2147483647, %v3975_v61  ;;  %v1434_v9 = vmul.f32 %v11915_v23, %v1288_v12  ;;  %v1712_v42 = vmul.f32 %v9309_v45, %v11913_v8 }
 0x64d   : > { %6875 = vmatmul.mubr.f32.gmra.mrb[16].mxu1 %v6442_v63  ;;  %10633 = vmatprep.subr.bf16.mxu0 %v17588_v24  ;;  %v6452_v49 = vmul.f32 %v6164_v60, %v4837_v43  ;;  %v5590_v2 = vand.u32 2147483647, %v5302_v36  ;;  %v1713_v20 = vmul.f32 %v9310_v51, %v11913_v8  ;;  %v2128_v62 = vmul.f32 %v9446_v4, %v11980_v46  ;;  %v14086_v60 = vpop.permute.xlu1 %5099 }
 0x64e   : > { %7100 = vmatmul.mubr.f32.gmra.mrb[30].mxu0 %v6444_v34  ;;  %v4551_v54 = vsub.f32 1.0, %v4263_v14  ;;  %v1849_v7 = vadd.f32 %v1712_v42, %v1433_v16  ;;  %v2129_v40 = vmul.f32 %v9447_v32, %v11980_v46  ;;  %v2544_v28 = vmul.f32 %v9583_v31, %v12023_v50  ;;  %17645 = vst [vmem:[#allocation13_spill] sm:$0xff] %v14086_v60 }
 0x64f   : > { %6879 = vmatprep.mubr.f32.mxu1 %v6452_v49  ;;  %v5878_v18 = vsub.f32 1.0, %v5590_v2  ;;  %v1850_v10 = vadd.f32 %v1713_v20, %v1434_v9  ;;  %v2545_v12 = vmul.f32 %v9584_v59, %v12023_v50  ;;  %v2960_v45 = vmul.f32 %v9720_v3, %v12079_v37 }
 0x650   : > { %v4839_v11 = vmax.f32 %v4551_v54, 0.0  ;;  %v2265_v25 = vadd.f32 %v2128_v62, %v1849_v7  ;;  %v2961_v17 = vmul.f32 %v9721_v39, %v12079_v37  ;;  %v3376_v43 = vmul.f32 %v9857_v21, %v12125_v1 }
 0x651   : > { %v6166_v61 = vmax.f32 %v5878_v18, 0.0  ;;  %v2266_v51 = vadd.f32 %v2129_v40, %v1850_v10  ;;  %v3377_v4 = vmul.f32 %v9858_v56, %v12125_v1  ;;  %v3972_v63 = vsub.f32 %v14012_v53, %v11870_v27 }
 0x652   : > { %v2681_v36 = vadd.f32 %v2544_v28, %v2265_v25  ;;  %v5299_v16 = vsub.f32 %v14009_v15, %v11894_v47  ;;  %v3974_v32 = vsub.f32 %v14012_v53, %v11269_v44  ;;  %v5301_v31 = vsub.f32 %v14009_v15, %v11297_v55 }
 0x653   : > { %v6454_v34 = vmul.f32 %v6166_v61, %v4839_v11  ;;  %v2682_v14 = vadd.f32 %v2545_v12, %v2266_v51  ;;  %v4260_v9 = vand.u32 2147483647, %v3972_v63  ;;  %v3982_v42 = vsub.f32 %v14031_v5, %v11873_v29  ;;  %v9311_v51 = vld [vmem:[%s17374_s9 + $0x6a8] sm:$0xff] }
 0x654   : > { %v3097_v59 = vadd.f32 %v2960_v45, %v2681_v36  ;;  %v5587_v3 = vand.u32 2147483647, %v5299_v16  ;;  %v4262_v49 = vand.u32 2147483647, %v3974_v32  ;;  %v5589_v2 = vand.u32 2147483647, %v5301_v31 }
 0x655   : > { %7104 = vmatprep.mubr.f32.mxu0 %v6454_v34  ;;  %v3098_v20 = vadd.f32 %v2961_v17, %v2682_v14  ;;  %v4548_v62 = vsub.f32 1.0, %v4260_v9  ;;  %v4270_v39 = vand.u32 2147483647, %v3982_v42  ;;  %v5309_v21 = vsub.f32 %v14086_v60, %v11897_v48  ;;  %v1289_v45 = vld [vmem:[%s17374_s9 + $0x260] sm:$0xff]  ;;  %v9312_v31 = vld [vmem:[%s17374_s9 + $0x6b0] sm:$0xff]  ;;  %v9449_v14 = vld [vmem:[%s17374_s9 + $0xaf8] sm:$0xff] }
 0x656   : > { %v3513_v54 = vadd.f32 %v3376_v43, %v3097_v59  ;;  %v5875_v7 = vsub.f32 1.0, %v5587_v3  ;;  %v4550_v40 = vsub.f32 1.0, %v4262_v49  ;;  %v5877_v28 = vsub.f32 1.0, %v5589_v2  ;;  %v1290_v43 = vld [vmem:[%s17374_s9 + $0x268] sm:$0xff]  ;;  %v9448_v34 = vld [vmem:[%s17374_s9 + $0xaf0] sm:$0xff]  ;;  %v9585_v49 = vld [vmem:[%s17374_s9 + $0xf38] sm:$0xff] }
 0x657   : > { %v3514_v56 = vadd.f32 %v3377_v4, %v3098_v20  ;;  %v4836_v18 = vmax.f32 %v4548_v62, 0.0  ;;  %v4558_v10 = vsub.f32 1.0, %v4270_v39  ;;  %v5597_v12 = vand.u32 2147483647, %v5309_v21  ;;  %v14109_v4 = vpop.permute.xlu0 %5107  ;;  %v9586_v21 = vld [vmem:[%s17374_s9 + $0xf40] sm:$0xff] }
 0x658   : > { %v6163_v11 = vmax.f32 %v5875_v7, 0.0  ;;  %v4838_v25 = vmax.f32 %v4550_v40, 0.0  ;;  %v6165_v17 = vmax.f32 %v5877_v28, 0.0  ;;  %v3984_v61 = vsub.f32 %v14031_v5, %v11875_v30  ;;  %17646 = vst [vmem:[#allocation20_spill] sm:$0xff] %v14109_v4 }
 0x659   : > { %v10634_v63 = vpack.c.bf16 %v3514_v56, %v3513_v54  ;;  %v4846_v36 = vmax.f32 %v4558_v10, 0.0  ;;  %v5885_v16 = vsub.f32 1.0, %v5597_v12  ;;  %v5311_v32 = vsub.f32 %v14086_v60, %v11899_v52  ;;  %v9722_v54 = vld [vmem:[%s17374_s9 + $0x1380] sm:$0xff]  ;;  %v9859_v10 = vld [vmem:[%s17374_s9 + $0x17c8] sm:$0xff] }
 0x65a   : > { %v6451_v9 = vmul.f32 %v6163_v11, %v4836_v18  ;;  %v6453_v42 = vmul.f32 %v6165_v17, %v4838_v25  ;;  %v4272_v59 = vand.u32 2147483647, %v3984_v61  ;;  %v1435_v3 = vmul.f32 %v11915_v23, %v1289_v45  ;;  %v9723_v18 = vld [vmem:[%s17374_s9 + $0x1388] sm:$0xff]  ;;  %v9860_v17 = vld [vmem:[%s17374_s9 + $0x17d0] sm:$0xff] }
 0x65b   : > { %10635 = vmatpush1.bf16.msra.mxu0 %v10634_v63  ;;  %v6173_v2 = vmax.f32 %v5885_v16, 0.0  ;;  %v5599_v20 = vand.u32 2147483647, %v5311_v32  ;;  %v1436_v62 = vmul.f32 %v11915_v23, %v1290_v43  ;;  %v1714_v39 = vmul.f32 %v9311_v51, %v11913_v8  ;;  %v14150_v16 = vpop.permute.xlu0 %3753 }
 0x65c   : > { %6880 = vmatmul.mubr.f32.gmra.mrb[18].mxu1 %v6451_v9  ;;  %7105 = vmatmul.mubr.f32.gmra.mrb[32].mxu0 %v6453_v42  ;;  %v4560_v7 = vsub.f32 1.0, %v4272_v59  ;;  %v1715_v40 = vmul.f32 %v9312_v31, %v11913_v8  ;;  %v2130_v28 = vmul.f32 %v9448_v34, %v11980_v46  ;;  %v2131_v56 = vmul.f32 %v9449_v14, %v11980_v46 }
 0x65d   : > { %10636 = vmatprep.subr.bf16.mxu0 %v17588_v24  ;;  %v6461_v12 = vmul.f32 %v6173_v2, %v4846_v36  ;;  %v5887_v45 = vsub.f32 1.0, %v5599_v20  ;;  %v1851_v11 = vadd.f32 %v1714_v39, %v1435_v3  ;;  %v2546_v25 = vmul.f32 %v9585_v49, %v12023_v50  ;;  %17647 = vst [vmem:[#allocation24_spill] sm:$0xff] %v14150_v16 }
 0x65e   : > { %v4848_v61 = vmax.f32 %v4560_v7, 0.0  ;;  %v1852_v43 = vadd.f32 %v1715_v40, %v1436_v62  ;;  %v2547_v51 = vmul.f32 %v9586_v21, %v12023_v50  ;;  %v2962_v63 = vmul.f32 %v9722_v54, %v12079_v37  ;;  %v14163_v62 = vpop.permute.xlu1 %5103 }
 0x65f   : > { %6884 = vmatprep.mubr.f32.mxu1 %v6461_v12  ;;  %v6175_v32 = vmax.f32 %v5887_v45, 0.0  ;;  %v2267_v31 = vadd.f32 %v2130_v28, %v1851_v11  ;;  %v2963_v36 = vmul.f32 %v9723_v18, %v12079_v37  ;;  %v3378_v34 = vmul.f32 %v9859_v10, %v12125_v1  ;;  %17648 = vst [vmem:[#allocation31_spill] sm:$0xff] %v14163_v62 }
 0x660   : > { %v2268_v14 = vadd.f32 %v2131_v56, %v1852_v43  ;;  %v3379_v9 = vmul.f32 %v9860_v17, %v12125_v1  ;;  %v3981_v42 = vsub.f32 %v14031_v5, %v11870_v27  ;;  %v5308_v59 = vsub.f32 %v14086_v60, %v11894_v47 }
 0x661   : > { %v6463_v3 = vmul.f32 %v6175_v32, %v4848_v61  ;;  %v2683_v49 = vadd.f32 %v2546_v25, %v2267_v31  ;;  %v3983_v2 = vsub.f32 %v14031_v5, %v11269_v44  ;;  %v5310_v20 = vsub.f32 %v14086_v60, %v11297_v55 }
 0x662   : > { %v2684_v39 = vadd.f32 %v2547_v51, %v2268_v14  ;;  %v4269_v21 = vand.u32 2147483647, %v3981_v42  ;;  %v5596_v54 = vand.u32 2147483647, %v5308_v59  ;;  %v3991_v7 = vsub.f32 %v14150_v16, %v11873_v29 }
 0x663   : > { %7109 = vmatprep.mubr.f32.mxu0 %v6463_v3  ;;  %v3099_v40 = vadd.f32 %v2962_v63, %v2683_v49  ;;  %v4271_v28 = vand.u32 2147483647, %v3983_v2  ;;  %v5598_v56 = vand.u32 2147483647, %v5310_v20  ;;  %v5318_v18 = vsub.f32 %v14163_v62, %v11897_v48  ;;  %v1291_v63 = vld [vmem:[%s17374_s9 + $0x270] sm:$0xff]  ;;  %v9314_v49 = vld [vmem:[%s17374_s9 + $0x6c0] sm:$0xff] }
 0x664   : > { %v3100_v10 = vadd.f32 %v2963_v36, %v2684_v39  ;;  %v4557_v12 = vsub.f32 1.0, %v4269_v21  ;;  %v5884_v45 = vsub.f32 1.0, %v5596_v54  ;;  %v4279_v11 = vand.u32 2147483647, %v3991_v7  ;;  %v9450_v54 = vld [vmem:[%s17374_s9 + $0xb00] sm:$0xff]  ;;  %v9451_v7 = vld [vmem:[%s17374_s9 + $0xb08] sm:$0xff] }
 0x665   : > { %v3515_v25 = vadd.f32 %v3378_v34, %v3099_v40  ;;  %v4559_v17 = vsub.f32 1.0, %v4271_v28  ;;  %v5886_v61 = vsub.f32 1.0, %v5598_v56  ;;  %v5606_v43 = vand.u32 2147483647, %v5318_v18  ;;  %v1292_v34 = vld [vmem:[%s17374_s9 + $0x278] sm:$0xff] }
 0x666   : > { %v3516_v51 = vadd.f32 %v3379_v9, %v3100_v10  ;;  %v4845_v32 = vmax.f32 %v4557_v12, 0.0  ;;  %v6172_v31 = vmax.f32 %v5884_v45, 0.0  ;;  %v4567_v14 = vsub.f32 1.0, %v4279_v11  ;;  %v9313_v9 = vld [vmem:[%s17374_s9 + $0x6b8] sm:$0xff]  ;;  %v9587_v10 = vld [vmem:[%s17374_s9 + $0xf48] sm:$0xff] }
 0x667   : > { %v4847_v42 = vmax.f32 %v4559_v17, 0.0  ;;  %v6174_v59 = vmax.f32 %v5886_v61, 0.0  ;;  %v5894_v3 = vsub.f32 1.0, %v5606_v43  ;;  %v3993_v36 = vsub.f32 %v14150_v16, %v11875_v30  ;;  %v9588_v17 = vld [vmem:[%s17374_s9 + $0xf50] sm:$0xff]  ;;  %v9725_v43 = vld [vmem:[%s17374_s9 + $0x1398] sm:$0xff] }
 0x668   : > { %v10637_v2 = vpack.c.bf16 %v3516_v51, %v3515_v25  ;;  %v6460_v20 = vmul.f32 %v6172_v31, %v4845_v32  ;;  %v4855_v39 = vmax.f32 %v4567_v14, 0.0  ;;  %v5320_v21 = vsub.f32 %v14163_v62, %v11899_v52  ;;  %v9724_v61 = vld [vmem:[%s17374_s9 + $0x1390] sm:$0xff] }
 0x669   : > { %v6462_v40 = vmul.f32 %v6174_v59, %v4847_v42  ;;  %v6182_v28 = vmax.f32 %v5894_v3, 0.0  ;;  %v4281_v56 = vand.u32 2147483647, %v3993_v36  ;;  %v1437_v18 = vmul.f32 %v11915_v23, %v1291_v63  ;;  %v9861_v63 = vld [vmem:[%s17374_s9 + $0x17d8] sm:$0xff] }
 0x66a   : > { %10638 = vmatpush1.bf16.msra.mxu0 %v10637_v2  ;;  %6885 = vmatmul.mubr.f32.gmra.mrb[20].mxu1 %v6460_v20  ;;  %v5608_v12 = vand.u32 2147483647, %v5320_v21  ;;  %v1438_v45 = vmul.f32 %v11915_v23, %v1292_v34  ;;  %v1716_v11 = vmul.f32 %v9313_v9, %v11913_v8  ;;  %v1717_v25 = vmul.f32 %v9314_v49, %v11913_v8  ;;  %v9862_v34 = vld [vmem:[%s17374_s9 + $0x17e0] sm:$0xff] }
 0x66b   : > { %7110 = vmatmul.mubr.f32.gmra.mrb[34].mxu0 %v6462_v40  ;;  %10639 = vmatprep.subr.bf16.mxu0 %v17588_v24  ;;  %v6470_v51 = vmul.f32 %v6182_v28, %v4855_v39  ;;  %v4569_v32 = vsub.f32 1.0, %v4281_v56  ;;  %v2132_v31 = vmul.f32 %v9450_v54, %v11980_v46  ;;  %v2133_v14 = vmul.f32 %v9451_v7, %v11980_v46 }
 0x66c   : > { %v5896_v42 = vsub.f32 1.0, %v5608_v12  ;;  %v1853_v59 = vadd.f32 %v1716_v11, %v1437_v18  ;;  %v1854_v3 = vadd.f32 %v1717_v25, %v1438_v45  ;;  %v2548_v36 = vmul.f32 %v9587_v10, %v12023_v50  ;;  %v14228_v10 = vpop.permute.xlu1 %3758 }
 0x66d   : > { %6889 = vmatprep.mubr.f32.mxu1 %v6470_v51  ;;  %v4857_v9 = vmax.f32 %v4569_v32, 0.0  ;;  %v2549_v49 = vmul.f32 %v9588_v17, %v12023_v50  ;;  %v2964_v2 = vmul.f32 %v9724_v61, %v12079_v37  ;;  %v2965_v20 = vmul.f32 %v9725_v43, %v12079_v37  ;;  %17649 = vst [vmem:[#allocation16_spill] sm:$0xff] %v14228_v10 }
 0x66e   : > { %v6184_v39 = vmax.f32 %v5896_v42, 0.0  ;;  %v2269_v21 = vadd.f32 %v2132_v31, %v1853_v59  ;;  %v2270_v54 = vadd.f32 %v2133_v14, %v1854_v3  ;;  %v3380_v7 = vmul.f32 %v9861_v63, %v12125_v1 }
 0x66f   : > { %v3381_v40 = vmul.f32 %v9862_v34, %v12125_v1  ;;  %v3990_v28 = vsub.f32 %v14150_v16, %v11870_v27  ;;  %v5317_v56 = vsub.f32 %v14163_v62, %v11894_v47  ;;  %v3992_v18 = vsub.f32 %v14150_v16, %v11269_v44 }
 0x670   : > { %v6472_v12 = vmul.f32 %v6184_v39, %v4857_v9  ;;  %v2685_v45 = vadd.f32 %v2548_v36, %v2269_v21  ;;  %v2686_v11 = vadd.f32 %v2549_v49, %v2270_v54  ;;  %v5319_v25 = vsub.f32 %v14163_v62, %v11297_v55  ;;  %v1293_v21 = vld [vmem:[%s17374_s9 + $0x280] sm:$0xff] }
 0x671   : > { %v4278_v17 = vand.u32 2147483647, %v3990_v28  ;;  %v5605_v61 = vand.u32 2147483647, %v5317_v56  ;;  %v4280_v43 = vand.u32 2147483647, %v3992_v18  ;;  %v4000_v51 = vsub.f32 %v14228_v10, %v11873_v29 }
 0x672   : > { %7114 = vmatprep.mubr.f32.mxu0 %v6472_v12  ;;  %v3101_v32 = vadd.f32 %v2964_v2, %v2685_v45  ;;  %v3102_v31 = vadd.f32 %v2965_v20, %v2686_v11  ;;  %v5607_v14 = vand.u32 2147483647, %v5319_v25  ;;  %v5327_v63 = vsub.f32 %v14109_v4, %v11897_v48  ;;  %v1294_v56 = vld [vmem:[%s17374_s9 + $0x288] sm:$0xff]  ;;  %v9316_v11 = vld [vmem:[%s17374_s9 + $0x6d0] sm:$0xff] }
 0x673   : > { %v4566_v42 = vsub.f32 1.0, %v4278_v17  ;;  %v5893_v59 = vsub.f32 1.0, %v5605_v61  ;;  %v4568_v3 = vsub.f32 1.0, %v4280_v43  ;;  %v4288_v36 = vand.u32 2147483647, %v4000_v51  ;;  %v9452_v25 = vld [vmem:[%s17374_s9 + $0xb10] sm:$0xff]  ;;  %v14253_v17 = vpop.permute.xlu1 %3763 }
 0x674   : > { %v3517_v34 = vadd.f32 %v3380_v7, %v3101_v32  ;;  %v3518_v9 = vadd.f32 %v3381_v40, %v3102_v31  ;;  %v5895_v49 = vsub.f32 1.0, %v5607_v14  ;;  %v5615_v39 = vand.u32 2147483647, %v5327_v63  ;;  %v9315_v40 = vld [vmem:[%s17374_s9 + $0x6c8] sm:$0xff]  ;;  %17650 = vst [vmem:[#allocation17_spill] sm:$0xff] %v14253_v17  ;;  %v9453_v31 = vld [vmem:[%s17374_s9 + $0xb18] sm:$0xff] }
 0x675   : > { %v4854_v54 = vmax.f32 %v4566_v42, 0.0  ;;  %v6181_v28 = vmax.f32 %v5893_v59, 0.0  ;;  %v4856_v2 = vmax.f32 %v4568_v3, 0.0  ;;  %v4576_v20 = vsub.f32 1.0, %v4288_v36  ;;  %v9589_v14 = vld [vmem:[%s17374_s9 + $0xf58] sm:$0xff]  ;;  %v9590_v36 = vld [vmem:[%s17374_s9 + $0xf60] sm:$0xff] }
 0x676   : > { %v10640_v18 = vpack.c.bf16 %v3518_v9, %v3517_v34  ;;  %v6183_v12 = vmax.f32 %v5895_v49, 0.0  ;;  %v5903_v45 = vsub.f32 1.0, %v5615_v39  ;;  %v4002_v7 = vsub.f32 %v14228_v10, %v11875_v30 }
 0x677   : > { %v6469_v61 = vmul.f32 %v6181_v28, %v4854_v54  ;;  %v4864_v43 = vmax.f32 %v4576_v20, 0.0  ;;  %v5329_v51 = vsub.f32 %v14109_v4, %v11899_v52  ;;  %v1439_v32 = vmul.f32 %v11915_v23, %v1293_v21  ;;  %v9726_v21 = vld [vmem:[%s17374_s9 + $0x13a0] sm:$0xff]  ;;  %v9727_v54 = vld [vmem:[%s17374_s9 + $0x13a8] sm:$0xff] }
 0x678   : > { %10641 = vmatpush1.bf16.msra.mxu0 %v10640_v18  ;;  %v6471_v63 = vmul.f32 %v6183_v12, %v4856_v2  ;;  %v6191_v42 = vmax.f32 %v5903_v45, 0.0  ;;  %v4290_v59 = vand.u32 2147483647, %v4002_v7  ;;  %v1440_v3 = vmul.f32 %v11915_v23, %v1294_v56  ;;  %v9863_v28 = vld [vmem:[%s17374_s9 + $0x17e8] sm:$0xff]  ;;  %v9864_v12 = vld [vmem:[%s17374_s9 + $0x17f0] sm:$0xff] }
 0x679   : > { %6890 = vmatmul.mubr.f32.gmra.mrb[22].mxu1 %v6469_v61  ;;  %10642 = vmatprep.subr.bf16.mxu0 %v17588_v24  ;;  %v5617_v34 = vand.u32 2147483647, %v5329_v51  ;;  %v1718_v9 = vmul.f32 %v9315_v40, %v11913_v8  ;;  %v1719_v49 = vmul.f32 %v9316_v11, %v11913_v8  ;;  %v2134_v39 = vmul.f32 %v9452_v25, %v11980_v46 }
 0x67a   : > { %7115 = vmatmul.mubr.f32.gmra.mrb[36].mxu0 %v6471_v63  ;;  %v6479_v2 = vmul.f32 %v6191_v42, %v4864_v43  ;;  %v4578_v20 = vsub.f32 1.0, %v4290_v59  ;;  %v2135_v56 = vmul.f32 %v9453_v31, %v11980_v46  ;;  %v2550_v18 = vmul.f32 %v9589_v14, %v12023_v50  ;;  %v14290_v31 = vpop.permute.xlu1 %5111 }
 0x67b   : > { %v5905_v45 = vsub.f32 1.0, %v5617_v34  ;;  %v1855_v7 = vadd.f32 %v1718_v9, %v1439_v32  ;;  %v1856_v40 = vadd.f32 %v1719_v49, %v1440_v3  ;;  %v2551_v11 = vmul.f32 %v9590_v36, %v12023_v50  ;;  %17651 = vst [vmem:[#allocation25_spill] sm:$0xff] %v14290_v31 }
 0x67c   : > { %6894 = vmatprep.mubr.f32.mxu1 %v6479_v2  ;;  %v4866_v25 = vmax.f32 %v4578_v20, 0.0  ;;  %v2966_v61 = vmul.f32 %v9726_v21, %v12079_v37  ;;  %v2967_v43 = vmul.f32 %v9727_v54, %v12079_v37  ;;  %v3382_v51 = vmul.f32 %v9863_v28, %v12125_v1 }
 0x67d   : > { %v6193_v14 = vmax.f32 %v5905_v45, 0.0  ;;  %v2271_v63 = vadd.f32 %v2134_v39, %v1855_v7  ;;  %v2272_v42 = vadd.f32 %v2135_v56, %v1856_v40  ;;  %v3383_v59 = vmul.f32 %v9864_v12, %v12125_v1 }
 0x67e   : > { %v3999_v32 = vsub.f32 %v14228_v10, %v11870_v27  ;;  %v5326_v3 = vsub.f32 %v14109_v4, %v11894_v47  ;;  %v4001_v36 = vsub.f32 %v14228_v10, %v11269_v44  ;;  %v5328_v34 = vsub.f32 %v14109_v4, %v11297_v55 }
 0x67f   : > { %v6481_v9 = vmul.f32 %v6193_v14, %v4866_v25  ;;  %v2687_v49 = vadd.f32 %v2550_v18, %v2271_v63  ;;  %v2688_v21 = vadd.f32 %v2551_v11, %v2272_v42  ;;  %v4009_v39 = vsub.f32 %v14253_v17, %v11873_v29  ;;  %v1295_v42 = vld [vmem:[%s17374_s9 + $0x290] sm:$0xff] }
 0x680   : > { %v4287_v54 = vand.u32 2147483647, %v3999_v32  ;;  %v5614_v28 = vand.u32 2147483647, %v5326_v3  ;;  %v4289_v2 = vand.u32 2147483647, %v4001_v36  ;;  %v5336_v20 = vsub.f32 %v14290_v31, %v11897_v48 }
 0x681   : > { %7119 = vmatprep.mubr.f32.mxu0 %v6481_v9  ;;  %v3103_v56 = vadd.f32 %v2966_v61, %v2687_v49  ;;  %v3104_v12 = vadd.f32 %v2967_v43, %v2688_v21  ;;  %v5616_v45 = vand.u32 2147483647, %v5328_v34  ;;  %v4297_v7 = vand.u32 2147483647, %v4009_v39  ;;  %v1296_v61 = vld [vmem:[%s17374_s9 + $0x298] sm:$0xff] }
 0x682   : > { %v4575_v40 = vsub.f32 1.0, %v4287_v54  ;;  %v5902_v10 = vsub.f32 1.0, %v5614_v28  ;;  %v4577_v4 = vsub.f32 1.0, %v4289_v2  ;;  %v5624_v25 = vand.u32 2147483647, %v5336_v20  ;;  %v9317_v43 = vld [vmem:[%s17374_s9 + $0x6d8] sm:$0xff] }
 0x683   : > { %v3519_v18 = vadd.f32 %v3382_v51, %v3103_v56  ;;  %v3520_v11 = vadd.f32 %v3383_v59, %v3104_v12  ;;  %v5904_v14 = vsub.f32 1.0, %v5616_v45  ;;  %v4585_v63 = vsub.f32 1.0, %v4297_v7  ;;  %v9455_v2 = vld [vmem:[%s17374_s9 + $0xb28] sm:$0xff] }
 0x684   : > { %v4863_v32 = vmax.f32 %v4575_v40, 0.0  ;;  %v6190_v3 = vmax.f32 %v5902_v10, 0.0  ;;  %v4865_v36 = vmax.f32 %v4577_v4, 0.0  ;;  %v5912_v9 = vsub.f32 1.0, %v5624_v25  ;;  %v9318_v10 = vld [vmem:[%s17374_s9 + $0x6e0] sm:$0xff]  ;;  %v9591_v20 = vld [vmem:[%s17374_s9 + $0xf68] sm:$0xff] }
 0x685   : > { %v10643_v51 = vpack.c.bf16 %v3520_v11, %v3519_v18  ;;  %v6192_v59 = vmax.f32 %v5904_v14, 0.0  ;;  %v4873_v34 = vmax.f32 %v4585_v63, 0.0  ;;  %v4011_v49 = vsub.f32 %v14253_v17, %v11875_v30  ;;  %v9454_v4 = vld [vmem:[%s17374_s9 + $0xb20] sm:$0xff]  ;;  %v9592_v40 = vld [vmem:[%s17374_s9 + $0xf70] sm:$0xff] }
 0x686   : > { %v6478_v21 = vmul.f32 %v6190_v3, %v4863_v32  ;;  %v6200_v39 = vmax.f32 %v5912_v9, 0.0  ;;  %v5338_v54 = vsub.f32 %v14290_v31, %v11899_v52  ;;  %v1441_v28 = vmul.f32 %v11915_v23, %v1295_v42  ;;  %v9728_v25 = vld [vmem:[%s17374_s9 + $0x13b0] sm:$0xff]  ;;  %v9729_v42 = vld [vmem:[%s17374_s9 + $0x13b8] sm:$0xff] }
 0x687   : > { %10644 = vmatpush1.bf16.msra.mxu0 %v10643_v51  ;;  %v6480_v56 = vmul.f32 %v6192_v59, %v4865_v36  ;;  %v4299_v12 = vand.u32 2147483647, %v4011_v49  ;;  %v1442_v45 = vmul.f32 %v11915_v23, %v1296_v61  ;;  %v1720_v7 = vmul.f32 %v9317_v43, %v11913_v8  ;;  %v9865_v32 = vld [vmem:[%s17374_s9 + $0x17f8] sm:$0xff]  ;;  %v9866_v43 = vld [vmem:[%s17374_s9 + $0x1800] sm:$0xff] }
 0x688   : > { %6895 = vmatmul.mubr.f32.gmra.mrb[24].mxu1 %v6478_v21  ;;  %10645 = vmatprep.subr.bf16.mxu0 %v17588_v24  ;;  %v6488_v18 = vmul.f32 %v6200_v39, %v4873_v34  ;;  %v5626_v11 = vand.u32 2147483647, %v5338_v54  ;;  %v1721_v14 = vmul.f32 %v9318_v10, %v11913_v8  ;;  %v2136_v63 = vmul.f32 %v9454_v4, %v11980_v46  ;;  %v14355_v10 = vpop.permute.xlu0 %3768 }
 0x689   : > { %7120 = vmatmul.mubr.f32.gmra.mrb[38].mxu0 %v6480_v56  ;;  %v4587_v3 = vsub.f32 1.0, %v4299_v12  ;;  %v1857_v36 = vadd.f32 %v1720_v7, %v1441_v28  ;;  %v2137_v9 = vmul.f32 %v9455_v2, %v11980_v46  ;;  %v2552_v61 = vmul.f32 %v9591_v20, %v12023_v50  ;;  %17652 = vst [vmem:[#allocation27_spill] sm:$0xff] %v14355_v10 }
 0x68a   : > { %6899 = vmatprep.mubr.f32.mxu1 %v6488_v18  ;;  %v5914_v51 = vsub.f32 1.0, %v5626_v11  ;;  %v1858_v59 = vadd.f32 %v1721_v14, %v1442_v45  ;;  %v2553_v34 = vmul.f32 %v9592_v40, %v12023_v50  ;;  %v2968_v49 = vmul.f32 %v9728_v25, %v12079_v37 }
 0x68b   : > { %v4875_v4 = vmax.f32 %v4587_v3, 0.0  ;;  %v2273_v21 = vadd.f32 %v2136_v63, %v1857_v36  ;;  %v2969_v39 = vmul.f32 %v9729_v42, %v12079_v37  ;;  %v3384_v54 = vmul.f32 %v9865_v32, %v12125_v1  ;;  %v14370_v63 = vpop.permute.xlu1 %5115 }
 0x68c   : > { %v6202_v28 = vmax.f32 %v5914_v51, 0.0  ;;  %v2274_v2 = vadd.f32 %v2137_v9, %v1858_v59  ;;  %v3385_v20 = vmul.f32 %v9866_v43, %v12125_v1  ;;  %v4008_v56 = vsub.f32 %v14253_v17, %v11870_v27  ;;  %17653 = vst [vmem:[#allocation38_spill] sm:$0xff] %v14370_v63 }
 0x68d   : > { %v2689_v12 = vadd.f32 %v2552_v61, %v2273_v21  ;;  %v5335_v45 = vsub.f32 %v14290_v31, %v11894_v47  ;;  %v4010_v7 = vsub.f32 %v14253_v17, %v11269_v44  ;;  %v5337_v40 = vsub.f32 %v14290_v31, %v11297_v55 }
 0x68e   : > { %v6490_v25 = vmul.f32 %v6202_v28, %v4875_v4  ;;  %v2690_v18 = vadd.f32 %v2553_v34, %v2274_v2  ;;  %v4296_v11 = vand.u32 2147483647, %v4008_v56  ;;  %v4018_v14 = vsub.f32 %v14355_v10, %v11873_v29 }
 0x68f   : > { %v3105_v42 = vadd.f32 %v2968_v49, %v2689_v12  ;;  %v5623_v32 = vand.u32 2147483647, %v5335_v45  ;;  %v4298_v3 = vand.u32 2147483647, %v4010_v7  ;;  %v5625_v36 = vand.u32 2147483647, %v5337_v40 }
 0x690   : > { %7124 = vmatprep.mubr.f32.mxu0 %v6490_v25  ;;  %v3106_v9 = vadd.f32 %v2969_v39, %v2690_v18  ;;  %v4584_v61 = vsub.f32 1.0, %v4296_v11  ;;  %v4306_v43 = vand.u32 2147483647, %v4018_v14  ;;  %v5345_v51 = vsub.f32 %v14370_v63, %v11897_v48  ;;  %v1297_v49 = vld [vmem:[%s17374_s9 + $0x2a0] sm:$0xff]  ;;  %v9320_v14 = vld [vmem:[%s17374_s9 + $0x6f0] sm:$0xff] }
 0x691   : > { %v3521_v59 = vadd.f32 %v3384_v54, %v3105_v42  ;;  %v5911_v4 = vsub.f32 1.0, %v5623_v32  ;;  %v4586_v34 = vsub.f32 1.0, %v4298_v3  ;;  %v5913_v21 = vsub.f32 1.0, %v5625_v36  ;;  %v1298_v54 = vld [vmem:[%s17374_s9 + $0x2a8] sm:$0xff]  ;;  %v9456_v42 = vld [vmem:[%s17374_s9 + $0xb30] sm:$0xff]  ;;  %v9457_v32 = vld [vmem:[%s17374_s9 + $0xb38] sm:$0xff] }
 0x692   : > { %v3522_v28 = vadd.f32 %v3385_v20, %v3106_v9  ;;  %v4872_v2 = vmax.f32 %v4584_v61, 0.0  ;;  %v4594_v56 = vsub.f32 1.0, %v4306_v43  ;;  %v5633_v31 = vand.u32 2147483647, %v5345_v51  ;;  %v9319_v20 = vld [vmem:[%s17374_s9 + $0x6e8] sm:$0xff]  ;;  %v9593_v61 = vld [vmem:[%s17374_s9 + $0xf78] sm:$0xff] }
 0x693   : > { %v6199_v12 = vmax.f32 %v5911_v4, 0.0  ;;  %v4874_v45 = vmax.f32 %v4586_v34, 0.0  ;;  %v6201_v39 = vmax.f32 %v5913_v21, 0.0  ;;  %v4020_v7 = vsub.f32 %v14355_v10, %v11875_v30  ;;  %v9594_v34 = vld [vmem:[%s17374_s9 + $0xf80] sm:$0xff] }
 0x694   : > { %v10646_v40 = vpack.c.bf16 %v3522_v28, %v3521_v59  ;;  %v4882_v25 = vmax.f32 %v4594_v56, 0.0  ;;  %v5921_v18 = vsub.f32 1.0, %v5633_v31  ;;  %v5347_v11 = vsub.f32 %v14370_v63, %v11899_v52  ;;  %v9730_v21 = vld [vmem:[%s17374_s9 + $0x13c0] sm:$0xff] }
 0x695   : > { %v6487_v3 = vmul.f32 %v6199_v12, %v4872_v2  ;;  %v6489_v36 = vmul.f32 %v6201_v39, %v4874_v45  ;;  %v4308_v9 = vand.u32 2147483647, %v4020_v7  ;;  %v1443_v31 = vmul.f32 %v11915_v23, %v1297_v49  ;;  %v9731_v12 = vld [vmem:[%s17374_s9 + $0x13c8] sm:$0xff] }
 0x696   : > { %10647 = vmatpush1.bf16.msra.mxu0 %v10646_v40  ;;  %v6209_v43 = vmax.f32 %v5921_v18, 0.0  ;;  %v5635_v51 = vand.u32 2147483647, %v5347_v11  ;;  %v1444_v59 = vmul.f32 %v11915_v23, %v1298_v54  ;;  %v1722_v4 = vmul.f32 %v9319_v20, %v11913_v8  ;;  %v9867_v45 = vld [vmem:[%s17374_s9 + $0x1808] sm:$0xff]  ;;  %v9868_v40 = vld [vmem:[%s17374_s9 + $0x1810] sm:$0xff] }
 0x697   : > { %6900 = vmatmul.mubr.f32.gmra.mrb[26].mxu1 %v6487_v3  ;;  %7125 = vmatmul.mubr.f32.gmra.mrb[40].mxu0 %v6489_v36  ;;  %v4596_v28 = vsub.f32 1.0, %v4308_v9  ;;  %v1723_v2 = vmul.f32 %v9320_v14, %v11913_v8  ;;  %v2138_v56 = vmul.f32 %v9456_v42, %v11980_v46  ;;  %v2139_v49 = vmul.f32 %v9457_v32, %v11980_v46  ;;  %v14426_v9 = vpop.permute.xlu0 %5119 }
 0x698   : > { %10648 = vmatprep.subr.bf16.mxu0 %v17588_v24  ;;  %v6497_v39 = vmul.f32 %v6209_v43, %v4882_v25  ;;  %v5923_v7 = vsub.f32 1.0, %v5635_v51  ;;  %v1859_v54 = vadd.f32 %v1722_v4, %v1443_v31  ;;  %v2554_v20 = vmul.f32 %v9593_v61, %v12023_v50  ;;  %17654 = vst [vmem:[#allocation21_spill] sm:$0xff] %v14426_v9 }
 0x699   : > { %v4884_v18 = vmax.f32 %v4596_v28, 0.0  ;;  %v1860_v11 = vadd.f32 %v1723_v2, %v1444_v59  ;;  %v2555_v14 = vmul.f32 %v9594_v34, %v12023_v50  ;;  %v2970_v42 = vmul.f32 %v9730_v21, %v12079_v37  ;;  %v14433_v59 = vpop.permute.xlu1 %3773 }
 0x69a   : > { %6904 = vmatprep.mubr.f32.mxu1 %v6497_v39  ;;  %v6211_v32 = vmax.f32 %v5923_v7, 0.0  ;;  %v2275_v3 = vadd.f32 %v2138_v56, %v1859_v54  ;;  %v2971_v36 = vmul.f32 %v9731_v12, %v12079_v37  ;;  %v3386_v25 = vmul.f32 %v9867_v45, %v12125_v1  ;;  %17655 = vst [vmem:[#allocation39_spill] sm:$0xff] %v14433_v59 }
 0x69b   : > { %v2276_v31 = vadd.f32 %v2139_v49, %v1860_v11  ;;  %v3387_v61 = vmul.f32 %v9868_v40, %v12125_v1  ;;  %v4017_v43 = vsub.f32 %v14355_v10, %v11870_v27  ;;  %v5344_v51 = vsub.f32 %v14370_v63, %v11894_v47 }
 0x69c   : > { %v6499_v4 = vmul.f32 %v6211_v32, %v4884_v18  ;;  %v2691_v34 = vadd.f32 %v2554_v20, %v2275_v3  ;;  %v4019_v21 = vsub.f32 %v14355_v10, %v11269_v44  ;;  %v5346_v28 = vsub.f32 %v14370_v63, %v11297_v55 }
 0x69d   : > { %v2692_v2 = vadd.f32 %v2555_v14, %v2276_v31  ;;  %v4305_v56 = vand.u32 2147483647, %v4017_v43  ;;  %v5632_v49 = vand.u32 2147483647, %v5344_v51  ;;  %v4027_v12 = vsub.f32 %v14433_v59, %v11873_v29 }
 0x69e   : > { %7129 = vmatprep.mubr.f32.mxu0 %v6499_v4  ;;  %v3107_v45 = vadd.f32 %v2970_v42, %v2691_v34  ;;  %v4307_v39 = vand.u32 2147483647, %v4019_v21  ;;  %v5634_v7 = vand.u32 2147483647, %v5346_v28  ;;  %v5354_v54 = vsub.f32 %v14426_v9, %v11897_v48  ;;  %v1299_v42 = vld [vmem:[%s17374_s9 + $0x2b0] sm:$0xff]  ;;  %v9322_v28 = vld [vmem:[%s17374_s9 + $0x700] sm:$0xff] }
 0x69f   : > { %v3108_v20 = vadd.f32 %v2971_v36, %v2692_v2  ;;  %v4593_v40 = vsub.f32 1.0, %v4305_v56  ;;  %v5920_v18 = vsub.f32 1.0, %v5632_v49  ;;  %v4315_v11 = vand.u32 2147483647, %v4027_v12  ;;  %v9458_v12 = vld [vmem:[%s17374_s9 + $0xb40] sm:$0xff] }
 0x6a0   : > { %v3523_v32 = vadd.f32 %v3386_v25, %v3107_v45  ;;  %v4595_v3 = vsub.f32 1.0, %v4307_v39  ;;  %v5922_v63 = vsub.f32 1.0, %v5634_v7  ;;  %v5642_v14 = vand.u32 2147483647, %v5354_v54  ;;  %v1300_v25 = vld [vmem:[%s17374_s9 + $0x2b8] sm:$0xff]  ;;  %v9459_v45 = vld [vmem:[%s17374_s9 + $0xb48] sm:$0xff]  ;;  %v14465_v39 = vpop.permute.xlu1 %3778 }
 0x6a1   : > { %v3524_v31 = vadd.f32 %v3387_v61, %v3108_v20  ;;  %v4881_v43 = vmax.f32 %v4593_v40, 0.0  ;;  %v6208_v51 = vmax.f32 %v5920_v18, 0.0  ;;  %v4603_v10 = vsub.f32 1.0, %v4315_v11  ;;  %v9321_v61 = vld [vmem:[%s17374_s9 + $0x6f8] sm:$0xff]  ;;  %17656 = vst [vmem:[#allocation33_spill] sm:$0xff] %v14465_v39 }
 0x6a2   : > { %v4883_v4 = vmax.f32 %v4595_v3, 0.0  ;;  %v6210_v34 = vmax.f32 %v5922_v63, 0.0  ;;  %v5930_v21 = vsub.f32 1.0, %v5642_v14  ;;  %v4029_v36 = vsub.f32 %v14433_v59, %v11875_v30  ;;  %v9596_v14 = vld [vmem:[%s17374_s9 + $0xf90] sm:$0xff] }
 0x6a3   : > { %v10649_v2 = vpack.c.bf16 %v3524_v31, %v3523_v32  ;;  %v6496_v56 = vmul.f32 %v6208_v51, %v4881_v43  ;;  %v4891_v49 = vmax.f32 %v4603_v10, 0.0  ;;  %v5356_v63 = vsub.f32 %v14426_v9, %v11899_v52  ;;  %v9595_v10 = vld [vmem:[%s17374_s9 + $0xf88] sm:$0xff]  ;;  %v9732_v31 = vld [vmem:[%s17374_s9 + $0x13d0] sm:$0xff]  ;;  %v9733_v43 = vld [vmem:[%s17374_s9 + $0x13d8] sm:$0xff] }
 0x6a4   : > { %v6498_v7 = vmul.f32 %v6210_v34, %v4883_v4  ;;  %v6218_v54 = vmax.f32 %v5930_v21, 0.0  ;;  %v4317_v20 = vand.u32 2147483647, %v4029_v36  ;;  %v1445_v40 = vmul.f32 %v11915_v23, %v1299_v42  ;;  %v9869_v21 = vld [vmem:[%s17374_s9 + $0x1818] sm:$0xff] }
 0x6a5   : > { %10650 = vmatpush1.bf16.msra.mxu0 %v10649_v2  ;;  %6905 = vmatmul.mubr.f32.gmra.mrb[28].mxu1 %v6496_v56  ;;  %v5644_v18 = vand.u32 2147483647, %v5356_v63  ;;  %v1446_v11 = vmul.f32 %v11915_v23, %v1300_v25  ;;  %v1724_v32 = vmul.f32 %v9321_v61, %v11913_v8  ;;  %v1725_v3 = vmul.f32 %v9322_v28, %v11913_v8  ;;  %v9870_v2 = vld [vmem:[%s17374_s9 + $0x1820] sm:$0xff] }
 0x6a6   : > { %7130 = vmatmul.mubr.f32.gmra.mrb[42].mxu0 %v6498_v7  ;;  %10651 = vmatprep.subr.bf16.mxu0 %v17588_v24  ;;  %v6506_v51 = vmul.f32 %v6218_v54, %v4891_v49  ;;  %v4605_v42 = vsub.f32 1.0, %v4317_v20  ;;  %v2140_v4 = vmul.f32 %v9458_v12, %v11980_v46  ;;  %v2141_v34 = vmul.f32 %v9459_v45, %v11980_v46 }
 0x6a7   : > { %v5932_v36 = vsub.f32 1.0, %v5644_v18  ;;  %v1861_v25 = vadd.f32 %v1724_v32, %v1445_v40  ;;  %v1862_v61 = vadd.f32 %v1725_v3, %v1446_v11  ;;  %v2556_v28 = vmul.f32 %v9595_v10, %v12023_v50  ;;  %v14497_v40 = vpop.permute.xlu1 %5123 }
 0x6a8   : > { %6909 = vmatprep.mubr.f32.mxu1 %v6506_v51  ;;  %v4893_v56 = vmax.f32 %v4605_v42, 0.0  ;;  %v2557_v49 = vmul.f32 %v9596_v14, %v12023_v50  ;;  %v2972_v63 = vmul.f32 %v9732_v31, %v12079_v37  ;;  %v2973_v12 = vmul.f32 %v9733_v43, %v12079_v37  ;;  %17657 = vst [vmem:[#allocation22_spill] sm:$0xff] %v14497_v40 }
 0x6a9   : > { %v6220_v45 = vmax.f32 %v5932_v36, 0.0  ;;  %v2277_v7 = vadd.f32 %v2140_v4, %v1861_v25  ;;  %v2278_v54 = vadd.f32 %v2141_v34, %v1862_v61  ;;  %v3388_v20 = vmul.f32 %v9869_v21, %v12125_v1 }
 0x6aa   : > { %v3389_v10 = vmul.f32 %v9870_v2, %v12125_v1  ;;  %v4026_v18 = vsub.f32 %v14433_v59, %v11870_v27  ;;  %v5353_v11 = vsub.f32 %v14426_v9, %v11894_v47  ;;  %v4028_v32 = vsub.f32 %v14433_v59, %v11269_v44 }
 0x6ab   : > { %v6508_v3 = vmul.f32 %v6220_v45, %v4893_v56  ;;  %v2693_v14 = vadd.f32 %v2556_v28, %v2277_v7  ;;  %v2694_v31 = vadd.f32 %v2557_v49, %v2278_v54  ;;  %v5355_v43 = vsub.f32 %v14426_v9, %v11297_v55 }
 0x6ac   : > { %v4314_v51 = vand.u32 2147483647, %v4026_v18  ;;  %v5641_v42 = vand.u32 2147483647, %v5353_v11  ;;  %v4316_v4 = vand.u32 2147483647, %v4028_v32  ;;  %v4036_v34 = vsub.f32 %v14465_v39, %v11873_v29 }
 0x6ad   : > { %7134 = vmatprep.mubr.f32.mxu0 %v6508_v3  ;;  %v3109_v21 = vadd.f32 %v2972_v63, %v2693_v14  ;;  %v3110_v36 = vadd.f32 %v2973_v12, %v2694_v31  ;;  %v5643_v25 = vand.u32 2147483647, %v5355_v43  ;;  %v5363_v61 = vsub.f32 %v14497_v40, %v11897_v48  ;;  %v1301_v11 = vld [vmem:[%s17374_s9 + $0x2c0] sm:$0xff]  ;;  %v1302_v14 = vld [vmem:[%s17374_s9 + $0x2c8] sm:$0xff] }
 0x6ae   : > { %v4602_v2 = vsub.f32 1.0, %v4314_v51  ;;  %v5929_v56 = vsub.f32 1.0, %v5641_v42  ;;  %v4604_v28 = vsub.f32 1.0, %v4316_v4  ;;  %v4324_v49 = vand.u32 2147483647, %v4036_v34  ;;  %v9324_v42 = vld [vmem:[%s17374_s9 + $0x710] sm:$0xff] }
 0x6af   : > { %v3525_v45 = vadd.f32 %v3388_v20, %v3109_v21  ;;  %v3526_v7 = vadd.f32 %v3389_v10, %v3110_v36  ;;  %v5931_v54 = vsub.f32 1.0, %v5643_v25  ;;  %v5651_v18 = vand.u32 2147483647, %v5363_v61  ;;  %v9323_v10 = vld [vmem:[%s17374_s9 + $0x708] sm:$0xff]  ;;  %v9460_v4 = vld [vmem:[%s17374_s9 + $0xb50] sm:$0xff]  ;;  %v9461_v61 = vld [vmem:[%s17374_s9 + $0xb58] sm:$0xff] }
 0x6b0   : > { %v4890_v32 = vmax.f32 %v4602_v2, 0.0  ;;  %v6217_v3 = vmax.f32 %v5929_v56, 0.0  ;;  %v4892_v63 = vmax.f32 %v4604_v28, 0.0  ;;  %v4612_v12 = vsub.f32 1.0, %v4324_v49  ;;  %v9597_v2 = vld [vmem:[%s17374_s9 + $0xf98] sm:$0xff] }
 0x6b1   : > { %v10652_v31 = vpack.c.bf16 %v3526_v7, %v3525_v45  ;;  %v6219_v43 = vmax.f32 %v5931_v54, 0.0  ;;  %v5939_v51 = vsub.f32 1.0, %v5651_v18  ;;  %v4038_v20 = vsub.f32 %v14465_v39, %v11875_v30  ;;  %v9598_v7 = vld [vmem:[%s17374_s9 + $0xfa0] sm:$0xff] }
 0x6b2   : > { %v6505_v34 = vmul.f32 %v6217_v3, %v4890_v32  ;;  %v4900_v21 = vmax.f32 %v4612_v12, 0.0  ;;  %v5365_v36 = vsub.f32 %v14497_v40, %v11899_v52  ;;  %v1447_v25 = vmul.f32 %v11915_v23, %v1301_v11  ;;  %v9734_v3 = vld [vmem:[%s17374_s9 + $0x13e0] sm:$0xff]  ;;  %v9871_v12 = vld [vmem:[%s17374_s9 + $0x1828] sm:$0xff] }
 0x6b3   : > { %10653 = vmatpush1.bf16.msra.mxu0 %v10652_v31  ;;  %v6507_v56 = vmul.f32 %v6219_v43, %v4892_v63  ;;  %v6227_v28 = vmax.f32 %v5939_v51, 0.0  ;;  %v4326_v49 = vand.u32 2147483647, %v4038_v20  ;;  %v1448_v45 = vmul.f32 %v11915_v23, %v1302_v14  ;;  %v9735_v63 = vld [vmem:[%s17374_s9 + $0x13e8] sm:$0xff]  ;;  %v9872_v20 = vld [vmem:[%s17374_s9 + $0x1830] sm:$0xff] }
 0x6b4   : > { %6910 = vmatmul.mubr.f32.gmra.mrb[30].mxu1 %v6505_v34  ;;  %10654 = vmatprep.subr.bf16.mxu0 %v17588_v24  ;;  %v5653_v54 = vand.u32 2147483647, %v5365_v36  ;;  %v1726_v18 = vmul.f32 %v9323_v10, %v11913_v8  ;;  %v1727_v11 = vmul.f32 %v9324_v42, %v11913_v8  ;;  %v2142_v32 = vmul.f32 %v9460_v4, %v11980_v46  ;;  %v14561_v36 = vpop.permute.xlu0 %3783 }
 0x6b5   : > { %7135 = vmatmul.mubr.f32.gmra.mrb[44].mxu0 %v6507_v56  ;;  %v6515_v14 = vmul.f32 %v6227_v28, %v4900_v21  ;;  %v4614_v31 = vsub.f32 1.0, %v4326_v49  ;;  %v2143_v43 = vmul.f32 %v9461_v61, %v11980_v46  ;;  %v2558_v51 = vmul.f32 %v9597_v2, %v12023_v50  ;;  %17658 = vst [vmem:[#allocation41_spill] sm:$0xff] %v14561_v36 }
 0x6b6   : > { %v5941_v10 = vsub.f32 1.0, %v5653_v54  ;;  %v1863_v42 = vadd.f32 %v1726_v18, %v1447_v25  ;;  %v1864_v4 = vadd.f32 %v1727_v11, %v1448_v45  ;;  %v2559_v34 = vmul.f32 %v9598_v7, %v12023_v50  ;;  %v14575_v18 = vpop.permute.xlu1 %5127 }
 0x6b7   : > { %6914 = vmatprep.mubr.f32.mxu1 %v6515_v14  ;;  %v4902_v9 = vmax.f32 %v4614_v31, 0.0  ;;  %v2974_v21 = vmul.f32 %v9734_v3, %v12079_v37  ;;  %v2975_v56 = vmul.f32 %v9735_v63, %v12079_v37  ;;  %v3390_v61 = vmul.f32 %v9871_v12, %v12125_v1  ;;  %17659 = vst [vmem:[#allocation36_spill] sm:$0xff] %v14575_v18 }
 0x6b8   : > { %v6229_v2 = vmax.f32 %v5941_v10, 0.0  ;;  %v2279_v28 = vadd.f32 %v2142_v32, %v1863_v42  ;;  %v2280_v49 = vadd.f32 %v2143_v43, %v1864_v4  ;;  %v3391_v59 = vmul.f32 %v9872_v20, %v12125_v1 }
 0x6b9   : > { %v4035_v25 = vsub.f32 %v14465_v39, %v11870_v27  ;;  %v5362_v45 = vsub.f32 %v14497_v40, %v11894_v47  ;;  %v4037_v7 = vsub.f32 %v14465_v39, %v11269_v44  ;;  %v5364_v54 = vsub.f32 %v14497_v40, %v11297_v55 }
 0x6ba   : > { %v6517_v11 = vmul.f32 %v6229_v2, %v4902_v9  ;;  %v2695_v3 = vadd.f32 %v2558_v51, %v2279_v28  ;;  %v2696_v32 = vadd.f32 %v2559_v34, %v2280_v49  ;;  %v4045_v63 = vsub.f32 %v14561_v36, %v11873_v29  ;;  %v1303_v49 = vld [vmem:[%s17374_s9 + $0x2d0] sm:$0xff] }
 0x6bb   : > { %v4323_v12 = vand.u32 2147483647, %v4035_v25  ;;  %v5650_v14 = vand.u32 2147483647, %v5362_v45  ;;  %v4325_v31 = vand.u32 2147483647, %v4037_v7  ;;  %v5372_v43 = vsub.f32 %v14575_v18, %v11897_v48 }
 0x6bc   : > { %7139 = vmatprep.mubr.f32.mxu0 %v6517_v11  ;;  %v3111_v20 = vadd.f32 %v2974_v21, %v2695_v3  ;;  %v3112_v10 = vadd.f32 %v2975_v56, %v2696_v32  ;;  %v5652_v42 = vand.u32 2147483647, %v5364_v54  ;;  %v4333_v4 = vand.u32 2147483647, %v4045_v63  ;;  %v1304_v21 = vld [vmem:[%s17374_s9 + $0x2d8] sm:$0xff] }
 0x6bd   : > { %v4611_v40 = vsub.f32 1.0, %v4323_v12  ;;  %v5938_v39 = vsub.f32 1.0, %v5650_v14  ;;  %v4613_v17 = vsub.f32 1.0, %v4325_v31  ;;  %v5660_v9 = vand.u32 2147483647, %v5372_v43  ;;  %v9325_v56 = vld [vmem:[%s17374_s9 + $0x718] sm:$0xff] }
 0x6be   : > { %v3527_v51 = vadd.f32 %v3390_v61, %v3111_v20  ;;  %v3528_v34 = vadd.f32 %v3391_v59, %v3112_v10  ;;  %v5940_v2 = vsub.f32 1.0, %v5652_v42  ;;  %v4621_v28 = vsub.f32 1.0, %v4333_v4  ;;  %v9463_v14 = vld [vmem:[%s17374_s9 + $0xb68] sm:$0xff]  ;;  %v9600_v4 = vld [vmem:[%s17374_s9 + $0xfb0] sm:$0xff] }
 0x6bf   : > { %v4899_v25 = vmax.f32 %v4611_v40, 0.0  ;;  %v6226_v45 = vmax.f32 %v5938_v39, 0.0  ;;  %v4901_v7 = vmax.f32 %v4613_v17, 0.0  ;;  %v5948_v11 = vsub.f32 1.0, %v5660_v9  ;;  %v9326_v39 = vld [vmem:[%s17374_s9 + $0x720] sm:$0xff]  ;;  %v9599_v31 = vld [vmem:[%s17374_s9 + $0xfa8] sm:$0xff] }
 0x6c0   : > { %v10655_v61 = vpack.c.bf16 %v3528_v34, %v3527_v51  ;;  %v6228_v59 = vmax.f32 %v5940_v2, 0.0  ;;  %v4909_v54 = vmax.f32 %v4621_v28, 0.0  ;;  %v4047_v3 = vsub.f32 %v14561_v36, %v11875_v30  ;;  %v9462_v17 = vld [vmem:[%s17374_s9 + $0xb60] sm:$0xff]  ;;  %v9736_v9 = vld [vmem:[%s17374_s9 + $0x13f0] sm:$0xff] }
 0x6c1   : > { %v6514_v40 = vmul.f32 %v6226_v45, %v4899_v25  ;;  %v6236_v32 = vmax.f32 %v5948_v11, 0.0  ;;  %v5374_v63 = vsub.f32 %v14575_v18, %v11899_v52  ;;  %v1449_v12 = vmul.f32 %v11915_v23, %v1303_v49  ;;  %v9737_v49 = vld [vmem:[%s17374_s9 + $0x13f8] sm:$0xff] }
 0x6c2   : > { %10656 = vmatpush1.bf16.msra.mxu0 %v10655_v61  ;;  %v6516_v43 = vmul.f32 %v6228_v59, %v4901_v7  ;;  %v4335_v20 = vand.u32 2147483647, %v4047_v3  ;;  %v1450_v10 = vmul.f32 %v11915_v23, %v1304_v21  ;;  %v1728_v42 = vmul.f32 %v9325_v56, %v11913_v8  ;;  %v9873_v25 = vld [vmem:[%s17374_s9 + $0x1838] sm:$0xff]  ;;  %v9874_v56 = vld [vmem:[%s17374_s9 + $0x1840] sm:$0xff] }
 0x6c3   : > { %6915 = vmatmul.mubr.f32.gmra.mrb[32].mxu1 %v6514_v40  ;;  %10657 = vmatprep.subr.bf16.mxu0 %v17588_v24  ;;  %v6524_v51 = vmul.f32 %v6236_v32, %v4909_v54  ;;  %v5662_v34 = vand.u32 2147483647, %v5374_v63  ;;  %v1729_v2 = vmul.f32 %v9326_v39, %v11913_v8  ;;  %v2144_v28 = vmul.f32 %v9462_v17, %v11980_v46 }
 0x6c4   : > { %7140 = vmatmul.mubr.f32.gmra.mrb[46].mxu0 %v6516_v43  ;;  %v4623_v45 = vsub.f32 1.0, %v4335_v20  ;;  %v1865_v7 = vadd.f32 %v1728_v42, %v1449_v12  ;;  %v2145_v11 = vmul.f32 %v9463_v14, %v11980_v46  ;;  %v2560_v21 = vmul.f32 %v9599_v31, %v12023_v50  ;;  %v14636_v43 = vpop.permute.xlu1 %3788  ;;  %v14638_v20 = vpop.permute.xlu0 %5131 }
 0x6c5   : > { %6919 = vmatprep.mubr.f32.mxu1 %v6524_v51  ;;  %v5950_v61 = vsub.f32 1.0, %v5662_v34  ;;  %v1866_v59 = vadd.f32 %v1729_v2, %v1450_v10  ;;  %v2561_v54 = vmul.f32 %v9600_v4, %v12023_v50  ;;  %v2976_v3 = vmul.f32 %v9736_v9, %v12079_v37  ;;  %17660 = vst [vmem:[#allocation32_spill] sm:$0xff] %v14636_v43 }
 0x6c6   : > { %v4911_v39 = vmax.f32 %v4623_v45, 0.0  ;;  %v2281_v17 = vadd.f32 %v2144_v28, %v1865_v7  ;;  %v2977_v40 = vmul.f32 %v9737_v49, %v12079_v37  ;;  %v3392_v32 = vmul.f32 %v9873_v25, %v12125_v1  ;;  %17661 = vst [vmem:[#allocation42_spill] sm:$0xff] %v14638_v20 }
 0x6c7   : > { %v6238_v63 = vmax.f32 %v5950_v61, 0.0  ;;  %v2282_v12 = vadd.f32 %v2145_v11, %v1866_v59  ;;  %v3393_v14 = vmul.f32 %v9874_v56, %v12125_v1  ;;  %v4044_v31 = vsub.f32 %v14561_v36, %v11870_v27 }
 0x6c8   : > { %v2697_v10 = vadd.f32 %v2560_v21, %v2281_v17  ;;  %v5371_v42 = vsub.f32 %v14575_v18, %v11894_v47  ;;  %v4046_v4 = vsub.f32 %v14561_v36, %v11269_v44  ;;  %v5373_v9 = vsub.f32 %v14575_v18, %v11297_v55 }
 0x6c9   : > { %v6526_v51 = vmul.f32 %v6238_v63, %v4911_v39  ;;  %v2698_v34 = vadd.f32 %v2561_v54, %v2282_v12  ;;  %v4332_v2 = vand.u32 2147483647, %v4044_v31  ;;  %v4054_v28 = vsub.f32 %v14636_v43, %v11873_v29 }
 0x6ca   : > { %v3113_v49 = vadd.f32 %v2976_v3, %v2697_v10  ;;  %v5659_v25 = vand.u32 2147483647, %v5371_v42  ;;  %v4334_v45 = vand.u32 2147483647, %v4046_v4  ;;  %v5661_v7 = vand.u32 2147483647, %v5373_v9 }
 0x6cb   : > { %7144 = vmatprep.mubr.f32.mxu0 %v6526_v51  ;;  %v3114_v11 = vadd.f32 %v2977_v40, %v2698_v34  ;;  %v4620_v21 = vsub.f32 1.0, %v4332_v2  ;;  %v4342_v56 = vand.u32 2147483647, %v4054_v28  ;;  %v5381_v61 = vsub.f32 %v14638_v20, %v11897_v48  ;;  %v1305_v3 = vld [vmem:[%s17374_s9 + $0x2e0] sm:$0xff]  ;;  %v9464_v28 = vld [vmem:[%s17374_s9 + $0xb70] sm:$0xff] }
 0x6cc   : > { %v3529_v59 = vadd.f32 %v3392_v32, %v3113_v49  ;;  %v5947_v17 = vsub.f32 1.0, %v5659_v25  ;;  %v4622_v18 = vsub.f32 1.0, %v4334_v45  ;;  %v5949_v39 = vsub.f32 1.0, %v5661_v7  ;;  %v1306_v32 = vld [vmem:[%s17374_s9 + $0x2e8] sm:$0xff]  ;;  %v9465_v49 = vld [vmem:[%s17374_s9 + $0xb78] sm:$0xff]  ;;  %v14672_v25 = vpop.permute.xlu1 %3793 }
 0x6cd   : > { %v3530_v54 = vadd.f32 %v3393_v14, %v3114_v11  ;;  %v4908_v63 = vmax.f32 %v4620_v21, 0.0  ;;  %v4630_v12 = vsub.f32 1.0, %v4342_v56  ;;  %v5669_v31 = vand.u32 2147483647, %v5381_v61  ;;  %v9327_v14 = vld [vmem:[%s17374_s9 + $0x728] sm:$0xff]  ;;  %v9601_v56 = vld [vmem:[%s17374_s9 + $0xfb8] sm:$0xff] }
 0x6ce   : > { %v6235_v10 = vmax.f32 %v5947_v17, 0.0  ;;  %v4910_v42 = vmax.f32 %v4622_v18, 0.0  ;;  %v6237_v40 = vmax.f32 %v5949_v39, 0.0  ;;  %v4056_v4 = vsub.f32 %v14636_v43, %v11875_v30  ;;  %v9328_v18 = vld [vmem:[%s17374_s9 + $0x730] sm:$0xff] }
 0x6cf   : > { %v10658_v9 = vpack.c.bf16 %v3530_v54, %v3529_v59  ;;  %v4918_v51 = vmax.f32 %v4630_v12, 0.0  ;;  %v5957_v34 = vsub.f32 1.0, %v5669_v31  ;;  %v5383_v2 = vsub.f32 %v14638_v20, %v11899_v52  ;;  %v9602_v54 = vld [vmem:[%s17374_s9 + $0xfc0] sm:$0xff] }
 0x6d0   : > { %v6523_v45 = vmul.f32 %v6235_v10, %v4908_v63  ;;  %v6525_v7 = vmul.f32 %v6237_v40, %v4910_v42  ;;  %v4344_v11 = vand.u32 2147483647, %v4056_v4  ;;  %v1451_v21 = vmul.f32 %v11915_v23, %v1305_v3  ;;  %v9738_v63 = vld [vmem:[%s17374_s9 + $0x1400] sm:$0xff]  ;;  %v9739_v42 = vld [vmem:[%s17374_s9 + $0x1408] sm:$0xff] }
 0x6d1   : > { %10659 = vmatpush1.bf16.msra.mxu0 %v10658_v9  ;;  %v6245_v61 = vmax.f32 %v5957_v34, 0.0  ;;  %v5671_v59 = vand.u32 2147483647, %v5383_v2  ;;  %v1452_v17 = vmul.f32 %v11915_v23, %v1306_v32  ;;  %v1730_v39 = vmul.f32 %v9327_v14, %v11913_v8  ;;  %v9875_v40 = vld [vmem:[%s17374_s9 + $0x1848] sm:$0xff]  ;;  %v9876_v34 = vld [vmem:[%s17374_s9 + $0x1850] sm:$0xff] }
 0x6d2   : > { %6920 = vmatmul.mubr.f32.gmra.mrb[34].mxu1 %v6523_v45  ;;  %7145 = vmatmul.mubr.f32.gmra.mrb[48].mxu0 %v6525_v7  ;;  %v4632_v12 = vsub.f32 1.0, %v4344_v11  ;;  %v1731_v31 = vmul.f32 %v9328_v18, %v11913_v8  ;;  %v2146_v3 = vmul.f32 %v9464_v28, %v11980_v46  ;;  %v2147_v10 = vmul.f32 %v9465_v49, %v11980_v46 }
 0x6d3   : > { %10660 = vmatprep.subr.bf16.mxu0 %v17588_v24  ;;  %v6533_v4 = vmul.f32 %v6245_v61, %v4918_v51  ;;  %v5959_v32 = vsub.f32 1.0, %v5671_v59  ;;  %v1867_v14 = vadd.f32 %v1730_v39, %v1451_v21  ;;  %v2562_v9 = vmul.f32 %v9601_v56, %v12023_v50  ;;  %v14704_v21 = vpop.permute.xlu1 %5135 }
 0x6d4   : > { %v4920_v2 = vmax.f32 %v4632_v12, 0.0  ;;  %v1868_v18 = vadd.f32 %v1731_v31, %v1452_v17  ;;  %v2563_v28 = vmul.f32 %v9602_v54, %v12023_v50  ;;  %v2978_v49 = vmul.f32 %v9738_v63, %v12079_v37 }
 0x6d5   : > { %6924 = vmatprep.mubr.f32.mxu1 %v6533_v4  ;;  %v6247_v45 = vmax.f32 %v5959_v32, 0.0  ;;  %v2283_v7 = vadd.f32 %v2146_v3, %v1867_v14  ;;  %v2979_v11 = vmul.f32 %v9739_v42, %v12079_v37  ;;  %v3394_v51 = vmul.f32 %v9875_v40, %v12125_v1 }
 0x6d6   : > { %v2284_v56 = vadd.f32 %v2147_v10, %v1868_v18  ;;  %v3395_v61 = vmul.f32 %v9876_v34, %v12125_v1  ;;  %v4053_v59 = vsub.f32 %v14636_v43, %v11870_v27  ;;  %v5380_v17 = vsub.f32 %v14638_v20, %v11894_v47 }
 0x6d7   : > { %v6535_v39 = vmul.f32 %v6247_v45, %v4920_v2  ;;  %v2699_v54 = vadd.f32 %v2562_v9, %v2283_v7  ;;  %v4055_v63 = vsub.f32 %v14636_v43, %v11269_v44  ;;  %v5382_v12 = vsub.f32 %v14638_v20, %v11297_v55 }
 0x6d8   : > { %v2700_v31 = vadd.f32 %v2563_v28, %v2284_v56  ;;  %v4341_v3 = vand.u32 2147483647, %v4053_v59  ;;  %v5668_v42 = vand.u32 2147483647, %v5380_v17  ;;  %v4063_v10 = vsub.f32 %v14672_v25, %v11873_v29 }
 0x6d9   : > { %7149 = vmatprep.mubr.f32.mxu0 %v6535_v39  ;;  %v3115_v40 = vadd.f32 %v2978_v49, %v2699_v54  ;;  %v4343_v4 = vand.u32 2147483647, %v4055_v63  ;;  %v5670_v32 = vand.u32 2147483647, %v5382_v12  ;;  %v5390_v14 = vsub.f32 %v14704_v21, %v11897_v48  ;;  %v1307_v49 = vld [vmem:[%s17374_s9 + $0x2f0] sm:$0xff]  ;;  %v9330_v12 = vld [vmem:[%s17374_s9 + $0x740] sm:$0xff] }
 0x6da   : > { %v3116_v9 = vadd.f32 %v2979_v11, %v2700_v31  ;;  %v4629_v34 = vsub.f32 1.0, %v4341_v3  ;;  %v5956_v2 = vsub.f32 1.0, %v5668_v42  ;;  %v4351_v18 = vand.u32 2147483647, %v4063_v10  ;;  %v9466_v10 = vld [vmem:[%s17374_s9 + $0xb80] sm:$0xff] }
 0x6db   : > { %v3531_v45 = vadd.f32 %v3394_v51, %v3115_v40  ;;  %v4631_v7 = vsub.f32 1.0, %v4343_v4  ;;  %v5958_v20 = vsub.f32 1.0, %v5670_v32  ;;  %v5678_v28 = vand.u32 2147483647, %v5390_v14  ;;  %v1308_v51 = vld [vmem:[%s17374_s9 + $0x2f8] sm:$0xff]  ;;  %v9467_v40 = vld [vmem:[%s17374_s9 + $0xb88] sm:$0xff] }
 0x6dc   : > { %v3532_v56 = vadd.f32 %v3395_v61, %v3116_v9  ;;  %v4917_v59 = vmax.f32 %v4629_v34, 0.0  ;;  %v6244_v17 = vmax.f32 %v5956_v2, 0.0  ;;  %v4639_v43 = vsub.f32 1.0, %v4351_v18  ;;  %v9329_v61 = vld [vmem:[%s17374_s9 + $0x738] sm:$0xff] }
 0x6dd   : > { %v4919_v39 = vmax.f32 %v4631_v7, 0.0  ;;  %v6246_v54 = vmax.f32 %v5958_v20, 0.0  ;;  %v5966_v63 = vsub.f32 1.0, %v5678_v28  ;;  %v4065_v11 = vsub.f32 %v14672_v25, %v11875_v30  ;;  %v9604_v7 = vld [vmem:[%s17374_s9 + $0xfd0] sm:$0xff] }
 0x6de   : > { %v10661_v31 = vpack.c.bf16 %v3532_v56, %v3531_v45  ;;  %v6532_v3 = vmul.f32 %v6244_v17, %v4917_v59  ;;  %v4927_v42 = vmax.f32 %v4639_v43, 0.0  ;;  %v5392_v20 = vsub.f32 %v14704_v21, %v11899_v52  ;;  %v9603_v43 = vld [vmem:[%s17374_s9 + $0xfc8] sm:$0xff]  ;;  %v9740_v28 = vld [vmem:[%s17374_s9 + $0x1410] sm:$0xff]  ;;  %v9741_v56 = vld [vmem:[%s17374_s9 + $0x1418] sm:$0xff] }
 0x6df   : > { %v6534_v4 = vmul.f32 %v6246_v54, %v4919_v39  ;;  %v6254_v32 = vmax.f32 %v5966_v63, 0.0  ;;  %v4353_v14 = vand.u32 2147483647, %v4065_v11  ;;  %v1453_v9 = vmul.f32 %v11915_v23, %v1307_v49  ;;  %v9877_v54 = vld [vmem:[%s17374_s9 + $0x1858] sm:$0xff]  ;;  %v1341_v63 = vld [vmem:[%s17374_s9 + $0x400] sm:$0xff] }
 0x6e0   : > { %10662 = vmatpush1.bf16.msra.mxu0 %v10661_v31  ;;  %6925 = vmatmul.mubr.f32.gmra.mrb[36].mxu1 %v6532_v3  ;;  %v5680_v34 = vand.u32 2147483647, %v5392_v20  ;;  %v1454_v2 = vmul.f32 %v11915_v23, %v1308_v51  ;;  %v1732_v18 = vmul.f32 %v9329_v61, %v11913_v8  ;;  %v1733_v45 = vmul.f32 %v9330_v12, %v11913_v8  ;;  %v9878_v31 = vld [vmem:[%s17374_s9 + $0x1860] sm:$0xff]  ;;  %v1342_v3 = vld [vmem:[%s17374_s9 + $0x408] sm:$0xff] }
 0x6e1   : > { %7150 = vmatmul.mubr.f32.gmra.mrb[50].mxu0 %v6534_v4  ;;  %10663 = vmatprep.subr.bf16.mxu0 %v17588_v24  ;;  %v6542_v59 = vmul.f32 %v6254_v32, %v4927_v42  ;;  %v4641_v17 = vsub.f32 1.0, %v4353_v14  ;;  %v2148_v49 = vmul.f32 %v9466_v10, %v11980_v46  ;;  %v2149_v39 = vmul.f32 %v9467_v40, %v11980_v46  ;;  %v9363_v42 = vld [vmem:[%s17374_s9 + $0x848] sm:$0xff]  ;;  %v9364_v32 = vld [vmem:[%s17374_s9 + $0x850] sm:$0xff] }
 0x6e2   : > { %v5968_v11 = vsub.f32 1.0, %v5680_v34  ;;  %v1869_v51 = vadd.f32 %v1732_v18, %v1453_v9  ;;  %v1870_v61 = vadd.f32 %v1733_v45, %v1454_v2  ;;  %v2564_v12 = vmul.f32 %v9603_v43, %v12023_v50  ;;  %v9500_v2 = vld [vmem:[%s17374_s9 + $0xc90] sm:$0xff]  ;;  %v9501_v18 = vld [vmem:[%s17374_s9 + $0xc98] sm:$0xff] }
 0x6e3   : > { %6929 = vmatprep.mubr.f32.mxu1 %v6542_v59  ;;  %v4929_v20 = vmax.f32 %v4641_v17, 0.0  ;;  %v2565_v10 = vmul.f32 %v9604_v7, %v12023_v50  ;;  %v2980_v40 = vmul.f32 %v9740_v28, %v12079_v37  ;;  %v2981_v4 = vmul.f32 %v9741_v56, %v12079_v37  ;;  %v9637_v45 = vld [vmem:[%s17374_s9 + $0x10d8] sm:$0xff]  ;;  %v9638_v17 = vld [vmem:[%s17374_s9 + $0x10e0] sm:$0xff] }
 0x6e4   : > { %v6256_v14 = vmax.f32 %v5968_v11, 0.0  ;;  %v2285_v9 = vadd.f32 %v2148_v49, %v1869_v51  ;;  %v2286_v43 = vadd.f32 %v2149_v39, %v1870_v61  ;;  %v3396_v34 = vmul.f32 %v9877_v54, %v12125_v1  ;;  %v9774_v51 = vld [vmem:[%s17374_s9 + $0x1520] sm:$0xff]  ;;  %v9911_v61 = vld [vmem:[%s17374_s9 + $0x1968] sm:$0xff] }
 0x6e5   : > { %v3397_v7 = vmul.f32 %v9878_v31, %v12125_v1  ;;  %v1487_v28 = vmul.f32 %v11915_v23, %v1341_v63  ;;  %v1488_v56 = vmul.f32 %v11915_v23, %v1342_v3  ;;  %v1766_v59 = vmul.f32 %v9363_v42, %v11913_v8  ;;  %v9775_v63 = vld [vmem:[%s17374_s9 + $0x1528] sm:$0xff] }
 0x6e6   : > { %v6544_v49 = vmul.f32 %v6256_v14, %v4929_v20  ;;  %v2701_v39 = vadd.f32 %v2564_v12, %v2285_v9  ;;  %v2702_v54 = vadd.f32 %v2565_v10, %v2286_v43  ;;  %v1767_v11 = vmul.f32 %v9364_v32, %v11913_v8  ;;  %v9912_v20 = vld [vmem:[%s17374_s9 + $0x1970] sm:$0xff]  ;;  %v14816_v43 = vpop.permute.xlu0 %3798 }
 0x6e7   : > { %v1903_v31 = vadd.f32 %v1766_v59, %v1487_v28  ;;  %v2182_v3 = vmul.f32 %v9500_v2, %v11980_v46  ;;  %v2183_v12 = vmul.f32 %v9501_v18, %v11980_v46  ;;  %v2598_v42 = vmul.f32 %v9637_v45, %v12023_v50 }
 0x6e8   : > { %7154 = vmatprep.mubr.f32.mxu0 %v6544_v49  ;;  %v3117_v10 = vadd.f32 %v2980_v40, %v2701_v39  ;;  %v3118_v32 = vadd.f32 %v2981_v4, %v2702_v54  ;;  %v1904_v14 = vadd.f32 %v1767_v11, %v1488_v56  ;;  %v2599_v9 = vmul.f32 %v9638_v17, %v12023_v50  ;;  %v14822_v49 = vpop.permute.xlu1 %5139 }
 0x6e9   : > { %v2319_v36 = vadd.f32 %v2182_v3, %v1903_v31  ;;  %v3014_v28 = vmul.f32 %v9774_v51, %v12079_v37  ;;  %v3015_v2 = vmul.f32 %v9775_v63, %v12079_v37  ;;  %v3430_v18 = vmul.f32 %v9911_v61, %v12125_v1 }
 0x6ea   : > { %v3533_v45 = vadd.f32 %v3396_v34, %v3117_v10  ;;  %v3534_v59 = vadd.f32 %v3397_v7, %v3118_v32  ;;  %v2320_v62 = vadd.f32 %v2183_v12, %v1904_v14  ;;  %v3431_v16 = vmul.f32 %v9912_v20, %v12125_v1 }
 0x6eb   : > { %v2735_v40 = vadd.f32 %v2598_v42, %v2319_v36  ;;  %v4062_v4 = vsub.f32 %v14672_v25, %v11870_v27  ;;  %v5389_v56 = vsub.f32 %v14704_v21, %v11894_v47  ;;  %v4064_v17 = vsub.f32 %v14672_v25, %v11269_v44 }
 0x6ec   : > { %v10664_v39 = vpack.c.bf16 %v3534_v59, %v3533_v45  ;;  %v2736_v54 = vadd.f32 %v2599_v9, %v2320_v62  ;;  %v5391_v34 = vsub.f32 %v14704_v21, %v11297_v55  ;;  %v4072_v7 = vsub.f32 %v14816_v43, %v11873_v29 }
 0x6ed   : > { %v3151_v11 = vadd.f32 %v3014_v28, %v2735_v40  ;;  %v4350_v51 = vand.u32 2147483647, %v4062_v4  ;;  %v5677_v36 = vand.u32 2147483647, %v5389_v56  ;;  %v4352_v63 = vand.u32 2147483647, %v4064_v17 }
 0x6ee   : > { %10665 = vmatpush1.bf16.msra.mxu0 %v10664_v39  ;;  %v3152_v61 = vadd.f32 %v3015_v2, %v2736_v54  ;;  %v5679_v31 = vand.u32 2147483647, %v5391_v34  ;;  %v4360_v3 = vand.u32 2147483647, %v4072_v7  ;;  %v5399_v12 = vsub.f32 %v14822_v49, %v11897_v48 }
 0x6ef   : > { %v3567_v42 = vadd.f32 %v3430_v18, %v3151_v11  ;;  %v4638_v20 = vsub.f32 1.0, %v4350_v51  ;;  %v5965_v62 = vsub.f32 1.0, %v5677_v36  ;;  %v4640_v10 = vsub.f32 1.0, %v4352_v63  ;;  %10666 = vmatprep.subr.bf16.mxu0 %v17588_v24 }
 0x6f0   : > { %v3568_v32 = vadd.f32 %v3431_v16, %v3152_v61  ;;  %v5967_v14 = vsub.f32 1.0, %v5679_v31  ;;  %v4648_v9 = vsub.f32 1.0, %v4360_v3  ;;  %v5687_v28 = vand.u32 2147483647, %v5399_v12 }
 0x6f1   : > { %v4926_v45 = vmax.f32 %v4638_v20, 0.0  ;;  %v6253_v59 = vmax.f32 %v5965_v62, 0.0  ;;  %v4928_v40 = vmax.f32 %v4640_v10, 0.0  ;;  %v4074_v2 = vsub.f32 %v14816_v43, %v11875_v30  ;;  %v17663_v62 = vld [vmem:[#allocation3_spill] sm:$0xff] }
 0x6f2   : > { %v14839_v4 = vpack.c.bf16 %v3568_v32, %v3567_v42  ;;  %v6255_v56 = vmax.f32 %v5967_v14, 0.0  ;;  %v4936_v17 = vmax.f32 %v4648_v9, 0.0  ;;  %v5975_v18 = vsub.f32 1.0, %v5687_v28 }
 0x6f3   : > { %v6541_v39 = vmul.f32 %v6253_v59, %v4926_v45  ;;  %v4362_v54 = vand.u32 2147483647, %v4074_v2  ;;  %v5401_v34 = vsub.f32 %v14822_v49, %v11899_v52  ;;  %v4071_v16 = vsub.f32 %v14816_v43, %v11870_v27  ;;  %v17664_v2 = vld [vmem:[#allocation7_spill] sm:$0xff] }
 0x6f4   : > { %17662 = vst [vmem:[#allocation40_spill] sm:$0xff] %v14839_v4  ;;  %10715 = vmatprep.subr.bf16.mxu1 %v14839_v4  ;;  %v6543_v7 = vmul.f32 %v6255_v56, %v4928_v40  ;;  %v6263_v11 = vmax.f32 %v5975_v18, 0.0  ;;  %v5398_v51 = vsub.f32 %v14822_v49, %v11894_v47  ;;  %v4073_v36 = vsub.f32 %v14816_v43, %v11269_v44 }
 0x6f5   : > { %6930 = vmatmul.mubr.f32.gmra.mrb[38].mxu1 %v6541_v39  ;;  %v4650_v63 = vsub.f32 1.0, %v4362_v54  ;;  %v5689_v61 = vand.u32 2147483647, %v5401_v34  ;;  %v4359_v31 = vand.u32 2147483647, %v4071_v16  ;;  %v5400_v3 = vsub.f32 %v14822_v49, %v11297_v55  ;;  %v1309_v16 = vld [vmem:[%s17374_s9 + $0x300] sm:$0xff] }
 0x6f6   : > { %7155 = vmatmul.mubr.f32.gmra.mrb[52].mxu0 %v6543_v7  ;;  %v6551_v12 = vmul.f32 %v6263_v11, %v4936_v17  ;;  %v5686_v42 = vand.u32 2147483647, %v5398_v51  ;;  %v4361_v20 = vand.u32 2147483647, %v4073_v36  ;;  %v3923_v10 = vsub.f32 %v12501_v13, %v17663_v62  ;;  %v17665_v17 = vld [vmem:[#allocation2_spill] sm:$0xff] }
 0x6f7   : > { %v4938_v32 = vmax.f32 %v4650_v63, 0.0  ;;  %v5977_v14 = vsub.f32 1.0, %v5689_v61  ;;  %v4647_v9 = vsub.f32 1.0, %v4359_v31  ;;  %v5688_v28 = vand.u32 2147483647, %v5400_v3  ;;  %v1310_v63 = vld [vmem:[%s17374_s9 + $0x308] sm:$0xff] }
 0x6f8   : > { %6934 = vmatprep.mubr.f32.mxu1 %v6551_v12  ;;  %v5974_v45 = vsub.f32 1.0, %v5686_v42  ;;  %v4649_v59 = vsub.f32 1.0, %v4361_v20  ;;  %v4211_v40 = vand.u32 2147483647, %v3923_v10  ;;  %v5250_v56 = vsub.f32 %v12548_v57, %v17664_v2  ;;  %v17666_v12 = vld [vmem:[#allocation6_spill] sm:$0xff]  ;;  %v9331_v20 = vld [vmem:[%s17374_s9 + $0x748] sm:$0xff] }
 0x6f9   : > { %v6265_v18 = vmax.f32 %v5977_v14, 0.0  ;;  %v4935_v39 = vmax.f32 %v4647_v9, 0.0  ;;  %v5976_v54 = vsub.f32 1.0, %v5688_v28  ;;  %v3922_v34 = vsub.f32 %v12501_v13, %v17665_v17  ;;  %v9332_v10 = vld [vmem:[%s17374_s9 + $0x750] sm:$0xff] }
 0x6fa   : > { %v6262_v7 = vmax.f32 %v5974_v45, 0.0  ;;  %v4937_v11 = vmax.f32 %v4649_v59, 0.0  ;;  %v4499_v51 = vsub.f32 1.0, %v4211_v40  ;;  %v5538_v36 = vand.u32 2147483647, %v5250_v56  ;;  %v9468_v14 = vld [vmem:[%s17374_s9 + $0xb90] sm:$0xff] }
 0x6fb   : > { %v6553_v61 = vmul.f32 %v6265_v18, %v4938_v32  ;;  %v6264_v31 = vmax.f32 %v5976_v54, 0.0  ;;  %v4210_v3 = vand.u32 2147483647, %v3922_v34  ;;  %v5249_v42 = vsub.f32 %v12548_v57, %v17666_v12  ;;  %v9469_v59 = vld [vmem:[%s17374_s9 + $0xb98] sm:$0xff] }
 0x6fc   : > { %v6550_v9 = vmul.f32 %v6262_v7, %v4935_v39  ;;  %v4787_v28 = vmax.f32 %v4499_v51, 0.0  ;;  %v5826_v32 = vsub.f32 1.0, %v5538_v36  ;;  %v1455_v45 = vmul.f32 %v11915_v23, %v1309_v16  ;;  %v9605_v40 = vld [vmem:[%s17374_s9 + $0xfd8] sm:$0xff]  ;;  %v9606_v39 = vld [vmem:[%s17374_s9 + $0xfe0] sm:$0xff] }
 0x6fd   : > { %7159 = vmatprep.mubr.f32.mxu0 %v6553_v61  ;;  %v6552_v56 = vmul.f32 %v6264_v31, %v4937_v11  ;;  %v4498_v18 = vsub.f32 1.0, %v4210_v3  ;;  %v5537_v54 = vand.u32 2147483647, %v5249_v42  ;;  %v1456_v34 = vmul.f32 %v11915_v23, %v1310_v63  ;;  %v9742_v11 = vld [vmem:[%s17374_s9 + $0x1420] sm:$0xff]  ;;  %v9743_v63 = vld [vmem:[%s17374_s9 + $0x1428] sm:$0xff] }
 0x6fe   : > { %6935 = vmatmul.mubr.f32.gmra.mrb[40].mxu1 %v6550_v9  ;;  %v6114_v16 = vmax.f32 %v5826_v32, 0.0  ;;  %v1734_v7 = vmul.f32 %v9331_v20, %v11913_v8  ;;  %v1735_v51 = vmul.f32 %v9332_v10, %v11913_v8  ;;  %v2150_v36 = vmul.f32 %v9468_v14, %v11980_v46  ;;  %v9879_v61 = vld [vmem:[%s17374_s9 + $0x1868] sm:$0xff]  ;;  %v9880_v10 = vld [vmem:[%s17374_s9 + $0x1870] sm:$0xff] }
 0x6ff   : > { %7160 = vmatmul.mubr.f32.gmra.mrb[54].mxu0 %v6552_v56  ;;  %v4786_v31 = vmax.f32 %v4498_v18, 0.0  ;;  %v5825_v3 = vsub.f32 1.0, %v5537_v54  ;;  %v2151_v42 = vmul.f32 %v9469_v59, %v11980_v46  ;;  %v2566_v20 = vmul.f32 %v9605_v40, %v12023_v50  ;;  %v1311_v59 = vld [vmem:[%s17374_s9 + $0x310] sm:$0xff] }
 0x700   : > { %v6402_v14 = vmul.f32 %v6114_v16, %v4787_v28  ;;  %v1871_v9 = vadd.f32 %v1734_v7, %v1455_v45  ;;  %v1872_v32 = vadd.f32 %v1735_v51, %v1456_v34  ;;  %v2567_v57 = vmul.f32 %v9606_v39, %v12023_v50  ;;  %v1312_v34 = vld [vmem:[%s17374_s9 + $0x318] sm:$0xff] }
 0x701   : > { %v6113_v13 = vmax.f32 %v5825_v3, 0.0  ;;  %v2982_v4 = vmul.f32 %v9742_v11, %v12079_v37  ;;  %v2983_v56 = vmul.f32 %v9743_v63, %v12079_v37  ;;  %v3398_v18 = vmul.f32 %v9879_v61, %v12125_v1 }
 0x702   : > { %7299 = vmatprep.mubr.f32.mxu0 %v6402_v14  ;;  %v2287_v40 = vadd.f32 %v2150_v36, %v1871_v9  ;;  %v2288_v54 = vadd.f32 %v2151_v42, %v1872_v32  ;;  %v3399_v28 = vmul.f32 %v9880_v10, %v12125_v1  ;;  %v3932_v45 = vsub.f32 %v13592_v38, %v17663_v62  ;;  %v9333_v36 = vld [vmem:[%s17374_s9 + $0x758] sm:$0xff] }
 0x703   : > { %v6401_v39 = vmul.f32 %v6113_v13, %v4786_v31  ;;  %v5259_v16 = vsub.f32 %v13611_v22, %v17664_v2  ;;  %v3931_v7 = vsub.f32 %v13592_v38, %v17665_v17  ;;  %v5258_v51 = vsub.f32 %v13611_v22, %v17666_v12  ;;  %v9334_v13 = vld [vmem:[%s17374_s9 + $0x760] sm:$0xff] }
 0x704   : > { %v2703_v11 = vadd.f32 %v2566_v20, %v2287_v40  ;;  %v2704_v63 = vadd.f32 %v2567_v57, %v2288_v54  ;;  %v4220_v61 = vand.u32 2147483647, %v3932_v45  ;;  %v1457_v3 = vmul.f32 %v11915_v23, %v1311_v59  ;;  %v9470_v54 = vld [vmem:[%s17374_s9 + $0xba0] sm:$0xff]  ;;  %v9471_v45 = vld [vmem:[%s17374_s9 + $0xba8] sm:$0xff] }
 0x705   : > { %7300 = vmatmul.mubr.f32.vlgmr.msra.gmra.mrb[20].mxu0 %v6401_v39  ;;  %v5547_v31 = vand.u32 2147483647, %v5259_v16  ;;  %v4219_v42 = vand.u32 2147483647, %v3931_v7  ;;  %v5546_v10 = vand.u32 2147483647, %v5258_v51  ;;  %v1458_v14 = vmul.f32 %v11915_v23, %v1312_v34 }
 0x706   : > { %v3119_v9 = vadd.f32 %v2982_v4, %v2703_v11  ;;  %v3120_v32 = vadd.f32 %v2983_v56, %v2704_v63  ;;  %v4508_v22 = vsub.f32 1.0, %v4220_v61  ;;  %v1736_v38 = vmul.f32 %v9333_v36, %v11913_v8  ;;  %v9607_v4 = vld [vmem:[%s17374_s9 + $0xfe8] sm:$0xff]  ;;  %v9608_v7 = vld [vmem:[%s17374_s9 + $0xff0] sm:$0xff] }
 0x707   : > { %v5835_v20 = vsub.f32 1.0, %v5547_v31  ;;  %v4507_v57 = vsub.f32 1.0, %v4219_v42  ;;  %v5834_v40 = vsub.f32 1.0, %v5546_v10  ;;  %v1737_v59 = vmul.f32 %v9334_v13, %v11913_v8  ;;  %v9744_v51 = vld [vmem:[%s17374_s9 + $0x1430] sm:$0xff]  ;;  %v9745_v13 = vld [vmem:[%s17374_s9 + $0x1438] sm:$0xff]  ;;  %v9882_v31 = vld [vmem:[%s17374_s9 + $0x1880] sm:$0xff] }
 0x708   : > { %v3535_v56 = vadd.f32 %v3398_v18, %v3119_v9  ;;  %v3536_v34 = vadd.f32 %v3399_v28, %v3120_v32  ;;  %v4796_v39 = vmax.f32 %v4508_v22, 0.0  ;;  %v1873_v16 = vadd.f32 %v1736_v38, %v1457_v3  ;;  %v9881_v38 = vld [vmem:[%s17374_s9 + $0x1878] sm:$0xff] }
 0x709   : > { %v6123_v36 = vmax.f32 %v5835_v20, 0.0  ;;  %v4795_v11 = vmax.f32 %v4507_v57, 0.0  ;;  %v6122_v63 = vmax.f32 %v5834_v40, 0.0  ;;  %v1874_v61 = vadd.f32 %v1737_v59, %v1458_v14  ;;  %v1313_v59 = vld [vmem:[%s17374_s9 + $0x320] sm:$0xff] }
 0x70a   : > { %v10667_v22 = vpack.c.bf16 %v3536_v34, %v3535_v56  ;;  %v2152_v18 = vmul.f32 %v9470_v54, %v11980_v46  ;;  %v2153_v28 = vmul.f32 %v9471_v45, %v11980_v46  ;;  %v2568_v3 = vmul.f32 %v9607_v4, %v12023_v50  ;;  %v1314_v54 = vld [vmem:[%s17374_s9 + $0x328] sm:$0xff] }
 0x70b   : > { %v6411_v42 = vmul.f32 %v6123_v36, %v4796_v39  ;;  %v6410_v10 = vmul.f32 %v6122_v63, %v4795_v11  ;;  %v2569_v14 = vmul.f32 %v9608_v7, %v12023_v50  ;;  %v2984_v9 = vmul.f32 %v9744_v51, %v12079_v37  ;;  %v9335_v51 = vld [vmem:[%s17374_s9 + $0x768] sm:$0xff]  ;;  %v9336_v36 = vld [vmem:[%s17374_s9 + $0x770] sm:$0xff] }
 0x70c   : > { %10668 = vmatpush1.bf16.msra.mxu0 %v10667_v22  ;;  %v2289_v32 = vadd.f32 %v2152_v18, %v1873_v16  ;;  %v2290_v20 = vadd.f32 %v2153_v28, %v1874_v61  ;;  %v2985_v57 = vmul.f32 %v9745_v13, %v12079_v37  ;;  %v3400_v40 = vmul.f32 %v9881_v38, %v12125_v1 }
 0x70d   : > { %7304 = vmatprep.mubr.f32.mxu0 %v6411_v42  ;;  %10669 = vmatprep.subr.bf16.mxu0 %v17588_v24  ;;  %v3401_v45 = vmul.f32 %v9882_v31, %v12125_v1  ;;  %v3941_v4 = vsub.f32 %v13676_v41, %v17663_v62  ;;  %v5268_v56 = vsub.f32 %v13689_v33, %v17664_v2 }
 0x70e   : > { %7305 = vmatmul.mubr.f32.gmra.mrb[22].mxu0 %v6410_v10  ;;  %v2705_v34 = vadd.f32 %v2568_v3, %v2289_v32  ;;  %v2706_v39 = vadd.f32 %v2569_v14, %v2290_v20  ;;  %v3940_v16 = vsub.f32 %v13676_v41, %v17665_v17  ;;  %v5267_v7 = vsub.f32 %v13689_v33, %v17666_v12  ;;  %v9472_v14 = vld [vmem:[%s17374_s9 + $0xbb0] sm:$0xff] }
 0x70f   : > { %v4229_v11 = vand.u32 2147483647, %v3941_v4  ;;  %v5556_v63 = vand.u32 2147483647, %v5268_v56  ;;  %v1459_v61 = vmul.f32 %v11915_v23, %v1313_v59  ;;  %v1460_v13 = vmul.f32 %v11915_v23, %v1314_v54  ;;  %v9610_v54 = vld [vmem:[%s17374_s9 + $0x1000] sm:$0xff] }
 0x710   : > { %v3121_v38 = vadd.f32 %v2984_v9, %v2705_v34  ;;  %v3122_v22 = vadd.f32 %v2985_v57, %v2706_v39  ;;  %v4228_v18 = vand.u32 2147483647, %v3940_v16  ;;  %v5555_v28 = vand.u32 2147483647, %v5267_v7  ;;  %v9473_v9 = vld [vmem:[%s17374_s9 + $0xbb8] sm:$0xff] }
 0x711   : > { %v4517_v3 = vsub.f32 1.0, %v4229_v11  ;;  %v5844_v31 = vsub.f32 1.0, %v5556_v63  ;;  %v1738_v42 = vmul.f32 %v9335_v51, %v11913_v8  ;;  %v1739_v10 = vmul.f32 %v9336_v36, %v11913_v8  ;;  %v9609_v57 = vld [vmem:[%s17374_s9 + $0xff8] sm:$0xff]  ;;  %v9883_v63 = vld [vmem:[%s17374_s9 + $0x1888] sm:$0xff] }
 0x712   : > { %v3537_v32 = vadd.f32 %v3400_v40, %v3121_v38  ;;  %v3538_v20 = vadd.f32 %v3401_v45, %v3122_v22  ;;  %v4516_v4 = vsub.f32 1.0, %v4228_v18  ;;  %v5843_v59 = vsub.f32 1.0, %v5555_v28  ;;  %v9746_v40 = vld [vmem:[%s17374_s9 + $0x1440] sm:$0xff]  ;;  %v9747_v45 = vld [vmem:[%s17374_s9 + $0x1448] sm:$0xff] }
 0x713   : > { %v4805_v56 = vmax.f32 %v4517_v3, 0.0  ;;  %v6132_v34 = vmax.f32 %v5844_v31, 0.0  ;;  %v1875_v39 = vadd.f32 %v1738_v42, %v1459_v61  ;;  %v1876_v16 = vadd.f32 %v1739_v10, %v1460_v13  ;;  %v9884_v61 = vld [vmem:[%s17374_s9 + $0x1890] sm:$0xff] }
 0x714   : > { %v10670_v7 = vpack.c.bf16 %v3538_v20, %v3537_v32  ;;  %v4804_v51 = vmax.f32 %v4516_v4, 0.0  ;;  %v6131_v36 = vmax.f32 %v5843_v59, 0.0  ;;  %v2154_v11 = vmul.f32 %v9472_v14, %v11980_v46  ;;  %v1315_v10 = vld [vmem:[%s17374_s9 + $0x330] sm:$0xff]  ;;  %v1316_v14 = vld [vmem:[%s17374_s9 + $0x338] sm:$0xff] }
 0x715   : > { %v6420_v13 = vmul.f32 %v6132_v34, %v4805_v56  ;;  %v2155_v38 = vmul.f32 %v9473_v9, %v11980_v46  ;;  %v2570_v22 = vmul.f32 %v9609_v57, %v12023_v50  ;;  %v2571_v18 = vmul.f32 %v9610_v54, %v12023_v50  ;;  %v9337_v56 = vld [vmem:[%s17374_s9 + $0x778] sm:$0xff]  ;;  %v9338_v34 = vld [vmem:[%s17374_s9 + $0x780] sm:$0xff] }
 0x716   : > { %10671 = vmatpush1.bf16.msra.mxu0 %v10670_v7  ;;  %v6419_v28 = vmul.f32 %v6131_v36, %v4804_v51  ;;  %v2291_v3 = vadd.f32 %v2154_v11, %v1875_v39  ;;  %v2986_v31 = vmul.f32 %v9746_v40, %v12079_v37  ;;  %v2987_v42 = vmul.f32 %v9747_v45, %v12079_v37 }
 0x717   : > { %7309 = vmatprep.mubr.f32.mxu0 %v6420_v13  ;;  %10672 = vmatprep.subr.bf16.mxu0 %v17588_v24  ;;  %v2292_v32 = vadd.f32 %v2155_v38, %v1876_v16  ;;  %v3402_v20 = vmul.f32 %v9883_v63, %v12125_v1  ;;  %v3403_v4 = vmul.f32 %v9884_v61, %v12125_v1 }
 0x718   : > { %7310 = vmatmul.mubr.f32.gmra.mrb[24].mxu0 %v6419_v28  ;;  %v2707_v59 = vadd.f32 %v2570_v22, %v2291_v3  ;;  %v3950_v9 = vsub.f32 %v13759_v6, %v17663_v62  ;;  %v5277_v57 = vsub.f32 %v13646_v0, %v17664_v2  ;;  %v3949_v54 = vsub.f32 %v13759_v6, %v17665_v17  ;;  %v9474_v22 = vld [vmem:[%s17374_s9 + $0xbc0] sm:$0xff] }
 0x719   : > { %v2708_v39 = vadd.f32 %v2571_v18, %v2292_v32  ;;  %v5276_v16 = vsub.f32 %v13646_v0, %v17666_v12  ;;  %v1461_v40 = vmul.f32 %v11915_v23, %v1315_v10  ;;  %v1462_v45 = vmul.f32 %v11915_v23, %v1316_v14 }
 0x71a   : > { %v3123_v7 = vadd.f32 %v2986_v31, %v2707_v59  ;;  %v4238_v51 = vand.u32 2147483647, %v3950_v9  ;;  %v5565_v36 = vand.u32 2147483647, %v5277_v57  ;;  %v4237_v11 = vand.u32 2147483647, %v3949_v54 }
 0x71b   : > { %v3124_v63 = vadd.f32 %v2987_v42, %v2708_v39  ;;  %v5564_v61 = vand.u32 2147483647, %v5276_v16  ;;  %v1740_v13 = vmul.f32 %v9337_v56, %v11913_v8  ;;  %v1741_v38 = vmul.f32 %v9338_v34, %v11913_v8  ;;  %v9475_v31 = vld [vmem:[%s17374_s9 + $0xbc8] sm:$0xff]  ;;  %v9612_v57 = vld [vmem:[%s17374_s9 + $0x1010] sm:$0xff]  ;;  %v9885_v16 = vld [vmem:[%s17374_s9 + $0x1898] sm:$0xff] }
 0x71c   : > { %v3539_v18 = vadd.f32 %v3402_v20, %v3123_v7  ;;  %v4526_v28 = vsub.f32 1.0, %v4238_v51  ;;  %v5853_v3 = vsub.f32 1.0, %v5565_v36  ;;  %v4525_v10 = vsub.f32 1.0, %v4237_v11  ;;  %v9611_v42 = vld [vmem:[%s17374_s9 + $0x1008] sm:$0xff]  ;;  %v9748_v20 = vld [vmem:[%s17374_s9 + $0x1450] sm:$0xff]  ;;  %v9886_v36 = vld [vmem:[%s17374_s9 + $0x18a0] sm:$0xff] }
 0x71d   : > { %v3540_v14 = vadd.f32 %v3403_v4, %v3124_v63  ;;  %v5852_v32 = vsub.f32 1.0, %v5564_v61  ;;  %v1877_v59 = vadd.f32 %v1740_v13, %v1461_v40  ;;  %v1878_v9 = vadd.f32 %v1741_v38, %v1462_v45  ;;  %v9749_v4 = vld [vmem:[%s17374_s9 + $0x1458] sm:$0xff] }
 0x71e   : > { %v4814_v54 = vmax.f32 %v4526_v28, 0.0  ;;  %v6141_v56 = vmax.f32 %v5853_v3, 0.0  ;;  %v4813_v34 = vmax.f32 %v4525_v10, 0.0  ;;  %v2156_v39 = vmul.f32 %v9474_v22, %v11980_v46  ;;  %v1317_v3 = vld [vmem:[%s17374_s9 + $0x340] sm:$0xff]  ;;  %v1318_v10 = vld [vmem:[%s17374_s9 + $0x348] sm:$0xff] }
 0x71f   : > { %v10673_v40 = vpack.c.bf16 %v3540_v14, %v3539_v18  ;;  %v6140_v45 = vmax.f32 %v5852_v32, 0.0  ;;  %v2157_v7 = vmul.f32 %v9475_v31, %v11980_v46  ;;  %v2572_v51 = vmul.f32 %v9611_v42, %v12023_v50 }
 0x720   : > { %v6429_v11 = vmul.f32 %v6141_v56, %v4814_v54  ;;  %v2293_v63 = vadd.f32 %v2156_v39, %v1877_v59  ;;  %v2573_v61 = vmul.f32 %v9612_v57, %v12023_v50  ;;  %v2988_v13 = vmul.f32 %v9748_v20, %v12079_v37  ;;  %v9339_v20 = vld [vmem:[%s17374_s9 + $0x788] sm:$0xff]  ;;  %v9340_v54 = vld [vmem:[%s17374_s9 + $0x790] sm:$0xff] }
 0x721   : > { %10674 = vmatpush1.bf16.msra.mxu0 %v10673_v40  ;;  %v6428_v38 = vmul.f32 %v6140_v45, %v4813_v34  ;;  %v2294_v22 = vadd.f32 %v2157_v7, %v1878_v9  ;;  %v2989_v18 = vmul.f32 %v9749_v4, %v12079_v37  ;;  %v3404_v28 = vmul.f32 %v9885_v16, %v12125_v1  ;;  %v9476_v16 = vld [vmem:[%s17374_s9 + $0xbd0] sm:$0xff] }
 0x722   : > { %7314 = vmatprep.mubr.f32.mxu0 %v6429_v11  ;;  %10675 = vmatprep.subr.bf16.mxu0 %v17588_v24  ;;  %v2709_v31 = vadd.f32 %v2572_v51, %v2293_v63  ;;  %v3405_v42 = vmul.f32 %v9886_v36, %v12125_v1  ;;  %v3959_v14 = vsub.f32 %v13809_v19, %v17663_v62 }
 0x723   : > { %7315 = vmatmul.mubr.f32.gmra.mrb[26].mxu0 %v6428_v38  ;;  %v2710_v32 = vadd.f32 %v2573_v61, %v2294_v22  ;;  %v5286_v59 = vsub.f32 %v13846_v35, %v17664_v2  ;;  %v3958_v9 = vsub.f32 %v13809_v19, %v17665_v17  ;;  %v5285_v57 = vsub.f32 %v13846_v35, %v17666_v12 }
 0x724   : > { %v3125_v56 = vadd.f32 %v2988_v13, %v2709_v31  ;;  %v4247_v34 = vand.u32 2147483647, %v3959_v14  ;;  %v1463_v39 = vmul.f32 %v11915_v23, %v1317_v3  ;;  %v1464_v4 = vmul.f32 %v11915_v23, %v1318_v10  ;;  %v9477_v10 = vld [vmem:[%s17374_s9 + $0xbd8] sm:$0xff] }
 0x725   : > { %v3126_v40 = vadd.f32 %v2989_v18, %v2710_v32  ;;  %v5574_v45 = vand.u32 2147483647, %v5286_v59  ;;  %v4246_v7 = vand.u32 2147483647, %v3958_v9  ;;  %v5573_v51 = vand.u32 2147483647, %v5285_v57 }
 0x726   : > { %v3541_v36 = vadd.f32 %v3404_v28, %v3125_v56  ;;  %v4535_v11 = vsub.f32 1.0, %v4247_v34  ;;  %v1742_v63 = vmul.f32 %v9339_v20, %v11913_v8  ;;  %v1743_v61 = vmul.f32 %v9340_v54, %v11913_v8  ;;  %v9613_v18 = vld [vmem:[%s17374_s9 + $0x1018] sm:$0xff]  ;;  %v9614_v28 = vld [vmem:[%s17374_s9 + $0x1020] sm:$0xff]  ;;  %v9751_v9 = vld [vmem:[%s17374_s9 + $0x1468] sm:$0xff] }
 0x727   : > { %v3542_v13 = vadd.f32 %v3405_v42, %v3126_v40  ;;  %v5862_v38 = vsub.f32 1.0, %v5574_v45  ;;  %v4534_v22 = vsub.f32 1.0, %v4246_v7  ;;  %v5861_v3 = vsub.f32 1.0, %v5573_v51  ;;  %v9750_v59 = vld [vmem:[%s17374_s9 + $0x1460] sm:$0xff]  ;;  %v9887_v34 = vld [vmem:[%s17374_s9 + $0x18a8] sm:$0xff] }
 0x728   : > { %v4823_v31 = vmax.f32 %v4535_v11, 0.0  ;;  %v1879_v14 = vadd.f32 %v1742_v63, %v1463_v39  ;;  %v1880_v32 = vadd.f32 %v1743_v61, %v1464_v4  ;;  %v2158_v42 = vmul.f32 %v9476_v16, %v11980_v46  ;;  %v9888_v39 = vld [vmem:[%s17374_s9 + $0x18b0] sm:$0xff]  ;;  %v15128_v4 = vpop.permute.xlu0 %5143  ;;  %v15135_v61 = vpop.permute.xlu1 %3803 }
 0x729   : > { %v10676_v57 = vpack.c.bf16 %v3542_v13, %v3541_v36  ;;  %v6150_v20 = vmax.f32 %v5862_v38, 0.0  ;;  %v4822_v54 = vmax.f32 %v4534_v22, 0.0  ;;  %v6149_v56 = vmax.f32 %v5861_v3, 0.0 }
 0x72a   : > { %v2159_v16 = vmul.f32 %v9477_v10, %v11980_v46  ;;  %v2295_v40 = vadd.f32 %v2158_v42, %v1879_v14  ;;  %v2574_v45 = vmul.f32 %v9613_v18, %v12023_v50  ;;  %v2575_v7 = vmul.f32 %v9614_v28, %v12023_v50 }
 0x72b   : > { %10677 = vmatpush1.bf16.msra.mxu0 %v10676_v57  ;;  %v6438_v51 = vmul.f32 %v6150_v20, %v4823_v31  ;;  %v6437_v36 = vmul.f32 %v6149_v56, %v4822_v54  ;;  %v2990_v11 = vmul.f32 %v9750_v59, %v12079_v37  ;;  %v2991_v63 = vmul.f32 %v9751_v9, %v12079_v37 }
 0x72c   : > { %10678 = vmatprep.subr.bf16.mxu0 %v17588_v24  ;;  %v2296_v13 = vadd.f32 %v2159_v16, %v1880_v32  ;;  %v2711_v38 = vadd.f32 %v2574_v45, %v2295_v40  ;;  %v3406_v22 = vmul.f32 %v9887_v34, %v12125_v1  ;;  %v3407_v3 = vmul.f32 %v9888_v39, %v12125_v1 }
 0x72d   : > { %7319 = vmatprep.mubr.f32.mxu0 %v6438_v51  ;;  %v4081_v10 = vsub.f32 %v15135_v61, %v11873_v29  ;;  %v5408_v18 = vsub.f32 %v15128_v4, %v11897_v48  ;;  %v3968_v28 = vsub.f32 %v13924_v58, %v17663_v62  ;;  %v5295_v31 = vsub.f32 %v13939_v26, %v17664_v2 }
 0x72e   : > { %7320 = vmatmul.mubr.f32.gmra.mrb[28].mxu0 %v6437_v36  ;;  %v2712_v14 = vadd.f32 %v2575_v7, %v2296_v13  ;;  %v3127_v32 = vadd.f32 %v2990_v11, %v2711_v38  ;;  %v4080_v42 = vsub.f32 %v15135_v61, %v11870_v27  ;;  %v5407_v59 = vsub.f32 %v15128_v4, %v11894_v47 }
 0x72f   : > { %v4369_v9 = vand.u32 2147483647, %v4081_v10  ;;  %v5696_v57 = vand.u32 2147483647, %v5408_v18  ;;  %v4256_v20 = vand.u32 2147483647, %v3968_v28  ;;  %v3967_v54 = vsub.f32 %v13924_v58, %v17665_v17 }
 0x730   : > { %v3128_v56 = vadd.f32 %v2991_v63, %v2712_v14  ;;  %v3543_v34 = vadd.f32 %v3406_v22, %v3127_v32  ;;  %v5583_v39 = vand.u32 2147483647, %v5295_v31  ;;  %v4368_v16 = vand.u32 2147483647, %v4080_v42  ;;  %v1319_v10 = vld [vmem:[%s17374_s9 + $0x350] sm:$0xff]  ;;  %v1320_v63 = vld [vmem:[%s17374_s9 + $0x358] sm:$0xff] }
 0x731   : > { %v4657_v40 = vsub.f32 1.0, %v4369_v9  ;;  %v5984_v45 = vsub.f32 1.0, %v5696_v57  ;;  %v4544_v7 = vsub.f32 1.0, %v4256_v20  ;;  %v5695_v51 = vand.u32 2147483647, %v5407_v59  ;;  %v9341_v22 = vld [vmem:[%s17374_s9 + $0x798] sm:$0xff] }
 0x732   : > { %v3544_v36 = vadd.f32 %v3407_v3, %v3128_v56  ;;  %v5871_v11 = vsub.f32 1.0, %v5583_v39  ;;  %v4656_v13 = vsub.f32 1.0, %v4368_v16  ;;  %v4255_v38 = vand.u32 2147483647, %v3967_v54  ;;  %v15163_v3 = vpop.permute.xlu1 %3808  ;;  %v9342_v59 = vld [vmem:[%s17374_s9 + $0x7a0] sm:$0xff]  ;;  %v9615_v39 = vld [vmem:[%s17374_s9 + $0x1028] sm:$0xff] }
 0x733   : > { %v4945_v18 = vmax.f32 %v4657_v40, 0.0  ;;  %v6272_v28 = vmax.f32 %v5984_v45, 0.0  ;;  %v4832_v35 = vmax.f32 %v4544_v7, 0.0  ;;  %v5983_v58 = vsub.f32 1.0, %v5695_v51  ;;  %v9478_v9 = vld [vmem:[%s17374_s9 + $0xbe0] sm:$0xff]  ;;  %v9616_v16 = vld [vmem:[%s17374_s9 + $0x1030] sm:$0xff] }
 0x734   : > { %v10679_v31 = vpack.c.bf16 %v3544_v36, %v3543_v34  ;;  %v6159_v14 = vmax.f32 %v5871_v11, 0.0  ;;  %v4944_v32 = vmax.f32 %v4656_v13, 0.0  ;;  %v4543_v42 = vsub.f32 1.0, %v4255_v38  ;;  %v9479_v34 = vld [vmem:[%s17374_s9 + $0xbe8] sm:$0xff]  ;;  %v9752_v51 = vld [vmem:[%s17374_s9 + $0x1470] sm:$0xff]  ;;  %v9753_v36 = vld [vmem:[%s17374_s9 + $0x1478] sm:$0xff] }
 0x735   : > { %v6560_v57 = vmul.f32 %v6272_v28, %v4945_v18  ;;  %v6271_v20 = vmax.f32 %v5983_v58, 0.0  ;;  %v5294_v54 = vsub.f32 %v13939_v26, %v17666_v12  ;;  %v1465_v56 = vmul.f32 %v11915_v23, %v1319_v10  ;;  %v9889_v10 = vld [vmem:[%s17374_s9 + $0x18b8] sm:$0xff]  ;;  %v9890_v18 = vld [vmem:[%s17374_s9 + $0x18c0] sm:$0xff] }
 0x736   : > { %10680 = vmatpush1.bf16.msra.mxu0 %v10679_v31  ;;  %v6447_v40 = vmul.f32 %v6159_v14, %v4832_v35  ;;  %v4831_v58 = vmax.f32 %v4543_v42, 0.0  ;;  %v1466_v45 = vmul.f32 %v11915_v23, %v1320_v63  ;;  %v1744_v7 = vmul.f32 %v9341_v22, %v11913_v8 }
 0x737   : > { %6939 = vmatprep.mubr.f32.mxu1 %v6560_v57  ;;  %v6559_v11 = vmul.f32 %v6271_v20, %v4944_v32  ;;  %10681 = vmatprep.subr.bf16.mxu0 %v17588_v24  ;;  %v5582_v13 = vand.u32 2147483647, %v5294_v54  ;;  %v1745_v35 = vmul.f32 %v9342_v59, %v11913_v8  ;;  %v2160_v38 = vmul.f32 %v9478_v9, %v11980_v46  ;;  %v15205_v9 = vpop.permute.xlu1 %5147 }
 0x738   : > { %7324 = vmatprep.mubr.f32.mxu0 %v6447_v40  ;;  %v1881_v28 = vadd.f32 %v1744_v7, %v1465_v56  ;;  %v2161_v63 = vmul.f32 %v9479_v34, %v11980_v46  ;;  %v2576_v22 = vmul.f32 %v9615_v39, %v12023_v50  ;;  %v2577_v31 = vmul.f32 %v9616_v16, %v12023_v50 }
 0x739   : > { %6940 = vmatmul.mubr.f32.gmra.mrb[42].mxu1 %v6559_v11  ;;  %v5870_v14 = vsub.f32 1.0, %v5582_v13  ;;  %v1882_v32 = vadd.f32 %v1745_v35, %v1466_v45  ;;  %v2992_v42 = vmul.f32 %v9752_v51, %v12079_v37  ;;  %v2993_v59 = vmul.f32 %v9753_v36, %v12079_v37 }
 0x73a   : > { %v2297_v57 = vadd.f32 %v2160_v38, %v1881_v28  ;;  %v3408_v20 = vmul.f32 %v9889_v10, %v12125_v1  ;;  %v3409_v54 = vmul.f32 %v9890_v18, %v12125_v1  ;;  %v4090_v56 = vsub.f32 %v15163_v3, %v11873_v29 }
 0x73b   : > { %v6158_v34 = vmax.f32 %v5870_v14, 0.0  ;;  %v2298_v39 = vadd.f32 %v2161_v63, %v1882_v32  ;;  %v5417_v16 = vsub.f32 %v15205_v9, %v11897_v48  ;;  %v3977_v40 = vsub.f32 %v14012_v53, %v17663_v62 }
 0x73c   : > { %v2713_v45 = vadd.f32 %v2576_v22, %v2297_v57  ;;  %v4378_v7 = vand.u32 2147483647, %v4090_v56  ;;  %v5304_v51 = vsub.f32 %v14009_v15, %v17664_v2  ;;  %v4089_v36 = vsub.f32 %v15163_v3, %v11870_v27 }
 0x73d   : > { %v6446_v11 = vmul.f32 %v6158_v34, %v4831_v58  ;;  %v2714_v13 = vadd.f32 %v2577_v31, %v2298_v39  ;;  %v5705_v35 = vand.u32 2147483647, %v5417_v16  ;;  %v4265_v38 = vand.u32 2147483647, %v3977_v40  ;;  %v1321_v58 = vld [vmem:[%s17374_s9 + $0x360] sm:$0xff] }
 0x73e   : > { %v3129_v10 = vadd.f32 %v2992_v42, %v2713_v45  ;;  %v4666_v18 = vsub.f32 1.0, %v4378_v7  ;;  %v5592_v28 = vand.u32 2147483647, %v5304_v51  ;;  %v4377_v63 = vand.u32 2147483647, %v4089_v36  ;;  %v9343_v7 = vld [vmem:[%s17374_s9 + $0x7a8] sm:$0xff] }
 0x73f   : > { %7325 = vmatmul.mubr.f32.gmra.mrb[30].mxu0 %v6446_v11  ;;  %v3130_v14 = vadd.f32 %v2993_v59, %v2714_v13  ;;  %v5993_v32 = vsub.f32 1.0, %v5705_v35  ;;  %v4553_v26 = vsub.f32 1.0, %v4265_v38  ;;  %v5416_v22 = vsub.f32 %v15205_v9, %v11894_v47  ;;  %v1322_v59 = vld [vmem:[%s17374_s9 + $0x368] sm:$0xff]  ;;  %v9481_v11 = vld [vmem:[%s17374_s9 + $0xbf8] sm:$0xff] }
 0x740   : > { %v3545_v57 = vadd.f32 %v3408_v20, %v3129_v10  ;;  %v4954_v56 = vmax.f32 %v4666_v18, 0.0  ;;  %v5880_v19 = vsub.f32 1.0, %v5592_v28  ;;  %v4665_v0 = vsub.f32 1.0, %v4377_v63  ;;  %v9617_v13 = vld [vmem:[%s17374_s9 + $0x1038] sm:$0xff]  ;;  %v9618_v28 = vld [vmem:[%s17374_s9 + $0x1040] sm:$0xff] }
 0x741   : > { %v3546_v31 = vadd.f32 %v3409_v54, %v3130_v14  ;;  %v6281_v42 = vmax.f32 %v5993_v32, 0.0  ;;  %v4841_v34 = vmax.f32 %v4553_v26, 0.0  ;;  %v5704_v39 = vand.u32 2147483647, %v5416_v22  ;;  %v9344_v26 = vld [vmem:[%s17374_s9 + $0x7b0] sm:$0xff] }
 0x742   : > { %v6168_v16 = vmax.f32 %v5880_v19, 0.0  ;;  %v4953_v40 = vmax.f32 %v4665_v0, 0.0  ;;  %v3976_v20 = vsub.f32 %v14012_v53, %v17665_v17  ;;  %v5303_v45 = vsub.f32 %v14009_v15, %v17666_v12  ;;  %v9480_v54 = vld [vmem:[%s17374_s9 + $0xbf0] sm:$0xff] }
 0x743   : > { %v10682_v19 = vpack.c.bf16 %v3546_v31, %v3545_v57  ;;  %v6569_v0 = vmul.f32 %v6281_v42, %v4954_v56  ;;  %v5992_v51 = vsub.f32 1.0, %v5704_v39  ;;  %v1467_v36 = vmul.f32 %v11915_v23, %v1321_v58  ;;  %v9754_v57 = vld [vmem:[%s17374_s9 + $0x1480] sm:$0xff]  ;;  %v9755_v56 = vld [vmem:[%s17374_s9 + $0x1488] sm:$0xff] }
 0x744   : > { %v6456_v35 = vmul.f32 %v6168_v16, %v4841_v34  ;;  %v4264_v38 = vand.u32 2147483647, %v3976_v20  ;;  %v5591_v10 = vand.u32 2147483647, %v5303_v45  ;;  %v1468_v18 = vmul.f32 %v11915_v23, %v1322_v59  ;;  %v9891_v39 = vld [vmem:[%s17374_s9 + $0x18c8] sm:$0xff]  ;;  %v9892_v59 = vld [vmem:[%s17374_s9 + $0x18d0] sm:$0xff]  ;;  %v15269_v16 = vpop.permute.xlu0 %3813 }
 0x745   : > { %10683 = vmatpush1.bf16.msra.mxu0 %v10682_v19  ;;  %6944 = vmatprep.mubr.f32.mxu1 %v6569_v0  ;;  %v6280_v63 = vmax.f32 %v5992_v51, 0.0  ;;  %v1746_v14 = vmul.f32 %v9343_v7, %v11913_v8  ;;  %v1747_v32 = vmul.f32 %v9344_v26, %v11913_v8  ;;  %v2162_v22 = vmul.f32 %v9480_v54, %v11980_v46 }
 0x746   : > { %7329 = vmatprep.mubr.f32.mxu0 %v6456_v35  ;;  %10684 = vmatprep.subr.bf16.mxu0 %v17588_v24  ;;  %v4552_v58 = vsub.f32 1.0, %v4264_v38  ;;  %v5879_v31 = vsub.f32 1.0, %v5591_v10  ;;  %v2163_v42 = vmul.f32 %v9481_v11, %v11980_v46  ;;  %v2578_v34 = vmul.f32 %v9617_v13, %v12023_v50  ;;  %v15274_v11 = vpop.permute.xlu1 %5151 }
 0x747   : > { %v6568_v20 = vmul.f32 %v6280_v63, %v4953_v40  ;;  %v1883_v45 = vadd.f32 %v1746_v14, %v1467_v36  ;;  %v1884_v7 = vadd.f32 %v1747_v32, %v1468_v18  ;;  %v2579_v26 = vmul.f32 %v9618_v28, %v12023_v50 }
 0x748   : > { %v4840_v54 = vmax.f32 %v4552_v58, 0.0  ;;  %v6167_v19 = vmax.f32 %v5879_v31, 0.0  ;;  %v2994_v0 = vmul.f32 %v9754_v57, %v12079_v37  ;;  %v2995_v51 = vmul.f32 %v9755_v56, %v12079_v37 }
 0x749   : > { %6945 = vmatmul.mubr.f32.gmra.mrb[44].mxu1 %v6568_v20  ;;  %v2299_v13 = vadd.f32 %v2162_v22, %v1883_v45  ;;  %v2300_v35 = vadd.f32 %v2163_v42, %v1884_v7  ;;  %v3410_v38 = vmul.f32 %v9891_v39, %v12125_v1  ;;  %v3411_v10 = vmul.f32 %v9892_v59, %v12125_v1 }
 0x74a   : > { %v6455_v40 = vmul.f32 %v6167_v19, %v4840_v54  ;;  %v4099_v36 = vsub.f32 %v15269_v16, %v11873_v29  ;;  %v5426_v18 = vsub.f32 %v15274_v11, %v11897_v48  ;;  %v3986_v28 = vsub.f32 %v14031_v5, %v17663_v62 }
 0x74b   : > { %v2715_v63 = vadd.f32 %v2578_v34, %v2299_v13  ;;  %v2716_v14 = vadd.f32 %v2579_v26, %v2300_v35  ;;  %v5313_v32 = vsub.f32 %v14086_v60, %v17664_v2  ;;  %v4098_v22 = vsub.f32 %v15269_v16, %v11870_v27 }
 0x74c   : > { %7330 = vmatmul.mubr.f32.gmra.mrb[32].mxu0 %v6455_v40  ;;  %v4387_v57 = vand.u32 2147483647, %v4099_v36  ;;  %v5714_v56 = vand.u32 2147483647, %v5426_v18  ;;  %v4274_v58 = vand.u32 2147483647, %v3986_v28  ;;  %v5425_v31 = vsub.f32 %v15274_v11, %v11894_v47 }
 0x74d   : > { %v3131_v42 = vadd.f32 %v2994_v0, %v2715_v63  ;;  %v3132_v39 = vadd.f32 %v2995_v51, %v2716_v14  ;;  %v5601_v59 = vand.u32 2147483647, %v5313_v32  ;;  %v4386_v20 = vand.u32 2147483647, %v4098_v22  ;;  %v1323_v40 = vld [vmem:[%s17374_s9 + $0x370] sm:$0xff]  ;;  %v1324_v0 = vld [vmem:[%s17374_s9 + $0x378] sm:$0xff] }
 0x74e   : > { %v4675_v45 = vsub.f32 1.0, %v4387_v57  ;;  %v6002_v34 = vsub.f32 1.0, %v5714_v56  ;;  %v4562_v7 = vsub.f32 1.0, %v4274_v58  ;;  %v5713_v26 = vand.u32 2147483647, %v5425_v31  ;;  %v9345_v51 = vld [vmem:[%s17374_s9 + $0x7b8] sm:$0xff] }
 0x74f   : > { %v3547_v54 = vadd.f32 %v3410_v38, %v3131_v42  ;;  %v3548_v19 = vadd.f32 %v3411_v10, %v3132_v39  ;;  %v5889_v13 = vsub.f32 1.0, %v5601_v59  ;;  %v4674_v35 = vsub.f32 1.0, %v4386_v20  ;;  %v9346_v32 = vld [vmem:[%s17374_s9 + $0x7c0] sm:$0xff]  ;;  %v9483_v42 = vld [vmem:[%s17374_s9 + $0xc08] sm:$0xff] }
 0x750   : > { %v4963_v36 = vmax.f32 %v4675_v45, 0.0  ;;  %v6290_v18 = vmax.f32 %v6002_v34, 0.0  ;;  %v4850_v28 = vmax.f32 %v4562_v7, 0.0  ;;  %v6001_v15 = vsub.f32 1.0, %v5713_v26  ;;  %v9482_v22 = vld [vmem:[%s17374_s9 + $0xc00] sm:$0xff]  ;;  %v9619_v39 = vld [vmem:[%s17374_s9 + $0x1048] sm:$0xff] }
 0x751   : > { %v10685_v38 = vpack.c.bf16 %v3548_v19, %v3547_v54  ;;  %v6177_v10 = vmax.f32 %v5889_v13, 0.0  ;;  %v4962_v63 = vmax.f32 %v4674_v35, 0.0  ;;  %v3985_v14 = vsub.f32 %v14031_v5, %v17665_v17  ;;  %v9620_v34 = vld [vmem:[%s17374_s9 + $0x1050] sm:$0xff]  ;;  %v9757_v35 = vld [vmem:[%s17374_s9 + $0x1498] sm:$0xff] }
 0x752   : > { %v6578_v57 = vmul.f32 %v6290_v18, %v4963_v36  ;;  %v6289_v56 = vmax.f32 %v6001_v15, 0.0  ;;  %v5312_v58 = vsub.f32 %v14086_v60, %v17666_v12  ;;  %v1469_v31 = vmul.f32 %v11915_v23, %v1323_v40  ;;  %v9756_v7 = vld [vmem:[%s17374_s9 + $0x1490] sm:$0xff]  ;;  %v9893_v40 = vld [vmem:[%s17374_s9 + $0x18d8] sm:$0xff] }
 0x753   : > { %10686 = vmatpush1.bf16.msra.mxu0 %v10685_v38  ;;  %v6465_v59 = vmul.f32 %v6177_v10, %v4850_v28  ;;  %v4273_v20 = vand.u32 2147483647, %v3985_v14  ;;  %v1470_v45 = vmul.f32 %v11915_v23, %v1324_v0  ;;  %v1748_v15 = vmul.f32 %v9345_v51, %v11913_v8  ;;  %v9894_v51 = vld [vmem:[%s17374_s9 + $0x18e0] sm:$0xff]  ;;  %v15338_v38 = vpop.permute.xlu0 %5155 }
 0x754   : > { %6949 = vmatprep.mubr.f32.mxu1 %v6578_v57  ;;  %v6577_v26 = vmul.f32 %v6289_v56, %v4962_v63  ;;  %10687 = vmatprep.subr.bf16.mxu0 %v17588_v24  ;;  %v5600_v54 = vand.u32 2147483647, %v5312_v58  ;;  %v1749_v19 = vmul.f32 %v9346_v32, %v11913_v8  ;;  %v2164_v13 = vmul.f32 %v9482_v22, %v11980_v46  ;;  %v15342_v22 = vpop.permute.xlu1 %3818 }
 0x755   : > { %7334 = vmatprep.mubr.f32.mxu0 %v6465_v59  ;;  %v4561_v36 = vsub.f32 1.0, %v4273_v20  ;;  %v1885_v18 = vadd.f32 %v1748_v15, %v1469_v31  ;;  %v2165_v28 = vmul.f32 %v9483_v42, %v11980_v46  ;;  %v2580_v0 = vmul.f32 %v9619_v39, %v12023_v50 }
 0x756   : > { %6950 = vmatmul.mubr.f32.gmra.mrb[46].mxu1 %v6577_v26  ;;  %v5888_v10 = vsub.f32 1.0, %v5600_v54  ;;  %v1886_v63 = vadd.f32 %v1749_v19, %v1470_v45  ;;  %v2581_v14 = vmul.f32 %v9620_v34, %v12023_v50  ;;  %v2996_v32 = vmul.f32 %v9756_v7, %v12079_v37  ;;  %v17667_v34 = vld [vmem:[#allocation24_spill] sm:$0xff]  ;;  %v17668_v26 = vld [vmem:[#allocation31_spill] sm:$0xff] }
 0x757   : > { %v4849_v57 = vmax.f32 %v4561_v36, 0.0  ;;  %v2301_v56 = vadd.f32 %v2164_v13, %v1885_v18  ;;  %v2997_v58 = vmul.f32 %v9757_v35, %v12079_v37  ;;  %v3412_v31 = vmul.f32 %v9893_v40, %v12125_v1 }
 0x758   : > { %v6176_v42 = vmax.f32 %v5888_v10, 0.0  ;;  %v2302_v39 = vadd.f32 %v2165_v28, %v1886_v63  ;;  %v3413_v59 = vmul.f32 %v9894_v51, %v12125_v1  ;;  %v4108_v20 = vsub.f32 %v15342_v22, %v11873_v29 }
 0x759   : > { %v2717_v45 = vadd.f32 %v2580_v0, %v2301_v56  ;;  %v5435_v15 = vsub.f32 %v15338_v38, %v11897_v48  ;;  %v3995_v7 = vsub.f32 %v17667_v34, %v17663_v62  ;;  %v5322_v54 = vsub.f32 %v17668_v26, %v17664_v2 }
 0x75a   : > { %v6464_v19 = vmul.f32 %v6176_v42, %v4849_v57  ;;  %v2718_v13 = vadd.f32 %v2581_v14, %v2302_v39  ;;  %v4396_v35 = vand.u32 2147483647, %v4108_v20  ;;  %v4107_v40 = vsub.f32 %v15342_v22, %v11870_v27 }
 0x75b   : > { %v3133_v36 = vadd.f32 %v2996_v32, %v2717_v45  ;;  %v5723_v18 = vand.u32 2147483647, %v5435_v15  ;;  %v4283_v28 = vand.u32 2147483647, %v3995_v7  ;;  %v5610_v51 = vand.u32 2147483647, %v5322_v54  ;;  %v15370_v54 = vpop.permute.xlu1 %3823 }
 0x75c   : > { %7335 = vmatmul.mubr.f32.gmra.mrb[34].mxu0 %v6464_v19  ;;  %v3134_v0 = vadd.f32 %v2997_v58, %v2718_v13  ;;  %v4684_v10 = vsub.f32 1.0, %v4396_v35  ;;  %v4395_v63 = vand.u32 2147483647, %v4107_v40  ;;  %v5434_v56 = vsub.f32 %v15338_v38, %v11894_v47  ;;  %v1325_v32 = vld [vmem:[%s17374_s9 + $0x380] sm:$0xff]  ;;  %17669 = vst [vmem:[#allocation23_spill] sm:$0xff] %v15370_v54  ;;  %v9484_v40 = vld [vmem:[%s17374_s9 + $0xc10] sm:$0xff] }
 0x75d   : > { %v3549_v60 = vadd.f32 %v3412_v31, %v3133_v36  ;;  %v6011_v5 = vsub.f32 1.0, %v5723_v18  ;;  %v4571_v53 = vsub.f32 1.0, %v4283_v28  ;;  %v5898_v57 = vsub.f32 1.0, %v5610_v51  ;;  %v1326_v31 = vld [vmem:[%s17374_s9 + $0x388] sm:$0xff]  ;;  %v9485_v36 = vld [vmem:[%s17374_s9 + $0xc18] sm:$0xff] }
 0x75e   : > { %v3550_v14 = vadd.f32 %v3413_v59, %v3134_v0  ;;  %v4972_v42 = vmax.f32 %v4684_v10, 0.0  ;;  %v4683_v39 = vsub.f32 1.0, %v4395_v63  ;;  %v5722_v20 = vand.u32 2147483647, %v5434_v56  ;;  %v9347_v59 = vld [vmem:[%s17374_s9 + $0x7c8] sm:$0xff]  ;;  %v9621_v0 = vld [vmem:[%s17374_s9 + $0x1058] sm:$0xff] }
 0x75f   : > { %v6299_v45 = vmax.f32 %v6011_v5, 0.0  ;;  %v4859_v15 = vmax.f32 %v4571_v53, 0.0  ;;  %v6186_v58 = vmax.f32 %v5898_v57, 0.0  ;;  %v3994_v7 = vsub.f32 %v17667_v34, %v17665_v17  ;;  %v9348_v5 = vld [vmem:[%s17374_s9 + $0x7d0] sm:$0xff] }
 0x760   : > { %v10688_v19 = vpack.c.bf16 %v3550_v14, %v3549_v60  ;;  %v4971_v13 = vmax.f32 %v4683_v39, 0.0  ;;  %v6010_v35 = vsub.f32 1.0, %v5722_v20  ;;  %v5321_v53 = vsub.f32 %v17668_v26, %v17666_v12  ;;  %v9622_v14 = vld [vmem:[%s17374_s9 + $0x1060] sm:$0xff] }
 0x761   : > { %v6587_v18 = vmul.f32 %v6299_v45, %v4972_v42  ;;  %v6474_v28 = vmul.f32 %v6186_v58, %v4859_v15  ;;  %v4282_v60 = vand.u32 2147483647, %v3994_v7  ;;  %v1471_v51 = vmul.f32 %v11915_v23, %v1325_v32  ;;  %v9758_v42 = vld [vmem:[%s17374_s9 + $0x14a0] sm:$0xff]  ;;  %v9759_v15 = vld [vmem:[%s17374_s9 + $0x14a8] sm:$0xff] }
 0x762   : > { %10689 = vmatpush1.bf16.msra.mxu0 %v10688_v19  ;;  %v6298_v10 = vmax.f32 %v6010_v35, 0.0  ;;  %v5609_v63 = vand.u32 2147483647, %v5321_v53  ;;  %v1472_v56 = vmul.f32 %v11915_v23, %v1326_v31  ;;  %v1750_v57 = vmul.f32 %v9347_v59, %v11913_v8  ;;  %v9895_v58 = vld [vmem:[%s17374_s9 + $0x18e8] sm:$0xff]  ;;  %v9896_v35 = vld [vmem:[%s17374_s9 + $0x18f0] sm:$0xff] }
 0x763   : > { %6954 = vmatprep.mubr.f32.mxu1 %v6587_v18  ;;  %7339 = vmatprep.mubr.f32.mxu0 %v6474_v28  ;;  %v4570_v39 = vsub.f32 1.0, %v4282_v60  ;;  %v1751_v20 = vmul.f32 %v9348_v5, %v11913_v8  ;;  %v2166_v32 = vmul.f32 %v9484_v40, %v11980_v46  ;;  %v2167_v45 = vmul.f32 %v9485_v36, %v11980_v46  ;;  %v15411_v18 = vpop.permute.xlu1 %5159 }
 0x764   : > { %v6586_v7 = vmul.f32 %v6298_v10, %v4971_v13  ;;  %10690 = vmatprep.subr.bf16.mxu0 %v17588_v24  ;;  %v5897_v31 = vsub.f32 1.0, %v5609_v63  ;;  %v1887_v59 = vadd.f32 %v1750_v57, %v1471_v51  ;;  %v2582_v19 = vmul.f32 %v9621_v0, %v12023_v50  ;;  %17670 = vst [vmem:[#allocation28_spill] sm:$0xff] %v15411_v18 }
 0x765   : > { %v4858_v53 = vmax.f32 %v4570_v39, 0.0  ;;  %v1888_v5 = vadd.f32 %v1751_v20, %v1472_v56  ;;  %v2583_v40 = vmul.f32 %v9622_v14, %v12023_v50  ;;  %v2998_v36 = vmul.f32 %v9758_v42, %v12079_v37  ;;  %v17671_v42 = vld [vmem:[#allocation16_spill] sm:$0xff] }
 0x766   : > { %6955 = vmatmul.mubr.f32.gmra.mrb[48].mxu1 %v6586_v7  ;;  %v6185_v13 = vmax.f32 %v5897_v31, 0.0  ;;  %v2303_v28 = vadd.f32 %v2166_v32, %v1887_v59  ;;  %v2999_v60 = vmul.f32 %v9759_v15, %v12079_v37  ;;  %v3414_v51 = vmul.f32 %v9895_v58, %v12125_v1  ;;  %v17672_v20 = vld [vmem:[#allocation20_spill] sm:$0xff] }
 0x767   : > { %v2304_v0 = vadd.f32 %v2167_v45, %v1888_v5  ;;  %v3415_v10 = vmul.f32 %v9896_v35, %v12125_v1  ;;  %v4117_v63 = vsub.f32 %v15370_v54, %v11873_v29  ;;  %v5444_v56 = vsub.f32 %v15411_v18, %v11897_v48 }
 0x768   : > { %v6473_v57 = vmul.f32 %v6185_v13, %v4858_v53  ;;  %v2719_v14 = vadd.f32 %v2582_v19, %v2303_v28  ;;  %v4004_v39 = vsub.f32 %v17671_v42, %v17663_v62  ;;  %v5331_v32 = vsub.f32 %v17672_v20, %v17664_v2 }
 0x769   : > { %v2720_v15 = vadd.f32 %v2583_v40, %v2304_v0  ;;  %v4405_v7 = vand.u32 2147483647, %v4117_v63  ;;  %v5732_v58 = vand.u32 2147483647, %v5444_v56  ;;  %v4116_v45 = vsub.f32 %v15370_v54, %v11870_v27  ;;  %v15428_v0 = vpop.permute.xlu0 %5167 }
 0x76a   : > { %7340 = vmatmul.mubr.f32.gmra.mrb[36].mxu0 %v6473_v57  ;;  %v3135_v31 = vadd.f32 %v2998_v36, %v2719_v14  ;;  %v4292_v59 = vand.u32 2147483647, %v4004_v39  ;;  %v5619_v35 = vand.u32 2147483647, %v5331_v32  ;;  %v5443_v53 = vsub.f32 %v15411_v18, %v11894_v47  ;;  %17673 = vst [vmem:[#allocation37_spill] sm:$0xff] %v15428_v0  ;;  %v1327_v36 = vld [vmem:[%s17374_s9 + $0x390] sm:$0xff] }
 0x76b   : > { %v3136_v19 = vadd.f32 %v2999_v60, %v2720_v15  ;;  %v4693_v5 = vsub.f32 1.0, %v4405_v7  ;;  %v6020_v13 = vsub.f32 1.0, %v5732_v58  ;;  %v4404_v28 = vand.u32 2147483647, %v4116_v45  ;;  %v9350_v15 = vld [vmem:[%s17374_s9 + $0x7e0] sm:$0xff] }
 0x76c   : > { %v3551_v26 = vadd.f32 %v3414_v51, %v3135_v31  ;;  %v4580_v34 = vsub.f32 1.0, %v4292_v59  ;;  %v5907_v6 = vsub.f32 1.0, %v5619_v35  ;;  %v5731_v40 = vand.u32 2147483647, %v5443_v53  ;;  %v1328_v51 = vld [vmem:[%s17374_s9 + $0x398] sm:$0xff]  ;;  %v9486_v45 = vld [vmem:[%s17374_s9 + $0xc20] sm:$0xff] }
 0x76d   : > { %v3552_v63 = vadd.f32 %v3415_v10, %v3136_v19  ;;  %v4981_v56 = vmax.f32 %v4693_v5, 0.0  ;;  %v6308_v33 = vmax.f32 %v6020_v13, 0.0  ;;  %v4692_v57 = vsub.f32 1.0, %v4404_v28  ;;  %v9349_v10 = vld [vmem:[%s17374_s9 + $0x7d8] sm:$0xff]  ;;  %v9487_v31 = vld [vmem:[%s17374_s9 + $0xc28] sm:$0xff] }
 0x76e   : > { %v4868_v14 = vmax.f32 %v4580_v34, 0.0  ;;  %v6195_v39 = vmax.f32 %v5907_v6, 0.0  ;;  %v6019_v60 = vsub.f32 1.0, %v5731_v40  ;;  %v4003_v32 = vsub.f32 %v17671_v42, %v17665_v17  ;;  %v9624_v40 = vld [vmem:[%s17374_s9 + $0x1070] sm:$0xff] }
 0x76f   : > { %v10691_v7 = vpack.c.bf16 %v3552_v63, %v3551_v26  ;;  %v6596_v58 = vmul.f32 %v6308_v33, %v4981_v56  ;;  %v4980_v34 = vmax.f32 %v4692_v57, 0.0  ;;  %v5330_v6 = vsub.f32 %v17672_v20, %v17666_v12  ;;  %v9623_v33 = vld [vmem:[%s17374_s9 + $0x1068] sm:$0xff]  ;;  %v9760_v63 = vld [vmem:[%s17374_s9 + $0x14b0] sm:$0xff]  ;;  %v9761_v56 = vld [vmem:[%s17374_s9 + $0x14b8] sm:$0xff] }
 0x770   : > { %v6483_v59 = vmul.f32 %v6195_v39, %v4868_v14  ;;  %v6307_v35 = vmax.f32 %v6019_v60, 0.0  ;;  %v4291_v53 = vand.u32 2147483647, %v4003_v32  ;;  %v1473_v19 = vmul.f32 %v11915_v23, %v1327_v36  ;;  %v9897_v60 = vld [vmem:[%s17374_s9 + $0x18f8] sm:$0xff]  ;;  %v15474_v32 = vpop.permute.xlu0 %3828 }
 0x771   : > { %10692 = vmatpush1.bf16.msra.mxu0 %v10691_v7  ;;  %6959 = vmatprep.mubr.f32.mxu1 %v6596_v58  ;;  %v5618_v26 = vand.u32 2147483647, %v5330_v6  ;;  %v1474_v5 = vmul.f32 %v11915_v23, %v1328_v51  ;;  %v1752_v13 = vmul.f32 %v9349_v10, %v11913_v8  ;;  %v1753_v28 = vmul.f32 %v9350_v15, %v11913_v8  ;;  %v9898_v58 = vld [vmem:[%s17374_s9 + $0x1900] sm:$0xff] }
 0x772   : > { %7344 = vmatprep.mubr.f32.mxu0 %v6483_v59  ;;  %v6595_v57 = vmul.f32 %v6307_v35, %v4980_v34  ;;  %10693 = vmatprep.subr.bf16.mxu0 %v17588_v24  ;;  %v4579_v36 = vsub.f32 1.0, %v4291_v53  ;;  %v2168_v14 = vmul.f32 %v9486_v45, %v11980_v46  ;;  %v2169_v39 = vmul.f32 %v9487_v31, %v11980_v46  ;;  %v15483_v59 = vpop.permute.xlu1 %5163 }
 0x773   : > { %17674 = vst [vmem:[#allocation43_spill] sm:$0xff] %v15474_v32  ;;  %v5906_v51 = vsub.f32 1.0, %v5618_v26  ;;  %v1889_v10 = vadd.f32 %v1752_v13, %v1473_v19  ;;  %v1890_v15 = vadd.f32 %v1753_v28, %v1474_v5  ;;  %v2584_v7 = vmul.f32 %v9623_v33, %v12023_v50  ;;  %17675 = vst [vmem:[#allocation3_spill] sm:$0xff] %v15483_v59  ;;  %v17676_v28 = vld [vmem:[#allocation17_spill] sm:$0xff] }
 0x774   : > { %6960 = vmatmul.mubr.f32.gmra.mrb[50].mxu1 %v6595_v57  ;;  %v4867_v34 = vmax.f32 %v4579_v36, 0.0  ;;  %v2585_v6 = vmul.f32 %v9624_v40, %v12023_v50  ;;  %v3000_v45 = vmul.f32 %v9760_v63, %v12079_v37  ;;  %v3001_v31 = vmul.f32 %v9761_v56, %v12079_v37  ;;  %v17677_v36 = vld [vmem:[#allocation25_spill] sm:$0xff] }
 0x775   : > { %v6194_v35 = vmax.f32 %v5906_v51, 0.0  ;;  %v2305_v53 = vadd.f32 %v2168_v14, %v1889_v10  ;;  %v2306_v19 = vadd.f32 %v2169_v39, %v1890_v15  ;;  %v3416_v26 = vmul.f32 %v9897_v60, %v12125_v1 }
 0x776   : > { %v3417_v33 = vmul.f32 %v9898_v58, %v12125_v1  ;;  %v4126_v5 = vsub.f32 %v15474_v32, %v11873_v29  ;;  %v5453_v13 = vsub.f32 %v15483_v59, %v11897_v48  ;;  %v4013_v40 = vsub.f32 %v17676_v28, %v17663_v62 }
 0x777   : > { %v6482_v63 = vmul.f32 %v6194_v35, %v4867_v34  ;;  %v2721_v56 = vadd.f32 %v2584_v7, %v2305_v53  ;;  %v2722_v57 = vadd.f32 %v2585_v6, %v2306_v19  ;;  %v5340_v14 = vsub.f32 %v17677_v36, %v17664_v2 }
 0x778   : > { %v4414_v39 = vand.u32 2147483647, %v4126_v5  ;;  %v5741_v51 = vand.u32 2147483647, %v5453_v13  ;;  %v4301_v60 = vand.u32 2147483647, %v4013_v40  ;;  %v4125_v10 = vsub.f32 %v15474_v32, %v11870_v27 }
 0x779   : > { %7345 = vmatmul.mubr.f32.gmra.mrb[38].mxu0 %v6482_v63  ;;  %v3137_v15 = vadd.f32 %v3000_v45, %v2721_v56  ;;  %v3138_v58 = vadd.f32 %v3001_v31, %v2722_v57  ;;  %v5628_v20 = vand.u32 2147483647, %v5340_v14  ;;  %v5452_v42 = vsub.f32 %v15483_v59, %v11894_v47  ;;  %v1329_v13 = vld [vmem:[%s17374_s9 + $0x3a0] sm:$0xff]  ;;  %v1330_v56 = vld [vmem:[%s17374_s9 + $0x3a8] sm:$0xff] }
 0x77a   : > { %v4702_v41 = vsub.f32 1.0, %v4414_v39  ;;  %v6029_v34 = vsub.f32 1.0, %v5741_v51  ;;  %v4589_v7 = vsub.f32 1.0, %v4301_v60  ;;  %v4413_v6 = vand.u32 2147483647, %v4125_v10 }
 0x77b   : > { %v3553_v35 = vadd.f32 %v3416_v26, %v3137_v15  ;;  %v3554_v53 = vadd.f32 %v3417_v33, %v3138_v58  ;;  %v5916_v19 = vsub.f32 1.0, %v5628_v20  ;;  %v5740_v5 = vand.u32 2147483647, %v5452_v42  ;;  %v9351_v42 = vld [vmem:[%s17374_s9 + $0x7e8] sm:$0xff]  ;;  %v9488_v20 = vld [vmem:[%s17374_s9 + $0xc30] sm:$0xff]  ;;  %v9489_v15 = vld [vmem:[%s17374_s9 + $0xc38] sm:$0xff] }
 0x77c   : > { %v4990_v40 = vmax.f32 %v4702_v41, 0.0  ;;  %v6317_v63 = vmax.f32 %v6029_v34, 0.0  ;;  %v4877_v45 = vmax.f32 %v4589_v7, 0.0  ;;  %v4701_v31 = vsub.f32 1.0, %v4413_v6  ;;  %v9352_v41 = vld [vmem:[%s17374_s9 + $0x7f0] sm:$0xff]  ;;  %v9625_v58 = vld [vmem:[%s17374_s9 + $0x1078] sm:$0xff] }
 0x77d   : > { %v10694_v57 = vpack.c.bf16 %v3554_v53, %v3553_v35  ;;  %v6204_v14 = vmax.f32 %v5916_v19, 0.0  ;;  %v6028_v39 = vsub.f32 1.0, %v5740_v5  ;;  %v4012_v26 = vsub.f32 %v17676_v28, %v17665_v17  ;;  %v9626_v53 = vld [vmem:[%s17374_s9 + $0x1080] sm:$0xff] }
 0x77e   : > { %v6605_v33 = vmul.f32 %v6317_v63, %v4990_v40  ;;  %v4989_v51 = vmax.f32 %v4701_v31, 0.0  ;;  %v5339_v60 = vsub.f32 %v17677_v36, %v17666_v12  ;;  %v1475_v10 = vmul.f32 %v11915_v23, %v1329_v13  ;;  %v9762_v63 = vld [vmem:[%s17374_s9 + $0x14c0] sm:$0xff]  ;;  %v9899_v31 = vld [vmem:[%s17374_s9 + $0x1908] sm:$0xff] }
 0x77f   : > { %10695 = vmatpush1.bf16.msra.mxu0 %v10694_v57  ;;  %v6492_v34 = vmul.f32 %v6204_v14, %v4877_v45  ;;  %v6316_v7 = vmax.f32 %v6028_v39, 0.0  ;;  %v4300_v6 = vand.u32 2147483647, %v4012_v26  ;;  %v1476_v35 = vmul.f32 %v11915_v23, %v1330_v56  ;;  %v9763_v45 = vld [vmem:[%s17374_s9 + $0x14c8] sm:$0xff]  ;;  %v9900_v26 = vld [vmem:[%s17374_s9 + $0x1910] sm:$0xff] }
 0x780   : > { %6964 = vmatprep.mubr.f32.mxu1 %v6605_v33  ;;  %10696 = vmatprep.subr.bf16.mxu0 %v17588_v24  ;;  %v5627_v19 = vand.u32 2147483647, %v5339_v60  ;;  %v1754_v5 = vmul.f32 %v9351_v42, %v11913_v8  ;;  %v1755_v13 = vmul.f32 %v9352_v41, %v11913_v8  ;;  %v2170_v40 = vmul.f32 %v9488_v20, %v11980_v46 }
 0x781   : > { %7349 = vmatprep.mubr.f32.mxu0 %v6492_v34  ;;  %v6604_v56 = vmul.f32 %v6316_v7, %v4989_v51  ;;  %v4588_v57 = vsub.f32 1.0, %v4300_v6  ;;  %v2171_v14 = vmul.f32 %v9489_v15, %v11980_v46  ;;  %v2586_v39 = vmul.f32 %v9625_v58, %v12023_v50  ;;  %v15551_v15 = vpop.permute.xlu1 %3833 }
 0x782   : > { %v5915_v42 = vsub.f32 1.0, %v5627_v19  ;;  %v1891_v41 = vadd.f32 %v1754_v5, %v1475_v10  ;;  %v1892_v20 = vadd.f32 %v1755_v13, %v1476_v35  ;;  %v2587_v33 = vmul.f32 %v9626_v53, %v12023_v50  ;;  %17678 = vst [vmem:[#allocation7_spill] sm:$0xff] %v15551_v15  ;;  %v17679_v53 = vld [vmem:[#allocation27_spill] sm:$0xff]  ;;  %v17680_v5 = vld [vmem:[#allocation38_spill] sm:$0xff] }
 0x783   : > { %6965 = vmatmul.mubr.f32.gmra.mrb[52].mxu1 %v6604_v56  ;;  %v4876_v60 = vmax.f32 %v4588_v57, 0.0  ;;  %v3002_v36 = vmul.f32 %v9762_v63, %v12079_v37  ;;  %v3003_v51 = vmul.f32 %v9763_v45, %v12079_v37  ;;  %v3418_v34 = vmul.f32 %v9899_v31, %v12125_v1 }
 0x784   : > { %v6203_v58 = vmax.f32 %v5915_v42, 0.0  ;;  %v2307_v7 = vadd.f32 %v2170_v40, %v1891_v41  ;;  %v2308_v6 = vadd.f32 %v2171_v14, %v1892_v20  ;;  %v3419_v28 = vmul.f32 %v9900_v26, %v12125_v1 }
 0x785   : > { %v4135_v10 = vsub.f32 %v15551_v15, %v11873_v29  ;;  %v5462_v35 = vsub.f32 %v15428_v0, %v11897_v48  ;;  %v4022_v19 = vsub.f32 %v17679_v53, %v17663_v62  ;;  %v5349_v13 = vsub.f32 %v17680_v5, %v17664_v2 }
 0x786   : > { %v6491_v63 = vmul.f32 %v6203_v58, %v4876_v60  ;;  %v2723_v45 = vadd.f32 %v2586_v39, %v2307_v7  ;;  %v2724_v31 = vadd.f32 %v2587_v33, %v2308_v6  ;;  %v4134_v40 = vsub.f32 %v15551_v15, %v11870_v27  ;;  %v1331_v6 = vld [vmem:[%s17374_s9 + $0x3b0] sm:$0xff] }
 0x787   : > { %v4423_v56 = vand.u32 2147483647, %v4135_v10  ;;  %v5750_v57 = vand.u32 2147483647, %v5462_v35  ;;  %v4310_v14 = vand.u32 2147483647, %v4022_v19  ;;  %v5461_v26 = vsub.f32 %v15428_v0, %v11894_v47 }
 0x788   : > { %7350 = vmatmul.mubr.f32.gmra.mrb[40].mxu0 %v6491_v63  ;;  %v3139_v42 = vadd.f32 %v3002_v36, %v2723_v45  ;;  %v3140_v41 = vadd.f32 %v3003_v51, %v2724_v31  ;;  %v5637_v20 = vand.u32 2147483647, %v5349_v13  ;;  %v4422_v59 = vand.u32 2147483647, %v4134_v40  ;;  %v1332_v36 = vld [vmem:[%s17374_s9 + $0x3b8] sm:$0xff] }
 0x789   : > { %v4711_v32 = vsub.f32 1.0, %v4423_v56  ;;  %v6038_v18 = vsub.f32 1.0, %v5750_v57  ;;  %v4598_v54 = vsub.f32 1.0, %v4310_v14  ;;  %v5749_v60 = vand.u32 2147483647, %v5461_v26  ;;  %v9353_v51 = vld [vmem:[%s17374_s9 + $0x7f8] sm:$0xff] }
 0x78a   : > { %v3555_v39 = vadd.f32 %v3418_v34, %v3139_v42  ;;  %v3556_v33 = vadd.f32 %v3419_v28, %v3140_v41  ;;  %v5925_v58 = vsub.f32 1.0, %v5637_v20  ;;  %v4710_v7 = vsub.f32 1.0, %v4422_v59  ;;  %v9491_v57 = vld [vmem:[%s17374_s9 + $0xc48] sm:$0xff] }
 0x78b   : > { %v4999_v10 = vmax.f32 %v4711_v32, 0.0  ;;  %v6326_v35 = vmax.f32 %v6038_v18, 0.0  ;;  %v4886_v19 = vmax.f32 %v4598_v54, 0.0  ;;  %v6037_v63 = vsub.f32 1.0, %v5749_v60  ;;  %v9354_v18 = vld [vmem:[%s17374_s9 + $0x800] sm:$0xff]  ;;  %v15583_v32 = vpop.permute.xlu1 %3838  ;;  %v9627_v14 = vld [vmem:[%s17374_s9 + $0x1088] sm:$0xff] }
 0x78c   : > { %v10697_v34 = vpack.c.bf16 %v3556_v33, %v3555_v39  ;;  %v6213_v28 = vmax.f32 %v5925_v58, 0.0  ;;  %v4998_v13 = vmax.f32 %v4710_v7, 0.0  ;;  %v4021_v59 = vsub.f32 %v17679_v53, %v17665_v17  ;;  %v9490_v54 = vld [vmem:[%s17374_s9 + $0xc40] sm:$0xff]  ;;  %17681 = vst [vmem:[#allocation2_spill] sm:$0xff] %v15583_v32  ;;  %v9628_v60 = vld [vmem:[%s17374_s9 + $0x1090] sm:$0xff] }
 0x78d   : > { %v6614_v45 = vmul.f32 %v6326_v35, %v4999_v10  ;;  %v6325_v31 = vmax.f32 %v6037_v63, 0.0  ;;  %v5348_v40 = vsub.f32 %v17680_v5, %v17666_v12  ;;  %v1477_v56 = vmul.f32 %v11915_v23, %v1331_v6  ;;  %v9764_v39 = vld [vmem:[%s17374_s9 + $0x14d0] sm:$0xff]  ;;  %v9765_v10 = vld [vmem:[%s17374_s9 + $0x14d8] sm:$0xff] }
 0x78e   : > { %10698 = vmatpush1.bf16.msra.mxu0 %v10697_v34  ;;  %v6501_v26 = vmul.f32 %v6213_v28, %v4886_v19  ;;  %v4309_v42 = vand.u32 2147483647, %v4021_v59  ;;  %v1478_v41 = vmul.f32 %v11915_v23, %v1332_v36  ;;  %v1756_v20 = vmul.f32 %v9353_v51, %v11913_v8  ;;  %v9901_v35 = vld [vmem:[%s17374_s9 + $0x1918] sm:$0xff]  ;;  %v9902_v34 = vld [vmem:[%s17374_s9 + $0x1920] sm:$0xff] }
 0x78f   : > { %6969 = vmatprep.mubr.f32.mxu1 %v6614_v45  ;;  %v6613_v33 = vmul.f32 %v6325_v31, %v4998_v13  ;;  %10699 = vmatprep.subr.bf16.mxu0 %v17588_v24  ;;  %v5636_v58 = vand.u32 2147483647, %v5348_v40  ;;  %v1757_v7 = vmul.f32 %v9354_v18, %v11913_v8  ;;  %v2172_v6 = vmul.f32 %v9490_v54, %v11980_v46 }
 0x790   : > { %7354 = vmatprep.mubr.f32.mxu0 %v6501_v26  ;;  %v4597_v19 = vsub.f32 1.0, %v4309_v42  ;;  %v1893_v63 = vadd.f32 %v1756_v20, %v1477_v56  ;;  %v2173_v36 = vmul.f32 %v9491_v57, %v11980_v46  ;;  %v2588_v51 = vmul.f32 %v9627_v14, %v12023_v50  ;;  %v15620_v56 = vpop.permute.xlu1 %5171 }
 0x791   : > { %6970 = vmatmul.mubr.f32.gmra.mrb[54].mxu1 %v6613_v33  ;;  %v5924_v28 = vsub.f32 1.0, %v5636_v58  ;;  %v1894_v13 = vadd.f32 %v1757_v7, %v1478_v41  ;;  %v2589_v59 = vmul.f32 %v9628_v60, %v12023_v50  ;;  %v3004_v18 = vmul.f32 %v9764_v39, %v12079_v37  ;;  %17682 = vst [vmem:[#allocation6_spill] sm:$0xff] %v15620_v56  ;;  %v17683_v60 = vld [vmem:[#allocation39_spill] sm:$0xff]  ;;  %v17684_v33 = vld [vmem:[#allocation21_spill] sm:$0xff] }
 0x792   : > { %v4885_v54 = vmax.f32 %v4597_v19, 0.0  ;;  %v2309_v45 = vadd.f32 %v2172_v6, %v1893_v63  ;;  %v3005_v31 = vmul.f32 %v9765_v10, %v12079_v37  ;;  %v3420_v40 = vmul.f32 %v9901_v35, %v12125_v1 }
 0x793   : > { %v6212_v57 = vmax.f32 %v5924_v28, 0.0  ;;  %v2310_v14 = vadd.f32 %v2173_v36, %v1894_v13  ;;  %v3421_v26 = vmul.f32 %v9902_v34, %v12125_v1  ;;  %v4144_v42 = vsub.f32 %v15583_v32, %v11873_v29 }
 0x794   : > { %v2725_v41 = vadd.f32 %v2588_v51, %v2309_v45  ;;  %v5471_v20 = vsub.f32 %v15620_v56, %v11897_v48  ;;  %v4031_v39 = vsub.f32 %v17683_v60, %v17663_v62  ;;  %v5358_v58 = vsub.f32 %v17684_v33, %v17664_v2 }
 0x795   : > { %v6500_v7 = vmul.f32 %v6212_v57, %v4885_v54  ;;  %v2726_v6 = vadd.f32 %v2589_v59, %v2310_v14  ;;  %v4432_v10 = vand.u32 2147483647, %v4144_v42  ;;  %v4143_v35 = vsub.f32 %v15583_v32, %v11870_v27 }
 0x796   : > { %v3141_v19 = vadd.f32 %v3004_v18, %v2725_v41  ;;  %v5759_v63 = vand.u32 2147483647, %v5471_v20  ;;  %v4319_v36 = vand.u32 2147483647, %v4031_v39  ;;  %v5646_v34 = vand.u32 2147483647, %v5358_v58 }
 0x797   : > { %7355 = vmatmul.mubr.f32.gmra.mrb[42].mxu0 %v6500_v7  ;;  %v3142_v51 = vadd.f32 %v3005_v31, %v2726_v6  ;;  %v4720_v28 = vsub.f32 1.0, %v4432_v10  ;;  %v4431_v13 = vand.u32 2147483647, %v4143_v35  ;;  %v5470_v45 = vsub.f32 %v15620_v56, %v11894_v47  ;;  %v1333_v18 = vld [vmem:[%s17374_s9 + $0x3c0] sm:$0xff]  ;;  %v9493_v35 = vld [vmem:[%s17374_s9 + $0xc58] sm:$0xff] }
 0x798   : > { %v3557_v5 = vadd.f32 %v3420_v40, %v3141_v19  ;;  %v6047_v53 = vsub.f32 1.0, %v5759_v63  ;;  %v4607_v0 = vsub.f32 1.0, %v4319_v36  ;;  %v5934_v54 = vsub.f32 1.0, %v5646_v34  ;;  %v1334_v40 = vld [vmem:[%s17374_s9 + $0x3c8] sm:$0xff]  ;;  %v9629_v34 = vld [vmem:[%s17374_s9 + $0x1098] sm:$0xff] }
 0x799   : > { %v3558_v59 = vadd.f32 %v3421_v26, %v3142_v51  ;;  %v5008_v57 = vmax.f32 %v4720_v28, 0.0  ;;  %v4719_v14 = vsub.f32 1.0, %v4431_v13  ;;  %v5758_v42 = vand.u32 2147483647, %v5470_v45  ;;  %v9355_v26 = vld [vmem:[%s17374_s9 + $0x808] sm:$0xff] }
 0x79a   : > { %v6335_v41 = vmax.f32 %v6047_v53, 0.0  ;;  %v4895_v20 = vmax.f32 %v4607_v0, 0.0  ;;  %v6222_v31 = vmax.f32 %v5934_v54, 0.0  ;;  %v4030_v39 = vsub.f32 %v17683_v60, %v17665_v17  ;;  %v9356_v0 = vld [vmem:[%s17374_s9 + $0x810] sm:$0xff]  ;;  %v9630_v54 = vld [vmem:[%s17374_s9 + $0x10a0] sm:$0xff] }
 0x79b   : > { %v10700_v58 = vpack.c.bf16 %v3558_v59, %v3557_v5  ;;  %v5007_v7 = vmax.f32 %v4719_v14, 0.0  ;;  %v6046_v6 = vsub.f32 1.0, %v5758_v42  ;;  %v5357_v10 = vsub.f32 %v17684_v33, %v17666_v12  ;;  %v9492_v53 = vld [vmem:[%s17374_s9 + $0xc50] sm:$0xff]  ;;  %v9766_v59 = vld [vmem:[%s17374_s9 + $0x14e0] sm:$0xff] }
 0x79c   : > { %v6623_v19 = vmul.f32 %v6335_v41, %v5008_v57  ;;  %v6510_v63 = vmul.f32 %v6222_v31, %v4895_v20  ;;  %v4318_v5 = vand.u32 2147483647, %v4030_v39  ;;  %v1479_v36 = vmul.f32 %v11915_v23, %v1333_v18  ;;  %v9767_v41 = vld [vmem:[%s17374_s9 + $0x14e8] sm:$0xff]  ;;  %v15678_v31 = vpop.permute.xlu0 %3843 }
 0x79d   : > { %10701 = vmatpush1.bf16.msra.mxu0 %v10700_v58  ;;  %v6334_v51 = vmax.f32 %v6046_v6, 0.0  ;;  %v5645_v28 = vand.u32 2147483647, %v5357_v10  ;;  %v1480_v13 = vmul.f32 %v11915_v23, %v1334_v40  ;;  %v1758_v45 = vmul.f32 %v9355_v26, %v11913_v8  ;;  %v9903_v20 = vld [vmem:[%s17374_s9 + $0x1928] sm:$0xff]  ;;  %17685 = vst [vmem:[#allocation49_spill] sm:$0xff] %v15678_v31  ;;  %v9904_v6 = vld [vmem:[%s17374_s9 + $0x1930] sm:$0xff] }
 0x79e   : > { %6974 = vmatprep.mubr.f32.mxu1 %v6623_v19  ;;  %7359 = vmatprep.mubr.f32.mxu0 %v6510_v63  ;;  %v4606_v57 = vsub.f32 1.0, %v4318_v5  ;;  %v1759_v14 = vmul.f32 %v9356_v0, %v11913_v8  ;;  %v2174_v42 = vmul.f32 %v9492_v53, %v11980_v46  ;;  %v2175_v18 = vmul.f32 %v9493_v35, %v11980_v46  ;;  %v15687_v19 = vpop.permute.xlu1 %5175 }
 0x79f   : > { %v6622_v39 = vmul.f32 %v6334_v51, %v5007_v7  ;;  %10702 = vmatprep.subr.bf16.mxu0 %v17588_v24  ;;  %v5933_v40 = vsub.f32 1.0, %v5645_v28  ;;  %v1895_v26 = vadd.f32 %v1758_v45, %v1479_v36  ;;  %v2590_v58 = vmul.f32 %v9629_v34, %v12023_v50  ;;  %17686 = vst [vmem:[#allocation50_spill] sm:$0xff] %v15687_v19 }
 0x7a0   : > { %v4894_v10 = vmax.f32 %v4606_v57, 0.0  ;;  %v1896_v0 = vadd.f32 %v1759_v14, %v1480_v13  ;;  %v2591_v53 = vmul.f32 %v9630_v54, %v12023_v50  ;;  %v3006_v35 = vmul.f32 %v9766_v59, %v12079_v37  ;;  %v17687_v59 = vld [vmem:[#allocation33_spill] sm:$0xff]  ;;  %v17688_v14 = vld [vmem:[#allocation22_spill] sm:$0xff] }
 0x7a1   : > { %6975 = vmatmul.mubr.f32.gmra.mrb[56].mxu1 %v6622_v39  ;;  %v6221_v7 = vmax.f32 %v5933_v40, 0.0  ;;  %v2311_v63 = vadd.f32 %v2174_v42, %v1895_v26  ;;  %v3007_v5 = vmul.f32 %v9767_v41, %v12079_v37  ;;  %v3422_v36 = vmul.f32 %v9903_v20, %v12125_v1 }
 0x7a2   : > { %v2312_v34 = vadd.f32 %v2175_v18, %v1896_v0  ;;  %v3423_v51 = vmul.f32 %v9904_v6, %v12125_v1  ;;  %v4153_v28 = vsub.f32 %v15678_v31, %v11873_v29  ;;  %v5480_v13 = vsub.f32 %v15687_v19, %v11897_v48 }
 0x7a3   : > { %v6509_v45 = vmul.f32 %v6221_v7, %v4894_v10  ;;  %v2727_v54 = vadd.f32 %v2590_v58, %v2311_v63  ;;  %v4040_v57 = vsub.f32 %v17687_v59, %v17663_v62  ;;  %v5367_v42 = vsub.f32 %v17688_v14, %v17664_v2 }
 0x7a4   : > { %v2728_v41 = vadd.f32 %v2591_v53, %v2312_v34  ;;  %v4441_v39 = vand.u32 2147483647, %v4153_v28  ;;  %v5768_v20 = vand.u32 2147483647, %v5480_v13  ;;  %v4152_v18 = vsub.f32 %v15678_v31, %v11870_v27 }
 0x7a5   : > { %7360 = vmatmul.mubr.f32.gmra.mrb[44].mxu0 %v6509_v45  ;;  %v3143_v40 = vadd.f32 %v3006_v35, %v2727_v54  ;;  %v4328_v26 = vand.u32 2147483647, %v4040_v57  ;;  %v5655_v6 = vand.u32 2147483647, %v5367_v42  ;;  %v5479_v10 = vsub.f32 %v15687_v19, %v11894_v47  ;;  %v1335_v35 = vld [vmem:[%s17374_s9 + $0x3d0] sm:$0xff]  ;;  %v9358_v42 = vld [vmem:[%s17374_s9 + $0x820] sm:$0xff] }
 0x7a6   : > { %v3144_v58 = vadd.f32 %v3007_v5, %v2728_v41  ;;  %v4729_v0 = vsub.f32 1.0, %v4441_v39  ;;  %v6056_v7 = vsub.f32 1.0, %v5768_v20  ;;  %v4440_v63 = vand.u32 2147483647, %v4152_v18  ;;  %v9494_v20 = vld [vmem:[%s17374_s9 + $0xc60] sm:$0xff]  ;;  %v9495_v18 = vld [vmem:[%s17374_s9 + $0xc68] sm:$0xff] }
 0x7a7   : > { %v3559_v33 = vadd.f32 %v3422_v36, %v3143_v40  ;;  %v4616_v60 = vsub.f32 1.0, %v4328_v26  ;;  %v5943_v56 = vsub.f32 1.0, %v5655_v6  ;;  %v5767_v53 = vand.u32 2147483647, %v5479_v10  ;;  %v1336_v36 = vld [vmem:[%s17374_s9 + $0x3d8] sm:$0xff] }
 0x7a8   : > { %v3560_v34 = vadd.f32 %v3423_v51, %v3144_v58  ;;  %v5017_v28 = vmax.f32 %v4729_v0, 0.0  ;;  %v6344_v13 = vmax.f32 %v6056_v7, 0.0  ;;  %v4728_v32 = vsub.f32 1.0, %v4440_v63  ;;  %v9357_v51 = vld [vmem:[%s17374_s9 + $0x818] sm:$0xff]  ;;  %v9632_v63 = vld [vmem:[%s17374_s9 + $0x10b0] sm:$0xff] }
 0x7a9   : > { %v4904_v45 = vmax.f32 %v4616_v60, 0.0  ;;  %v6231_v54 = vmax.f32 %v5943_v56, 0.0  ;;  %v6055_v57 = vsub.f32 1.0, %v5767_v53  ;;  %v4039_v5 = vsub.f32 %v17687_v59, %v17665_v17  ;;  %v9768_v53 = vld [vmem:[%s17374_s9 + $0x14f0] sm:$0xff] }
 0x7aa   : > { %v10703_v41 = vpack.c.bf16 %v3560_v34, %v3559_v33  ;;  %v6632_v39 = vmul.f32 %v6344_v13, %v5017_v28  ;;  %v5016_v60 = vmax.f32 %v4728_v32, 0.0  ;;  %v5366_v56 = vsub.f32 %v17688_v14, %v17666_v12  ;;  %v9631_v32 = vld [vmem:[%s17374_s9 + $0x10a8] sm:$0xff]  ;;  %v9769_v34 = vld [vmem:[%s17374_s9 + $0x14f8] sm:$0xff] }
 0x7ab   : > { %v6519_v40 = vmul.f32 %v6231_v54, %v4904_v45  ;;  %v6343_v26 = vmax.f32 %v6055_v57, 0.0  ;;  %v4327_v6 = vand.u32 2147483647, %v4039_v5  ;;  %v1481_v10 = vmul.f32 %v11915_v23, %v1335_v35  ;;  %v9905_v54 = vld [vmem:[%s17374_s9 + $0x1938] sm:$0xff]  ;;  %v15748_v57 = vpop.permute.xlu0 %5179 }
 0x7ac   : > { %10704 = vmatpush1.bf16.msra.mxu0 %v10703_v41  ;;  %6979 = vmatprep.mubr.f32.mxu1 %v6632_v39  ;;  %v5654_v33 = vand.u32 2147483647, %v5366_v56  ;;  %v1482_v58 = vmul.f32 %v11915_v23, %v1336_v36  ;;  %v1760_v0 = vmul.f32 %v9357_v51, %v11913_v8  ;;  %v1761_v7 = vmul.f32 %v9358_v42, %v11913_v8  ;;  %v9906_v41 = vld [vmem:[%s17374_s9 + $0x1940] sm:$0xff] }
 0x7ad   : > { %7364 = vmatprep.mubr.f32.mxu0 %v6519_v40  ;;  %v6631_v28 = vmul.f32 %v6343_v26, %v5016_v60  ;;  %10705 = vmatprep.subr.bf16.mxu0 %v17588_v24  ;;  %v4615_v13 = vsub.f32 1.0, %v4327_v6  ;;  %v2176_v35 = vmul.f32 %v9494_v20, %v11980_v46  ;;  %v2177_v45 = vmul.f32 %v9495_v18, %v11980_v46  ;;  %v15757_v18 = vpop.permute.xlu1 %3848 }
 0x7ae   : > { %17689 = vst [vmem:[#allocation51_spill] sm:$0xff] %v15748_v57  ;;  %v5942_v5 = vsub.f32 1.0, %v5654_v33  ;;  %v1897_v36 = vadd.f32 %v1760_v0, %v1481_v10  ;;  %v1898_v51 = vadd.f32 %v1761_v7, %v1482_v58  ;;  %v2592_v42 = vmul.f32 %v9631_v32, %v12023_v50  ;;  %17690 = vst [vmem:[#allocation52_spill] sm:$0xff] %v15757_v18  ;;  %v17691_v0 = vld [vmem:[#allocation41_spill] sm:$0xff] }
 0x7af   : > { %6980 = vmatmul.mubr.f32.gmra.mrb[58].mxu1 %v6631_v28  ;;  %v4903_v39 = vmax.f32 %v4615_v13, 0.0  ;;  %v2593_v60 = vmul.f32 %v9632_v63, %v12023_v50  ;;  %v3008_v56 = vmul.f32 %v9768_v53, %v12079_v37  ;;  %v3009_v20 = vmul.f32 %v9769_v34, %v12079_v37  ;;  %v17692_v28 = vld [vmem:[#allocation36_spill] sm:$0xff] }
 0x7b0   : > { %v6230_v40 = vmax.f32 %v5942_v5, 0.0  ;;  %v2313_v26 = vadd.f32 %v2176_v35, %v1897_v36  ;;  %v2314_v6 = vadd.f32 %v2177_v45, %v1898_v51  ;;  %v3424_v10 = vmul.f32 %v9905_v54, %v12125_v1 }
 0x7b1   : > { %v3425_v32 = vmul.f32 %v9906_v41, %v12125_v1  ;;  %v4162_v33 = vsub.f32 %v15757_v18, %v11873_v29  ;;  %v5489_v58 = vsub.f32 %v15748_v57, %v11897_v48  ;;  %v4049_v7 = vsub.f32 %v17691_v0, %v17663_v62 }
 0x7b2   : > { %v6518_v63 = vmul.f32 %v6230_v40, %v4903_v39  ;;  %v2729_v53 = vadd.f32 %v2592_v42, %v2313_v26  ;;  %v2730_v34 = vadd.f32 %v2593_v60, %v2314_v6  ;;  %v5376_v13 = vsub.f32 %v17692_v28, %v17664_v2 }
 0x7b3   : > { %v4450_v35 = vand.u32 2147483647, %v4162_v33  ;;  %v5777_v45 = vand.u32 2147483647, %v5489_v58  ;;  %v4337_v54 = vand.u32 2147483647, %v4049_v7  ;;  %v4161_v5 = vsub.f32 %v15757_v18, %v11870_v27 }
 0x7b4   : > { %7365 = vmatmul.mubr.f32.gmra.mrb[46].mxu0 %v6518_v63  ;;  %v3145_v36 = vadd.f32 %v3008_v56, %v2729_v53  ;;  %v3146_v51 = vadd.f32 %v3009_v20, %v2730_v34  ;;  %v5664_v41 = vand.u32 2147483647, %v5376_v13  ;;  %v5488_v14 = vsub.f32 %v15748_v57, %v11894_v47  ;;  %v1337_v58 = vld [vmem:[%s17374_s9 + $0x3e0] sm:$0xff]  ;;  %v1338_v53 = vld [vmem:[%s17374_s9 + $0x3e8] sm:$0xff] }
 0x7b5   : > { %v4738_v59 = vsub.f32 1.0, %v4450_v35  ;;  %v6065_v39 = vsub.f32 1.0, %v5777_v45  ;;  %v4625_v42 = vsub.f32 1.0, %v4337_v54  ;;  %v4449_v60 = vand.u32 2147483647, %v4161_v5  ;;  %v15790_v45 = vpop.permute.xlu1 %3853 }
 0x7b6   : > { %v3561_v40 = vadd.f32 %v3424_v10, %v3145_v36  ;;  %v3562_v26 = vadd.f32 %v3425_v32, %v3146_v51  ;;  %v5952_v6 = vsub.f32 1.0, %v5664_v41  ;;  %v5776_v33 = vand.u32 2147483647, %v5488_v14  ;;  %v9359_v14 = vld [vmem:[%s17374_s9 + $0x828] sm:$0xff]  ;;  %v9496_v32 = vld [vmem:[%s17374_s9 + $0xc70] sm:$0xff]  ;;  %17693 = vst [vmem:[#allocation53_spill] sm:$0xff] %v15790_v45 }
 0x7b7   : > { %v5026_v7 = vmax.f32 %v4738_v59, 0.0  ;;  %v6353_v63 = vmax.f32 %v6065_v39, 0.0  ;;  %v4913_v56 = vmax.f32 %v4625_v42, 0.0  ;;  %v4737_v20 = vsub.f32 1.0, %v4449_v60  ;;  %v9360_v59 = vld [vmem:[%s17374_s9 + $0x830] sm:$0xff]  ;;  %v9497_v41 = vld [vmem:[%s17374_s9 + $0xc78] sm:$0xff] }
 0x7b8   : > { %v10706_v34 = vpack.c.bf16 %v3562_v26, %v3561_v40  ;;  %v6240_v13 = vmax.f32 %v5952_v6, 0.0  ;;  %v6064_v35 = vsub.f32 1.0, %v5776_v33  ;;  %v4048_v10 = vsub.f32 %v17691_v0, %v17665_v17  ;;  %v9633_v39 = vld [vmem:[%s17374_s9 + $0x10b8] sm:$0xff]  ;;  %v9634_v6 = vld [vmem:[%s17374_s9 + $0x10c0] sm:$0xff] }
 0x7b9   : > { %v6641_v54 = vmul.f32 %v6353_v63, %v5026_v7  ;;  %v5025_v5 = vmax.f32 %v4737_v20, 0.0  ;;  %v5375_v36 = vsub.f32 %v17692_v28, %v17666_v12  ;;  %v1483_v51 = vmul.f32 %v11915_v23, %v1337_v58  ;;  %v9771_v20 = vld [vmem:[%s17374_s9 + $0x1508] sm:$0xff] }
 0x7ba   : > { %10707 = vmatpush1.bf16.msra.mxu0 %v10706_v34  ;;  %v6528_v42 = vmul.f32 %v6240_v13, %v4913_v56  ;;  %v6352_v60 = vmax.f32 %v6064_v35, 0.0  ;;  %v4336_v40 = vand.u32 2147483647, %v4048_v10  ;;  %v1484_v26 = vmul.f32 %v11915_v23, %v1338_v53  ;;  %v9770_v56 = vld [vmem:[%s17374_s9 + $0x1500] sm:$0xff]  ;;  %v9907_v53 = vld [vmem:[%s17374_s9 + $0x1948] sm:$0xff] }
 0x7bb   : > { %6984 = vmatprep.mubr.f32.mxu1 %v6641_v54  ;;  %10708 = vmatprep.subr.bf16.mxu0 %v17588_v24  ;;  %v5663_v33 = vand.u32 2147483647, %v5375_v36  ;;  %v1762_v58 = vmul.f32 %v9359_v14, %v11913_v8  ;;  %v1763_v7 = vmul.f32 %v9360_v59, %v11913_v8  ;;  %v2178_v63 = vmul.f32 %v9496_v32, %v11980_v46  ;;  %v9908_v14 = vld [vmem:[%s17374_s9 + $0x1950] sm:$0xff] }
 0x7bc   : > { %7369 = vmatprep.mubr.f32.mxu0 %v6528_v42  ;;  %v6640_v34 = vmul.f32 %v6352_v60, %v5025_v5  ;;  %v4624_v13 = vsub.f32 1.0, %v4336_v40  ;;  %v2179_v35 = vmul.f32 %v9497_v41, %v11980_v46  ;;  %v2594_v10 = vmul.f32 %v9633_v39, %v12023_v50  ;;  %v15827_v41 = vpop.permute.xlu1 %5183 }
 0x7bd   : > { %v5951_v59 = vsub.f32 1.0, %v5663_v33  ;;  %v1899_v32 = vadd.f32 %v1762_v58, %v1483_v51  ;;  %v1900_v54 = vadd.f32 %v1763_v7, %v1484_v26  ;;  %v2595_v36 = vmul.f32 %v9634_v6, %v12023_v50  ;;  %17694 = vst [vmem:[#allocation54_spill] sm:$0xff] %v15827_v41  ;;  %v17695_v6 = vld [vmem:[#allocation32_spill] sm:$0xff]  ;;  %v17696_v58 = vld [vmem:[#allocation42_spill] sm:$0xff] }
 0x7be   : > { %6985 = vmatmul.mubr.f32.gmra.mrb[60].mxu1 %v6640_v34  ;;  %v4912_v28 = vmax.f32 %v4624_v13, 0.0  ;;  %v3010_v0 = vmul.f32 %v9770_v56, %v12079_v37  ;;  %v3011_v5 = vmul.f32 %v9771_v20, %v12079_v37  ;;  %v3426_v42 = vmul.f32 %v9907_v53, %v12125_v1 }
 0x7bf   : > { %v6239_v39 = vmax.f32 %v5951_v59, 0.0  ;;  %v2315_v60 = vadd.f32 %v2178_v63, %v1899_v32  ;;  %v2316_v40 = vadd.f32 %v2179_v35, %v1900_v54  ;;  %v3427_v57 = vmul.f32 %v9908_v14, %v12125_v1 }
 0x7c0   : > { %v4171_v51 = vsub.f32 %v15790_v45, %v11873_v29  ;;  %v5498_v26 = vsub.f32 %v15827_v41, %v11897_v48  ;;  %v4058_v33 = vsub.f32 %v17695_v6, %v17663_v62  ;;  %v5385_v7 = vsub.f32 %v17696_v58, %v17664_v2 }
 0x7c1   : > { %v6527_v56 = vmul.f32 %v6239_v39, %v4912_v28  ;;  %v2731_v20 = vadd.f32 %v2594_v10, %v2315_v60  ;;  %v2732_v53 = vadd.f32 %v2595_v36, %v2316_v40  ;;  %v4170_v63 = vsub.f32 %v15790_v45, %v11870_v27  ;;  %v1339_v40 = vld [vmem:[%s17374_s9 + $0x3f0] sm:$0xff] }
 0x7c2   : > { %v4459_v34 = vand.u32 2147483647, %v4171_v51  ;;  %v5786_v13 = vand.u32 2147483647, %v5498_v26  ;;  %v4346_v35 = vand.u32 2147483647, %v4058_v33  ;;  %v5497_v14 = vsub.f32 %v15827_v41, %v11894_v47 }
 0x7c3   : > { %7370 = vmatmul.mubr.f32.gmra.mrb[48].mxu0 %v6527_v56  ;;  %v3147_v59 = vadd.f32 %v3010_v0, %v2731_v20  ;;  %v3148_v32 = vadd.f32 %v3011_v5, %v2732_v53  ;;  %v5673_v54 = vand.u32 2147483647, %v5385_v7  ;;  %v4458_v18 = vand.u32 2147483647, %v4170_v63  ;;  %v1340_v0 = vld [vmem:[%s17374_s9 + $0x3f8] sm:$0xff] }
 0x7c4   : > { %v4747_v19 = vsub.f32 1.0, %v4459_v34  ;;  %v6074_v31 = vsub.f32 1.0, %v5786_v13  ;;  %v4634_v15 = vsub.f32 1.0, %v4346_v35  ;;  %v5785_v28 = vand.u32 2147483647, %v5497_v14  ;;  %v9361_v5 = vld [vmem:[%s17374_s9 + $0x838] sm:$0xff] }
 0x7c5   : > { %v3563_v10 = vadd.f32 %v3426_v42, %v3147_v59  ;;  %v3564_v36 = vadd.f32 %v3427_v57, %v3148_v32  ;;  %v5961_v39 = vsub.f32 1.0, %v5673_v54  ;;  %v4746_v60 = vsub.f32 1.0, %v4458_v18  ;;  %v9499_v34 = vld [vmem:[%s17374_s9 + $0xc88] sm:$0xff]  ;;  %v9636_v54 = vld [vmem:[%s17374_s9 + $0x10d0] sm:$0xff] }
 0x7c6   : > { %v5035_v51 = vmax.f32 %v4747_v19, 0.0  ;;  %v6362_v26 = vmax.f32 %v6074_v31, 0.0  ;;  %v4922_v33 = vmax.f32 %v4634_v15, 0.0  ;;  %v6073_v56 = vsub.f32 1.0, %v5785_v28  ;;  %v9362_v31 = vld [vmem:[%s17374_s9 + $0x840] sm:$0xff]  ;;  %v9635_v13 = vld [vmem:[%s17374_s9 + $0x10c8] sm:$0xff] }
 0x7c7   : > { %v10709_v42 = vpack.c.bf16 %v3564_v36, %v3563_v10  ;;  %v6249_v57 = vmax.f32 %v5961_v39, 0.0  ;;  %v5034_v7 = vmax.f32 %v4746_v60, 0.0  ;;  %v4057_v18 = vsub.f32 %v17695_v6, %v17665_v17  ;;  %v9498_v15 = vld [vmem:[%s17374_s9 + $0xc80] sm:$0xff]  ;;  %v9772_v28 = vld [vmem:[%s17374_s9 + $0x1510] sm:$0xff] }
 0x7c8   : > { %v6650_v19 = vmul.f32 %v6362_v26, %v5035_v51  ;;  %v6361_v20 = vmax.f32 %v6073_v56, 0.0  ;;  %v5384_v53 = vsub.f32 %v17696_v58, %v17666_v12  ;;  %v1485_v63 = vmul.f32 %v11915_v23, %v1339_v40  ;;  %v9773_v40 = vld [vmem:[%s17374_s9 + $0x1518] sm:$0xff]  ;;  %v15885_v26 = vpop.permute.xlu1 %5187 }
 0x7c9   : > { %10710 = vmatpush1.bf16.msra.mxu0 %v10709_v42  ;;  %v6537_v35 = vmul.f32 %v6249_v57, %v4922_v33  ;;  %v4345_v14 = vand.u32 2147483647, %v4057_v18  ;;  %v1486_v59 = vmul.f32 %v11915_v23, %v1340_v0  ;;  %v1764_v32 = vmul.f32 %v9361_v5, %v11913_v8  ;;  %v9909_v51 = vld [vmem:[%s17374_s9 + $0x1958] sm:$0xff]  ;;  %17697 = vst [vmem:[#allocation55_spill] sm:$0xff] %v15885_v26  ;;  %v15887_v33 = vpop.permute.xlu0 %3858  ;;  %v9910_v42 = vld [vmem:[%s17374_s9 + $0x1960] sm:$0xff] }
 0x7ca   : > { %6989 = vmatprep.mubr.f32.mxu1 %v6650_v19  ;;  %v6649_v10 = vmul.f32 %v6361_v20, %v5034_v7  ;;  %10711 = vmatprep.subr.bf16.mxu0 %v17588_v24  ;;  %v5672_v36 = vand.u32 2147483647, %v5384_v53  ;;  %v1765_v39 = vmul.f32 %v9362_v31, %v11913_v8  ;;  %v2180_v60 = vmul.f32 %v9498_v15, %v11980_v46 }
 0x7cb   : > { %17698 = vst [vmem:[#allocation56_spill] sm:$0xff] %v15887_v33  ;;  %7374 = vmatprep.mubr.f32.mxu0 %v6537_v35  ;;  %v4633_v56 = vsub.f32 1.0, %v4345_v14  ;;  %v1901_v24 = vadd.f32 %v1764_v32, %v1485_v63  ;;  %v2181_v0 = vmul.f32 %v9499_v34, %v11980_v46  ;;  %v2596_v5 = vmul.f32 %v9635_v13, %v12023_v50 }
 0x7cc   : > { %6990 = vmatmul.mubr.f32.gmra.mrb[62].mxu1 %v6649_v10  ;;  %v5960_v57 = vsub.f32 1.0, %v5672_v36  ;;  %v1902_v7 = vadd.f32 %v1765_v39, %v1486_v59  ;;  %v2597_v18 = vmul.f32 %v9636_v54, %v12023_v50  ;;  %v3012_v31 = vmul.f32 %v9772_v28, %v12079_v37 }
 0x7cd   : > { %v4921_v15 = vmax.f32 %v4633_v56, 0.0  ;;  %v2317_v19 = vadd.f32 %v2180_v60, %v1901_v24  ;;  %v3013_v20 = vmul.f32 %v9773_v40, %v12079_v37  ;;  %v3428_v53 = vmul.f32 %v9909_v51, %v12125_v1  ;;  %v15909_v60 = vpop.permute.xlu1 %3863  ;;  %v15913_v6 = vpop.permute.xlu0 %5191 }
 0x7ce   : > { %v6248_v63 = vmax.f32 %v5960_v57, 0.0  ;;  %v2318_v34 = vadd.f32 %v2181_v0, %v1902_v7  ;;  %v3429_v13 = vmul.f32 %v9910_v42, %v12125_v1  ;;  %v4180_v35 = vsub.f32 %v15887_v33, %v11873_v29  ;;  %17699 = vst [vmem:[#allocation57_spill] sm:$0xff] %v15909_v60  ;;  %17700 = vst [vmem:[#allocation58_spill] sm:$0xff] %v15913_v6 }
 0x7cf   : > { %v2733_v14 = vadd.f32 %v2596_v5, %v2317_v19  ;;  %v5507_v59 = vsub.f32 %v15885_v26, %v11897_v48  ;;  %v4067_v32 = vsub.f32 %v14672_v25, %v17663_v62  ;;  %v5394_v54 = vsub.f32 %v14704_v21, %v17664_v2 }
 0x7d0   : > { %v6536_v28 = vmul.f32 %v6248_v63, %v4921_v15  ;;  %v2734_v10 = vadd.f32 %v2597_v18, %v2318_v34  ;;  %v4468_v36 = vand.u32 2147483647, %v4180_v35  ;;  %v4179_v39 = vsub.f32 %v15887_v33, %v11870_v27 }
 0x7d1   : > { %v3149_v40 = vadd.f32 %v3012_v31, %v2733_v14  ;;  %v5795_v51 = vand.u32 2147483647, %v5507_v59  ;;  %v4355_v56 = vand.u32 2147483647, %v4067_v32  ;;  %v5682_v24 = vand.u32 2147483647, %v5394_v54 }
 0x7d2   : > { %7375 = vmatmul.mubr.f32.gmra.mrb[50].mxu0 %v6536_v28  ;;  %v3150_v0 = vadd.f32 %v3013_v20, %v2734_v10  ;;  %v4756_v5 = vsub.f32 1.0, %v4468_v36  ;;  %v4467_v42 = vand.u32 2147483647, %v4179_v39  ;;  %v5506_v57 = vsub.f32 %v15885_v26, %v11894_v47  ;;  %v15919_v10 = vpop.permute.xlu1 %3868 }
 0x7d3   : > { %v3565_v7 = vadd.f32 %v3428_v53, %v3149_v40  ;;  %v6083_v15 = vsub.f32 1.0, %v5795_v51  ;;  %v4643_v18 = vsub.f32 1.0, %v4355_v56  ;;  %v5970_v19 = vsub.f32 1.0, %v5682_v24  ;;  %17701 = vst [vmem:[#allocation59_spill] sm:$0xff] %v15919_v10 }
 0x7d4   : > { %v3566_v63 = vadd.f32 %v3429_v13, %v3150_v0  ;;  %v5044_v34 = vmax.f32 %v4756_v5, 0.0  ;;  %v4755_v35 = vsub.f32 1.0, %v4467_v42  ;;  %v5794_v58 = vand.u32 2147483647, %v5506_v57 }
 0x7d5   : > { %v6371_v31 = vmax.f32 %v6083_v15, 0.0  ;;  %v4931_v14 = vmax.f32 %v4643_v18, 0.0  ;;  %v6258_v59 = vmax.f32 %v5970_v19, 0.0  ;;  %v4066_v20 = vsub.f32 %v14672_v25, %v17665_v17 }
 0x7d6   : > { %v10712_v32 = vpack.c.bf16 %v3566_v63, %v3565_v7  ;;  %v5043_v54 = vmax.f32 %v4755_v35, 0.0  ;;  %v6082_v28 = vsub.f32 1.0, %v5794_v58  ;;  %v5393_v53 = vsub.f32 %v14704_v21, %v17666_v12 }
 0x7d7   : > { %v6659_v13 = vmul.f32 %v6371_v31, %v5044_v34  ;;  %v6546_v36 = vmul.f32 %v6258_v59, %v4931_v14  ;;  %v4354_v39 = vand.u32 2147483647, %v4066_v20  ;;  %v4189_v40 = vsub.f32 %v15909_v60, %v11873_v29 }
 0x7d8   : > { %10713 = vmatpush1.bf16.msra.mxu0 %v10712_v32  ;;  %v6370_v51 = vmax.f32 %v6082_v28, 0.0  ;;  %v5681_v56 = vand.u32 2147483647, %v5393_v53  ;;  %v5516_v24 = vsub.f32 %v15913_v6, %v11897_v48  ;;  %v4076_v58 = vsub.f32 %v14816_v43, %v17663_v62  ;;  %v15933_v28 = vpop.permute.xlu1 %5195 }
 0x7d9   : > { %6994 = vmatprep.mubr.f32.mxu1 %v6659_v13  ;;  %7379 = vmatprep.mubr.f32.mxu0 %v6546_v36  ;;  %v4642_v0 = vsub.f32 1.0, %v4354_v39  ;;  %v4477_v5 = vand.u32 2147483647, %v4189_v40  ;;  %v5403_v42 = vsub.f32 %v14822_v49, %v17664_v2  ;;  %v4188_v57 = vsub.f32 %v15909_v60, %v11870_v27  ;;  %17702 = vst [vmem:[#allocation60_spill] sm:$0xff] %v15933_v28 }
 0x7da   : > { %v6658_v7 = vmul.f32 %v6370_v51, %v5043_v54  ;;  %v5969_v15 = vsub.f32 1.0, %v5681_v56  ;;  %v5804_v18 = vand.u32 2147483647, %v5516_v24  ;;  %v4364_v19 = vand.u32 2147483647, %v4076_v58 }
 0x7db   : > { %v4930_v63 = vmax.f32 %v4642_v0, 0.0  ;;  %v4765_v34 = vsub.f32 1.0, %v4477_v5  ;;  %v5691_v35 = vand.u32 2147483647, %v5403_v42  ;;  %v4476_v31 = vand.u32 2147483647, %v4188_v57 }
 0x7dc   : > { %6995 = vmatmul.mubr.f32.gmra.mrb[64].mxu1 %v6658_v7  ;;  %v6257_v14 = vmax.f32 %v5969_v15, 0.0  ;;  %v6092_v59 = vsub.f32 1.0, %v5804_v18  ;;  %v4652_v20 = vsub.f32 1.0, %v4364_v19  ;;  %v5515_v32 = vsub.f32 %v15913_v6, %v11894_v47 }
 0x7dd   : > { %v5053_v53 = vmax.f32 %v4765_v34, 0.0  ;;  %v5979_v13 = vsub.f32 1.0, %v5691_v35  ;;  %v4764_v36 = vsub.f32 1.0, %v4476_v31  ;;  %v4075_v54 = vsub.f32 %v14816_v43, %v17665_v17 }
 0x7de   : > { %v6545_v39 = vmul.f32 %v6257_v14, %v4930_v63  ;;  %v6380_v40 = vmax.f32 %v6092_v59, 0.0  ;;  %v4940_v51 = vmax.f32 %v4652_v20, 0.0  ;;  %v5803_v56 = vand.u32 2147483647, %v5515_v32 }
 0x7df   : > { %v6267_v24 = vmax.f32 %v5979_v13, 0.0  ;;  %v5052_v58 = vmax.f32 %v4764_v36, 0.0  ;;  %v4363_v0 = vand.u32 2147483647, %v4075_v54  ;;  %v5402_v5 = vsub.f32 %v14822_v49, %v17666_v12 }
 0x7e0   : > { %7380 = vmatmul.mubr.f32.gmra.mrb[52].mxu0 %v6545_v39  ;;  %v6668_v42 = vmul.f32 %v6380_v40, %v5053_v53  ;;  %v6091_v57 = vsub.f32 1.0, %v5803_v56  ;;  %v4198_v7 = vsub.f32 %v15919_v10, %v11873_v29  ;;  %v5525_v15 = vsub.f32 %v15933_v28, %v11897_v48 }
 0x7e1   : > { %v6555_v18 = vmul.f32 %v6267_v24, %v4940_v51  ;;  %v4651_v19 = vsub.f32 1.0, %v4363_v0  ;;  %v5690_v63 = vand.u32 2147483647, %v5402_v5  ;;  %v4085_v34 = vsub.f32 %v15135_v61, %v17663_v62 }
 0x7e2   : > { %6999 = vmatprep.mubr.f32.mxu1 %v6668_v42  ;;  %v6379_v35 = vmax.f32 %v6091_v57, 0.0  ;;  %v4486_v31 = vand.u32 2147483647, %v4198_v7  ;;  %v5813_v14 = vand.u32 2147483647, %v5525_v15  ;;  %v5412_v59 = vsub.f32 %v15128_v4, %v17664_v2 }
 0x7e3   : > { %7384 = vmatprep.mubr.f32.mxu0 %v6555_v18  ;;  %v4939_v20 = vmax.f32 %v4651_v19, 0.0  ;;  %v5978_v32 = vsub.f32 1.0, %v5690_v63  ;;  %v4373_v29 = vand.u32 2147483647, %v4085_v34  ;;  %v4197_v48 = vsub.f32 %v15919_v10, %v11870_v27 }
 0x7e4   : > { %v6667_v53 = vmul.f32 %v6379_v35, %v5052_v58  ;;  %v4774_v13 = vsub.f32 1.0, %v4486_v31  ;;  %v6101_v36 = vsub.f32 1.0, %v5813_v14  ;;  %v5700_v54 = vand.u32 2147483647, %v5412_v59 }
 0x7e5   : > { %v6266_v39 = vmax.f32 %v5978_v32, 0.0  ;;  %v4661_v40 = vsub.f32 1.0, %v4373_v29  ;;  %v4485_v51 = vand.u32 2147483647, %v4197_v48  ;;  %v5524_v56 = vsub.f32 %v15933_v28, %v11894_v47 }
 0x7e6   : > { %7000 = vmatmul.mubr.f32.gmra.mrb[66].mxu1 %v6667_v53  ;;  %v5062_v24 = vmax.f32 %v4774_v13, 0.0  ;;  %v6389_v0 = vmax.f32 %v6101_v36, 0.0  ;;  %v5988_v5 = vsub.f32 1.0, %v5700_v54  ;;  %v4083_v42 = vsub.f32 %v15135_v61, %v11875_v30 }
 0x7e7   : > { %v6554_v57 = vmul.f32 %v6266_v39, %v4939_v20  ;;  %v4949_v7 = vmax.f32 %v4661_v40, 0.0  ;;  %v4773_v27 = vsub.f32 1.0, %v4485_v51  ;;  %v5812_v58 = vand.u32 2147483647, %v5524_v56 }
 0x7e8   : > { %v6677_v15 = vmul.f32 %v6389_v0, %v5062_v24  ;;  %v6276_v18 = vmax.f32 %v5988_v5, 0.0  ;;  %v4371_v19 = vand.u32 2147483647, %v4083_v42  ;;  %v5410_v63 = vsub.f32 %v15128_v4, %v11899_v52 }
 0x7e9   : > { %7385 = vmatmul.mubr.f32.gmra.mrb[54].mxu0 %v6554_v57  ;;  %v5061_v34 = vmax.f32 %v4773_v27, 0.0  ;;  %v6100_v47 = vsub.f32 1.0, %v5812_v58  ;;  %v4084_v35 = vsub.f32 %v15135_v61, %v17665_v17  ;;  %v5411_v31 = vsub.f32 %v15128_v4, %v17666_v12 }
 0x7ea   : > { %7004 = vmatprep.mubr.f32.mxu1 %v6677_v15  ;;  %v6564_v14 = vmul.f32 %v6276_v18, %v4949_v7  ;;  %v4659_v59 = vsub.f32 1.0, %v4371_v19  ;;  %v5698_v20 = vand.u32 2147483647, %v5410_v63  ;;  %v4094_v32 = vsub.f32 %v15163_v3, %v17663_v62  ;;  %v1343_v19 = vld [vmem:[%s17374_s9 + $0x410] sm:$0xff]  ;;  %v1344_v63 = vld [vmem:[%s17374_s9 + $0x418] sm:$0xff] }
 0x7eb   : > { %v6388_v29 = vmax.f32 %v6100_v47, 0.0  ;;  %v4372_v48 = vand.u32 2147483647, %v4084_v35  ;;  %v5699_v53 = vand.u32 2147483647, %v5411_v31  ;;  %v5421_v13 = vsub.f32 %v15205_v9, %v17664_v2 }
 0x7ec   : > { %7389 = vmatprep.mubr.f32.mxu0 %v6564_v14  ;;  %v4947_v36 = vmax.f32 %v4659_v59, 0.0  ;;  %v5986_v54 = vsub.f32 1.0, %v5698_v20  ;;  %v4382_v39 = vand.u32 2147483647, %v4094_v32  ;;  %v4082_v40 = vsub.f32 %v15135_v61, %v11269_v44  ;;  %v9365_v14 = vld [vmem:[%s17374_s9 + $0x858] sm:$0xff] }
 0x7ed   : > { %v6676_v51 = vmul.f32 %v6388_v29, %v5061_v34  ;;  %v4660_v56 = vsub.f32 1.0, %v4372_v48  ;;  %v5987_v24 = vsub.f32 1.0, %v5699_v53  ;;  %v5709_v0 = vand.u32 2147483647, %v5421_v13  ;;  %v9366_v48 = vld [vmem:[%s17374_s9 + $0x860] sm:$0xff]  ;;  %v9503_v13 = vld [vmem:[%s17374_s9 + $0xca8] sm:$0xff] }
 0x7ee   : > { %v6274_v5 = vmax.f32 %v5986_v54, 0.0  ;;  %v4670_v42 = vsub.f32 1.0, %v4382_v39  ;;  %v4370_v57 = vand.u32 2147483647, %v4082_v40  ;;  %v5409_v7 = vsub.f32 %v15128_v4, %v11297_v55  ;;  %v9502_v53 = vld [vmem:[%s17374_s9 + $0xca0] sm:$0xff] }
 0x7ef   : > { %7005 = vmatmul.mubr.f32.gmra.mrb[68].mxu1 %v6676_v51  ;;  %v4948_v27 = vmax.f32 %v4660_v56, 0.0  ;;  %v6275_v58 = vmax.f32 %v5987_v24, 0.0  ;;  %v5997_v15 = vsub.f32 1.0, %v5709_v0  ;;  %v4092_v18 = vsub.f32 %v15163_v3, %v11875_v30  ;;  %v9639_v51 = vld [vmem:[%s17374_s9 + $0x10e8] sm:$0xff] }
 0x7f0   : > { %v6562_v34 = vmul.f32 %v6274_v5, %v4947_v36  ;;  %v4958_v47 = vmax.f32 %v4670_v42, 0.0  ;;  %v4658_v35 = vsub.f32 1.0, %v4370_v57  ;;  %v5697_v31 = vand.u32 2147483647, %v5409_v7  ;;  %v9640_v42 = vld [vmem:[%s17374_s9 + $0x10f0] sm:$0xff] }
 0x7f1   : > { %v6563_v59 = vmul.f32 %v6275_v58, %v4948_v27  ;;  %v6285_v20 = vmax.f32 %v5997_v15, 0.0  ;;  %v4380_v32 = vand.u32 2147483647, %v4092_v18  ;;  %v5419_v29 = vsub.f32 %v15205_v9, %v11899_v52  ;;  %v9776_v57 = vld [vmem:[%s17374_s9 + $0x1530] sm:$0xff]  ;;  %v9777_v18 = vld [vmem:[%s17374_s9 + $0x1538] sm:$0xff] }
 0x7f2   : > { %7164 = vmatprep.mubr.f32.mxu1 %v6562_v34  ;;  %v4946_v36 = vmax.f32 %v4658_v35, 0.0  ;;  %v5985_v54 = vsub.f32 1.0, %v5697_v31  ;;  %v1489_v39 = vmul.f32 %v11915_v23, %v1343_v19  ;;  %v1490_v40 = vmul.f32 %v11915_v23, %v1344_v63  ;;  %v9913_v19 = vld [vmem:[%s17374_s9 + $0x1978] sm:$0xff]  ;;  %v9914_v31 = vld [vmem:[%s17374_s9 + $0x1980] sm:$0xff] }
 0x7f3   : > { %7390 = vmatmul.mubr.f32.gmra.mrb[56].mxu0 %v6563_v59  ;;  %v6573_v56 = vmul.f32 %v6285_v20, %v4958_v47  ;;  %v4668_v24 = vsub.f32 1.0, %v4380_v32  ;;  %v5707_v0 = vand.u32 2147483647, %v5419_v29  ;;  %v1768_v5 = vmul.f32 %v9365_v14, %v11913_v8 }
 0x7f4   : > { %v6273_v7 = vmax.f32 %v5985_v54, 0.0  ;;  %v1769_v27 = vmul.f32 %v9366_v48, %v11913_v8  ;;  %v2184_v58 = vmul.f32 %v9502_v53, %v11980_v46  ;;  %v2185_v15 = vmul.f32 %v9503_v13, %v11980_v46 }
 0x7f5   : > { %7394 = vmatprep.mubr.f32.mxu0 %v6573_v56  ;;  %v4956_v63 = vmax.f32 %v4668_v24, 0.0  ;;  %v5995_v34 = vsub.f32 1.0, %v5707_v0  ;;  %v1905_v47 = vadd.f32 %v1768_v5, %v1489_v39  ;;  %v2600_v35 = vmul.f32 %v9639_v51, %v12023_v50 }
 0x7f6   : > { %v6561_v14 = vmul.f32 %v6273_v7, %v4946_v36  ;;  %v1906_v59 = vadd.f32 %v1769_v27, %v1490_v40  ;;  %v2601_v20 = vmul.f32 %v9640_v42, %v12023_v50  ;;  %v3016_v32 = vmul.f32 %v9776_v57, %v12079_v37  ;;  %v17703_v40 = vld [vmem:[#allocation40_spill] sm:$0xff] }
 0x7f7   : > { %v6283_v29 = vmax.f32 %v5995_v34, 0.0  ;;  %v2321_v48 = vadd.f32 %v2184_v58, %v1905_v47  ;;  %v3017_v53 = vmul.f32 %v9777_v18, %v12079_v37  ;;  %v3432_v13 = vmul.f32 %v9913_v19, %v12125_v1 }
 0x7f8   : > { %7165 = vmatmul.mubr.f32.vlgmr.msra.gmra.mrb[42].mxu1 %v6561_v14  ;;  %v2322_v54 = vadd.f32 %v2185_v15, %v1906_v59  ;;  %v3433_v39 = vmul.f32 %v9914_v31, %v12125_v1  ;;  %v4093_v51 = vsub.f32 %v15163_v3, %v17665_v17  ;;  %v5420_v36 = vsub.f32 %v15205_v9, %v17666_v12 }
 0x7f9   : > { %10717 = vmatpush3.bf16.msra.mxu1 %v17703_v40  ;;  %v6571_v56 = vmul.f32 %v6283_v29, %v4956_v63  ;;  %v2737_v24 = vadd.f32 %v2600_v35, %v2321_v48  ;;  %v4103_v0 = vsub.f32 %v15269_v16, %v17663_v62  ;;  %v5430_v5 = vsub.f32 %v15274_v11, %v17664_v2 }
 0x7fa   : > { %v2738_v42 = vadd.f32 %v2601_v20, %v2322_v54  ;;  %v4381_v57 = vand.u32 2147483647, %v4093_v51  ;;  %v5708_v7 = vand.u32 2147483647, %v5420_v36  ;;  %v4091_v27 = vsub.f32 %v15163_v3, %v11269_v44 }
 0x7fb   : > { %7169 = vmatprep.mubr.f32.mxu1 %v6571_v56  ;;  %v3153_v58 = vadd.f32 %v3016_v32, %v2737_v24  ;;  %v4391_v15 = vand.u32 2147483647, %v4103_v0  ;;  %v5718_v18 = vand.u32 2147483647, %v5430_v5  ;;  %v5418_v19 = vsub.f32 %v15205_v9, %v11297_v55  ;;  %v1345_v32 = vld [vmem:[%s17374_s9 + $0x420] sm:$0xff]  ;;  %v9368_v24 = vld [vmem:[%s17374_s9 + $0x870] sm:$0xff] }
 0x7fc   : > { %v3154_v63 = vadd.f32 %v3017_v53, %v2738_v42  ;;  %v4669_v34 = vsub.f32 1.0, %v4381_v57  ;;  %v5996_v47 = vsub.f32 1.0, %v5708_v7  ;;  %v4379_v35 = vand.u32 2147483647, %v4091_v27  ;;  %v9504_v7 = vld [vmem:[%s17374_s9 + $0xcb0] sm:$0xff]  ;;  %v9505_v27 = vld [vmem:[%s17374_s9 + $0xcb8] sm:$0xff] }
 0x7fd   : > { %v3569_v31 = vadd.f32 %v3432_v13, %v3153_v58  ;;  %v4679_v14 = vsub.f32 1.0, %v4391_v15  ;;  %v6006_v59 = vsub.f32 1.0, %v5718_v18  ;;  %v5706_v20 = vand.u32 2147483647, %v5418_v19  ;;  %v1346_v13 = vld [vmem:[%s17374_s9 + $0x428] sm:$0xff] }
 0x7fe   : > { %v3570_v29 = vadd.f32 %v3433_v39, %v3154_v63  ;;  %v4957_v48 = vmax.f32 %v4669_v34, 0.0  ;;  %v6284_v54 = vmax.f32 %v5996_v47, 0.0  ;;  %v4667_v51 = vsub.f32 1.0, %v4379_v35  ;;  %v9367_v39 = vld [vmem:[%s17374_s9 + $0x868] sm:$0xff]  ;;  %v9641_v63 = vld [vmem:[%s17374_s9 + $0x10f8] sm:$0xff] }
 0x7ff   : > { %v4967_v36 = vmax.f32 %v4679_v14, 0.0  ;;  %v6294_v40 = vmax.f32 %v6006_v59, 0.0  ;;  %v5994_v56 = vsub.f32 1.0, %v5706_v20  ;;  %v4101_v53 = vsub.f32 %v15269_v16, %v11875_v30  ;;  %v9642_v14 = vld [vmem:[%s17374_s9 + $0x1100] sm:$0xff]  ;;  %v9779_v20 = vld [vmem:[%s17374_s9 + $0x1548] sm:$0xff] }
 0x800   : > { %v10718_v0 = vpack.c.bf16 %v3570_v29, %v3569_v31  ;;  %v6572_v5 = vmul.f32 %v6284_v54, %v4957_v48  ;;  %v4955_v42 = vmax.f32 %v4667_v51, 0.0  ;;  %v5428_v57 = vsub.f32 %v15274_v11, %v11899_v52  ;;  %v9778_v59 = vld [vmem:[%s17374_s9 + $0x1540] sm:$0xff] }
 0x801   : > { %v6582_v58 = vmul.f32 %v6294_v40, %v4967_v36  ;;  %v6282_v15 = vmax.f32 %v5994_v56, 0.0  ;;  %v4389_v18 = vand.u32 2147483647, %v4101_v53  ;;  %v1491_v19 = vmul.f32 %v11915_v23, %v1345_v32  ;;  %v9915_v32 = vld [vmem:[%s17374_s9 + $0x1988] sm:$0xff] }
 0x802   : > { %10719 = vmatprep.subr.bf16.mxu1 %v10718_v0  ;;  %7395 = vmatmul.mubr.f32.gmra.mrb[58].mxu0 %v6572_v5  ;;  %v5716_v34 = vand.u32 2147483647, %v5428_v57  ;;  %v1492_v47 = vmul.f32 %v11915_v23, %v1346_v13  ;;  %v1770_v35 = vmul.f32 %v9367_v39, %v11913_v8  ;;  %v1771_v31 = vmul.f32 %v9368_v24, %v11913_v8  ;;  %v9916_v13 = vld [vmem:[%s17374_s9 + $0x1990] sm:$0xff] }
 0x803   : > { %7399 = vmatprep.mubr.f32.mxu0 %v6582_v58  ;;  %v6570_v29 = vmul.f32 %v6282_v15, %v4955_v42  ;;  %10721 = vmatpush3.bf16.msra.mxu1 %v10718_v0  ;;  %v4677_v48 = vsub.f32 1.0, %v4389_v18  ;;  %v2186_v54 = vmul.f32 %v9504_v7, %v11980_v46  ;;  %v2187_v51 = vmul.f32 %v9505_v27, %v11980_v46 }
 0x804   : > { %v6004_v36 = vsub.f32 1.0, %v5716_v34  ;;  %v1907_v40 = vadd.f32 %v1770_v35, %v1491_v19  ;;  %v1908_v56 = vadd.f32 %v1771_v31, %v1492_v47  ;;  %v2602_v53 = vmul.f32 %v9641_v63, %v12023_v50 }
 0x805   : > { %7170 = vmatmul.mubr.f32.gmra.mrb[44].mxu1 %v6570_v29  ;;  %v4965_v39 = vmax.f32 %v4677_v48, 0.0  ;;  %v2603_v24 = vmul.f32 %v9642_v14, %v12023_v50  ;;  %v3018_v0 = vmul.f32 %v9778_v59, %v12079_v37  ;;  %v3019_v5 = vmul.f32 %v9779_v20, %v12079_v37 }
 0x806   : > { %v6292_v42 = vmax.f32 %v6004_v36, 0.0  ;;  %v2323_v57 = vadd.f32 %v2186_v54, %v1907_v40  ;;  %v2324_v7 = vadd.f32 %v2187_v51, %v1908_v56  ;;  %v3434_v27 = vmul.f32 %v9915_v32, %v12125_v1 }
 0x807   : > { %v3435_v58 = vmul.f32 %v9916_v13, %v12125_v1  ;;  %v4102_v15 = vsub.f32 %v15269_v16, %v17665_v17  ;;  %v5429_v18 = vsub.f32 %v15274_v11, %v17666_v12  ;;  %v4112_v19 = vsub.f32 %v15342_v22, %v17663_v62 }
 0x808   : > { %v6580_v63 = vmul.f32 %v6292_v42, %v4965_v39  ;;  %v2739_v34 = vadd.f32 %v2602_v53, %v2323_v57  ;;  %v2740_v47 = vadd.f32 %v2603_v24, %v2324_v7  ;;  %v5439_v35 = vsub.f32 %v15338_v38, %v17664_v2  ;;  %v1347_v42 = vld [vmem:[%s17374_s9 + $0x430] sm:$0xff] }
 0x809   : > { %v4390_v31 = vand.u32 2147483647, %v4102_v15  ;;  %v5717_v14 = vand.u32 2147483647, %v5429_v18  ;;  %v4400_v59 = vand.u32 2147483647, %v4112_v19  ;;  %v4100_v20 = vsub.f32 %v15269_v16, %v11269_v44 }
 0x80a   : > { %7174 = vmatprep.mubr.f32.mxu1 %v6580_v63  ;;  %v3155_v29 = vadd.f32 %v3018_v0, %v2739_v34  ;;  %v3156_v48 = vadd.f32 %v3019_v5, %v2740_v47  ;;  %v5727_v54 = vand.u32 2147483647, %v5439_v35  ;;  %v5427_v51 = vsub.f32 %v15274_v11, %v11297_v55  ;;  %v1348_v15 = vld [vmem:[%s17374_s9 + $0x438] sm:$0xff]  ;;  %v9370_v34 = vld [vmem:[%s17374_s9 + $0x880] sm:$0xff] }
 0x80b   : > { %v4678_v32 = vsub.f32 1.0, %v4390_v31  ;;  %v6005_v36 = vsub.f32 1.0, %v5717_v14  ;;  %v4688_v40 = vsub.f32 1.0, %v4400_v59  ;;  %v4388_v56 = vand.u32 2147483647, %v4100_v20  ;;  %v9506_v47 = vld [vmem:[%s17374_s9 + $0xcc0] sm:$0xff] }
 0x80c   : > { %v3571_v53 = vadd.f32 %v3434_v27, %v3155_v29  ;;  %v3572_v13 = vadd.f32 %v3435_v58, %v3156_v48  ;;  %v6015_v39 = vsub.f32 1.0, %v5727_v54  ;;  %v5715_v24 = vand.u32 2147483647, %v5427_v51  ;;  %v9369_v58 = vld [vmem:[%s17374_s9 + $0x878] sm:$0xff]  ;;  %v9507_v20 = vld [vmem:[%s17374_s9 + $0xcc8] sm:$0xff] }
 0x80d   : > { %v4966_v57 = vmax.f32 %v4678_v32, 0.0  ;;  %v6293_v7 = vmax.f32 %v6005_v36, 0.0  ;;  %v4976_v0 = vmax.f32 %v4688_v40, 0.0  ;;  %v4676_v5 = vsub.f32 1.0, %v4388_v56  ;;  %v9643_v29 = vld [vmem:[%s17374_s9 + $0x1108] sm:$0xff]  ;;  %v9644_v36 = vld [vmem:[%s17374_s9 + $0x1110] sm:$0xff] }
 0x80e   : > { %v10722_v18 = vpack.c.bf16 %v3572_v13, %v3571_v53  ;;  %v6303_v19 = vmax.f32 %v6015_v39, 0.0  ;;  %v6003_v63 = vsub.f32 1.0, %v5715_v24  ;;  %v4110_v27 = vsub.f32 %v15342_v22, %v11875_v30  ;;  %v9780_v39 = vld [vmem:[%s17374_s9 + $0x1550] sm:$0xff]  ;;  %v9781_v24 = vld [vmem:[%s17374_s9 + $0x1558] sm:$0xff] }
 0x80f   : > { %v6581_v35 = vmul.f32 %v6293_v7, %v4966_v57  ;;  %v4964_v31 = vmax.f32 %v4676_v5, 0.0  ;;  %v5437_v14 = vsub.f32 %v15338_v38, %v11899_v52  ;;  %v1493_v59 = vmul.f32 %v11915_v23, %v1347_v42  ;;  %v9917_v42 = vld [vmem:[%s17374_s9 + $0x1998] sm:$0xff] }
 0x810   : > { %10723 = vmatprep.subr.bf16.mxu1 %v10722_v18  ;;  %v6591_v48 = vmul.f32 %v6303_v19, %v4976_v0  ;;  %v6291_v54 = vmax.f32 %v6003_v63, 0.0  ;;  %v4398_v51 = vand.u32 2147483647, %v4110_v27  ;;  %v1494_v32 = vmul.f32 %v11915_v23, %v1348_v15  ;;  %v9918_v15 = vld [vmem:[%s17374_s9 + $0x19a0] sm:$0xff] }
 0x811   : > { %7400 = vmatmul.mubr.f32.gmra.mrb[60].mxu0 %v6581_v35  ;;  %10725 = vmatpush3.bf16.msra.mxu1 %v10722_v18  ;;  %v5725_v40 = vand.u32 2147483647, %v5437_v14  ;;  %v1772_v56 = vmul.f32 %v9369_v58, %v11913_v8  ;;  %v1773_v53 = vmul.f32 %v9370_v34, %v11913_v8  ;;  %v2188_v13 = vmul.f32 %v9506_v47, %v11980_v46 }
 0x812   : > { %7404 = vmatprep.mubr.f32.mxu0 %v6591_v48  ;;  %v6579_v57 = vmul.f32 %v6291_v54, %v4964_v31  ;;  %v4686_v7 = vsub.f32 1.0, %v4398_v51  ;;  %v2189_v0 = vmul.f32 %v9507_v20, %v11980_v46  ;;  %v2604_v5 = vmul.f32 %v9643_v29, %v12023_v50  ;;  %v17704_v54 = vld [vmem:[#allocation23_spill] sm:$0xff] }
 0x813   : > { %v6013_v18 = vsub.f32 1.0, %v5725_v40  ;;  %v1909_v19 = vadd.f32 %v1772_v56, %v1493_v59  ;;  %v1910_v63 = vadd.f32 %v1773_v53, %v1494_v32  ;;  %v2605_v27 = vmul.f32 %v9644_v36, %v12023_v50  ;;  %v17705_v32 = vld [vmem:[#allocation28_spill] sm:$0xff] }
 0x814   : > { %7175 = vmatmul.mubr.f32.gmra.mrb[46].mxu1 %v6579_v57  ;;  %v4974_v58 = vmax.f32 %v4686_v7, 0.0  ;;  %v3020_v34 = vmul.f32 %v9780_v39, %v12079_v37  ;;  %v3021_v47 = vmul.f32 %v9781_v24, %v12079_v37  ;;  %v3436_v35 = vmul.f32 %v9917_v42, %v12125_v1 }
 0x815   : > { %v6301_v31 = vmax.f32 %v6013_v18, 0.0  ;;  %v2325_v14 = vadd.f32 %v2188_v13, %v1909_v19  ;;  %v2326_v20 = vadd.f32 %v2189_v0, %v1910_v63  ;;  %v3437_v29 = vmul.f32 %v9918_v15, %v12125_v1  ;;  %v1349_v19 = vld [vmem:[%s17374_s9 + $0x440] sm:$0x1] }
 0x816   : > { %v4111_v48 = vsub.f32 %v15342_v22, %v17665_v17  ;;  %v5438_v59 = vsub.f32 %v15338_v38, %v17666_v12  ;;  %v4121_v51 = vsub.f32 %v17704_v54, %v17663_v62  ;;  %v5448_v36 = vsub.f32 %v17705_v32, %v17664_v2 }
 0x817   : > { %v6589_v40 = vmul.f32 %v6301_v31, %v4974_v58  ;;  %v2741_v56 = vadd.f32 %v2604_v5, %v2325_v14  ;;  %v2742_v53 = vadd.f32 %v2605_v27, %v2326_v20  ;;  %v4109_v13 = vsub.f32 %v15342_v22, %v11269_v44  ;;  %v9371_v31 = vld [vmem:[%s17374_s9 + $0x888] sm:$0x1] }
 0x818   : > { %v4399_v39 = vand.u32 2147483647, %v4111_v48  ;;  %v5726_v24 = vand.u32 2147483647, %v5438_v59  ;;  %v4409_v42 = vand.u32 2147483647, %v4121_v51  ;;  %v5436_v57 = vsub.f32 %v15338_v38, %v11297_v55 }
 0x819   : > { %7179 = vmatprep.mubr.f32.mxu1 %v6589_v40  ;;  %v3157_v7 = vadd.f32 %v3020_v34, %v2741_v56  ;;  %v3158_v0 = vadd.f32 %v3021_v47, %v2742_v53  ;;  %v5736_v15 = vand.u32 2147483647, %v5448_v36  ;;  %v4397_v18 = vand.u32 2147483647, %v4109_v13  ;;  %v9508_v34 = vld [vmem:[%s17374_s9 + $0xcd0] sm:$0x1] }
 0x81a   : > { %v4687_v5 = vsub.f32 1.0, %v4399_v39  ;;  %v6014_v63 = vsub.f32 1.0, %v5726_v24  ;;  %v4697_v27 = vsub.f32 1.0, %v4409_v42  ;;  %v5724_v58 = vand.u32 2147483647, %v5436_v57  ;;  %v16169_v47 = vpop.f32.mrb[6].mxu1 }
 0x81b   : > { %v3573_v14 = vadd.f32 %v3436_v35, %v3157_v7  ;;  %v3574_v20 = vadd.f32 %v3437_v29, %v3158_v0  ;;  %v6024_v48 = vsub.f32 1.0, %v5736_v15  ;;  %v4685_v59 = vsub.f32 1.0, %v4397_v18  ;;  %17706 = vst [vmem:[#allocation40_spill] sm:$0xff] %v16169_v47  ;;  %v6853_v53 = vpop.f32.mrb[7].mxu1  ;;  %v9645_v29 = vld [vmem:[%s17374_s9 + $0x1118] sm:$0x1] }
 0x81c   : > { %v4975_v51 = vmax.f32 %v4687_v5, 0.0  ;;  %v6302_v36 = vmax.f32 %v6014_v63, 0.0  ;;  %v4985_v40 = vmax.f32 %v4697_v27, 0.0  ;;  %v6012_v56 = vsub.f32 1.0, %v5724_v58  ;;  %v9782_v42 = vld [vmem:[%s17374_s9 + $0x1560] sm:$0x1] }
 0x81d   : > { %v10726_v13 = vpack.c.bf16 %v3574_v20, %v3573_v14  ;;  %v6312_v39 = vmax.f32 %v6024_v48, 0.0  ;;  %v4973_v24 = vmax.f32 %v4685_v59, 0.0  ;;  %v4119_v35 = vsub.f32 %v17704_v54, %v11875_v30  ;;  %v9919_v18 = vld [vmem:[%s17374_s9 + $0x19a8] sm:$0x1] }
 0x81e   : > { %v6590_v57 = vmul.f32 %v6302_v36, %v4975_v51  ;;  %v6300_v7 = vmax.f32 %v6012_v56, 0.0  ;;  %v5446_v0 = vsub.f32 %v17705_v32, %v11899_v52  ;;  %v1495_v15 = vmul.f32 %v11915_v23, %v1349_v19 }
 0x81f   : > { %10727 = vmatprep.subr.bf16.mxu1 %v10726_v13  ;;  %v6600_v5 = vmul.f32 %v6312_v39, %v4985_v40  ;;  %v4407_v63 = vand.u32 2147483647, %v4119_v35  ;;  %v1774_v27 = vmul.f32 %v9371_v31, %v11913_v8  ;;  %v2190_v58 = vmul.f32 %v9508_v34, %v11980_v46  ;;  %v17707_v31 = vld [vmem:[#allocation43_spill] sm:$0xff] }
 0x820   : > { %7405 = vmatmul.mubr.f32.gmra.mrb[62].mxu0 %v6590_v57  ;;  %v6588_v14 = vmul.f32 %v6300_v7, %v4973_v24  ;;  %10729 = vmatpush3.bf16.msra.mxu1 %v10726_v13  ;;  %v5734_v20 = vand.u32 2147483647, %v5446_v0  ;;  %v2606_v48 = vmul.f32 %v9645_v29, %v12023_v50  ;;  %v3022_v59 = vmul.f32 %v9782_v42, %v12079_v37  ;;  %v17708_v50 = vld [vmem:[#allocation3_spill] sm:$0xff]  ;;  %v16202_v29 = vpop.f32.mrb[8].mxu1 }
 0x821   : > { %7409 = vmatprep.mubr.f32.mxu0 %v6600_v5  ;;  %v4695_v23 = vsub.f32 1.0, %v4407_v63  ;;  %v1911_v19 = vadd.f32 %v1774_v27, %v1495_v15  ;;  %v3438_v51 = vmul.f32 %v9919_v18, %v12125_v1  ;;  %v4120_v36 = vsub.f32 %v17704_v54, %v17665_v17  ;;  %17709 = vst [vmem:[#allocation23_spill] sm:$0xff] %v16202_v29  ;;  %v6858_v15 = vpop.f32.mrb[9].mxu1  ;;  %v8548_v29 = vld [vmem:[%s16226_s20 + $0x20] sm:$0xff] }
 0x822   : > { %7180 = vmatmul.mubr.f32.gmra.mrb[48].mxu1 %v6588_v14  ;;  %v6022_v8 = vsub.f32 1.0, %v5734_v20  ;;  %v5447_v46 = vsub.f32 %v17705_v32, %v17666_v12  ;;  %v4130_v34 = vsub.f32 %v17707_v31, %v17663_v62  ;;  %v5457_v40 = vsub.f32 %v17708_v50, %v17664_v2 }
 0x823   : > { %v4983_v37 = vmax.f32 %v4695_v23, 0.0  ;;  %v2327_v56 = vadd.f32 %v2190_v58, %v1911_v19  ;;  %v4408_v53 = vand.u32 2147483647, %v4120_v36  ;;  %v4118_v1 = vsub.f32 %v17704_v54, %v11269_v44 }
 0x824   : > { %v6310_v13 = vmax.f32 %v6022_v8, 0.0  ;;  %v5735_v39 = vand.u32 2147483647, %v5447_v46  ;;  %v4418_v24 = vand.u32 2147483647, %v4130_v34  ;;  %v5445_v35 = vsub.f32 %v17705_v32, %v11297_v55 }
 0x825   : > { %v2743_v42 = vadd.f32 %v2606_v48, %v2327_v56  ;;  %v4696_v57 = vsub.f32 1.0, %v4408_v53  ;;  %v5745_v7 = vand.u32 2147483647, %v5457_v40  ;;  %v4406_v0 = vand.u32 2147483647, %v4118_v1 }
 0x826   : > { %v6598_v18 = vmul.f32 %v6310_v13, %v4983_v37  ;;  %v6023_v5 = vsub.f32 1.0, %v5735_v39  ;;  %v4706_v63 = vsub.f32 1.0, %v4418_v24  ;;  %v5733_v27 = vand.u32 2147483647, %v5445_v35 }
 0x827   : > { %v3159_v58 = vadd.f32 %v3022_v59, %v2743_v42  ;;  %v4984_v14 = vmax.f32 %v4696_v57, 0.0  ;;  %v6033_v20 = vsub.f32 1.0, %v5745_v7  ;;  %v4694_v23 = vsub.f32 1.0, %v4406_v0  ;;  %v17711_v0 = vld [vmem:[#allocation37_spill] sm:$0xff] }
 0x828   : > { %7184 = vmatprep.mubr.f32.mxu1 %v6598_v18  ;;  %v6311_v19 = vmax.f32 %v6023_v5, 0.0  ;;  %v4994_v36 = vmax.f32 %v4706_v63, 0.0  ;;  %v6021_v8 = vsub.f32 1.0, %v5733_v27  ;;  %v4128_v46 = vsub.f32 %v17707_v31, %v11875_v30 }
 0x829   : > { %v3575_v48 = vadd.f32 %v3438_v51, %v3159_v58  ;;  %v6321_v34 = vmax.f32 %v6033_v20, 0.0  ;;  %v4982_v40 = vmax.f32 %v4694_v23, 0.0  ;;  %v5455_v37 = vsub.f32 %v17708_v50, %v11899_v52  ;;  %v17710_v51 = vld [vmem:[#allocation7_spill] sm:$0xff]  ;;  %v16220_v58 = vpop.f32.mrb[10].mxu1 }
 0x82a   : > { %v6599_v56 = vmul.f32 %v6311_v19, %v4984_v14  ;;  %v6309_v53 = vmax.f32 %v6021_v8, 0.0  ;;  %v4416_v1 = vand.u32 2147483647, %v4128_v46  ;;  %v4129_v59 = vsub.f32 %v17707_v31, %v17665_v17  ;;  %17712 = vst [vmem:[#allocation28_spill] sm:$0xff] %v16220_v58 }
 0x82b   : > { %10238 = vmatprep.subr.msk.mxu1 %vm801_vm2, %v3575_v48  ;;  %v6609_v13 = vmul.f32 %v6321_v34, %v4994_v36  ;;  %v5743_v39 = vand.u32 2147483647, %v5455_v37  ;;  %v5456_v24 = vsub.f32 %v17708_v50, %v17666_v12  ;;  %v4139_v35 = vsub.f32 %v17710_v51, %v17663_v62  ;;  %v6863_v36 = vpop.f32.mrb[11].mxu1 }
 0x82c   : > { %7410 = vmatmul.mubr.f32.gmra.mrb[64].mxu0 %v6599_v56  ;;  %v6597_v42 = vmul.f32 %v6309_v53, %v4982_v40  ;;  %10239 = vmatpush3.msk.msra.mxu1 %vm801_vm2, %v3575_v48  ;;  %v4704_v57 = vsub.f32 1.0, %v4416_v1  ;;  %v4417_v7 = vand.u32 2147483647, %v4129_v59  ;;  %v5466_v15 = vsub.f32 %v17711_v0, %v17664_v2 }
 0x82d   : > { %7414 = vmatprep.mubr.f32.mxu0 %v6609_v13  ;;  %v6031_v18 = vsub.f32 1.0, %v5743_v39  ;;  %v5744_v5 = vand.u32 2147483647, %v5456_v24  ;;  %v4427_v63 = vand.u32 2147483647, %v4139_v35  ;;  %v4127_v27 = vsub.f32 %v17707_v31, %v11269_v44  ;;  %v8545_v24 = vld [vmem:[%s16226_s20 + $0x8] sm:$0xff] }
 0x82e   : > { %7185 = vmatmul.mubr.f32.gmra.mrb[50].mxu1 %v6597_v42  ;;  %v4992_v14 = vmax.f32 %v4704_v57, 0.0  ;;  %v4705_v20 = vsub.f32 1.0, %v4417_v7  ;;  %v5754_v23 = vand.u32 2147483647, %v5466_v15  ;;  %v5454_v19 = vsub.f32 %v17708_v50, %v11297_v55  ;;  %v8544_v35 = vld [vmem:[%s16226_s20] sm:$0xff]  ;;  %8583 = vperm.xlu0 %11006, %v8545_v24  }
 0x82f   : > { %v6319_v8 = vmax.f32 %v6031_v18, 0.0  ;;  %v6032_v46 = vsub.f32 1.0, %v5744_v5  ;;  %v4715_v48 = vsub.f32 1.0, %v4427_v63  ;;  %v4415_v34 = vand.u32 2147483647, %v4127_v27  ;;  %8578 = vperm.xlu1 %11007, %v8544_v35  }
 0x830   : > { %v4993_v40 = vmax.f32 %v4705_v20, 0.0  ;;  %v6042_v37 = vsub.f32 1.0, %v5754_v23  ;;  %v5742_v56 = vand.u32 2147483647, %v5454_v19  ;;  %v4137_v53 = vsub.f32 %v17710_v51, %v11875_v30 }
 0x831   : > { %v6607_v1 = vmul.f32 %v6319_v8, %v4992_v14  ;;  %v6320_v59 = vmax.f32 %v6032_v46, 0.0  ;;  %v5003_v13 = vmax.f32 %v4715_v48, 0.0  ;;  %v4703_v39 = vsub.f32 1.0, %v4415_v34  ;;  %v17713_v46 = vld [vmem:[#allocation2_spill] sm:$0xff] }
 0x832   : > { %v6330_v42 = vmax.f32 %v6042_v37, 0.0  ;;  %v6030_v57 = vsub.f32 1.0, %v5742_v56  ;;  %v4425_v7 = vand.u32 2147483647, %v4137_v53  ;;  %v5464_v15 = vsub.f32 %v17711_v0, %v11899_v52  ;;  %v17714_v34 = vld [vmem:[#allocation6_spill] sm:$0xff] }
 0x833   : > { %7189 = vmatprep.mubr.f32.mxu1 %v6607_v1  ;;  %v6608_v18 = vmul.f32 %v6320_v59, %v4993_v40  ;;  %v4991_v5 = vmax.f32 %v4703_v39, 0.0  ;;  %v4138_v63 = vsub.f32 %v17710_v51, %v17665_v17  ;;  %v5465_v27 = vsub.f32 %v17711_v0, %v17666_v12  ;;  %v16246_v59 = vpop.f32.mrb[12].mxu1 }
 0x834   : > { %v6618_v14 = vmul.f32 %v6330_v42, %v5003_v13  ;;  %v6318_v20 = vmax.f32 %v6030_v57, 0.0  ;;  %v4713_v23 = vsub.f32 1.0, %v4425_v7  ;;  %v5752_v19 = vand.u32 2147483647, %v5464_v15  ;;  %17715 = vst [vmem:[#allocation43_spill] sm:$0xff] %v16246_v59 }
 0x835   : > { %7415 = vmatmul.mubr.f32.gmra.mrb[66].mxu0 %v6608_v18  ;;  %v4426_v36 = vand.u32 2147483647, %v4138_v63  ;;  %v5753_v8 = vand.u32 2147483647, %v5465_v27  ;;  %v4148_v48 = vsub.f32 %v17713_v46, %v17663_v62  ;;  %v5475_v40 = vsub.f32 %v17714_v34, %v17664_v2  ;;  %v6868_v18 = vpop.f32.mrb[13].mxu1 }
 0x836   : > { %7419 = vmatprep.mubr.f32.mxu0 %v6618_v14  ;;  %v6606_v37 = vmul.f32 %v6318_v20, %v4991_v5  ;;  %v5001_v56 = vmax.f32 %v4713_v23, 0.0  ;;  %v6040_v53 = vsub.f32 1.0, %v5752_v19  ;;  %v4136_v1 = vsub.f32 %v17710_v51, %v11269_v44 }
 0x837   : > { %v4714_v13 = vsub.f32 1.0, %v4426_v36  ;;  %v6041_v39 = vsub.f32 1.0, %v5753_v8  ;;  %v4436_v24 = vand.u32 2147483647, %v4148_v48  ;;  %v5763_v35 = vand.u32 2147483647, %v5475_v40 }
 0x838   : > { %7190 = vmatmul.mubr.f32.gmra.mrb[52].mxu1 %v6606_v37  ;;  %v6328_v42 = vmax.f32 %v6040_v53, 0.0  ;;  %v4424_v57 = vand.u32 2147483647, %v4136_v1  ;;  %v5463_v7 = vsub.f32 %v17711_v0, %v11297_v55  ;;  %v4146_v15 = vsub.f32 %v17713_v46, %v11875_v30  ;;  %v8547_v53 = vld [vmem:[%s16226_s20 + $0x18] sm:$0xff]  ;;  %v8546_v1 = vld [vmem:[%s16226_s20 + $0x10] sm:$0xff] }
 0x839   : > { %v5002_v5 = vmax.f32 %v4714_v13, 0.0  ;;  %v6329_v63 = vmax.f32 %v6041_v39, 0.0  ;;  %v4724_v27 = vsub.f32 1.0, %v4436_v24  ;;  %v6051_v14 = vsub.f32 1.0, %v5763_v35  ;;  %8593 = vperm.xlu0 %11006, %v8547_v53   ;;  %v17716_v35 = vld [vmem:[#allocation49_spill] sm:$0xff]  ;;  %8588 = vperm.xlu1 %11007, %v8546_v1  }
 0x83a   : > { %v6616_v20 = vmul.f32 %v6328_v42, %v5001_v56  ;;  %v4712_v23 = vsub.f32 1.0, %v4424_v57  ;;  %v5751_v19 = vand.u32 2147483647, %v5463_v7  ;;  %v4434_v36 = vand.u32 2147483647, %v4146_v15 }
 0x83b   : > { %v6617_v8 = vmul.f32 %v6329_v63, %v5002_v5  ;;  %v5012_v48 = vmax.f32 %v4724_v27, 0.0  ;;  %v6339_v40 = vmax.f32 %v6051_v14, 0.0  ;;  %v5473_v37 = vsub.f32 %v17714_v34, %v11899_v52  ;;  %v17717_v5 = vld [vmem:[#allocation50_spill] sm:$0xff] }
 0x83c   : > { %7194 = vmatprep.mubr.f32.mxu1 %v6616_v20  ;;  %v5000_v59 = vmax.f32 %v4712_v23, 0.0  ;;  %v6039_v58 = vsub.f32 1.0, %v5751_v19  ;;  %v4722_v18 = vsub.f32 1.0, %v4434_v36  ;;  %v4147_v13 = vsub.f32 %v17713_v46, %v17665_v17 }
 0x83d   : > { %7420 = vmatmul.mubr.f32.gmra.mrb[68].mxu0 %v6617_v8  ;;  %v6627_v56 = vmul.f32 %v6339_v40, %v5012_v48  ;;  %v5761_v39 = vand.u32 2147483647, %v5473_v37  ;;  %v5474_v24 = vsub.f32 %v17714_v34, %v17666_v12  ;;  %v4157_v42 = vsub.f32 %v17716_v35, %v17663_v62  ;;  %8598 = vperm.xlu1 %11007, %v8548_v29   ;;  %v17720_v29 = vld [vmem:[#allocation51_spill] sm:$0xff] }
 0x83e   : > { %v6327_v57 = vmax.f32 %v6039_v58, 0.0  ;;  %v5010_v7 = vmax.f32 %v4722_v18, 0.0  ;;  %v4435_v15 = vand.u32 2147483647, %v4147_v13  ;;  %v5484_v63 = vsub.f32 %v17717_v5, %v17664_v2  ;;  %v16268_v58 = vpop.f32.mrb[14].mxu1 }
 0x83f   : > { %7424 = vmatprep.mubr.f32.mxu0 %v6627_v56  ;;  %v6049_v27 = vsub.f32 1.0, %v5761_v39  ;;  %v5762_v14 = vand.u32 2147483647, %v5474_v24  ;;  %v4445_v20 = vand.u32 2147483647, %v4157_v42  ;;  %v4145_v23 = vsub.f32 %v17713_v46, %v11269_v44  ;;  %17718 = vst [vmem:[#allocation3_spill] sm:$0xff] %v16268_v58 }
 0x840   : > { %v6615_v19 = vmul.f32 %v6327_v57, %v5000_v59  ;;  %v4723_v36 = vsub.f32 1.0, %v4435_v15  ;;  %v5772_v8 = vand.u32 2147483647, %v5484_v63  ;;  %v5472_v48 = vsub.f32 %v17714_v34, %v11297_v55  ;;  %v6873_v18 = vpop.f32.mrb[15].mxu1  ;;  %v8549_v63 = vld [vmem:[%s16226_s20 + $0x28] sm:$0xff] }
 0x841   : > { %v6337_v40 = vmax.f32 %v6049_v27, 0.0  ;;  %v6050_v37 = vsub.f32 1.0, %v5762_v14  ;;  %v4733_v53 = vsub.f32 1.0, %v4445_v20  ;;  %v4433_v1 = vand.u32 2147483647, %v4145_v23  ;;  %8603 = vperm.xlu0 %11006, %v8549_v63  }
 0x842   : > { %7195 = vmatmul.mubr.f32.gmra.mrb[54].mxu1 %v6615_v19  ;;  %v5011_v13 = vmax.f32 %v4723_v36, 0.0  ;;  %v6060_v56 = vsub.f32 1.0, %v5772_v8  ;;  %v5760_v39 = vand.u32 2147483647, %v5472_v48  ;;  %v4155_v59 = vsub.f32 %v17716_v35, %v11875_v30 }
 0x843   : > { %v6625_v24 = vmul.f32 %v6337_v40, %v5010_v7  ;;  %v6338_v42 = vmax.f32 %v6050_v37, 0.0  ;;  %v5021_v57 = vmax.f32 %v4733_v53, 0.0  ;;  %v4721_v15 = vsub.f32 1.0, %v4433_v1  ;;  %v17719_v1 = vld [vmem:[#allocation52_spill] sm:$0xff] }
 0x844   : > { %v6348_v58 = vmax.f32 %v6060_v56, 0.0  ;;  %v6048_v47 = vsub.f32 1.0, %v5760_v39  ;;  %v4443_v27 = vand.u32 2147483647, %v4155_v59  ;;  %v5482_v14 = vsub.f32 %v17717_v5, %v11899_v52 }
 0x845   : > { %7199 = vmatprep.mubr.f32.mxu1 %v6625_v24  ;;  %v6626_v20 = vmul.f32 %v6338_v42, %v5011_v13  ;;  %v5009_v23 = vmax.f32 %v4721_v15, 0.0  ;;  %v4156_v19 = vsub.f32 %v17716_v35, %v17665_v17  ;;  %v5483_v7 = vsub.f32 %v17717_v5, %v17666_v12 }
 0x846   : > { %v6636_v36 = vmul.f32 %v6348_v58, %v5021_v57  ;;  %v6336_v8 = vmax.f32 %v6048_v47, 0.0  ;;  %v4731_v48 = vsub.f32 1.0, %v4443_v27  ;;  %v5770_v40 = vand.u32 2147483647, %v5482_v14 }
 0x847   : > { %7425 = vmatmul.mubr.f32.gmra.mrb[70].mxu0 %v6626_v20  ;;  %v4444_v37 = vand.u32 2147483647, %v4156_v19  ;;  %v5771_v53 = vand.u32 2147483647, %v5483_v7  ;;  %v4166_v18 = vsub.f32 %v17719_v1, %v17663_v62  ;;  %v5493_v13 = vsub.f32 %v17720_v29, %v17664_v2  ;;  %v16290_v20 = vpop.f32.mrb[16].mxu1 }
 0x848   : > { %7429 = vmatprep.mubr.f32.mxu0 %v6636_v36  ;;  %v6624_v56 = vmul.f32 %v6336_v8, %v5009_v23  ;;  %v5019_v39 = vmax.f32 %v4731_v48, 0.0  ;;  %v6058_v59 = vsub.f32 1.0, %v5770_v40  ;;  %v4154_v24 = vsub.f32 %v17716_v35, %v11269_v44  ;;  %17721 = vst [vmem:[#allocation7_spill] sm:$0xff] %v16290_v20  ;;  %v6878_v8 = vpop.f32.mrb[17].mxu1 }
 0x849   : > { %v4732_v58 = vsub.f32 1.0, %v4444_v37  ;;  %v6059_v47 = vsub.f32 1.0, %v5771_v53  ;;  %v4454_v42 = vand.u32 2147483647, %v4166_v18  ;;  %v5781_v57 = vand.u32 2147483647, %v5493_v13 }
 0x84a   : > { %7200 = vmatmul.mubr.f32.gmra.mrb[56].mxu1 %v6624_v56  ;;  %v6346_v15 = vmax.f32 %v6058_v59, 0.0  ;;  %v4442_v63 = vand.u32 2147483647, %v4154_v24  ;;  %v5481_v27 = vsub.f32 %v17717_v5, %v11297_v55  ;;  %v4164_v14 = vsub.f32 %v17719_v1, %v11875_v30  ;;  %v8551_v24 = vld [vmem:[%s16226_s20 + $0x38] sm:$0xff]  ;;  %v8550_v5 = vld [vmem:[%s16226_s20 + $0x30] sm:$0xff] }
 0x84b   : > { %v5020_v23 = vmax.f32 %v4732_v58, 0.0  ;;  %v6347_v19 = vmax.f32 %v6059_v47, 0.0  ;;  %v4742_v7 = vsub.f32 1.0, %v4454_v42  ;;  %v6069_v36 = vsub.f32 1.0, %v5781_v57  ;;  %8613 = vperm.xlu0 %11006, %v8551_v24   ;;  %8608 = vperm.xlu1 %11007, %v8550_v5  }
 0x84c   : > { %v6634_v48 = vmul.f32 %v6346_v15, %v5019_v39  ;;  %v4730_v40 = vsub.f32 1.0, %v4442_v63  ;;  %v5769_v37 = vand.u32 2147483647, %v5481_v27  ;;  %v4452_v53 = vand.u32 2147483647, %v4164_v14 }
 0x84d   : > { %v6635_v18 = vmul.f32 %v6347_v19, %v5020_v23  ;;  %v5030_v13 = vmax.f32 %v4742_v7, 0.0  ;;  %v6357_v56 = vmax.f32 %v6069_v36, 0.0  ;;  %v5491_v59 = vsub.f32 %v17720_v29, %v11899_v52 }
 0x84e   : > { %7204 = vmatprep.mubr.f32.mxu1 %v6634_v48  ;;  %v5018_v35 = vmax.f32 %v4730_v40, 0.0  ;;  %v6057_v20 = vsub.f32 1.0, %v5769_v37  ;;  %v4740_v58 = vsub.f32 1.0, %v4452_v53  ;;  %v4165_v47 = vsub.f32 %v17719_v1, %v17665_v17 }
 0x84f   : > { %7430 = vmatmul.mubr.f32.gmra.mrb[72].mxu0 %v6635_v18  ;;  %v6645_v39 = vmul.f32 %v6357_v56, %v5030_v13  ;;  %v5779_v42 = vand.u32 2147483647, %v5491_v59  ;;  %v5492_v57 = vsub.f32 %v17720_v29, %v17666_v12  ;;  %v4175_v15 = vsub.f32 %v15790_v45, %v17663_v62  ;;  %v16308_v56 = vpop.f32.mrb[18].mxu1 }
 0x850   : > { %v6345_v63 = vmax.f32 %v6057_v20, 0.0  ;;  %v5028_v27 = vmax.f32 %v4740_v58, 0.0  ;;  %v4453_v14 = vand.u32 2147483647, %v4165_v47  ;;  %v5502_v23 = vsub.f32 %v15827_v41, %v17664_v2  ;;  %17722 = vst [vmem:[#allocation37_spill] sm:$0xff] %v16308_v56  ;;  %v6883_v47 = vpop.f32.mrb[19].mxu1 }
 0x851   : > { %7434 = vmatprep.mubr.f32.mxu0 %v6645_v39  ;;  %v6067_v19 = vsub.f32 1.0, %v5779_v42  ;;  %v5780_v7 = vand.u32 2147483647, %v5492_v57  ;;  %v4463_v36 = vand.u32 2147483647, %v4175_v15  ;;  %v4163_v8 = vsub.f32 %v17719_v1, %v11269_v44 }
 0x852   : > { %v6633_v48 = vmul.f32 %v6345_v63, %v5018_v35  ;;  %v4741_v40 = vsub.f32 1.0, %v4453_v14  ;;  %v5790_v37 = vand.u32 2147483647, %v5502_v23  ;;  %v5490_v53 = vsub.f32 %v17720_v29, %v11297_v55  ;;  %v8553_v63 = vld [vmem:[%s16226_s20 + $0x48] sm:$0xff]  ;;  %v8552_v14 = vld [vmem:[%s16226_s20 + $0x40] sm:$0xff] }
 0x853   : > { %v6355_v5 = vmax.f32 %v6067_v19, 0.0  ;;  %v6068_v20 = vsub.f32 1.0, %v5780_v7  ;;  %v4751_v18 = vsub.f32 1.0, %v4463_v36  ;;  %v4451_v13 = vand.u32 2147483647, %v4163_v8  ;;  %8623 = vperm.xlu0 %11006, %v8553_v63   ;;  %8618 = vperm.xlu1 %11007, %v8552_v14  }
 0x854   : > { %7205 = vmatmul.mubr.f32.gmra.mrb[58].mxu1 %v6633_v48  ;;  %v5029_v59 = vmax.f32 %v4741_v40, 0.0  ;;  %v6078_v24 = vsub.f32 1.0, %v5790_v37  ;;  %v5778_v58 = vand.u32 2147483647, %v5490_v53  ;;  %v4173_v35 = vsub.f32 %v15790_v45, %v11875_v30 }
 0x855   : > { %v6643_v39 = vmul.f32 %v6355_v5, %v5028_v27  ;;  %v6356_v42 = vmax.f32 %v6068_v20, 0.0  ;;  %v5039_v57 = vmax.f32 %v4751_v18, 0.0  ;;  %v4739_v15 = vsub.f32 1.0, %v4451_v13 }
 0x856   : > { %v6366_v23 = vmax.f32 %v6078_v24, 0.0  ;;  %v6066_v19 = vsub.f32 1.0, %v5778_v58  ;;  %v4461_v7 = vand.u32 2147483647, %v4173_v35  ;;  %v5500_v36 = vsub.f32 %v15827_v41, %v11899_v52 }
 0x857   : > { %7209 = vmatprep.mubr.f32.mxu1 %v6643_v39  ;;  %v6644_v8 = vmul.f32 %v6356_v42, %v5029_v59  ;;  %v5027_v48 = vmax.f32 %v4739_v15, 0.0  ;;  %v4174_v40 = vsub.f32 %v15790_v45, %v17665_v17  ;;  %v5501_v27 = vsub.f32 %v15827_v41, %v17666_v12 }
 0x858   : > { %v6654_v37 = vmul.f32 %v6366_v23, %v5039_v57  ;;  %v6354_v53 = vmax.f32 %v6066_v19, 0.0  ;;  %v4749_v5 = vsub.f32 1.0, %v4461_v7  ;;  %v5788_v20 = vand.u32 2147483647, %v5500_v36 }
 0x859   : > { %7435 = vmatmul.mubr.f32.gmra.mrb[74].mxu0 %v6644_v8  ;;  %v4462_v18 = vand.u32 2147483647, %v4174_v40  ;;  %v5789_v13 = vand.u32 2147483647, %v5501_v27  ;;  %v4184_v24 = vsub.f32 %v15887_v33, %v17663_v62  ;;  %v5511_v59 = vsub.f32 %v15885_v26, %v17664_v2  ;;  %v16330_v27 = vpop.f32.mrb[20].mxu1 }
 0x85a   : > { %7439 = vmatprep.mubr.f32.mxu0 %v6654_v37  ;;  %v6642_v58 = vmul.f32 %v6354_v53, %v5027_v48  ;;  %v5037_v35 = vmax.f32 %v4749_v5, 0.0  ;;  %v6076_v47 = vsub.f32 1.0, %v5788_v20  ;;  %v4172_v39 = vsub.f32 %v15790_v45, %v11269_v44  ;;  %17723 = vst [vmem:[#allocation61_spill] sm:$0xff] %v16330_v27 }
 0x85b   : > { %v4750_v42 = vsub.f32 1.0, %v4462_v18  ;;  %v6077_v57 = vsub.f32 1.0, %v5789_v13  ;;  %v4472_v15 = vand.u32 2147483647, %v4184_v24  ;;  %v5799_v63 = vand.u32 2147483647, %v5511_v59 }
 0x85c   : > { %7210 = vmatmul.mubr.f32.gmra.mrb[60].mxu1 %v6642_v58  ;;  %v6364_v14 = vmax.f32 %v6076_v47, 0.0  ;;  %v4460_v23 = vand.u32 2147483647, %v4172_v39  ;;  %v5499_v19 = vsub.f32 %v15827_v41, %v11297_v55  ;;  %v4182_v7 = vsub.f32 %v15887_v33, %v11875_v30  ;;  %v8555_v18 = vld [vmem:[%s16226_s20 + $0x58] sm:$0xff]  ;;  %v6888_v47 = vpop.f32.mrb[21].mxu1  ;;  %v8554_v39 = vld [vmem:[%s16226_s20 + $0x50] sm:$0xff] }
 0x85d   : > { %v5038_v36 = vmax.f32 %v4750_v42, 0.0  ;;  %v6365_v8 = vmax.f32 %v6077_v57, 0.0  ;;  %v4760_v48 = vsub.f32 1.0, %v4472_v15  ;;  %v6087_v40 = vsub.f32 1.0, %v5799_v63  ;;  %8633 = vperm.xlu0 %11006, %v8555_v18   ;;  %8628 = vperm.xlu1 %11007, %v8554_v39  }
 0x85e   : > { %v6652_v37 = vmul.f32 %v6364_v14, %v5037_v35  ;;  %v4748_v53 = vsub.f32 1.0, %v4460_v23  ;;  %v5787_v5 = vand.u32 2147483647, %v5499_v19  ;;  %v4470_v20 = vand.u32 2147483647, %v4182_v7 }
 0x85f   : > { %v6653_v13 = vmul.f32 %v6365_v8, %v5038_v36  ;;  %v5048_v24 = vmax.f32 %v4760_v48, 0.0  ;;  %v6375_v59 = vmax.f32 %v6087_v40, 0.0  ;;  %v5509_v58 = vsub.f32 %v15885_v26, %v11899_v52 }
 0x860   : > { %7214 = vmatprep.mubr.f32.mxu1 %v6652_v37  ;;  %v5036_v42 = vmax.f32 %v4748_v53, 0.0  ;;  %v6075_v57 = vsub.f32 1.0, %v5787_v5  ;;  %v4758_v15 = vsub.f32 1.0, %v4470_v20  ;;  %v4183_v35 = vsub.f32 %v15887_v33, %v17665_v17 }
 0x861   : > { %7440 = vmatmul.mubr.f32.gmra.mrb[76].mxu0 %v6653_v13  ;;  %v6663_v63 = vmul.f32 %v6375_v59, %v5048_v24  ;;  %v5797_v14 = vand.u32 2147483647, %v5509_v58  ;;  %v5510_v23 = vsub.f32 %v15885_v26, %v17666_v12  ;;  %v4193_v19 = vsub.f32 %v15909_v60, %v17663_v62 }
 0x862   : > { %v6363_v7 = vmax.f32 %v6075_v57, 0.0  ;;  %v5046_v36 = vmax.f32 %v4758_v15, 0.0  ;;  %v4471_v8 = vand.u32 2147483647, %v4183_v35  ;;  %v5520_v48 = vsub.f32 %v15913_v6, %v17664_v2 }
 0x863   : > { %7444 = vmatprep.mubr.f32.mxu0 %v6663_v63  ;;  %v6085_v40 = vsub.f32 1.0, %v5797_v14  ;;  %v5798_v37 = vand.u32 2147483647, %v5510_v23  ;;  %v4481_v53 = vand.u32 2147483647, %v4193_v19  ;;  %v4181_v5 = vsub.f32 %v15887_v33, %v11269_v44  ;;  %v16350_v14 = vpop.f32.mrb[22].mxu1 }
 0x864   : > { %v6651_v20 = vmul.f32 %v6363_v7, %v5036_v42  ;;  %v4759_v18 = vsub.f32 1.0, %v4471_v8  ;;  %v5808_v13 = vand.u32 2147483647, %v5520_v48  ;;  %v5508_v24 = vsub.f32 %v15885_v26, %v11297_v55  ;;  %17724 = vst [vmem:[#allocation62_spill] sm:$0xff] %v16350_v14  ;;  %v6893_v8 = vpop.f32.mrb[23].mxu1  ;;  %v8568_v33 = vld [vmem:[%s16226_s20 + $0xc0] sm:$0xff] }
 0x865   : > { %v6373_v59 = vmax.f32 %v6085_v40, 0.0  ;;  %v6086_v58 = vsub.f32 1.0, %v5798_v37  ;;  %v4769_v47 = vsub.f32 1.0, %v4481_v53  ;;  %v4469_v39 = vand.u32 2147483647, %v4181_v5  ;;  %v8557_v5 = vld [vmem:[%s16226_s20 + $0x68] sm:$0xff] }
 0x866   : > { %7215 = vmatmul.mubr.f32.gmra.mrb[62].mxu1 %v6651_v20  ;;  %v5047_v57 = vmax.f32 %v4759_v18, 0.0  ;;  %v6096_v15 = vsub.f32 1.0, %v5808_v13  ;;  %v5796_v35 = vand.u32 2147483647, %v5508_v24  ;;  %v4191_v63 = vsub.f32 %v15909_v60, %v11875_v30  ;;  %v8556_v20 = vld [vmem:[%s16226_s20 + $0x60] sm:$0xff]  ;;  %8643 = vperm.xlu0 %11006, %v8557_v5  }
 0x867   : > { %v6661_v42 = vmul.f32 %v6373_v59, %v5046_v36  ;;  %v6374_v23 = vmax.f32 %v6086_v58, 0.0  ;;  %v5057_v19 = vmax.f32 %v4769_v47, 0.0  ;;  %v4757_v7 = vsub.f32 1.0, %v4469_v39  ;;  %8638 = vperm.xlu1 %11007, %v8556_v20  }
 0x868   : > { %v6384_v48 = vmax.f32 %v6096_v15, 0.0  ;;  %v6084_v40 = vsub.f32 1.0, %v5796_v35  ;;  %v4479_v37 = vand.u32 2147483647, %v4191_v63  ;;  %v5518_v53 = vsub.f32 %v15913_v6, %v11899_v52 }
 0x869   : > { %7219 = vmatprep.mubr.f32.mxu1 %v6661_v42  ;;  %v6662_v18 = vmul.f32 %v6374_v23, %v5047_v57  ;;  %v5045_v13 = vmax.f32 %v4757_v7, 0.0  ;;  %v4192_v24 = vsub.f32 %v15909_v60, %v17665_v17  ;;  %v5519_v36 = vsub.f32 %v15913_v6, %v17666_v12 }
 0x86a   : > { %v6672_v59 = vmul.f32 %v6384_v48, %v5057_v19  ;;  %v6372_v58 = vmax.f32 %v6084_v40, 0.0  ;;  %v4767_v47 = vsub.f32 1.0, %v4479_v37  ;;  %v5806_v39 = vand.u32 2147483647, %v5518_v53 }
 0x86b   : > { %7445 = vmatmul.mubr.f32.gmra.mrb[78].mxu0 %v6662_v18  ;;  %v4480_v15 = vand.u32 2147483647, %v4192_v24  ;;  %v5807_v35 = vand.u32 2147483647, %v5519_v36  ;;  %v4202_v63 = vsub.f32 %v15919_v10, %v17663_v62  ;;  %v5529_v57 = vsub.f32 %v15933_v28, %v17664_v2 }
 0x86c   : > { %7449 = vmatprep.mubr.f32.mxu0 %v6672_v59  ;;  %v6660_v42 = vmul.f32 %v6372_v58, %v5045_v13  ;;  %v5055_v23 = vmax.f32 %v4767_v47, 0.0  ;;  %v6094_v7 = vsub.f32 1.0, %v5806_v39  ;;  %v4190_v19 = vsub.f32 %v15909_v60, %v11269_v44  ;;  %v16370_v39 = vpop.f32.mrb[24].mxu1  ;;  %v8569_v60 = vld [vmem:[%s16226_s20 + $0xc8] sm:$0xff] }
 0x86d   : > { %v4768_v8 = vsub.f32 1.0, %v4480_v15  ;;  %v6095_v48 = vsub.f32 1.0, %v5807_v35  ;;  %v4490_v40 = vand.u32 2147483647, %v4202_v63  ;;  %v5817_v37 = vand.u32 2147483647, %v5529_v57 }
 0x86e   : > { %7220 = vmatmul.mubr.f32.gmra.mrb[64].mxu1 %v6660_v42  ;;  %v6382_v53 = vmax.f32 %v6094_v7, 0.0  ;;  %v4478_v5 = vand.u32 2147483647, %v4190_v19  ;;  %v5517_v62 = vsub.f32 %v15913_v6, %v11297_v55  ;;  %v4200_v2 = vsub.f32 %v15919_v10, %v11875_v30  ;;  %17725 = vst [vmem:[#allocation63_spill] sm:$0xff] %v16370_v39  ;;  %v8559_v42 = vld [vmem:[%s16226_s20 + $0x78] sm:$0xff]  ;;  %v6898_v7 = vpop.f32.mrb[25].mxu1 }
 0x86f   : > { %v5056_v20 = vmax.f32 %v4768_v8, 0.0  ;;  %v6383_v18 = vmax.f32 %v6095_v48, 0.0  ;;  %v4778_v13 = vsub.f32 1.0, %v4490_v40  ;;  %v6105_v24 = vsub.f32 1.0, %v5817_v37  ;;  %v8558_v30 = vld [vmem:[%s16226_s20 + $0x70] sm:$0xff]  ;;  %8653 = vperm.xlu0 %11006, %v8559_v42  }
 0x870   : > { %v6670_v36 = vmul.f32 %v6382_v53, %v5055_v23  ;;  %v4766_v59 = vsub.f32 1.0, %v4478_v5  ;;  %v5805_v58 = vand.u32 2147483647, %v5517_v62  ;;  %v4488_v47 = vand.u32 2147483647, %v4200_v2  ;;  %v17726_v5 = vld [vmem:[#allocation5_spill] sm:$0xff]  ;;  %8648 = vperm.xlu1 %11007, %v8558_v30  }
 0x871   : > { %v6671_v15 = vmul.f32 %v6383_v18, %v5056_v20  ;;  %v5066_v35 = vmax.f32 %v4778_v13, 0.0  ;;  %v6393_v63 = vmax.f32 %v6105_v24, 0.0  ;;  %v5527_v57 = vsub.f32 %v15933_v28, %v11899_v52  ;;  %v17727_v62 = vld [vmem:[#allocation34_spill] sm:$0xff]  ;;  %v17728_v13 = vld [vmem:[#allocation9_spill] sm:$0xff]  ;;  %v17729_v24 = vld [vmem:[#allocation35_spill] sm:$0xff] }
 0x872   : > { %7224 = vmatprep.mubr.f32.mxu1 %v6670_v36  ;;  %v5054_v19 = vmax.f32 %v4766_v59, 0.0  ;;  %v6093_v8 = vsub.f32 1.0, %v5805_v58  ;;  %v4776_v48 = vsub.f32 1.0, %v4488_v47  ;;  %v4201_v23 = vsub.f32 %v15919_v10, %v17665_v17 }
 0x873   : > { %7450 = vmatmul.mubr.f32.gmra.mrb[80].mxu0 %v6671_v15  ;;  %v6681_v40 = vmul.f32 %v6393_v63, %v5066_v35  ;;  %v5815_v37 = vand.u32 2147483647, %v5527_v57  ;;  %v5528_v53 = vsub.f32 %v15933_v28, %v17666_v12  ;;  %v3925_v52 = vsub.f32 %v17727_v62, %v17726_v5 }
 0x874   : > { %v6381_v2 = vmax.f32 %v6093_v8, 0.0  ;;  %v5064_v20 = vmax.f32 %v4776_v48, 0.0  ;;  %v4489_v18 = vand.u32 2147483647, %v4201_v23  ;;  %v5252_v36 = vsub.f32 %v17729_v24, %v17728_v13 }
 0x875   : > { %7454 = vmatprep.mubr.f32.mxu0 %v6681_v40  ;;  %v6103_v59 = vsub.f32 1.0, %v5815_v37  ;;  %v5816_v17 = vand.u32 2147483647, %v5528_v53  ;;  %v4213_v58 = vand.u32 2147483647, %v3925_v52  ;;  %v4199_v47 = vsub.f32 %v15919_v10, %v11269_v44  ;;  %v17730_v40 = vld [vmem:[#allocation29_spill] sm:$0xff] }
 0x876   : > { %v6669_v15 = vmul.f32 %v6381_v2, %v5054_v19  ;;  %v4777_v35 = vsub.f32 1.0, %v4489_v18  ;;  %v5540_v12 = vand.u32 2147483647, %v5252_v36  ;;  %v5526_v63 = vsub.f32 %v15933_v28, %v11297_v55  ;;  %v16390_v2 = vpop.f32.mrb[26].mxu1 }
 0x877   : > { %v6391_v57 = vmax.f32 %v6103_v59, 0.0  ;;  %v6104_v42 = vsub.f32 1.0, %v5816_v17  ;;  %v4501_v7 = vsub.f32 1.0, %v4213_v58  ;;  %v4487_v30 = vand.u32 2147483647, %v4199_v47  ;;  %17731 = vst [vmem:[#allocation5_spill] sm:$0xff] %v16390_v2 }
 0x878   : > { %7225 = vmatmul.mubr.f32.gmra.mrb[66].mxu1 %v6669_v15  ;;  %v5065_v8 = vmax.f32 %v4777_v35, 0.0  ;;  %v5828_v48 = vsub.f32 1.0, %v5540_v12  ;;  %v5814_v23 = vand.u32 2147483647, %v5526_v63  ;;  %v3926_v37 = vsub.f32 %v17727_v62, %v17730_v40  ;;  %v17732_v59 = vld [vmem:[#allocation30_spill] sm:$0xff]  ;;  %v6903_v58 = vpop.f32.mrb[27].mxu1 }
 0x879   : > { %v6679_v53 = vmul.f32 %v6391_v57, %v5064_v20  ;;  %v6392_v44 = vmax.f32 %v6104_v42, 0.0  ;;  %v4789_v19 = vmax.f32 %v4501_v7, 0.0  ;;  %v4775_v52 = vsub.f32 1.0, %v4487_v30  ;;  %v17733_v35 = vld [vmem:[#allocation4_spill] sm:$0xff]  ;;  %v8561_v12 = vld [vmem:[%s16226_s20 + $0x88] sm:$0xff]  ;;  %v8560_v63 = vld [vmem:[%s16226_s20 + $0x80] sm:$0xff] }
 0x87a   : > { %v6116_v55 = vmax.f32 %v5828_v48, 0.0  ;;  %v6102_v18 = vsub.f32 1.0, %v5814_v23  ;;  %v4214_v36 = vand.u32 2147483647, %v3926_v37  ;;  %v5253_v17 = vsub.f32 %v17729_v24, %v17732_v59  ;;  %8663 = vperm.xlu0 %11006, %v8561_v12   ;;  %8658 = vperm.xlu1 %11007, %v8560_v63   ;;  %v17734_v23 = vld [vmem:[#allocation8_spill] sm:$0xff]  ;;  %v17737_v63 = vld [vmem:[#allocation47_spill] sm:$0xff] }
 0x87b   : > { %7229 = vmatprep.mubr.f32.mxu1 %v6679_v53  ;;  %v6680_v47 = vmul.f32 %v6392_v44, %v5065_v8  ;;  %v5063_v15 = vmax.f32 %v4775_v52, 0.0  ;;  %v3924_v20 = vsub.f32 %v17727_v62, %v17733_v35  ;;  %v5251_v37 = vsub.f32 %v17729_v24, %v17734_v23  ;;  %v17735_v8 = vld [vmem:[#allocation44_spill] sm:$0xff]  ;;  %v17736_v44 = vld [vmem:[#allocation45_spill] sm:$0xff] }
 0x87c   : > { %v6404_v57 = vmul.f32 %v6116_v55, %v4789_v19  ;;  %v6390_v42 = vmax.f32 %v6102_v18, 0.0  ;;  %v4502_v7 = vsub.f32 1.0, %v4214_v36  ;;  %v5541_v30 = vand.u32 2147483647, %v5253_v17 }
 0x87d   : > { %7455 = vmatmul.mubr.f32.gmra.mrb[82].mxu0 %v6680_v47  ;;  %v4212_v48 = vand.u32 2147483647, %v3924_v20  ;;  %v3934_v53 = vsub.f32 %v17735_v8, %v17726_v5  ;;  %v5261_v52 = vsub.f32 %v17736_v44, %v17728_v13  ;;  %v3935_v55 = vsub.f32 %v17735_v8, %v17730_v40 }
 0x87e   : > { %7524 = vmatprep.mubr.f32.mxu0 %v6404_v57  ;;  %v6678_v62 = vmul.f32 %v6390_v42, %v5063_v15  ;;  %v4790_v58 = vmax.f32 %v4502_v7, 0.0  ;;  %v5829_v19 = vsub.f32 1.0, %v5541_v30  ;;  %v5539_v36 = vand.u32 2147483647, %v5251_v37 }
 0x87f   : > { %v4500_v18 = vsub.f32 1.0, %v4212_v48  ;;  %v4222_v17 = vand.u32 2147483647, %v3934_v53  ;;  %v5262_v47 = vsub.f32 %v17736_v44, %v17732_v59  ;;  %v5549_v20 = vand.u32 2147483647, %v5261_v52 }
 0x880   : > { %7230 = vmatmul.mubr.f32.gmra.mrb[68].mxu1 %v6678_v62  ;;  %v6117_v24 = vmax.f32 %v5829_v19, 0.0  ;;  %v4223_v12 = vand.u32 2147483647, %v3935_v55  ;;  %v3944_v2 = vsub.f32 %v17737_v63, %v17730_v40  ;;  %v5827_v15 = vsub.f32 1.0, %v5539_v36  ;;  %v17738_v62 = vld [vmem:[#allocation48_spill] sm:$0xff]  ;;  %v16412_v19 = vpop.f32.mrb[28].mxu1 }
 0x881   : > { %v4788_v57 = vmax.f32 %v4500_v18, 0.0  ;;  %v4510_v42 = vsub.f32 1.0, %v4222_v17  ;;  %v5550_v7 = vand.u32 2147483647, %v5262_v47  ;;  %v5837_v48 = vsub.f32 1.0, %v5549_v20  ;;  %17739 = vst [vmem:[#allocation34_spill] sm:$0xff] %v16412_v19 }
 0x882   : > { %v6405_v30 = vmul.f32 %v6117_v24, %v4790_v58  ;;  %v4511_v37 = vsub.f32 1.0, %v4223_v12  ;;  %v4232_v53 = vand.u32 2147483647, %v3944_v2  ;;  %v6115_v39 = vmax.f32 %v5827_v15, 0.0  ;;  %v8563_v17 = vld [vmem:[%s16226_s20 + $0x98] sm:$0xff]  ;;  %v6908_v47 = vpop.f32.mrb[29].mxu1 }
 0x883   : > { %v4798_v14 = vmax.f32 %v4510_v42, 0.0  ;;  %v5838_v27 = vsub.f32 1.0, %v5550_v7  ;;  %v5271_v52 = vsub.f32 %v17738_v62, %v17732_v59  ;;  %v6125_v55 = vmax.f32 %v5837_v48, 0.0  ;;  %v8562_v24 = vld [vmem:[%s16226_s20 + $0x90] sm:$0xff]  ;;  %8673 = vperm.xlu0 %11006, %v8563_v17  }
 0x884   : > { %10240 = vmatprep.mubr.msk.f32.mxu1 %vm6685_vm5, %v6405_v30  ;;  %v4799_v18 = vmax.f32 %v4511_v37, 0.0  ;;  %v4520_v36 = vsub.f32 1.0, %v4232_v53  ;;  %v3933_v58 = vsub.f32 %v17735_v8, %v17733_v35  ;;  %v6403_v2 = vmul.f32 %v6115_v39, %v4788_v57  ;;  %8668 = vperm.xlu1 %11007, %v8562_v24  }
 0x885   : > { %v6126_v20 = vmax.f32 %v5838_v27, 0.0  ;;  %v5559_v12 = vand.u32 2147483647, %v5271_v52  ;;  %v5260_v15 = vsub.f32 %v17736_v44, %v17734_v23  ;;  %v6413_v42 = vmul.f32 %v6125_v55, %v4798_v14  ;;  %v17740_v44 = vld [vmem:[#allocation12_spill] sm:$0xff]  ;;  %v17741_v14 = vld [vmem:[#allocation46_spill] sm:$0xff] }
 0x886   : > { %v4808_v7 = vmax.f32 %v4520_v36, 0.0  ;;  %v4221_v30 = vand.u32 2147483647, %v3933_v58  ;;  %v3943_v48 = vsub.f32 %v17737_v63, %v17726_v5  ;;  %7525 = vmatmul.mubr.f32.vlgmr.msra.gmra.mrb[20].mxu0 %v6403_v2  ;;  %v5270_v39 = vsub.f32 %v17738_v62, %v17728_v13 }
 0x887   : > { %v6414_v37 = vmul.f32 %v6126_v20, %v4799_v18  ;;  %v5847_v8 = vsub.f32 1.0, %v5559_v12  ;;  %v5548_v53 = vand.u32 2147483647, %v5260_v15  ;;  %7529 = vmatprep.mubr.f32.mxu0 %v6413_v42  ;;  %v3953_v52 = vsub.f32 %v17740_v44, %v17730_v40  ;;  %v17742_v18 = vld [vmem:[#allocation15_spill] sm:$0xff] }
 0x888   : > { %v4509_v27 = vsub.f32 1.0, %v4221_v30  ;;  %v4231_v57 = vand.u32 2147483647, %v3943_v48  ;;  %v5280_v55 = vsub.f32 %v17741_v14, %v17732_v59  ;;  %v5558_v17 = vand.u32 2147483647, %v5270_v39 }
 0x889   : > { %10241 = vmatmul.mubr.msk.f32.vlgmr.msra.gmra.mrb[70].mxu1 %vm6685_vm5, %v6414_v37  ;;  %v6135_v36 = vmax.f32 %v5847_v8, 0.0  ;;  %v5836_v58 = vsub.f32 1.0, %v5548_v53  ;;  %v3962_v47 = vsub.f32 %v17742_v18, %v17730_v40  ;;  %v4241_v20 = vand.u32 2147483647, %v3953_v52  ;;  %v17743_v37 = vld [vmem:[#allocation14_spill] sm:$0xff]  ;;  %v16434_v53 = vpop.f32.mrb[30].mxu1 }
 0x88a   : > { %v4797_v24 = vmax.f32 %v4509_v27, 0.0  ;;  %v4519_v2 = vsub.f32 1.0, %v4231_v57  ;;  %v5568_v12 = vand.u32 2147483647, %v5280_v55  ;;  %v5846_v30 = vsub.f32 1.0, %v5558_v17  ;;  %17744 = vst [vmem:[#allocation9_spill] sm:$0xff] %v16434_v53 }
 0x88b   : > { %v6423_v15 = vmul.f32 %v6135_v36, %v4808_v7  ;;  %v6124_v42 = vmax.f32 %v5836_v58, 0.0  ;;  %v4250_v48 = vand.u32 2147483647, %v3962_v47  ;;  %v4529_v56 = vsub.f32 1.0, %v4241_v20  ;;  %v6913_v52 = vpop.f32.mrb[31].mxu1  ;;  %v8565_v47 = vld [vmem:[%s16226_s20 + $0xa8] sm:$0xff] }
 0x88c   : > { %v4807_v19 = vmax.f32 %v4519_v2, 0.0  ;;  %v5856_v28 = vsub.f32 1.0, %v5568_v12  ;;  %v5289_v8 = vsub.f32 %v17743_v37, %v17732_v59  ;;  %v6134_v27 = vmax.f32 %v5846_v30, 0.0  ;;  %v8564_v2 = vld [vmem:[%s16226_s20 + $0xa0] sm:$0xff]  ;;  %8683 = vperm.xlu0 %11006, %v8565_v47  }
 0x88d   : > { %10243 = vmatprep.mubr.msk.f32.mxu1 %vm6685_vm5, %v6423_v15  ;;  %v6412_v39 = vmul.f32 %v6124_v42, %v4797_v24  ;;  %v4538_v57 = vsub.f32 1.0, %v4250_v48  ;;  %v3942_v7 = vsub.f32 %v17737_v63, %v17733_v35  ;;  %v4817_v55 = vmax.f32 %v4529_v56, 0.0  ;;  %8678 = vperm.xlu1 %11007, %v8564_v2   ;;  %v17745_v30 = vld [vmem:[#allocation10_spill] sm:$0xff] }
 0x88e   : > { %v6144_v36 = vmax.f32 %v5856_v28, 0.0  ;;  %v5577_v58 = vand.u32 2147483647, %v5289_v8  ;;  %v5269_v17 = vsub.f32 %v17738_v62, %v17734_v23  ;;  %v6422_v20 = vmul.f32 %v6134_v27, %v4807_v19  ;;  %v17746_v19 = vld [vmem:[#allocation19_spill] sm:$0xff] }
 0x88f   : > { %7530 = vmatmul.mubr.f32.gmra.mrb[22].mxu0 %v6412_v39  ;;  %v4826_v12 = vmax.f32 %v4538_v57, 0.0  ;;  %v4230_v53 = vand.u32 2147483647, %v3942_v7  ;;  %v3952_v24 = vsub.f32 %v17740_v44, %v17726_v5  ;;  %v5279_v28 = vsub.f32 %v17741_v14, %v17728_v13  ;;  %v17747_v7 = vld [vmem:[#allocation11_spill] sm:$0xff] }
 0x890   : > { %v6432_v15 = vmul.f32 %v6144_v36, %v4817_v55  ;;  %v5865_v42 = vsub.f32 1.0, %v5577_v58  ;;  %v5557_v63 = vand.u32 2147483647, %v5269_v17  ;;  %7534 = vmatprep.mubr.f32.mxu0 %v6422_v20  ;;  %v3971_v48 = vsub.f32 %v17745_v30, %v17730_v40 }
 0x891   : > { %v4518_v56 = vsub.f32 1.0, %v4230_v53  ;;  %v4240_v62 = vand.u32 2147483647, %v3952_v24  ;;  %v5298_v8 = vsub.f32 %v17746_v19, %v17732_v59  ;;  %v5567_v57 = vand.u32 2147483647, %v5279_v28 }
 0x892   : > { %10244 = vmatmul.mubr.msk.f32.gmra.mrb[72].mxu1 %vm6685_vm5, %v6432_v15  ;;  %v6153_v39 = vmax.f32 %v5865_v42, 0.0  ;;  %v5845_v27 = vsub.f32 1.0, %v5557_v63  ;;  %v3980_v52 = vsub.f32 %v17747_v7, %v17730_v40  ;;  %v4259_v58 = vand.u32 2147483647, %v3971_v48  ;;  %v17748_v15 = vld [vmem:[#allocation26_spill] sm:$0xff]  ;;  %v16459_v48 = vpop.f32.mrb[32].mxu1 }
 0x893   : > { %v4806_v55 = vmax.f32 %v4518_v56, 0.0  ;;  %v4528_v36 = vsub.f32 1.0, %v4240_v62  ;;  %v5586_v53 = vand.u32 2147483647, %v5298_v8  ;;  %v5855_v2 = vsub.f32 1.0, %v5567_v57  ;;  %17749 = vst [vmem:[#allocation35_spill] sm:$0xff] %v16459_v48 }
 0x894   : > { %v6441_v17 = vmul.f32 %v6153_v39, %v4826_v12  ;;  %v6133_v47 = vmax.f32 %v5845_v27, 0.0  ;;  %v4268_v20 = vand.u32 2147483647, %v3980_v52  ;;  %v4547_v10 = vsub.f32 1.0, %v4259_v58  ;;  %v8567_v12 = vld [vmem:[%s16226_s20 + $0xb8] sm:$0xff]  ;;  %v8566_v8 = vld [vmem:[%s16226_s20 + $0xb0] sm:$0xff] }
 0x895   : > { %v4816_v24 = vmax.f32 %v4528_v36, 0.0  ;;  %v5874_v6 = vsub.f32 1.0, %v5586_v53  ;;  %v5307_v42 = vsub.f32 %v17748_v15, %v17732_v59  ;;  %v6143_v28 = vmax.f32 %v5855_v2, 0.0  ;;  %8693 = vperm.xlu0 %11006, %v8567_v12   ;;  %v6918_v36 = vpop.f32.mrb[33].mxu1  ;;  %8688 = vperm.xlu1 %11007, %v8566_v8   ;;  %v17752_v12 = vld [vmem:[#allocation24_spill] sm:$0xff] }
 0x896   : > { %10246 = vmatprep.mubr.msk.f32.mxu1 %vm6685_vm5, %v6441_v17  ;;  %v6421_v63 = vmul.f32 %v6133_v47, %v4806_v55  ;;  %v4556_v56 = vsub.f32 1.0, %v4268_v20  ;;  %v3951_v62 = vsub.f32 %v17740_v44, %v17733_v35  ;;  %v4835_v39 = vmax.f32 %v4547_v10, 0.0  ;;  %v16476_v48 = vpop.f32.mrb[34].mxu1 }
 0x897   : > { %v6162_v27 = vmax.f32 %v5874_v6, 0.0  ;;  %v5595_v57 = vand.u32 2147483647, %v5307_v42  ;;  %v5278_v52 = vsub.f32 %v17741_v14, %v17734_v23  ;;  %v6431_v55 = vmul.f32 %v6143_v28, %v4816_v24  ;;  %v17750_v14 = vld [vmem:[#allocation18_spill] sm:$0xff]  ;;  %17753 = vst [vmem:[#allocation29_spill] sm:$0xff] %v16476_v48 }
 0x898   : > { %7535 = vmatmul.mubr.f32.gmra.mrb[24].mxu0 %v6421_v63  ;;  %v4844_v58 = vmax.f32 %v4556_v56, 0.0  ;;  %v4239_v53 = vand.u32 2147483647, %v3951_v62  ;;  %v3961_v44 = vsub.f32 %v17742_v18, %v17726_v5  ;;  %v5288_v6 = vsub.f32 %v17743_v37, %v17728_v13  ;;  %v17751_v63 = vld [vmem:[#allocation13_spill] sm:$0xff] }
 0x899   : > { %v6450_v17 = vmul.f32 %v6162_v27, %v4835_v39  ;;  %v5883_v47 = vsub.f32 1.0, %v5595_v57  ;;  %v5566_v2 = vand.u32 2147483647, %v5278_v52  ;;  %7539 = vmatprep.mubr.f32.mxu0 %v6431_v55  ;;  %v3989_v42 = vsub.f32 %v17750_v14, %v17730_v40  ;;  %8703 = vperm.xlu0 %11006, %v8569_v60   ;;  %v8571_v60 = vld [vmem:[%s16226_s20 + $0xd8] sm:$0xff] }
 0x89a   : > { %v4527_v10 = vsub.f32 1.0, %v4239_v53  ;;  %v4249_v20 = vand.u32 2147483647, %v3961_v44  ;;  %v5316_v24 = vsub.f32 %v17751_v63, %v17732_v59  ;;  %v5576_v62 = vand.u32 2147483647, %v5288_v6  ;;  %8698 = vperm.xlu1 %11007, %v8568_v33  }
 0x89b   : > { %10247 = vmatmul.mubr.msk.f32.gmra.mrb[74].mxu1 %vm6685_vm5, %v6450_v17  ;;  %v6171_v28 = vmax.f32 %v5883_v47, 0.0  ;;  %v5854_v56 = vsub.f32 1.0, %v5566_v2  ;;  %v3998_v8 = vsub.f32 %v17752_v12, %v17730_v40  ;;  %v4277_v57 = vand.u32 2147483647, %v3989_v42  ;;  %v17754_v2 = vld [vmem:[#allocation31_spill] sm:$0xff] }
 0x89c   : > { %v4815_v39 = vmax.f32 %v4527_v10, 0.0  ;;  %v4537_v27 = vsub.f32 1.0, %v4249_v20  ;;  %v5604_v52 = vand.u32 2147483647, %v5316_v24  ;;  %v5864_v53 = vsub.f32 1.0, %v5576_v62  ;;  %v6923_v10 = vpop.f32.mrb[35].mxu1 }
 0x89d   : > { %v6459_v36 = vmul.f32 %v6171_v28, %v4844_v58  ;;  %v6142_v55 = vmax.f32 %v5854_v56, 0.0  ;;  %v4286_v44 = vand.u32 2147483647, %v3998_v8  ;;  %v4565_v17 = vsub.f32 1.0, %v4277_v57  ;;  %8713 = vperm.xlu0 %11006, %v8571_v60   ;;  %v17757_v10 = vld [vmem:[#allocation20_spill] sm:$0xff] }
 0x89e   : > { %v4825_v26 = vmax.f32 %v4537_v27, 0.0  ;;  %v5892_v47 = vsub.f32 1.0, %v5604_v52  ;;  %v5325_v6 = vsub.f32 %v17754_v2, %v17732_v59  ;;  %v6152_v58 = vmax.f32 %v5864_v53, 0.0  ;;  %v16487_v27 = vpop.f32.mrb[36].mxu1  ;;  %v8570_v53 = vld [vmem:[%s16226_s20 + $0xd0] sm:$0xff] }
 0x89f   : > { %10249 = vmatprep.mubr.msk.f32.mxu1 %vm6685_vm5, %v6459_v36  ;;  %v6430_v20 = vmul.f32 %v6142_v55, %v4815_v39  ;;  %v4574_v42 = vsub.f32 1.0, %v4286_v44  ;;  %v3960_v24 = vsub.f32 %v17742_v18, %v17733_v35  ;;  %v4853_v28 = vmax.f32 %v4565_v17, 0.0  ;;  %17755 = vst [vmem:[#allocation30_spill] sm:$0xff] %v16487_v27  ;;  %v6928_v55 = vpop.f32.mrb[37].mxu1  ;;  %8708 = vperm.xlu1 %11007, %v8570_v53   ;;  %v8573_v53 = vld [vmem:[%s16226_s20 + $0xe8] sm:$0xff] }
 0x8a0   : > { %v6180_v56 = vmax.f32 %v5892_v47, 0.0  ;;  %v5613_v62 = vand.u32 2147483647, %v5325_v6  ;;  %v5287_v8 = vsub.f32 %v17743_v37, %v17734_v23  ;;  %v6440_v57 = vmul.f32 %v6152_v58, %v4825_v26  ;;  %v17756_v6 = vld [vmem:[#allocation16_spill] sm:$0xff]  ;;  %v16502_v48 = vpop.f32.mrb[38].mxu1 }
 0x8a1   : > { %7540 = vmatmul.mubr.f32.gmra.mrb[26].mxu0 %v6430_v20  ;;  %v4862_v52 = vmax.f32 %v4574_v42, 0.0  ;;  %v4248_v39 = vand.u32 2147483647, %v3960_v24  ;;  %v3970_v36 = vsub.f32 %v17745_v30, %v17726_v5  ;;  %v5297_v17 = vsub.f32 %v17746_v19, %v17728_v13  ;;  %17759 = vst [vmem:[#allocation4_spill] sm:$0xff] %v16502_v48  ;;  %8723 = vperm.xlu0 %11006, %v8573_v53  }
 0x8a2   : > { %v6468_v18 = vmul.f32 %v6180_v56, %v4853_v28  ;;  %v5901_v33 = vsub.f32 1.0, %v5613_v62  ;;  %v5575_v44 = vand.u32 2147483647, %v5287_v8  ;;  %7544 = vmatprep.mubr.f32.mxu0 %v6440_v57  ;;  %v4007_v26 = vsub.f32 %v17756_v6, %v17730_v40  ;;  %v17758_v28 = vld [vmem:[#allocation17_spill] sm:$0xff] }
 0x8a3   : > { %v4536_v37 = vsub.f32 1.0, %v4248_v39  ;;  %v4258_v47 = vand.u32 2147483647, %v3970_v36  ;;  %v5334_v20 = vsub.f32 %v17757_v10, %v17732_v59  ;;  %v5585_v24 = vand.u32 2147483647, %v5297_v17  ;;  %v17760_v17 = vld [vmem:[#allocation25_spill] sm:$0xff] }
 0x8a4   : > { %10250 = vmatmul.mubr.msk.f32.gmra.mrb[76].mxu1 %vm6685_vm5, %v6468_v18  ;;  %v6189_v58 = vmax.f32 %v5901_v33, 0.0  ;;  %v5863_v42 = vsub.f32 1.0, %v5575_v44  ;;  %v4016_v56 = vsub.f32 %v17758_v28, %v17730_v40  ;;  %v4295_v60 = vand.u32 2147483647, %v4007_v26 }
 0x8a5   : > { %v4824_v62 = vmax.f32 %v4536_v37, 0.0  ;;  %v4546_v8 = vsub.f32 1.0, %v4258_v47  ;;  %v5622_v57 = vand.u32 2147483647, %v5334_v20  ;;  %v5873_v55 = vsub.f32 1.0, %v5585_v24  ;;  %v6933_v37 = vpop.f32.mrb[39].mxu1 }
 0x8a6   : > { %v6477_v39 = vmul.f32 %v6189_v58, %v4862_v52  ;;  %v6151_v36 = vmax.f32 %v5863_v42, 0.0  ;;  %v4304_v27 = vand.u32 2147483647, %v4016_v56  ;;  %v4583_v33 = vsub.f32 1.0, %v4295_v60  ;;  %v8572_v47 = vld [vmem:[%s16226_s20 + $0xe0] sm:$0xff]  ;;  %v11018_v58 = vld [vmem:[%s16226_s20 + $0x8] sm:$0xff] }
 0x8a7   : > { %v4834_v18 = vmax.f32 %v4546_v8, 0.0  ;;  %v5910_v44 = vsub.f32 1.0, %v5622_v57  ;;  %v5343_v41 = vsub.f32 %v17760_v17, %v17732_v59  ;;  %v6161_v26 = vmax.f32 %v5873_v55, 0.0  ;;  %8718 = vperm.xlu1 %11007, %v8572_v47   ;;  %v11019_v60 = vld [vmem:[%s16226_s20] sm:$0xff] }
 0x8a8   : > { %10252 = vmatprep.mubr.msk.f32.mxu1 %vm6685_vm5, %v6477_v39  ;;  %v6439_v52 = vmul.f32 %v6151_v36, %v4824_v62  ;;  %v4592_v20 = vsub.f32 1.0, %v4304_v27  ;;  %v8769_v42 = vsub.f32 1.0, %v11018_v58  ;;  %v4871_v24 = vmax.f32 %v4583_v33, 0.0  ;;  %v16515_v39 = vpop.f32.mrb[40].mxu1  ;;  %v8575_v27 = vld [vmem:[%s16226_s20 + $0xf8] sm:$0xff]  ;;  %v8574_v36 = vld [vmem:[%s16226_s20 + $0xf0] sm:$0xff] }
 0x8a9   : > { %v6198_v56 = vmax.f32 %v5910_v44, 0.0  ;;  %v5631_v8 = vand.u32 2147483647, %v5343_v41  ;;  %v8768_v57 = vsub.f32 1.0, %v11019_v60  ;;  %v6449_v48 = vmul.f32 %v6161_v26, %v4834_v18  ;;  %17761 = vst [vmem:[#allocation8_spill] sm:$0xff] %v16515_v39  ;;  %8733 = vperm.xlu0 %11006, %v8575_v27   ;;  %v6938_v18 = vpop.f32.mrb[41].mxu1 }
 0x8aa   : > { %7545 = vmatmul.mubr.f32.gmra.mrb[28].mxu0 %v6439_v52  ;;  %v4880_v53 = vmax.f32 %v4592_v20, 0.0  ;;  %v3969_v37 = vsub.f32 %v17745_v30, %v17733_v35  ;;  %v5296_v62 = vsub.f32 %v17746_v19, %v17734_v23  ;;  %v3979_v41 = vsub.f32 %v17747_v7, %v17726_v5  ;;  %v17762_v52 = vld [vmem:[#allocation27_spill] sm:$0xff]  ;;  %v17763_v26 = vld [vmem:[#allocation38_spill] sm:$0xff] }
 0x8ab   : > { %v6486_v55 = vmul.f32 %v6198_v56, %v4871_v24  ;;  %v5919_v47 = vsub.f32 1.0, %v5631_v8  ;;  %v5306_v33 = vsub.f32 %v17748_v15, %v17728_v13  ;;  %7549 = vmatprep.mubr.f32.mxu0 %v6449_v48  ;;  %v4025_v19 = vsub.f32 %v17762_v52, %v17730_v40  ;;  %8728 = vperm.xlu1 %11007, %v8574_v36   ;;  %v17764_v8 = vld [vmem:[#allocation39_spill] sm:$0xff] }
 0x8ac   : > { %v4257_v44 = vand.u32 2147483647, %v3969_v37  ;;  %v5584_v30 = vand.u32 2147483647, %v5296_v62  ;;  %v5352_v20 = vsub.f32 %v17763_v26, %v17732_v59  ;;  %v4267_v24 = vand.u32 2147483647, %v3979_v41 }
 0x8ad   : > { %10253 = vmatmul.mubr.msk.f32.gmra.mrb[78].mxu1 %vm6685_vm5, %v6486_v55  ;;  %v6207_v58 = vmax.f32 %v5919_v47, 0.0  ;;  %v5594_v56 = vand.u32 2147483647, %v5306_v33  ;;  %v4034_v60 = vsub.f32 %v17764_v8, %v17730_v40  ;;  %v4313_v48 = vand.u32 2147483647, %v4025_v19  ;;  %8807 = vperm.xlu0 %11006, %v8769_v42  }
 0x8ae   : > { %v4545_v27 = vsub.f32 1.0, %v4257_v44  ;;  %v5872_v18 = vsub.f32 1.0, %v5584_v30  ;;  %v5640_v37 = vand.u32 2147483647, %v5352_v20  ;;  %v4555_v39 = vsub.f32 1.0, %v4267_v24  ;;  %v17765_v44 = vld [vmem:[#allocation21_spill] sm:$0xff] }
 0x8af   : > { %v6495_v62 = vmul.f32 %v6207_v58, %v4880_v53  ;;  %v5882_v45 = vsub.f32 1.0, %v5594_v56  ;;  %v4322_v29 = vand.u32 2147483647, %v4034_v60  ;;  %v4601_v34 = vsub.f32 1.0, %v4313_v48  ;;  %8802 = vperm.xlu1 %11007, %v8768_v57   ;;  %v11020_v58 = vld [vmem:[%s16226_s20 + $0x18] sm:$0xff] }
 0x8b0   : > { %v4833_v1 = vmax.f32 %v4545_v27, 0.0  ;;  %v6160_v36 = vmax.f32 %v5872_v18, 0.0  ;;  %v5928_v55 = vsub.f32 1.0, %v5640_v37  ;;  %v4843_v47 = vmax.f32 %v4555_v39, 0.0  ;;  %v11021_v27 = vld [vmem:[%s16226_s20 + $0x10] sm:$0xff]  ;;  %v17766_v48 = vld [vmem:[#allocation33_spill] sm:$0xff] }
 0x8b1   : > { %10255 = vmatprep.mubr.msk.f32.mxu1 %vm6685_vm5, %v6495_v62  ;;  %v6170_v41 = vmax.f32 %v5882_v45, 0.0  ;;  %v4610_v33 = vsub.f32 1.0, %v4322_v29  ;;  %v5361_v30 = vsub.f32 %v17765_v44, %v17732_v59  ;;  %v4889_v19 = vmax.f32 %v4601_v34, 0.0  ;;  %v17767_v62 = vld [vmem:[#allocation22_spill] sm:$0xff] }
 0x8b2   : > { %v6448_v53 = vmul.f32 %v6160_v36, %v4833_v1  ;;  %v6216_v20 = vmax.f32 %v5928_v55, 0.0  ;;  %v8771_v24 = vsub.f32 1.0, %v11020_v58  ;;  %v8770_v18 = vsub.f32 1.0, %v11021_v27 }
 0x8b3   : > { %v6458_v42 = vmul.f32 %v6170_v41, %v4843_v47  ;;  %v4898_v56 = vmax.f32 %v4610_v33, 0.0  ;;  %v5649_v60 = vand.u32 2147483647, %v5361_v30  ;;  %v3978_v39 = vsub.f32 %v17747_v7, %v17733_v35  ;;  %v17768_v47 = vld [vmem:[#allocation41_spill] sm:$0xff] }
 0x8b4   : > { %7550 = vmatmul.mubr.f32.gmra.mrb[30].mxu0 %v6448_v53  ;;  %v6504_v57 = vmul.f32 %v6216_v20, %v4889_v19  ;;  %v5305_v45 = vsub.f32 %v17748_v15, %v17734_v23  ;;  %v3988_v1 = vsub.f32 %v17750_v14, %v17726_v5  ;;  %v5315_v29 = vsub.f32 %v17751_v63, %v17728_v13  ;;  %v17769_v19 = vld [vmem:[#allocation36_spill] sm:$0xff] }
 0x8b5   : > { %7554 = vmatprep.mubr.f32.mxu0 %v6458_v42  ;;  %v5937_v34 = vsub.f32 1.0, %v5649_v60  ;;  %v4043_v37 = vsub.f32 %v17766_v48, %v17730_v40  ;;  %v5370_v36 = vsub.f32 %v17767_v62, %v17732_v59  ;;  %8817 = vperm.xlu0 %11006, %v8771_v24   ;;  %v4266_v7 = vand.u32 2147483647, %v3978_v39  ;;  %v11023_v62 = vld [vmem:[%s16226_s20 + $0x20] sm:$0xff] }
 0x8b6   : > { %10256 = vmatmul.mubr.msk.f32.gmra.mrb[80].mxu1 %vm6685_vm5, %v6504_v57  ;;  %v5593_v55 = vand.u32 2147483647, %v5305_v45  ;;  %v4276_v15 = vand.u32 2147483647, %v3988_v1  ;;  %v4052_v41 = vsub.f32 %v17768_v47, %v17730_v40  ;;  %8812 = vperm.xlu1 %11007, %v8770_v18   ;;  %v5603_v30 = vand.u32 2147483647, %v5315_v29 }
 0x8b7   : > { %v6225_v33 = vmax.f32 %v5937_v34, 0.0  ;;  %v4331_v53 = vand.u32 2147483647, %v4043_v37  ;;  %v5379_v20 = vsub.f32 %v17769_v19, %v17732_v59  ;;  %v4554_v58 = vsub.f32 1.0, %v4266_v7 }
 0x8b8   : > { %v5881_v42 = vsub.f32 1.0, %v5593_v55  ;;  %v4564_v60 = vsub.f32 1.0, %v4276_v15  ;;  %v5658_v27 = vand.u32 2147483647, %v5370_v36  ;;  %v5891_v57 = vsub.f32 1.0, %v5603_v30  ;;  %v11022_v15 = vld [vmem:[%s16226_s20 + $0x28] sm:$0xff] }
 0x8b9   : > { %v6513_v24 = vmul.f32 %v6225_v33, %v4898_v56  ;;  %v4619_v39 = vsub.f32 1.0, %v4331_v53  ;;  %v4340_v45 = vand.u32 2147483647, %v4052_v41  ;;  %v4842_v1 = vmax.f32 %v4554_v58, 0.0 }
 0x8ba   : > { %v6169_v46 = vmax.f32 %v5881_v42, 0.0  ;;  %v4852_v47 = vmax.f32 %v4564_v60, 0.0  ;;  %v5946_v18 = vsub.f32 1.0, %v5658_v27  ;;  %v6179_v34 = vmax.f32 %v5891_v57, 0.0  ;;  %v17771_v27 = vld [vmem:[#allocation42_spill] sm:$0xff] }
 0x8bb   : > { %10258 = vmatprep.mubr.msk.f32.mxu1 %vm6685_vm5, %v6513_v24  ;;  %v4907_v29 = vmax.f32 %v4619_v39, 0.0  ;;  %v4628_v37 = vsub.f32 1.0, %v4340_v45  ;;  %v5667_v19 = vand.u32 2147483647, %v5379_v20  ;;  %v8773_v36 = vsub.f32 1.0, %v11022_v15 }
 0x8bc   : > { %v6457_v7 = vmul.f32 %v6169_v46, %v4842_v1  ;;  %v6234_v55 = vmax.f32 %v5946_v18, 0.0  ;;  %v8772_v56 = vsub.f32 1.0, %v11023_v62  ;;  %v6467_v33 = vmul.f32 %v6179_v34, %v4852_v47  ;;  %v17770_v47 = vld [vmem:[#allocation32_spill] sm:$0xff] }
 0x8bd   : > { %v4916_v30 = vmax.f32 %v4628_v37, 0.0  ;;  %v5955_v53 = vsub.f32 1.0, %v5667_v19  ;;  %v3987_v41 = vsub.f32 %v17750_v14, %v17733_v35  ;;  %v5314_v42 = vsub.f32 %v17751_v63, %v17734_v23  ;;  %8827 = vperm.xlu0 %11006, %v8773_v36  }
 0x8be   : > { %7555 = vmatmul.mubr.f32.gmra.mrb[32].mxu0 %v6457_v7  ;;  %v6522_v58 = vmul.f32 %v6234_v55, %v4907_v29  ;;  %v3997_v20 = vsub.f32 %v17752_v12, %v17726_v5  ;;  %v5324_v46 = vsub.f32 %v17754_v2, %v17728_v13  ;;  %v4061_v19 = vsub.f32 %v17770_v47, %v17730_v40 }
 0x8bf   : > { %7559 = vmatprep.mubr.f32.mxu0 %v6467_v33  ;;  %v6243_v60 = vmax.f32 %v5955_v53, 0.0  ;;  %v4275_v62 = vand.u32 2147483647, %v3987_v41  ;;  %v5388_v14 = vsub.f32 %v17771_v27, %v17732_v59  ;;  %v5602_v24 = vand.u32 2147483647, %v5314_v42  ;;  %8822 = vperm.xlu1 %11007, %v8772_v56  }
 0x8c0   : > { %10259 = vmatmul.mubr.msk.f32.gmra.mrb[82].mxu1 %vm6685_vm5, %v6522_v58  ;;  %v4285_v63 = vand.u32 2147483647, %v3997_v20  ;;  %v5612_v57 = vand.u32 2147483647, %v5324_v46  ;;  %v4070_v39 = vsub.f32 %v14672_v25, %v17730_v40  ;;  %v4349_v18 = vand.u32 2147483647, %v4061_v19 }
 0x8c1   : > { %v6531_v45 = vmul.f32 %v6243_v60, %v4916_v30  ;;  %v4563_v1 = vsub.f32 1.0, %v4275_v62  ;;  %v5676_v34 = vand.u32 2147483647, %v5388_v14  ;;  %v5890_v29 = vsub.f32 1.0, %v5602_v24  ;;  %v11024_v60 = vld [vmem:[%s16226_s20 + $0x38] sm:$0xff] }
 0x8c2   : > { %v4573_v37 = vsub.f32 1.0, %v4285_v63  ;;  %v5900_v7 = vsub.f32 1.0, %v5612_v57  ;;  %v4358_v55 = vand.u32 2147483647, %v4070_v39  ;;  %v4637_v36 = vsub.f32 1.0, %v4349_v18  ;;  %v11025_v63 = vld [vmem:[%s16226_s20 + $0x30] sm:$0xff] }
 0x8c3   : > { %10261 = vmatprep.mubr.msk.f32.mxu1 %vm6685_vm5, %v6531_v45  ;;  %v4851_v15 = vmax.f32 %v4563_v1, 0.0  ;;  %v5964_v33 = vsub.f32 1.0, %v5676_v34  ;;  %v5397_v53 = vsub.f32 %v14704_v21, %v17732_v59  ;;  %v6178_v41 = vmax.f32 %v5890_v29, 0.0 }
 0x8c4   : > { %v4861_v56 = vmax.f32 %v4573_v37, 0.0  ;;  %v6188_v30 = vmax.f32 %v5900_v7, 0.0  ;;  %v4646_v58 = vsub.f32 1.0, %v4358_v55  ;;  %v4925_v42 = vmax.f32 %v4637_v36, 0.0 }
 0x8c5   : > { %v6252_v20 = vmax.f32 %v5964_v33, 0.0  ;;  %v5685_v46 = vand.u32 2147483647, %v5397_v53  ;;  %v8775_v62 = vsub.f32 1.0, %v11024_v60  ;;  %v6466_v19 = vmul.f32 %v6178_v41, %v4851_v15 }
 0x8c6   : > { %v6476_v14 = vmul.f32 %v6188_v30, %v4861_v56  ;;  %v4934_v24 = vmax.f32 %v4646_v58, 0.0  ;;  %v8774_v57 = vsub.f32 1.0, %v11025_v63  ;;  %v3996_v1 = vsub.f32 %v17752_v12, %v17733_v35 }
 0x8c7   : > { %v6540_v39 = vmul.f32 %v6252_v20, %v4925_v42  ;;  %v5973_v45 = vsub.f32 1.0, %v5685_v46  ;;  %v5323_v18 = vsub.f32 %v17754_v2, %v17734_v23  ;;  %8837 = vperm.xlu0 %11006, %v8775_v62   ;;  %7560 = vmatmul.mubr.f32.gmra.mrb[34].mxu0 %v6466_v19  ;;  %v4006_v34 = vsub.f32 %v17756_v6, %v17726_v5 }
 0x8c8   : > { %v5333_v29 = vsub.f32 %v17757_v10, %v17728_v13  ;;  %v4079_v37 = vsub.f32 %v14816_v43, %v17730_v40  ;;  %v5406_v7 = vsub.f32 %v14822_v49, %v17732_v59  ;;  %7564 = vmatprep.mubr.f32.mxu0 %v6476_v14  ;;  %v4284_v55 = vand.u32 2147483647, %v3996_v1  ;;  %8832 = vperm.xlu1 %11007, %v8774_v57  }
 0x8c9   : > { %10262 = vmatmul.mubr.msk.f32.gmra.mrb[84].mxu1 %vm6685_vm5, %v6540_v39  ;;  %v6261_v12 = vmax.f32 %v5973_v45, 0.0  ;;  %v5611_v2 = vand.u32 2147483647, %v5323_v18  ;;  %v4088_v15 = vsub.f32 %v15135_v61, %v17730_v40  ;;  %v4294_v36 = vand.u32 2147483647, %v4006_v34 }
 0x8ca   : > { %v5621_v33 = vand.u32 2147483647, %v5333_v29  ;;  %v4367_v53 = vand.u32 2147483647, %v4079_v37  ;;  %v5415_v41 = vsub.f32 %v15128_v4, %v17732_v59  ;;  %v4572_v30 = vsub.f32 1.0, %v4284_v55  ;;  %v11026_v37 = vld [vmem:[%s16226_s20 + $0x48] sm:$0xff] }
 0x8cb   : > { %v6549_v56 = vmul.f32 %v6261_v12, %v4934_v24  ;;  %v5899_v58 = vsub.f32 1.0, %v5611_v2  ;;  %v5694_v42 = vand.u32 2147483647, %v5406_v7  ;;  %v4582_v20 = vsub.f32 1.0, %v4294_v36  ;;  %v11027_v2 = vld [vmem:[%s16226_s20 + $0x40] sm:$0xff] }
 0x8cc   : > { %v5909_v46 = vsub.f32 1.0, %v5621_v33  ;;  %v4655_v60 = vsub.f32 1.0, %v4367_v53  ;;  %v4376_v62 = vand.u32 2147483647, %v4088_v15  ;;  %v4860_v19 = vmax.f32 %v4572_v30, 0.0 }
 0x8cd   : > { %10264 = vmatprep.mubr.msk.f32.mxu1 %vm6685_vm5, %v6549_v56  ;;  %v6187_v14 = vmax.f32 %v5899_v58, 0.0  ;;  %v5982_v63 = vsub.f32 1.0, %v5694_v42  ;;  %v5703_v39 = vand.u32 2147483647, %v5415_v41  ;;  %v4870_v45 = vmax.f32 %v4582_v20, 0.0 }
 0x8ce   : > { %v6197_v1 = vmax.f32 %v5909_v46, 0.0  ;;  %v4943_v18 = vmax.f32 %v4655_v60, 0.0  ;;  %v4664_v57 = vsub.f32 1.0, %v4376_v62  ;;  %v8777_v7 = vsub.f32 1.0, %v11026_v37 }
 0x8cf   : > { %v6475_v24 = vmul.f32 %v6187_v14, %v4860_v19  ;;  %v6270_v34 = vmax.f32 %v5982_v63, 0.0  ;;  %v5991_v29 = vsub.f32 1.0, %v5703_v39  ;;  %v8776_v15 = vsub.f32 1.0, %v11027_v2 }
 0x8d0   : > { %v6485_v12 = vmul.f32 %v6197_v1, %v4870_v45  ;;  %v4952_v55 = vmax.f32 %v4664_v57, 0.0  ;;  %v4005_v36 = vsub.f32 %v17756_v6, %v17733_v35  ;;  %v5332_v41 = vsub.f32 %v17757_v10, %v17734_v23  ;;  %8847 = vperm.xlu0 %11006, %v8777_v7  }
 0x8d1   : > { %7565 = vmatmul.mubr.f32.gmra.mrb[36].mxu0 %v6475_v24  ;;  %v6558_v33 = vmul.f32 %v6270_v34, %v4943_v18  ;;  %v6279_v53 = vmax.f32 %v5991_v29, 0.0  ;;  %v4015_v56 = vsub.f32 %v17758_v28, %v17726_v5  ;;  %v5342_v58 = vsub.f32 %v17760_v17, %v17728_v13  ;;  %8842 = vperm.xlu1 %11007, %v8776_v15  }
 0x8d2   : > { %7569 = vmatprep.mubr.f32.mxu0 %v6485_v12  ;;  %v4293_v30 = vand.u32 2147483647, %v4005_v36  ;;  %v4097_v42 = vsub.f32 %v15163_v3, %v17730_v40  ;;  %v5424_v6 = vsub.f32 %v15205_v9, %v17732_v59  ;;  %v5620_v10 = vand.u32 2147483647, %v5332_v41 }
 0x8d3   : > { %10265 = vmatmul.mubr.msk.f32.gmra.mrb[86].mxu1 %vm6685_vm5, %v6558_v33  ;;  %v6567_v20 = vmul.f32 %v6279_v53, %v4952_v55  ;;  %v4303_v46 = vand.u32 2147483647, %v4015_v56  ;;  %v4106_v60 = vsub.f32 %v15269_v16, %v17730_v40  ;;  %v5630_v19 = vand.u32 2147483647, %v5342_v58  ;;  %v11028_v33 = vld [vmem:[%s16226_s20 + $0x58] sm:$0xff]  ;;  %v11029_v58 = vld [vmem:[%s16226_s20 + $0x50] sm:$0xff] }
 0x8d4   : > { %v4581_v62 = vsub.f32 1.0, %v4293_v30  ;;  %v4385_v14 = vand.u32 2147483647, %v4097_v42  ;;  %v5433_v63 = vsub.f32 %v15274_v11, %v17732_v59  ;;  %v5908_v39 = vsub.f32 1.0, %v5620_v10 }
 0x8d5   : > { %10267 = vmatprep.mubr.msk.f32.mxu1 %vm6685_vm5, %v6567_v20  ;;  %v4591_v45 = vsub.f32 1.0, %v4303_v46  ;;  %v5712_v1 = vand.u32 2147483647, %v5424_v6  ;;  %v4394_v18 = vand.u32 2147483647, %v4106_v60  ;;  %v5918_v24 = vsub.f32 1.0, %v5630_v19 }
 0x8d6   : > { %v4869_v57 = vmax.f32 %v4581_v62, 0.0  ;;  %v4673_v34 = vsub.f32 1.0, %v4385_v14  ;;  %v5721_v29 = vand.u32 2147483647, %v5433_v63  ;;  %v6196_v37 = vmax.f32 %v5908_v39, 0.0 }
 0x8d7   : > { %v4879_v7 = vmax.f32 %v4591_v45, 0.0  ;;  %v6000_v12 = vsub.f32 1.0, %v5712_v1  ;;  %v4682_v55 = vsub.f32 1.0, %v4394_v18  ;;  %v6206_v2 = vmax.f32 %v5918_v24, 0.0 }
 0x8d8   : > { %v4961_v15 = vmax.f32 %v4673_v34, 0.0  ;;  %v6009_v36 = vsub.f32 1.0, %v5721_v29  ;;  %v8779_v53 = vsub.f32 1.0, %v11028_v33  ;;  %v6484_v41 = vmul.f32 %v6196_v37, %v4869_v57 }
 0x8d9   : > { %v6288_v56 = vmax.f32 %v6000_v12, 0.0  ;;  %v4970_v30 = vmax.f32 %v4682_v55, 0.0  ;;  %v8778_v42 = vsub.f32 1.0, %v11029_v58  ;;  %v6494_v6 = vmul.f32 %v6206_v2, %v4879_v7 }
 0x8da   : > { %v6297_v20 = vmax.f32 %v6009_v36, 0.0  ;;  %v4014_v10 = vsub.f32 %v17758_v28, %v17733_v35  ;;  %v5341_v46 = vsub.f32 %v17760_v17, %v17734_v23  ;;  %8857 = vperm.xlu0 %11006, %v8779_v53   ;;  %7570 = vmatmul.mubr.f32.gmra.mrb[38].mxu0 %v6484_v41  ;;  %v4024_v62 = vsub.f32 %v17762_v52, %v17726_v5 }
 0x8db   : > { %v6576_v60 = vmul.f32 %v6288_v56, %v4961_v15  ;;  %v5351_v19 = vsub.f32 %v17763_v26, %v17728_v13  ;;  %v4115_v14 = vsub.f32 %v15342_v22, %v17730_v40  ;;  %7574 = vmatprep.mubr.f32.mxu0 %v6494_v6  ;;  %v5442_v28 = vsub.f32 %v15338_v38, %v17732_v59 }
 0x8dc   : > { %v6585_v63 = vmul.f32 %v6297_v20, %v4970_v30  ;;  %v4302_v39 = vand.u32 2147483647, %v4014_v10  ;;  %v5629_v45 = vand.u32 2147483647, %v5341_v46  ;;  %8852 = vperm.xlu1 %11007, %v8778_v42   ;;  %v4312_v17 = vand.u32 2147483647, %v4024_v62 }
 0x8dd   : > { %10268 = vmatmul.mubr.msk.f32.gmra.mrb[88].mxu1 %vm6685_vm5, %v6576_v60  ;;  %v5639_v1 = vand.u32 2147483647, %v5351_v19  ;;  %v4403_v18 = vand.u32 2147483647, %v4115_v14  ;;  %v4124_v57 = vsub.f32 %v17704_v54, %v17730_v40  ;;  %v5730_v29 = vand.u32 2147483647, %v5442_v28 }
 0x8de   : > { %10270 = vmatprep.mubr.msk.f32.mxu1 %vm6685_vm5, %v6585_v63  ;;  %v4590_v24 = vsub.f32 1.0, %v4302_v39  ;;  %v5917_v34 = vsub.f32 1.0, %v5629_v45  ;;  %v5451_v37 = vsub.f32 %v17705_v32, %v17732_v59  ;;  %v4600_v7 = vsub.f32 1.0, %v4312_v17  ;;  %v11030_v10 = vld [vmem:[%s16226_s20 + $0x68] sm:$0xff]  ;;  %v11031_v19 = vld [vmem:[%s16226_s20 + $0x60] sm:$0xff] }
 0x8df   : > { %v5927_v12 = vsub.f32 1.0, %v5639_v1  ;;  %v4691_v55 = vsub.f32 1.0, %v4403_v18  ;;  %v4412_v2 = vand.u32 2147483647, %v4124_v57  ;;  %v6018_v33 = vsub.f32 1.0, %v5730_v29 }
 0x8e0   : > { %v4878_v15 = vmax.f32 %v4590_v24, 0.0  ;;  %v6205_v36 = vmax.f32 %v5917_v34, 0.0  ;;  %v5739_v53 = vand.u32 2147483647, %v5451_v37  ;;  %v4888_v41 = vmax.f32 %v4600_v7, 0.0 }
 0x8e1   : > { %v6215_v56 = vmax.f32 %v5927_v12, 0.0  ;;  %v4979_v30 = vmax.f32 %v4691_v55, 0.0  ;;  %v4700_v58 = vsub.f32 1.0, %v4412_v2  ;;  %v6306_v6 = vmax.f32 %v6018_v33, 0.0 }
 0x8e2   : > { %v6493_v42 = vmul.f32 %v6205_v36, %v4878_v15  ;;  %v6027_v20 = vsub.f32 1.0, %v5739_v53  ;;  %v8781_v46 = vsub.f32 1.0, %v11030_v10  ;;  %v8780_v14 = vsub.f32 1.0, %v11031_v19 }
 0x8e3   : > { %v6503_v60 = vmul.f32 %v6215_v56, %v4888_v41  ;;  %v4988_v62 = vmax.f32 %v4700_v58, 0.0  ;;  %v4023_v63 = vsub.f32 %v17762_v52, %v17733_v35  ;;  %v6594_v39 = vmul.f32 %v6306_v6, %v4979_v30 }
 0x8e4   : > { %7575 = vmatmul.mubr.f32.gmra.mrb[40].mxu0 %v6493_v42  ;;  %v6315_v45 = vmax.f32 %v6027_v20, 0.0  ;;  %v5350_v28 = vsub.f32 %v17763_v26, %v17734_v23  ;;  %v4033_v17 = vsub.f32 %v17764_v8, %v17726_v5  ;;  %8867 = vperm.xlu0 %11006, %v8781_v46   ;;  %v5360_v18 = vsub.f32 %v17765_v44, %v17728_v13 }
 0x8e5   : > { %7579 = vmatprep.mubr.f32.mxu0 %v6503_v60  ;;  %v4311_v1 = vand.u32 2147483647, %v4023_v63  ;;  %v4133_v57 = vsub.f32 %v17707_v31, %v17730_v40  ;;  %v5460_v52 = vsub.f32 %v17708_v50, %v17732_v59  ;;  %8862 = vperm.xlu1 %11007, %v8780_v14   ;;  %v4142_v29 = vsub.f32 %v17710_v51, %v17730_v40 }
 0x8e6   : > { %10271 = vmatmul.mubr.msk.f32.gmra.mrb[90].mxu1 %vm6685_vm5, %v6594_v39  ;;  %v6603_v24 = vmul.f32 %v6315_v45, %v4988_v62  ;;  %v5638_v26 = vand.u32 2147483647, %v5350_v28  ;;  %v4321_v34 = vand.u32 2147483647, %v4033_v17  ;;  %v5648_v7 = vand.u32 2147483647, %v5360_v18 }
 0x8e7   : > { %v4599_v37 = vsub.f32 1.0, %v4311_v1  ;;  %v4421_v12 = vand.u32 2147483647, %v4133_v57  ;;  %v5469_v55 = vsub.f32 %v17711_v0, %v17732_v59  ;;  %v5748_v36 = vand.u32 2147483647, %v5460_v52  ;;  %v11032_v62 = vld [vmem:[%s16226_s20 + $0x78] sm:$0xff] }
 0x8e8   : > { %10273 = vmatprep.mubr.msk.f32.mxu1 %vm6685_vm5, %v6603_v24  ;;  %v5926_v2 = vsub.f32 1.0, %v5638_v26  ;;  %v4609_v15 = vsub.f32 1.0, %v4321_v34  ;;  %v4430_v33 = vand.u32 2147483647, %v4142_v29  ;;  %v5936_v41 = vsub.f32 1.0, %v5648_v7  ;;  %v11033_v45 = vld [vmem:[%s16226_s20 + $0x70] sm:$0xff] }
 0x8e9   : > { %v4887_v53 = vmax.f32 %v4599_v37, 0.0  ;;  %v4709_v56 = vsub.f32 1.0, %v4421_v12  ;;  %v5757_v30 = vand.u32 2147483647, %v5469_v55  ;;  %v6036_v6 = vsub.f32 1.0, %v5748_v36  ;;  %v17772_v26 = vld [vmem:[#allocation22_spill] sm:$0xff] }
 0x8ea   : > { %v6214_v58 = vmax.f32 %v5926_v2, 0.0  ;;  %v4897_v42 = vmax.f32 %v4609_v15, 0.0  ;;  %v4718_v20 = vsub.f32 1.0, %v4430_v33  ;;  %v6224_v10 = vmax.f32 %v5936_v41, 0.0  ;;  %v17773_v29 = vld [vmem:[#allocation2_spill] sm:$0xff]  ;;  %v17775_v33 = vld [vmem:[#allocation49_spill] sm:$0xff] }
 0x8eb   : > { %v4997_v46 = vmax.f32 %v4709_v56, 0.0  ;;  %v6045_v60 = vsub.f32 1.0, %v5757_v30  ;;  %v8783_v19 = vsub.f32 1.0, %v11032_v62  ;;  %v6324_v63 = vmax.f32 %v6036_v6, 0.0 }
 0x8ec   : > { %v6502_v14 = vmul.f32 %v6214_v58, %v4887_v53  ;;  %v5006_v39 = vmax.f32 %v4718_v20, 0.0  ;;  %v8782_v28 = vsub.f32 1.0, %v11033_v45  ;;  %v6512_v17 = vmul.f32 %v6224_v10, %v4897_v42  ;;  %v17776_v58 = vld [vmem:[#allocation50_spill] sm:$0xff] }
 0x8ed   : > { %v6333_v1 = vmax.f32 %v6045_v60, 0.0  ;;  %v4032_v18 = vsub.f32 %v17764_v8, %v17733_v35  ;;  %v5359_v57 = vsub.f32 %v17765_v44, %v17734_v23  ;;  %8877 = vperm.xlu0 %11006, %v8783_v19   ;;  %v6612_v52 = vmul.f32 %v6324_v63, %v4997_v46  ;;  %v17774_v8 = vld [vmem:[#allocation6_spill] sm:$0xff] }
 0x8ee   : > { %7580 = vmatmul.mubr.f32.gmra.mrb[42].mxu0 %v6502_v14  ;;  %v4042_v24 = vsub.f32 %v17766_v48, %v17726_v5  ;;  %v5369_v34 = vsub.f32 %v17772_v26, %v17728_v13  ;;  %v4151_v37 = vsub.f32 %v17773_v29, %v17730_v40  ;;  %v5478_v2 = vsub.f32 %v17774_v8, %v17732_v59 }
 0x8ef   : > { %7584 = vmatprep.mubr.f32.mxu0 %v6512_v17  ;;  %v6621_v7 = vmul.f32 %v6333_v1, %v5006_v39  ;;  %v4320_v12 = vand.u32 2147483647, %v4032_v18  ;;  %v5647_v55 = vand.u32 2147483647, %v5359_v57  ;;  %8872 = vperm.xlu1 %11007, %v8782_v28   ;;  %v4160_v53 = vsub.f32 %v17775_v33, %v17730_v40  ;;  %v11034_v57 = vld [vmem:[%s16226_s20 + $0x88] sm:$0xff] }
 0x8f0   : > { %10274 = vmatmul.mubr.msk.f32.gmra.mrb[92].mxu1 %vm6685_vm5, %v6612_v52  ;;  %v4330_v44 = vand.u32 2147483647, %v4042_v24  ;;  %v5657_v15 = vand.u32 2147483647, %v5369_v34  ;;  %v4439_v36 = vand.u32 2147483647, %v4151_v37  ;;  %v5487_v42 = vsub.f32 %v17776_v58, %v17732_v59 }
 0x8f1   : > { %10276 = vmatprep.mubr.msk.f32.mxu1 %vm6685_vm5, %v6621_v7  ;;  %v4608_v41 = vsub.f32 1.0, %v4320_v12  ;;  %v5935_v56 = vsub.f32 1.0, %v5647_v55  ;;  %v5766_v30 = vand.u32 2147483647, %v5478_v2  ;;  %v4448_v46 = vand.u32 2147483647, %v4160_v53 }
 0x8f2   : > { %v4618_v6 = vsub.f32 1.0, %v4330_v44  ;;  %v5945_v20 = vsub.f32 1.0, %v5657_v15  ;;  %v4727_v10 = vsub.f32 1.0, %v4439_v36  ;;  %v5775_v14 = vand.u32 2147483647, %v5487_v42  ;;  %v11035_v37 = vld [vmem:[%s16226_s20 + $0x80] sm:$0xff] }
 0x8f3   : > { %v4896_v60 = vmax.f32 %v4608_v41, 0.0  ;;  %v6223_v62 = vmax.f32 %v5935_v56, 0.0  ;;  %v6054_v19 = vsub.f32 1.0, %v5766_v30  ;;  %v4736_v28 = vsub.f32 1.0, %v4448_v46  ;;  %v17777_v15 = vld [vmem:[#allocation41_spill] sm:$0xff]  ;;  %v17778_v41 = vld [vmem:[#allocation36_spill] sm:$0xff] }
 0x8f4   : > { %v4906_v63 = vmax.f32 %v4618_v6, 0.0  ;;  %v6233_v39 = vmax.f32 %v5945_v20, 0.0  ;;  %v5015_v45 = vmax.f32 %v4727_v10, 0.0  ;;  %v6063_v18 = vsub.f32 1.0, %v5775_v14  ;;  %v17779_v30 = vld [vmem:[#allocation52_spill] sm:$0xff]  ;;  %v17781_v46 = vld [vmem:[#allocation53_spill] sm:$0xff] }
 0x8f5   : > { %v6511_v17 = vmul.f32 %v6223_v62, %v4896_v60  ;;  %v6342_v1 = vmax.f32 %v6054_v19, 0.0  ;;  %v8785_v52 = vsub.f32 1.0, %v11034_v57  ;;  %v5024_v34 = vmax.f32 %v4736_v28, 0.0 }
 0x8f6   : > { %v6521_v24 = vmul.f32 %v6233_v39, %v4906_v63  ;;  %v8784_v7 = vsub.f32 1.0, %v11035_v37  ;;  %v4041_v12 = vsub.f32 %v17766_v48, %v17733_v35  ;;  %v6351_v2 = vmax.f32 %v6063_v18, 0.0  ;;  %v17780_v48 = vld [vmem:[#allocation51_spill] sm:$0xff]  ;;  %v17782_v63 = vld [vmem:[#allocation54_spill] sm:$0xff] }
 0x8f7   : > { %7585 = vmatmul.mubr.f32.gmra.mrb[44].mxu0 %v6511_v17  ;;  %v6630_v55 = vmul.f32 %v6342_v1, %v5015_v45  ;;  %v5368_v44 = vsub.f32 %v17772_v26, %v17734_v23  ;;  %v4051_v36 = vsub.f32 %v17777_v15, %v17726_v5  ;;  %8887 = vperm.xlu0 %11006, %v8785_v52  }
 0x8f8   : > { %7589 = vmatprep.mubr.f32.mxu0 %v6521_v24  ;;  %v4329_v53 = vand.u32 2147483647, %v4041_v12  ;;  %v5378_v56 = vsub.f32 %v17778_v41, %v17728_v13  ;;  %v4169_v42 = vsub.f32 %v17779_v30, %v17730_v40  ;;  %v5496_v6 = vsub.f32 %v17780_v48, %v17732_v59  ;;  %8882 = vperm.xlu1 %11007, %v8784_v7  }
 0x8f9   : > { %10277 = vmatmul.mubr.msk.f32.gmra.mrb[94].mxu1 %vm6685_vm5, %v6630_v55  ;;  %v6639_v20 = vmul.f32 %v6351_v2, %v5024_v34  ;;  %v5656_v26 = vand.u32 2147483647, %v5368_v44  ;;  %v4339_v10 = vand.u32 2147483647, %v4051_v36  ;;  %v4178_v60 = vsub.f32 %v17781_v46, %v17730_v40  ;;  %v16693_v34 = vpop.f32.mrb[42].mxu1 }
 0x8fa   : > { %v4617_v62 = vsub.f32 1.0, %v4329_v53  ;;  %v5666_v19 = vand.u32 2147483647, %v5378_v56  ;;  %v4457_v14 = vand.u32 2147483647, %v4169_v42  ;;  %v5505_v39 = vsub.f32 %v17782_v63, %v17732_v59  ;;  %17783 = vst [vmem:[#allocation44_spill] sm:$0xff] %v16693_v34 }
 0x8fb   : > { %10279 = vmatprep.mubr.msk.f32.mxu1 %vm6685_vm5, %v6639_v20  ;;  %v5944_v45 = vsub.f32 1.0, %v5656_v26  ;;  %v4627_v28 = vsub.f32 1.0, %v4339_v10  ;;  %v5784_v17 = vand.u32 2147483647, %v5496_v6  ;;  %v4466_v1 = vand.u32 2147483647, %v4178_v60 }
 0x8fc   : > { %v4905_v18 = vmax.f32 %v4617_v62, 0.0  ;;  %v5954_v57 = vsub.f32 1.0, %v5666_v19  ;;  %v4745_v52 = vsub.f32 1.0, %v4457_v14  ;;  %v5793_v24 = vand.u32 2147483647, %v5505_v39  ;;  %v11036_v53 = vld [vmem:[%s16226_s20 + $0x98] sm:$0xff] }
 0x8fd   : > { %v6232_v37 = vmax.f32 %v5944_v45, 0.0  ;;  %v4915_v7 = vmax.f32 %v4627_v28, 0.0  ;;  %v6072_v12 = vsub.f32 1.0, %v5784_v17  ;;  %v4754_v55 = vsub.f32 1.0, %v4466_v1  ;;  %v7168_v42 = vpop.f32.mrb[43].mxu1  ;;  %v11037_v10 = vld [vmem:[%s16226_s20 + $0x90] sm:$0xff] }
 0x8fe   : > { %v6242_v2 = vmax.f32 %v5954_v57, 0.0  ;;  %v5033_v44 = vmax.f32 %v4745_v52, 0.0  ;;  %v6081_v36 = vsub.f32 1.0, %v5793_v24  ;;  %v8787_v56 = vsub.f32 1.0, %v11036_v53  ;;  %v16697_v62 = vpop.f32.mrb[44].mxu1  ;;  %v17785_v57 = vld [vmem:[#allocation56_spill] sm:$0xff] }
 0x8ff   : > { %v6520_v20 = vmul.f32 %v6232_v37, %v4905_v18  ;;  %v6360_v6 = vmax.f32 %v6072_v12, 0.0  ;;  %v5042_v26 = vmax.f32 %v4754_v55, 0.0  ;;  %v8786_v60 = vsub.f32 1.0, %v11037_v10  ;;  %17784 = vst [vmem:[#allocation45_spill] sm:$0xff] %v16697_v62  ;;  %v7173_v28 = vpop.f32.mrb[45].mxu1 }
 0x900   : > { %v6530_v19 = vmul.f32 %v6242_v2, %v4915_v7  ;;  %v6369_v14 = vmax.f32 %v6081_v36, 0.0  ;;  %v4050_v39 = vsub.f32 %v17777_v15, %v17733_v35  ;;  %v5377_v45 = vsub.f32 %v17778_v41, %v17734_v23  ;;  %8897 = vperm.xlu0 %11006, %v8787_v56   ;;  %v17786_v7 = vld [vmem:[#allocation55_spill] sm:$0xff]  ;;  %v16711_v12 = vpop.f32.mrb[46].mxu1  ;;  %v17788_v36 = vld [vmem:[#allocation57_spill] sm:$0xff] }
 0x901   : > { %7590 = vmatmul.mubr.f32.gmra.mrb[46].mxu0 %v6520_v20  ;;  %v6648_v17 = vmul.f32 %v6360_v6, %v5033_v44  ;;  %v4060_v1 = vsub.f32 %v17770_v47, %v17726_v5  ;;  %v5387_v18 = vsub.f32 %v17771_v27, %v17728_v13  ;;  %v4187_v52 = vsub.f32 %v17785_v57, %v17730_v40  ;;  %v17789_v6 = vld [vmem:[#allocation58_spill] sm:$0xff]  ;;  %v7178_v10 = vpop.f32.mrb[47].mxu1 }
 0x902   : > { %7594 = vmatprep.mubr.f32.mxu0 %v6530_v19  ;;  %v6657_v24 = vmul.f32 %v6369_v14, %v5042_v26  ;;  %v4338_v37 = vand.u32 2147483647, %v4050_v39  ;;  %v5665_v15 = vand.u32 2147483647, %v5377_v45  ;;  %v5514_v41 = vsub.f32 %v17786_v7, %v17732_v59  ;;  %8892 = vperm.xlu1 %11007, %v8786_v60   ;;  %17787 = vst [vmem:[#allocation47_spill] sm:$0xff] %v16711_v12 }
 0x903   : > { %10280 = vmatmul.mubr.msk.f32.gmra.mrb[96].mxu1 %vm6685_vm5, %v6648_v17  ;;  %v4348_v55 = vand.u32 2147483647, %v4060_v1  ;;  %v5675_v2 = vand.u32 2147483647, %v5387_v18  ;;  %v4475_v44 = vand.u32 2147483647, %v4187_v52  ;;  %v4196_v53 = vsub.f32 %v17788_v36, %v17730_v40 }
 0x904   : > { %10282 = vmatprep.mubr.msk.f32.mxu1 %vm6685_vm5, %v6657_v24  ;;  %v4626_v56 = vsub.f32 1.0, %v4338_v37  ;;  %v5953_v42 = vsub.f32 1.0, %v5665_v15  ;;  %v5802_v20 = vand.u32 2147483647, %v5514_v41  ;;  %v5523_v26 = vsub.f32 %v17789_v6, %v17732_v59  ;;  %v16719_v18 = vpop.f32.mrb[48].mxu1 }
 0x905   : > { %v4636_v60 = vsub.f32 1.0, %v4348_v55  ;;  %v5963_v19 = vsub.f32 1.0, %v5675_v2  ;;  %v4763_v14 = vsub.f32 1.0, %v4475_v44  ;;  %v4484_v39 = vand.u32 2147483647, %v4196_v53  ;;  %v7183_v41 = vpop.f32.mrb[49].mxu1 }
 0x906   : > { %v4914_v45 = vmax.f32 %v4626_v56, 0.0  ;;  %v6241_v28 = vmax.f32 %v5953_v42, 0.0  ;;  %v6090_v17 = vsub.f32 1.0, %v5802_v20  ;;  %v5811_v1 = vand.u32 2147483647, %v5523_v26  ;;  %v11038_v55 = vld [vmem:[%s16226_s20 + $0xa8] sm:$0xff] }
 0x907   : > { %v4924_v52 = vmax.f32 %v4636_v60, 0.0  ;;  %v6251_v24 = vmax.f32 %v5963_v19, 0.0  ;;  %v5051_v37 = vmax.f32 %v4763_v14, 0.0  ;;  %v4772_v15 = vsub.f32 1.0, %v4484_v39  ;;  %v16722_v34 = vpop.f32.mrb[50].mxu1  ;;  %v11039_v56 = vld [vmem:[%s16226_s20 + $0xa0] sm:$0xff] }
 0x908   : > { %v6529_v12 = vmul.f32 %v6241_v28, %v4914_v45  ;;  %v6378_v62 = vmax.f32 %v6090_v17, 0.0  ;;  %v6099_v10 = vsub.f32 1.0, %v5811_v1  ;;  %v8789_v2 = vsub.f32 1.0, %v11038_v55  ;;  %v7188_v39 = vpop.f32.mrb[51].mxu1 }
 0x909   : > { %v6539_v44 = vmul.f32 %v6251_v24, %v4924_v52  ;;  %v5060_v53 = vmax.f32 %v4772_v15, 0.0  ;;  %v8788_v42 = vsub.f32 1.0, %v11039_v56  ;;  %v4059_v20 = vsub.f32 %v17770_v47, %v17733_v35  ;;  %v17790_v47 = vld [vmem:[#allocation59_spill] sm:$0xff] }
 0x90a   : > { %7595 = vmatmul.mubr.f32.gmra.mrb[48].mxu0 %v6529_v12  ;;  %v6666_v26 = vmul.f32 %v6378_v62, %v5051_v37  ;;  %v6387_v60 = vmax.f32 %v6099_v10, 0.0  ;;  %v5386_v19 = vsub.f32 %v17771_v27, %v17734_v23  ;;  %v4069_v14 = vsub.f32 %v14672_v25, %v17726_v5  ;;  %8907 = vperm.xlu0 %11006, %v8789_v2   ;;  %v17791_v62 = vld [vmem:[#allocation60_spill] sm:$0xff]  ;;  %v11040_v37 = vld [vmem:[%s16226_s20 + $0xb8] sm:$0xff] }
 0x90b   : > { %7599 = vmatprep.mubr.f32.mxu0 %v6539_v44  ;;  %v4347_v45 = vand.u32 2147483647, %v4059_v20  ;;  %v5396_v28 = vsub.f32 %v14704_v21, %v17728_v13  ;;  %v4205_v12 = vsub.f32 %v17790_v47, %v17730_v40  ;;  %v5532_v17 = vsub.f32 %v17791_v62, %v17732_v59  ;;  %8902 = vperm.xlu1 %11007, %v8788_v42   ;;  %v16737_v1 = vpop.f32.mrb[52].mxu1  ;;  %v11041_v44 = vld [vmem:[%s16226_s20 + $0xb0] sm:$0xff] }
 0x90c   : > { %10283 = vmatmul.mubr.msk.f32.gmra.mrb[98].mxu1 %vm6685_vm5, %v6666_v26  ;;  %v6675_v27 = vmul.f32 %v6387_v60, %v5060_v53  ;;  %v5674_v52 = vand.u32 2147483647, %v5386_v19  ;;  %v4357_v24 = vand.u32 2147483647, %v4069_v14  ;;  %v8791_v15 = vsub.f32 1.0, %v11040_v37  ;;  %v7193_v41 = vpop.f32.mrb[53].mxu1 }
 0x90d   : > { %v4635_v10 = vsub.f32 1.0, %v4347_v45  ;;  %v5684_v55 = vand.u32 2147483647, %v5396_v28  ;;  %v4493_v2 = vand.u32 2147483647, %v4205_v12  ;;  %v8790_v56 = vsub.f32 1.0, %v11041_v44 }
 0x90e   : > { %10285 = vmatprep.mubr.msk.f32.mxu1 %vm6685_vm5, %v6675_v27  ;;  %v5962_v40 = vsub.f32 1.0, %v5674_v52  ;;  %v4645_v59 = vsub.f32 1.0, %v4357_v24  ;;  %v5820_v42 = vand.u32 2147483647, %v5532_v17  ;;  %v4068_v20 = vsub.f32 %v14672_v25, %v17733_v35  ;;  %8917 = vperm.xlu0 %11006, %v8791_v15  }
 0x90f   : > { %v4923_v53 = vmax.f32 %v4635_v10, 0.0  ;;  %v5972_v26 = vsub.f32 1.0, %v5684_v55  ;;  %v4781_v60 = vsub.f32 1.0, %v4493_v2  ;;  %v5395_v19 = vsub.f32 %v14704_v21, %v17734_v23  ;;  %8912 = vperm.xlu1 %11007, %v8790_v56   ;;  %v11042_v55 = vld [vmem:[%s16226_s20 + $0xc8] sm:$0xff] }
 0x910   : > { %v6250_v14 = vmax.f32 %v5962_v40, 0.0  ;;  %v4933_v39 = vmax.f32 %v4645_v59, 0.0  ;;  %v6108_v45 = vsub.f32 1.0, %v5820_v42  ;;  %v4356_v28 = vand.u32 2147483647, %v4068_v20  ;;  %v11043_v59 = vld [vmem:[%s16226_s20 + $0xc0] sm:$0xff] }
 0x911   : > { %v6260_v12 = vmax.f32 %v5972_v26, 0.0  ;;  %v5069_v27 = vmax.f32 %v4781_v60, 0.0  ;;  %v5683_v17 = vand.u32 2147483647, %v5395_v19  ;;  %v4078_v25 = vsub.f32 %v14816_v43, %v17726_v5 }
 0x912   : > { %v6538_v52 = vmul.f32 %v6250_v14, %v4923_v53  ;;  %v6396_v24 = vmax.f32 %v6108_v45, 0.0  ;;  %v4644_v37 = vsub.f32 1.0, %v4356_v28  ;;  %v5405_v15 = vsub.f32 %v14822_v49, %v17728_v13  ;;  %v11044_v45 = vld [vmem:[%s16226_s20 + $0xd8] sm:$0xff] }
 0x913   : > { %v6548_v21 = vmul.f32 %v6260_v12, %v4933_v39  ;;  %v5971_v41 = vsub.f32 1.0, %v5683_v17  ;;  %v4366_v10 = vand.u32 2147483647, %v4078_v25  ;;  %v8793_v2 = vsub.f32 1.0, %v11042_v55 }
 0x914   : > { %7600 = vmatmul.mubr.f32.gmra.mrb[50].mxu0 %v6538_v52  ;;  %v6684_v44 = vmul.f32 %v6396_v24, %v5069_v27  ;;  %v4932_v56 = vmax.f32 %v4644_v37, 0.0  ;;  %v5693_v40 = vand.u32 2147483647, %v5405_v15  ;;  %v8792_v42 = vsub.f32 1.0, %v11043_v59  ;;  %v11045_v15 = vld [vmem:[%s16226_s20 + $0xd0] sm:$0xff] }
 0x915   : > { %7604 = vmatprep.mubr.f32.mxu0 %v6548_v21  ;;  %v6259_v20 = vmax.f32 %v5971_v41, 0.0  ;;  %v4654_v53 = vsub.f32 1.0, %v4366_v10  ;;  %v4077_v26 = vsub.f32 %v14816_v43, %v17733_v35  ;;  %v5404_v60 = vsub.f32 %v14822_v49, %v17734_v23  ;;  %8927 = vperm.xlu0 %11006, %v8793_v2   ;;  %v16763_v12 = vpop.f32.mrb[54].mxu1 }
 0x916   : > { %10286 = vmatmul.mubr.msk.f32.gmra.mrb[100].mxu1 %vm6685_vm5, %v6684_v44  ;;  %v5981_v19 = vsub.f32 1.0, %v5693_v40  ;;  %v4087_v14 = vsub.f32 %v15135_v61, %v17726_v5  ;;  %v5414_v39 = vsub.f32 %v15128_v4, %v17728_v13  ;;  %v8795_v28 = vsub.f32 1.0, %v11044_v45  ;;  %8922 = vperm.xlu1 %11007, %v8792_v42   ;;  %v7198_v25 = vpop.f32.mrb[55].mxu1 }
 0x917   : > { %v6547_v43 = vmul.f32 %v6259_v20, %v4932_v56  ;;  %v4942_v27 = vmax.f32 %v4654_v53, 0.0  ;;  %v4365_v17 = vand.u32 2147483647, %v4077_v26  ;;  %v5692_v49 = vand.u32 2147483647, %v5404_v60  ;;  %v11047_v25 = vld [vmem:[%s16226_s20 + $0xe0] sm:$0xff] }
 0x918   : > { %v6269_v52 = vmax.f32 %v5981_v19, 0.0  ;;  %v4375_v24 = vand.u32 2147483647, %v4087_v14  ;;  %v5702_v37 = vand.u32 2147483647, %v5414_v39  ;;  %v8794_v21 = vsub.f32 1.0, %v11045_v15 }
 0x919   : > { %7605 = vmatmul.mubr.f32.gmra.mrb[52].mxu0 %v6547_v43  ;;  %v4653_v41 = vsub.f32 1.0, %v4365_v17  ;;  %v5980_v10 = vsub.f32 1.0, %v5692_v49  ;;  %v4086_v55 = vsub.f32 %v15135_v61, %v17733_v35  ;;  %v5413_v2 = vsub.f32 %v15128_v4, %v17734_v23  ;;  %8937 = vperm.xlu0 %11006, %v8795_v28   ;;  %v11046_v28 = vld [vmem:[%s16226_s20 + $0xe8] sm:$0xff] }
 0x91a   : > { %v6557_v44 = vmul.f32 %v6269_v52, %v4942_v27  ;;  %v4663_v56 = vsub.f32 1.0, %v4375_v24  ;;  %v5990_v40 = vsub.f32 1.0, %v5702_v37  ;;  %v4096_v59 = vsub.f32 %v15163_v3, %v17726_v5  ;;  %8932 = vperm.xlu1 %11007, %v8794_v21  }
 0x91b   : > { %v4941_v42 = vmax.f32 %v4653_v41, 0.0  ;;  %v6268_v20 = vmax.f32 %v5980_v10, 0.0  ;;  %v4374_v53 = vand.u32 2147483647, %v4086_v55  ;;  %v5701_v26 = vand.u32 2147483647, %v5413_v2 }
 0x91c   : > { %7609 = vmatprep.mubr.f32.mxu0 %v6557_v44  ;;  %v4951_v60 = vmax.f32 %v4663_v56, 0.0  ;;  %v6278_v61 = vmax.f32 %v5990_v40, 0.0  ;;  %v4384_v19 = vand.u32 2147483647, %v4096_v59  ;;  %v5423_v4 = vsub.f32 %v15205_v9, %v17728_v13 }
 0x91d   : > { %v6556_v14 = vmul.f32 %v6268_v20, %v4941_v42  ;;  %v4662_v39 = vsub.f32 1.0, %v4374_v53  ;;  %v5989_v45 = vsub.f32 1.0, %v5701_v26  ;;  %v8797_v43 = vsub.f32 1.0, %v11046_v28  ;;  %v16776_v24 = vpop.f32.mrb[56].mxu1 }
 0x91e   : > { %v6566_v27 = vmul.f32 %v6278_v61, %v4951_v60  ;;  %v4672_v17 = vsub.f32 1.0, %v4384_v19  ;;  %v5711_v49 = vand.u32 2147483647, %v5423_v4  ;;  %v8796_v52 = vsub.f32 1.0, %v11047_v25  ;;  %v7203_v10 = vpop.f32.mrb[57].mxu1  ;;  %v11049_v60 = vld [vmem:[%s16226_s20 + $0xf0] sm:$0xff] }
 0x91f   : > { %7610 = vmatmul.mubr.f32.gmra.mrb[54].mxu0 %v6556_v14  ;;  %v4950_v37 = vmax.f32 %v4662_v39, 0.0  ;;  %v6277_v15 = vmax.f32 %v5989_v45, 0.0  ;;  %v4095_v21 = vsub.f32 %v15163_v3, %v17733_v35  ;;  %v5422_v41 = vsub.f32 %v15205_v9, %v17734_v23  ;;  %8947 = vperm.xlu0 %11006, %v8797_v43   ;;  %v11048_v3 = vld [vmem:[%s16226_s20 + $0xf8] sm:$0xff] }
 0x920   : > { %7614 = vmatprep.mubr.f32.mxu0 %v6566_v27  ;;  %v4960_v55 = vmax.f32 %v4672_v17, 0.0  ;;  %v5999_v2 = vsub.f32 1.0, %v5711_v49  ;;  %v4105_v44 = vsub.f32 %v15269_v16, %v17726_v5  ;;  %v5432_v56 = vsub.f32 %v15274_v11, %v17728_v13  ;;  %8942 = vperm.xlu1 %11007, %v8796_v52  }
 0x921   : > { %v6565_v40 = vmul.f32 %v6277_v15, %v4950_v37  ;;  %v4383_v59 = vand.u32 2147483647, %v4095_v21  ;;  %v5710_v42 = vand.u32 2147483647, %v5422_v41  ;;  %v8799_v20 = vsub.f32 1.0, %v11048_v3 }
 0x922   : > { %v6287_v53 = vmax.f32 %v5999_v2, 0.0  ;;  %v4393_v9 = vand.u32 2147483647, %v4105_v44  ;;  %v5720_v26 = vand.u32 2147483647, %v5432_v56  ;;  %v8798_v61 = vsub.f32 1.0, %v11049_v60 }
 0x923   : > { %7615 = vmatmul.mubr.f32.gmra.mrb[56].mxu0 %v6565_v40  ;;  %v4671_v19 = vsub.f32 1.0, %v4383_v59  ;;  %v5998_v4 = vsub.f32 1.0, %v5710_v42  ;;  %v4104_v14 = vsub.f32 %v15269_v16, %v17733_v35  ;;  %v5431_v39 = vsub.f32 %v15274_v11, %v17734_v23  ;;  %8957 = vperm.xlu0 %11006, %v8799_v20  }
 0x924   : > { %v6575_v45 = vmul.f32 %v6287_v53, %v4960_v55  ;;  %v4681_v28 = vsub.f32 1.0, %v4393_v9  ;;  %v6008_v43 = vsub.f32 1.0, %v5720_v26  ;;  %v4114_v27 = vsub.f32 %v15342_v22, %v17726_v5  ;;  %8952 = vperm.xlu1 %11007, %v8798_v61  }
 0x925   : > { %v4959_v17 = vmax.f32 %v4671_v19, 0.0  ;;  %v6286_v49 = vmax.f32 %v5998_v4, 0.0  ;;  %v4392_v25 = vand.u32 2147483647, %v4104_v14  ;;  %v5719_v52 = vand.u32 2147483647, %v5431_v39 }
 0x926   : > { %7619 = vmatprep.mubr.f32.mxu0 %v6575_v45  ;;  %v4969_v37 = vmax.f32 %v4681_v28, 0.0  ;;  %v6296_v15 = vmax.f32 %v6008_v43, 0.0  ;;  %v4402_v21 = vand.u32 2147483647, %v4114_v27  ;;  %v5441_v16 = vsub.f32 %v15338_v38, %v17728_v13 }
 0x927   : > { %v6574_v11 = vmul.f32 %v6286_v49, %v4959_v17  ;;  %v4680_v41 = vsub.f32 1.0, %v4392_v25  ;;  %v6007_v10 = vsub.f32 1.0, %v5719_v52  ;;  %v16796_v55 = vpop.f32.mrb[58].mxu1  ;;  %v4113_v3 = vsub.f32 %v15342_v22, %v17733_v35 }
 0x928   : > { %v6584_v2 = vmul.f32 %v6296_v15, %v4969_v37  ;;  %v4690_v44 = vsub.f32 1.0, %v4402_v21  ;;  %v5729_v56 = vand.u32 2147483647, %v5441_v16  ;;  %v7208_v40 = vpop.f32.mrb[59].mxu1  ;;  %v5440_v9 = vsub.f32 %v15338_v38, %v17734_v23 }
 0x929   : > { %7620 = vmatmul.mubr.f32.gmra.mrb[58].mxu0 %v6574_v11  ;;  %v4968_v59 = vmax.f32 %v4680_v41, 0.0  ;;  %v6295_v42 = vmax.f32 %v6007_v10, 0.0  ;;  %v4401_v60 = vand.u32 2147483647, %v4113_v3  ;;  %v4123_v61 = vsub.f32 %v17704_v54, %v17726_v5 }
 0x92a   : > { %7624 = vmatprep.mubr.f32.mxu0 %v6584_v2  ;;  %v4978_v20 = vmax.f32 %v4690_v44, 0.0  ;;  %v6017_v53 = vsub.f32 1.0, %v5729_v56  ;;  %v5728_v4 = vand.u32 2147483647, %v5440_v9  ;;  %v5450_v14 = vsub.f32 %v17705_v32, %v17728_v13 }
 0x92b   : > { %v6583_v26 = vmul.f32 %v6295_v42, %v4968_v59  ;;  %v4689_v39 = vsub.f32 1.0, %v4401_v60  ;;  %v4411_v45 = vand.u32 2147483647, %v4123_v61  ;;  %v4122_v52 = vsub.f32 %v17704_v54, %v17733_v35 }
 0x92c   : > { %v6305_v19 = vmax.f32 %v6017_v53, 0.0  ;;  %v6016_v28 = vsub.f32 1.0, %v5728_v4  ;;  %v5738_v43 = vand.u32 2147483647, %v5450_v14  ;;  %v5449_v37 = vsub.f32 %v17705_v32, %v17734_v23 }
 0x92d   : > { %7625 = vmatmul.mubr.f32.gmra.mrb[60].mxu0 %v6583_v26  ;;  %v4977_v27 = vmax.f32 %v4689_v39, 0.0  ;;  %v4699_v17 = vsub.f32 1.0, %v4411_v45  ;;  %v4132_v16 = vsub.f32 %v17707_v31, %v17726_v5  ;;  %v4410_v10 = vand.u32 2147483647, %v4122_v52 }
 0x92e   : > { %v6593_v22 = vmul.f32 %v6305_v19, %v4978_v20  ;;  %v6304_v38 = vmax.f32 %v6016_v28, 0.0  ;;  %v6026_v25 = vsub.f32 1.0, %v5738_v43  ;;  %v5737_v2 = vand.u32 2147483647, %v5449_v37 }
 0x92f   : > { %v16806_v49 = vpop.f32.mrb[60].mxu1  ;;  %v4987_v21 = vmax.f32 %v4699_v17, 0.0  ;;  %v4420_v44 = vand.u32 2147483647, %v4132_v16  ;;  %v5459_v56 = vsub.f32 %v17708_v50, %v17728_v13  ;;  %v4698_v59 = vsub.f32 1.0, %v4410_v10 }
 0x930   : > { %7629 = vmatprep.mubr.f32.mxu0 %v6593_v22  ;;  %v7213_v15 = vpop.f32.mrb[61].mxu1  ;;  %v6592_v11 = vmul.f32 %v6304_v38, %v4977_v27  ;;  %v6314_v41 = vmax.f32 %v6026_v25, 0.0  ;;  %v6025_v54 = vsub.f32 1.0, %v5737_v2  ;;  %v4131_v53 = vsub.f32 %v17707_v31, %v17733_v35 }
 0x931   : > { %v4708_v42 = vsub.f32 1.0, %v4420_v44  ;;  %v5747_v3 = vand.u32 2147483647, %v5459_v56  ;;  %v4986_v32 = vmax.f32 %v4698_v59, 0.0  ;;  %v5458_v60 = vsub.f32 %v17708_v50, %v17734_v23 }
 0x932   : > { %7630 = vmatmul.mubr.f32.gmra.mrb[62].mxu0 %v6592_v11  ;;  %v6602_v40 = vmul.f32 %v6314_v41, %v4987_v21  ;;  %v6313_v20 = vmax.f32 %v6025_v54, 0.0  ;;  %v4419_v19 = vand.u32 2147483647, %v4131_v53  ;;  %v4141_v4 = vsub.f32 %v17710_v51, %v17726_v5 }
 0x933   : > { %v4996_v9 = vmax.f32 %v4708_v42, 0.0  ;;  %v6035_v26 = vsub.f32 1.0, %v5747_v3  ;;  %v5746_v39 = vand.u32 2147483647, %v5458_v60  ;;  %v5468_v45 = vsub.f32 %v17711_v0, %v17728_v13 }
 0x934   : > { %7634 = vmatprep.mubr.f32.mxu0 %v6602_v40  ;;  %v6601_v61 = vmul.f32 %v6313_v20, %v4986_v32  ;;  %v4707_v22 = vsub.f32 1.0, %v4419_v19  ;;  %v4429_v28 = vand.u32 2147483647, %v4141_v4  ;;  %v4140_v15 = vsub.f32 %v17710_v51, %v17733_v35 }
 0x935   : > { %v6323_v14 = vmax.f32 %v6035_v26, 0.0  ;;  %v6034_v27 = vsub.f32 1.0, %v5746_v39  ;;  %v5756_v17 = vand.u32 2147483647, %v5468_v45  ;;  %v5467_v21 = vsub.f32 %v17711_v0, %v17734_v23 }
 0x936   : > { %7635 = vmatmul.mubr.f32.gmra.mrb[64].mxu0 %v6601_v61  ;;  %v4995_v50 = vmax.f32 %v4707_v22, 0.0  ;;  %v4717_v25 = vsub.f32 1.0, %v4429_v28  ;;  %v4150_v11 = vsub.f32 %v17773_v29, %v17726_v5  ;;  %v4428_v2 = vand.u32 2147483647, %v4140_v15 }
 0x937   : > { %v6611_v31 = vmul.f32 %v6323_v14, %v4996_v9  ;;  %v6322_v52 = vmax.f32 %v6034_v27, 0.0  ;;  %v6044_v37 = vsub.f32 1.0, %v5756_v17  ;;  %v5755_v44 = vand.u32 2147483647, %v5467_v21 }
 0x938   : > { %v5005_v16 = vmax.f32 %v4717_v25, 0.0  ;;  %v4438_v56 = vand.u32 2147483647, %v4150_v11  ;;  %v5477_v40 = vsub.f32 %v17774_v8, %v17728_v13  ;;  %v4716_v54 = vsub.f32 1.0, %v4428_v2 }
 0x939   : > { %v16824_v43 = vpop.f32.mrb[62].mxu1  ;;  %7639 = vmatprep.mubr.f32.mxu0 %v6611_v31  ;;  %v6610_v41 = vmul.f32 %v6322_v52, %v4995_v50  ;;  %v6332_v10 = vmax.f32 %v6044_v37, 0.0  ;;  %v6043_v42 = vsub.f32 1.0, %v5755_v44  ;;  %v4149_v9 = vsub.f32 %v17773_v29, %v17733_v35 }
 0x93a   : > { %v7218_v38 = vpop.f32.mrb[63].mxu1  ;;  %v4726_v3 = vsub.f32 1.0, %v4438_v56  ;;  %v5765_v0 = vand.u32 2147483647, %v5477_v40  ;;  %v5004_v20 = vmax.f32 %v4716_v54, 0.0  ;;  %v5476_v61 = vsub.f32 %v17774_v8, %v17734_v23 }
 0x93b   : > { %7640 = vmatmul.mubr.f32.gmra.mrb[66].mxu0 %v6610_v41  ;;  %v6620_v59 = vmul.f32 %v6332_v10, %v5005_v16  ;;  %v6331_v53 = vmax.f32 %v6043_v42, 0.0  ;;  %v4437_v4 = vand.u32 2147483647, %v4149_v9  ;;  %v4159_v14 = vsub.f32 %v17775_v33, %v17726_v5 }
 0x93c   : > { %v5014_v26 = vmax.f32 %v4726_v3, 0.0  ;;  %v6053_v60 = vsub.f32 1.0, %v5765_v0  ;;  %v5764_v45 = vand.u32 2147483647, %v5476_v61  ;;  %v5486_v22 = vsub.f32 %v17776_v58, %v17728_v13 }
 0x93d   : > { %7644 = vmatprep.mubr.f32.mxu0 %v6620_v59  ;;  %v6619_v19 = vmul.f32 %v6331_v53, %v5004_v20  ;;  %v4725_v28 = vsub.f32 1.0, %v4437_v4  ;;  %v4447_v31 = vand.u32 2147483647, %v4159_v14  ;;  %v4158_v52 = vsub.f32 %v17775_v33, %v17733_v35 }
 0x93e   : > { %v6341_v39 = vmax.f32 %v6053_v60, 0.0  ;;  %v6052_v29 = vsub.f32 1.0, %v5764_v45  ;;  %v5774_v17 = vand.u32 2147483647, %v5486_v22  ;;  %v5485_v37 = vsub.f32 %v17776_v58, %v17734_v23 }
 0x93f   : > { %7645 = vmatmul.mubr.f32.gmra.mrb[68].mxu0 %v6619_v19  ;;  %v5013_v38 = vmax.f32 %v4725_v28, 0.0  ;;  %v4735_v50 = vsub.f32 1.0, %v4447_v31  ;;  %v4168_v21 = vsub.f32 %v17779_v30, %v17726_v5  ;;  %v4446_v10 = vand.u32 2147483647, %v4158_v52 }
 0x940   : > { %v6629_v27 = vmul.f32 %v6341_v39, %v5014_v26  ;;  %v6340_v8 = vmax.f32 %v6052_v29, 0.0  ;;  %v6062_v25 = vsub.f32 1.0, %v5774_v17  ;;  %v5773_v2 = vand.u32 2147483647, %v5485_v37 }
 0x941   : > { %v16834_v51 = vpop.f32.mrb[64].mxu1  ;;  %v5023_v15 = vmax.f32 %v4735_v50, 0.0  ;;  %v4456_v56 = vand.u32 2147483647, %v4168_v21  ;;  %v5495_v40 = vsub.f32 %v17780_v48, %v17728_v13  ;;  %v4734_v59 = vsub.f32 1.0, %v4446_v10 }
 0x942   : > { %v7223_v32 = vpop.f32.mrb[65].mxu1  ;;  %7649 = vmatprep.mubr.f32.mxu0 %v6629_v27  ;;  %v6628_v11 = vmul.f32 %v6340_v8, %v5013_v38  ;;  %v6350_v41 = vmax.f32 %v6062_v25, 0.0  ;;  %v6061_v54 = vsub.f32 1.0, %v5773_v2  ;;  %v5494_v9 = vsub.f32 %v17780_v48, %v17734_v23 }
 0x943   : > { %v4744_v58 = vsub.f32 1.0, %v4456_v56  ;;  %v5783_v42 = vand.u32 2147483647, %v5495_v40  ;;  %v5022_v3 = vmax.f32 %v4734_v59, 0.0  ;;  %v4167_v32 = vsub.f32 %v17779_v30, %v17733_v35 }
 0x944   : > { %7650 = vmatmul.mubr.f32.gmra.mrb[70].mxu0 %v6628_v11  ;;  %v6638_v33 = vmul.f32 %v6350_v41, %v5023_v15  ;;  %v6349_v0 = vmax.f32 %v6061_v54, 0.0  ;;  %v4177_v61 = vsub.f32 %v17781_v46, %v17726_v5  ;;  %v5782_v4 = vand.u32 2147483647, %v5494_v9 }
 0x945   : > { %v5032_v20 = vmax.f32 %v4744_v58, 0.0  ;;  %v6071_v53 = vsub.f32 1.0, %v5783_v42  ;;  %v4455_v60 = vand.u32 2147483647, %v4167_v32  ;;  %v5504_v14 = vsub.f32 %v17782_v63, %v17728_v13 }
 0x946   : > { %7654 = vmatprep.mubr.f32.mxu0 %v6638_v33  ;;  %v6637_v26 = vmul.f32 %v6349_v0, %v5022_v3  ;;  %v4465_v30 = vand.u32 2147483647, %v4177_v61  ;;  %v6070_v31 = vsub.f32 1.0, %v5782_v4  ;;  %v4176_v50 = vsub.f32 %v17781_v46, %v17733_v35 }
 0x947   : > { %v6359_v19 = vmax.f32 %v6071_v53, 0.0  ;;  %v4743_v45 = vsub.f32 1.0, %v4455_v60  ;;  %v5792_v27 = vand.u32 2147483647, %v5504_v14  ;;  %v5503_v8 = vsub.f32 %v17782_v63, %v17734_v23 }
 0x948   : > { %7655 = vmatmul.mubr.f32.gmra.mrb[72].mxu0 %v6637_v26  ;;  %v4753_v29 = vsub.f32 1.0, %v4465_v30  ;;  %v6358_v17 = vmax.f32 %v6070_v31, 0.0  ;;  %v4186_v52 = vsub.f32 %v17785_v57, %v17726_v5  ;;  %v4464_v21 = vand.u32 2147483647, %v4176_v50 }
 0x949   : > { %v6647_v28 = vmul.f32 %v6359_v19, %v5032_v20  ;;  %v5031_v48 = vmax.f32 %v4743_v45, 0.0  ;;  %v6080_v38 = vsub.f32 1.0, %v5792_v27  ;;  %v5791_v11 = vand.u32 2147483647, %v5503_v8 }
 0x94a   : > { %v5041_v25 = vmax.f32 %v4753_v29, 0.0  ;;  %v4474_v41 = vand.u32 2147483647, %v4186_v52  ;;  %v5513_v10 = vsub.f32 %v17786_v7, %v17728_v13  ;;  %v4752_v46 = vsub.f32 1.0, %v4464_v21 }
 0x94b   : > { %v16850_v16 = vpop.f32.mrb[66].mxu1  ;;  %7659 = vmatprep.mubr.f32.mxu0 %v6647_v28  ;;  %v6646_v37 = vmul.f32 %v6358_v17, %v5031_v48  ;;  %v6368_v15 = vmax.f32 %v6080_v38, 0.0  ;;  %v6079_v56 = vsub.f32 1.0, %v5791_v11  ;;  %v4185_v42 = vsub.f32 %v17785_v57, %v17733_v35 }
 0x94c   : > { %v7228_v44 = vpop.f32.mrb[67].mxu1  ;;  %v4762_v63 = vsub.f32 1.0, %v4474_v41  ;;  %v5801_v33 = vand.u32 2147483647, %v5513_v10  ;;  %v5040_v54 = vmax.f32 %v4752_v46, 0.0  ;;  %v5512_v20 = vsub.f32 %v17786_v7, %v17734_v23 }
 0x94d   : > { %7660 = vmatmul.mubr.f32.gmra.mrb[74].mxu0 %v6646_v37  ;;  %v6656_v44 = vmul.f32 %v6368_v15, %v5041_v25  ;;  %v6367_v58 = vmax.f32 %v6079_v56, 0.0  ;;  %v4473_v9 = vand.u32 2147483647, %v4185_v42  ;;  %v4195_v26 = vsub.f32 %v17788_v36, %v17726_v5 }
 0x94e   : > { %v5050_v0 = vmax.f32 %v4762_v63, 0.0  ;;  %v6089_v32 = vsub.f32 1.0, %v5801_v33  ;;  %v5800_v61 = vand.u32 2147483647, %v5512_v20  ;;  %v5522_v19 = vsub.f32 %v17789_v6, %v17728_v13  ;;  %v16905_v63 = vld [vmem:[%s17376_s11] ss:$0 sm:$0xff]  ;;  %v7913_v20 = vpop.permute.xlu0 %7912 }
 0x94f   : > { %7664 = vmatprep.mubr.f32.mxu0 %v6656_v44  ;;  %v6655_v53 = vmul.f32 %v6367_v58, %v5040_v54  ;;  %v4761_v4 = vsub.f32 1.0, %v4473_v9  ;;  %v4483_v57 = vand.u32 2147483647, %v4195_v26  ;;  %v4194_v29 = vsub.f32 %v17788_v36, %v17733_v35 }
 0x950   : > { %v6377_v60 = vmax.f32 %v6089_v32, 0.0  ;;  %v6088_v45 = vsub.f32 1.0, %v5800_v61  ;;  %v5810_v30 = vand.u32 2147483647, %v5522_v19  ;;  %v5521_v17 = vsub.f32 %v17789_v6, %v17734_v23 }
 0x951   : > { %7665 = vmatmul.mubr.f32.gmra.mrb[76].mxu0 %v6655_v53  ;;  %v5049_v28 = vmax.f32 %v4761_v4, 0.0  ;;  %v4771_v7 = vsub.f32 1.0, %v4483_v57  ;;  %v4204_v50 = vsub.f32 %v17790_v47, %v17726_v5  ;;  %v4482_v37 = vand.u32 2147483647, %v4194_v29 }
 0x952   : > { %v6665_v14 = vmul.f32 %v6377_v60, %v5050_v0  ;;  %v6376_v27 = vmax.f32 %v6088_v45, 0.0  ;;  %v6098_v48 = vsub.f32 1.0, %v5810_v30  ;;  %v5809_v15 = vand.u32 2147483647, %v5521_v17  ;;  %v8206_v45 = vld [vmem:[%s17377_s12 + $0x8] sm:$0xff]  ;;  %v7917_v30 = vpop.permute.xlu1 %7916  ;;  %v8209_v17 = vld [vmem:[%s17377_s12 + $0x20] sm:$0xff] }
 0x953   : > { %v16862_v39 = vpop.f32.mrb[68].mxu1  ;;  %v5059_v38 = vmax.f32 %v4771_v7, 0.0  ;;  %v4492_v11 = vand.u32 2147483647, %v4204_v50  ;;  %v5531_v41 = vsub.f32 %v17791_v62, %v17728_v13  ;;  %v4770_v10 = vsub.f32 1.0, %v4482_v37  ;;  %v8207_v7 = vld [vmem:[%s17377_s12 + $0x10] sm:$0xff] }
 0x954   : > { %v7233_v22 = vpop.f32.mrb[69].mxu1  ;;  %7669 = vmatprep.mubr.f32.mxu0 %v6665_v14  ;;  %v6664_v25 = vmul.f32 %v6376_v27, %v5049_v28  ;;  %v6386_v52 = vmax.f32 %v6098_v48, 0.0  ;;  %v6097_v6 = vsub.f32 1.0, %v5809_v15  ;;  %v5530_v13 = vsub.f32 %v17791_v62, %v17734_v23  ;;  %v8205_v14 = vld [vmem:[%s17377_s12] sm:$0xff] }
 0x955   : > { %v4780_v44 = vsub.f32 1.0, %v4492_v11  ;;  %v5819_v46 = vand.u32 2147483647, %v5531_v41  ;;  %v5058_v5 = vmax.f32 %v4770_v10, 0.0  ;;  %v8045_v26 = vsub.f32 %v7913_v20, %v16905_v63  ;;  %v17792_v41 = vld [vmem:[#allocation40_spill] sm:$0xff] }
 0x956   : > { %7670 = vmatmul.mubr.f32.gmra.mrb[78].mxu0 %v6664_v25  ;;  %v6674_v36 = vmul.f32 %v6386_v52, %v5059_v38  ;;  %v6385_v56 = vmax.f32 %v6097_v6, 0.0  ;;  %v5818_v9 = vand.u32 2147483647, %v5530_v13  ;;  %v10730_v29 = vpack.c.bf16 %v8206_v45, %v8205_v14  ;;  %v8210_v38 = vld [vmem:[%s17377_s12 + $0x28] sm:$0xff]  ;;  %v7921_v15 = vpop.permute.xlu1 %7920  ;;  %v8211_v10 = vld [vmem:[%s17377_s12 + $0x30] sm:$0xff]  ;;  %v8212_v6 = vld [vmem:[%s17377_s12 + $0x38] sm:$0xff] }
 0x957   : > { %v5068_v33 = vmax.f32 %v4780_v44, 0.0  ;;  %v6107_v54 = vsub.f32 1.0, %v5819_v46  ;;  %v8077_v23 = vand.u32 2147483647, %v8045_v26  ;;  %v10738_v11 = vpack.c.bf16 %v8210_v38, %v8209_v17  ;;  %v17793_v44 = vld [vmem:[#allocation23_spill] sm:$0xff] }
 0x958   : > { %7674 = vmatprep.mubr.f32.mxu0 %v6674_v36  ;;  %v6673_v42 = vmul.f32 %v6385_v56, %v5058_v5  ;;  %v6106_v61 = vsub.f32 1.0, %v5818_v9  ;;  %10731 = vmatprep.subr.bf16.mxu1 %v10730_v29  ;;  %v10742_v13 = vpack.c.bf16 %v8212_v6, %v8211_v10 }
 0x959   : > { %v16872_v2 = vpop.f32.mrb[20].mxu0  ;;  %v6395_v53 = vmax.f32 %v6107_v54, 0.0  ;;  %v8109_v48 = vsub.f32 1.0, %v8077_v23  ;;  %10733 = vmatpush3.bf16.msra.mxu1 %v10730_v29  ;;  %v8046_v54 = vsub.f32 %v7917_v30, %v16905_v63  ;;  %v8216_v30 = vld [vmem:[%s17377_s12 + $0x58] sm:$0xff] }
 0x95a   : > { %v7528_v40 = vpop.f32.mrb[21].mxu0  ;;  %7675 = vmatmul.mubr.f32.gmra.mrb[80].mxu0 %v6673_v42  ;;  %v6394_v57 = vmax.f32 %v6106_v61, 0.0  ;;  %v10786_v36 = vadd.f32 %v16872_v2, %v17792_v41  ;;  %v7929_v9 = vpop.permute.xlu1 %7928  ;;  %v8217_v41 = vld [vmem:[%s17377_s12 + $0x60] sm:$0x7] }
 0x95b   : > { %v4203_v40 = vsub.f32 %v17790_v47, %v17733_v35  ;;  %v6683_v60 = vmul.f32 %v6395_v53, %v5068_v33  ;;  %v8141_v37 = vmax.f32 %v8109_v48, 0.0  ;;  %v7925_v53 = vpop.permute.xlu0 %7924 }
 0x95c   : > { %v16874_v59 = vpop.f32.mrb[70].mxu1  ;;  %v8048_v23 = vsub.f32 %v7925_v53, %v16905_v63 }
 0x95d   : > { %v16878_v3 = vpop.f32.mrb[71].mxu1  ;;  %v4491_v0 = vand.u32 2147483647, %v4203_v40  ;;  %7679 = vmatprep.mubr.f32.mxu0 %v6683_v60  ;;  %v17794_v40 = vld [vmem:[#allocation28_spill] sm:$0xff] }
 0x95e   : > { %v7752_v5 = vadd.f32 %v10786_v36, %v16878_v3  ;;  %v8213_v3 = vld [vmem:[%s17377_s12 + $0x40] sm:$0xff]  ;;  %v7937_v48 = vpop.permute.xlu1 %7936 }
 0x95f   : > { %v4779_v35 = vsub.f32 1.0, %v4491_v0  ;;  %v17795_v0 = vld [vmem:[#allocation43_spill] sm:$0xff]  ;;  %v8051_v38 = vsub.f32 %v7937_v48, %v16905_v63 }
 0x960   : > { %v8173_v42 = vmul.f32 %v8141_v37, %v7752_v5  ;;  %v17797_v37 = vld [vmem:[#allocation7_spill] sm:$0xff] }
 0x961   : > { %v5067_v4 = vmax.f32 %v4779_v35, 0.0  ;;  %v17796_v35 = vld [vmem:[#allocation3_spill] sm:$0xff] }
 0x962   : > { %v16886_v22 = vpop.f32.mrb[22].mxu0  ;;  %10314 = vmatprep.mubr.msk.f32.mxu1 %vm8218_vm6, %v8173_v42 }
 0x963   : > { %v7533_v31 = vpop.f32.mrb[23].mxu0  ;;  %v6682_v62 = vmul.f32 %v6394_v57, %v5067_v4  ;;  %v10787_v46 = vadd.f32 %v16886_v22, %v17793_v44  ;;  %v8047_v22 = vsub.f32 %v7921_v15, %v16905_v63  ;;  %v8078_v57 = vand.u32 2147483647, %v8046_v54 }
 0x964   : > { %v8208_v31 = vld [vmem:[%s17377_s12 + $0x18] sm:$0xff] }
 0x965   : > { %v16894_v8 = vpop.f32.mrb[72].mxu1  ;;  %7680 = vmatmul.mubr.f32.gmra.mrb[82].mxu0 %v6682_v62  ;;  %v10734_v50 = vpack.c.bf16 %v8208_v31, %v8207_v7  ;;  %v7757_v56 = vadd.f32 %v10787_v46, %v16874_v59  ;;  %v8214_v59 = vld [vmem:[%s17377_s12 + $0x48] sm:$0xff]  ;;  %v8079_v45 = vand.u32 2147483647, %v8047_v22  ;;  %v8110_v7 = vsub.f32 1.0, %v8078_v57 }
 0x966   : > { %v16896_v21 = vpop.f32.mrb[73].mxu1  ;;  %v10746_v62 = vpack.c.bf16 %v8214_v59, %v8213_v3  ;;  %v8080_v31 = vand.u32 2147483647, %v8048_v23 }
 0x967   : > { %10735 = vmatprep.subr.bf16.mxu1 %v10734_v50  ;;  %v8111_v29 = vsub.f32 1.0, %v8079_v45  ;;  %v8142_v10 = vmax.f32 %v8110_v7, 0.0 }
 0x968   : > { %10737 = vmatpush3.bf16.msra.mxu1 %v10734_v50  ;;  %v8112_v6 = vsub.f32 1.0, %v8080_v31  ;;  %v17799_v31 = vld [vmem:[#allocation61_spill] sm:$0xff] }
 0x969   : > { %10739 = vmatprep.subr.bf16.mxu1 %v10738_v11  ;;  %v8174_v42 = vmul.f32 %v8142_v10, %v7757_v56  ;;  %v17800_v10 = vld [vmem:[#allocation62_spill] sm:$0xff] }
 0x96a   : > { %v8144_v54 = vmax.f32 %v8112_v6, 0.0 }
 0x96b   : > { %v7536_v58 = vpop.f32.mrb[24].mxu0 }
 0x96c   : > { %v7538_v32 = vpop.f32.mrb[25].mxu0  ;;  %v10788_v33 = vadd.f32 %v7536_v58, %v17794_v40  ;;  %10741 = vmatpush3.bf16.msra.mxu1 %v10738_v11  ;;  %v8143_v40 = vmax.f32 %v8111_v29, 0.0 }
 0x96d   : > { %10743 = vmatprep.subr.bf16.mxu1 %v10742_v13 }
 0x96e   : > { %v16910_v47 = vpop.f32.mrb[74].mxu1  ;;  %v7762_v58 = vadd.f32 %v10788_v33, %v16896_v21  ;;  %v8049_v21 = vsub.f32 %v7929_v9, %v16905_v63  ;;  %v17798_v9 = vld [vmem:[#allocation37_spill] sm:$0xff] }
 0x96f   : > { %v7771_v19 = vpop.f32.mrb[75].mxu1 }
 0x970   : > { %10745 = vmatpush3.bf16.msra.mxu1 %v10742_v13  ;;  %v8081_v17 = vand.u32 2147483647, %v8049_v21  ;;  %v8175_v53 = vmul.f32 %v8143_v40, %v7762_v58 }
 0x971   : > { %10747 = vmatprep.subr.bf16.mxu1 %v10746_v62 }
 0x972   : > { %v8113_v33 = vsub.f32 1.0, %v8081_v17 }
 0x974   : > { %v7541_v28 = vpop.f32.mrb[26].mxu0  ;;  %10749 = vmatpush3.bf16.msra.mxu1 %v10746_v62 }
 0x975   : > { %v7543_v27 = vpop.f32.mrb[27].mxu0  ;;  %v10789_v32 = vadd.f32 %v7541_v28, %v17795_v0  ;;  %v7933_v28 = vpop.permute.xlu0 %7932  ;;  %v8145_v0 = vmax.f32 %v8113_v33, 0.0 }
 0x976   : > { %v8050_v27 = vsub.f32 %v7933_v28, %v16905_v63 }
 0x977   : > { %v16930_v25 = vpop.f32.mrb[76].mxu1  ;;  %v7767_v26 = vadd.f32 %v10789_v32, %v16894_v8  ;;  %v8215_v8 = vld [vmem:[%s17377_s12 + $0x50] sm:$0xff] }
 0x978   : > { %v16932_v52 = vpop.f32.mrb[77].mxu1  ;;  %v8082_v44 = vand.u32 2147483647, %v8050_v27 }
 0x979   : > { %v7941_v32 = vpop.permute.xlu0 %7940  ;;  %v8176_v59 = vmul.f32 %v8144_v54, %v7767_v26 }
 0x97a   : > { %v8114_v13 = vsub.f32 1.0, %v8082_v44  ;;  %v8052_v22 = vsub.f32 %v7941_v32, %v16905_v63 }
 0x97c   : > { %v8084_v62 = vand.u32 2147483647, %v8052_v22 }
 0x97d   : > { %v7546_v2 = vpop.f32.mrb[28].mxu0 }
 0x97e   : > { %v7548_v20 = vpop.f32.mrb[29].mxu0  ;;  %v10790_v60 = vadd.f32 %v7546_v2, %v17796_v35  ;;  %v8083_v2 = vand.u32 2147483647, %v8051_v38 }
 0x980   : > { %v16960_v61 = vpop.f32.mrb[78].mxu1  ;;  %v7772_v14 = vadd.f32 %v10790_v60, %v7771_v19  ;;  %v10750_v19 = vpack.c.bf16 %v8216_v30, %v8215_v8  ;;  %v8115_v20 = vsub.f32 1.0, %v8083_v2  ;;  %v8116_v8 = vsub.f32 1.0, %v8084_v62  ;;  %v7945_v30 = vpop.permute.xlu1 %7944 }
 0x981   : > { %v16962_v4 = vpop.f32.mrb[79].mxu1  ;;  %v8053_v28 = vsub.f32 %v7945_v30, %v16905_v63 }
 0x982   : > { %10751 = vmatprep.subr.bf16.mxu1 %v10750_v19  ;;  %v8147_v57 = vmax.f32 %v8115_v20, 0.0  ;;  %v8177_v56 = vmul.f32 %v8145_v0, %v7772_v14  ;;  %v8148_v7 = vmax.f32 %v8116_v8, 0.0  ;;  %v17801_v20 = vld [vmem:[#allocation63_spill] sm:$0xff] }
 0x983   : > { %10753 = vmatpush3.bf16.msra.mxu1 %v10750_v19  ;;  %v8085_v19 = vand.u32 2147483647, %v8053_v28 }
 0x984   : > { %10312 = vmatprep.subr.msk.mxu1 %vm8315_vm7, %v8217_v41 }
 0x987   : > { %v7551_v50 = vpop.f32.mrb[30].mxu0  ;;  %10313 = vmatpush3.msk.msra.mxu1 %vm8315_vm7, %v8217_v41 }
 0x988   : > { %v10791_v15 = vadd.f32 %v7551_v50, %v17797_v37  ;;  %v7553_v11 = vpop.f32.mrb[31].mxu0  ;;  %10315 = vmatmul.mubr.msk.f32.vlgmr.msra.gmra.mrb[102].mxu1 %vm8218_vm6, %v8174_v42  ;;  %v8117_v50 = vsub.f32 1.0, %v8085_v19  ;;  %v7949_v37 = vpop.permute.xlu0 %7948 }
 0x989   : > { %v16978_v36 = vpop.f32.mrb[80].mxu1  ;;  %10317 = vmatprep.mubr.msk.f32.mxu1 %vm8218_vm6, %v8175_v53 }
 0x98a   : > { %v7777_v46 = vadd.f32 %v10791_v15, %v16910_v47  ;;  %v16981_v5 = vpop.f32.mrb[81].mxu1  ;;  %v8146_v47 = vmax.f32 %v8114_v13, 0.0  ;;  %v8054_v15 = vsub.f32 %v7949_v37, %v16905_v63  ;;  %v8149_v41 = vmax.f32 %v8117_v50, 0.0  ;;  %v7953_v13 = vpop.permute.xlu1 %7952 }
 0x98b   : > { %v8055_v42 = vsub.f32 %v7953_v13, %v16905_v63 }
 0x98c   : > { %10318 = vmatmul.mubr.msk.f32.gmra.mrb[104].mxu1 %vm8218_vm6, %v8176_v59  ;;  %v8178_v21 = vmul.f32 %v8146_v47, %v7777_v46  ;;  %v8086_v40 = vand.u32 2147483647, %v8054_v15 }
 0x98d   : > { %10320 = vmatprep.mubr.msk.f32.mxu1 %vm8218_vm6, %v8177_v56 }
 0x98e   : > { %v8118_v54 = vsub.f32 1.0, %v8086_v40 }
 0x990   : > { %10321 = vmatmul.mubr.msk.f32.gmra.mrb[106].mxu1 %vm8218_vm6, %v8178_v21  ;;  %v8150_v32 = vmax.f32 %v8118_v54, 0.0  ;;  %v17804_v54 = vld [vmem:[#allocation9_spill] sm:$0xff] }
 0x991   : > { %v7556_v3 = vpop.f32.mrb[32].mxu0 }
 0x992   : > { %v10792_v35 = vadd.f32 %v7556_v3, %v17798_v9  ;;  %v7558_v60 = vpop.f32.mrb[33].mxu0  ;;  %v8087_v3 = vand.u32 2147483647, %v8055_v42 }
 0x993   : > { %v16987_v23 = vpop.f32.mrb[82].mxu1  ;;  %v7957_v60 = vpop.permute.xlu0 %7956 }
 0x994   : > { %v7782_v58 = vadd.f32 %v10792_v35, %v16932_v52  ;;  %v16990_v45 = vpop.f32.mrb[83].mxu1  ;;  %v8119_v35 = vsub.f32 1.0, %v8087_v3 }
 0x996   : > { %v8179_v26 = vmul.f32 %v8147_v57, %v7782_v58  ;;  %v8056_v57 = vsub.f32 %v7957_v60, %v16905_v63  ;;  %v8151_v62 = vmax.f32 %v8119_v35, 0.0  ;;  %v17802_v58 = vld [vmem:[#allocation5_spill] sm:$0xff] }
 0x998   : > { %10323 = vmatprep.mubr.msk.f32.mxu1 %vm8218_vm6, %v8179_v26  ;;  %v8088_v30 = vand.u32 2147483647, %v8056_v57 }
 0x99a   : > { %v7561_v14 = vpop.f32.mrb[34].mxu0 }
 0x99b   : > { %v10793_v52 = vadd.f32 %v7561_v14, %v17799_v31  ;;  %v7563_v27 = vpop.f32.mrb[35].mxu0  ;;  %v7961_v31 = vpop.permute.xlu1 %7960 }
 0x99c   : > { %v16998_v48 = vpop.f32.mrb[84].mxu1 }
 0x99d   : > { %v17000_v29 = vpop.f32.mrb[85].mxu1  ;;  %v7787_v17 = vadd.f32 %v10793_v52, %v16930_v25  ;;  %v8057_v52 = vsub.f32 %v7961_v31, %v16905_v63 }
 0x99f   : > { %v8180_v38 = vmul.f32 %v8148_v7, %v7787_v17  ;;  %v8120_v7 = vsub.f32 1.0, %v8088_v30  ;;  %v17803_v17 = vld [vmem:[#allocation34_spill] sm:$0xff]  ;;  %v8089_v37 = vand.u32 2147483647, %v8057_v52 }
 0x9a1   : > { %10324 = vmatmul.mubr.msk.f32.gmra.mrb[108].mxu1 %vm8218_vm6, %v8180_v38  ;;  %v8152_v19 = vmax.f32 %v8120_v7, 0.0 }
 0x9a4   : > { %v7566_v11 = vpop.f32.mrb[36].mxu0 }
 0x9a5   : > { %v10794_v6 = vadd.f32 %v7566_v11, %v17800_v10  ;;  %v7568_v44 = vpop.f32.mrb[37].mxu0 }
 0x9a6   : > { %v17006_v46 = vpop.f32.mrb[86].mxu1 }
 0x9a7   : > { %v7792_v33 = vadd.f32 %v10794_v6, %v16962_v4  ;;  %v17009_v2 = vpop.f32.mrb[87].mxu1  ;;  %v8121_v6 = vsub.f32 1.0, %v8089_v37 }
 0x9a9   : > { %v8181_v25 = vmul.f32 %v8149_v41, %v7792_v33  ;;  %v7965_v41 = vpop.permute.xlu0 %7964  ;;  %v8153_v33 = vmax.f32 %v8121_v6, 0.0 }
 0x9aa   : > { %v8058_v44 = vsub.f32 %v7965_v41, %v16905_v63 }
 0x9ab   : > { %10326 = vmatprep.mubr.msk.f32.mxu1 %vm8218_vm6, %v8181_v25 }
 0x9ad   : > { %v7571_v0 = vpop.f32.mrb[38].mxu0  ;;  %v7973_v25 = vpop.permute.xlu0 %7972 }
 0x9ae   : > { %v10795_v53 = vadd.f32 %v7571_v0, %v17801_v20  ;;  %v7573_v22 = vpop.f32.mrb[39].mxu0  ;;  %v7969_v0 = vpop.permute.xlu1 %7968  ;;  %v8090_v20 = vand.u32 2147483647, %v8058_v44  ;;  %v8060_v52 = vsub.f32 %v7973_v25, %v16905_v63 }
 0x9b0   : > { %v17014_v47 = vpop.f32.mrb[88].mxu1  ;;  %v7797_v59 = vadd.f32 %v10795_v53, %v16960_v61  ;;  %v8122_v3 = vsub.f32 1.0, %v8090_v20  ;;  %v17807_v20 = vld [vmem:[#allocation30_spill] sm:$0xff] }
 0x9b1   : > { %v17017_v4 = vpop.f32.mrb[89].mxu1 }
 0x9b2   : > { %v8182_v9 = vmul.f32 %v8150_v32, %v7797_v59  ;;  %v7981_v59 = vpop.permute.xlu0 %7980  ;;  %v7977_v35 = vpop.permute.xlu1 %7976  ;;  %v8154_v57 = vmax.f32 %v8122_v3, 0.0 }
 0x9b3   : > { %v8061_v44 = vsub.f32 %v7977_v35, %v16905_v63 }
 0x9b4   : > { %10327 = vmatmul.mubr.msk.f32.gmra.mrb[110].mxu1 %vm8218_vm6, %v8182_v9  ;;  %v8059_v9 = vsub.f32 %v7969_v0, %v16905_v63 }
 0x9b6   : > { %v7989_v30 = vpop.permute.xlu0 %7988 }
 0x9b7   : > { %v7576_v56 = vpop.f32.mrb[40].mxu0 }
 0x9b8   : > { %v10796_v21 = vadd.f32 %v7576_v56, %v17802_v58  ;;  %v7578_v26 = vpop.f32.mrb[41].mxu0  ;;  %v17805_v56 = vld [vmem:[#allocation35_spill] sm:$0xff] }
 0x9b9   : > { %v17022_v8 = vpop.f32.mrb[90].mxu1 }
 0x9ba   : > { %v7802_v28 = vadd.f32 %v10796_v21, %v16981_v5  ;;  %v17025_v61 = vpop.f32.mrb[91].mxu1  ;;  %v8091_v21 = vand.u32 2147483647, %v8059_v9 }
 0x9bc   : > { %v8183_v14 = vmul.f32 %v8151_v62, %v7802_v28  ;;  %v8123_v31 = vsub.f32 1.0, %v8091_v21 }
 0x9be   : > { %10329 = vmatprep.mubr.msk.f32.mxu1 %vm8218_vm6, %v8183_v14  ;;  %v7985_v14 = vpop.permute.xlu1 %7984 }
 0x9c1   : > { %v7581_v27 = vpop.f32.mrb[42].mxu0 }
 0x9c2   : > { %v10797_v38 = vadd.f32 %v7581_v27, %v17803_v17  ;;  %v7583_v50 = vpop.f32.mrb[43].mxu0  ;;  %v17053_v27 = vpop.permute.xlu0 %7996  ;;  %v8155_v17 = vmax.f32 %v8123_v31, 0.0  ;;  %v17808_v31 = vld [vmem:[#allocation4_spill] sm:$0xff] }
 0x9c3   : > { %v17030_v15 = vpop.f32.mrb[92].mxu1  ;;  %v17806_v50 = vld [vmem:[#allocation29_spill] sm:$0xff] }
 0x9c4   : > { %v7807_v11 = vadd.f32 %v10797_v38, %v16978_v36  ;;  %v17033_v5 = vpop.f32.mrb[93].mxu1  ;;  %v7993_v38 = vpop.permute.xlu1 %7992 }
 0x9c6   : > { %v8184_v10 = vmul.f32 %v8152_v19, %v7807_v11 }
 0x9c8   : > { %10330 = vmatmul.mubr.msk.f32.gmra.mrb[112].mxu1 %vm8218_vm6, %v8184_v10 }
 0x9ca   : > { %v7586_v40 = vpop.f32.mrb[44].mxu0 }
 0x9cb   : > { %v10798_v13 = vadd.f32 %v7586_v40, %v17804_v54  ;;  %v7588_v42 = vpop.f32.mrb[45].mxu0  ;;  %v17064_v54 = vpop.permute.xlu1 %8000 }
 0x9cc   : > { %v17038_v32 = vpop.f32.mrb[94].mxu1 }
 0x9cd   : > { %v7812_v36 = vadd.f32 %v10798_v13, %v16990_v45  ;;  %v17041_v53 = vpop.f32.mrb[95].mxu1  ;;  %v8093_v13 = vand.u32 2147483647, %v8061_v44  ;;  %v17809_v44 = vld [vmem:[#allocation8_spill] sm:$0xff] }
 0x9cf   : > { %v8185_v22 = vmul.f32 %v8153_v33, %v7812_v36  ;;  %v17062_v33 = vpop.permute.xlu0 %8004  ;;  %v8125_v3 = vsub.f32 1.0, %v8093_v13 }
 0x9d1   : > { %10332 = vmatprep.mubr.msk.f32.mxu1 %vm8218_vm6, %v8185_v22 }
 0x9d3   : > { %v17069_v9 = vpop.permute.xlu0 %8012 }
 0x9d4   : > { %v7591_v60 = vpop.f32.mrb[46].mxu0 }
 0x9d5   : > { %v10799_v62 = vadd.f32 %v7591_v60, %v17805_v56  ;;  %v7593_v58 = vpop.f32.mrb[47].mxu0  ;;  %v17073_v60 = vpop.permute.xlu1 %8008 }
 0x9d6   : > { %v17046_v26 = vpop.f32.mrb[96].mxu1 }
 0x9d7   : > { %v7817_v45 = vadd.f32 %v10799_v62, %v16987_v23  ;;  %v17049_v28 = vpop.f32.mrb[97].mxu1  ;;  %v8092_v23 = vand.u32 2147483647, %v8060_v52 }
 0x9d9   : > { %v8186_v7 = vmul.f32 %v8154_v57, %v7817_v45  ;;  %v8124_v25 = vsub.f32 1.0, %v8092_v23  ;;  %v8157_v45 = vmax.f32 %v8125_v3, 0.0  ;;  %v17810_v3 = vld [vmem:[#allocation44_spill] sm:$0xff] }
 0x9db   : > { %10333 = vmatmul.mubr.msk.f32.gmra.mrb[114].mxu1 %vm8218_vm6, %v8186_v7  ;;  %v8156_v0 = vmax.f32 %v8124_v25, 0.0  ;;  %v8063_v7 = vsub.f32 %v7985_v14, %v16905_v63 }
 0x9dd   : > { %v7596_v19 = vpop.f32.mrb[48].mxu0 }
 0x9de   : > { %v10800_v37 = vadd.f32 %v7596_v19, %v17806_v50  ;;  %v7598_v11 = vpop.f32.mrb[49].mxu0  ;;  %v17081_v19 = vpop.permute.xlu0 %8020 }
 0x9df   : > { %v17056_v41 = vpop.f32.mrb[98].mxu1  ;;  %v17084_v50 = vpop.permute.xlu1 %8016 }
 0x9e0   : > { %v7822_v10 = vadd.f32 %v10800_v37, %v17000_v29  ;;  %v17059_v6 = vpop.f32.mrb[99].mxu1  ;;  %v8062_v29 = vsub.f32 %v7981_v59, %v16905_v63  ;;  %v8095_v37 = vand.u32 2147483647, %v8063_v7 }
 0x9e2   : > { %v8187_v40 = vmul.f32 %v8155_v17, %v7822_v10  ;;  %v8094_v21 = vand.u32 2147483647, %v8062_v29  ;;  %v8064_v10 = vsub.f32 %v7989_v30, %v16905_v63  ;;  %v8127_v13 = vsub.f32 1.0, %v8095_v37 }
 0x9e4   : > { %10335 = vmatprep.mubr.msk.f32.mxu1 %vm8218_vm6, %v8187_v40 }
 0x9e7   : > { %v7601_v42 = vpop.f32.mrb[50].mxu0 }
 0x9e8   : > { %v10801_v36 = vadd.f32 %v7601_v42, %v17807_v20  ;;  %v7603_v22 = vpop.f32.mrb[51].mxu0  ;;  %v17089_v42 = vpop.permute.xlu0 %8028 }
 0x9e9   : > { %v17071_v35 = vpop.f32.mrb[100].mxu1  ;;  %v8065_v22 = vsub.f32 %v7993_v38, %v16905_v63 }
 0x9ea   : > { %v7827_v57 = vadd.f32 %v10801_v36, %v16998_v48  ;;  %v17076_v56 = vpop.f32.mrb[101].mxu1  ;;  %v8126_v48 = vsub.f32 1.0, %v8094_v21  ;;  %v8096_v36 = vand.u32 2147483647, %v8064_v10 }
 0x9ec   : > { %v8188_v62 = vmul.f32 %v8156_v0, %v7827_v57  ;;  %v7606_v58 = vpop.f32.mrb[52].mxu0  ;;  %v8158_v25 = vmax.f32 %v8126_v48, 0.0  ;;  %v8128_v21 = vsub.f32 1.0, %v8096_v36  ;;  %v17098_v7 = vpop.permute.xlu0 %8036  ;;  %v8066_v48 = vsub.f32 %v17053_v27, %v16905_v63 }
 0x9ed   : > { %v10802_v52 = vadd.f32 %v7606_v58, %v17808_v31  ;;  %v7608_v59 = vpop.f32.mrb[53].mxu0  ;;  %v8067_v27 = vsub.f32 %v17064_v54, %v16905_v63 }
 0x9ee   : > { %10336 = vmatmul.mubr.msk.f32.gmra.mrb[116].mxu1 %vm8218_vm6, %v8188_v62  ;;  %v8159_v62 = vmax.f32 %v8127_v13, 0.0  ;;  %v17811_v59 = vld [vmem:[#allocation45_spill] sm:$0xff]  ;;  %v8160_v37 = vmax.f32 %v8128_v21, 0.0  ;;  %v8098_v13 = vand.u32 2147483647, %v8066_v48 }
 0x9ef   : > { %v7832_v17 = vadd.f32 %v10802_v52, %v17009_v2  ;;  %v17092_v2 = vpop.permute.xlu1 %8024 }
 0x9f0   : > { %v17107_v10 = vpop.permute.xlu0 %8583 }
 0x9f1   : > { %v8189_v11 = vmul.f32 %v8157_v45, %v7832_v17  ;;  %v8097_v45 = vand.u32 2147483647, %v8065_v22 }
 0x9f2   : > { %v7611_v23 = vpop.f32.mrb[54].mxu0 }
 0x9f3   : > { %v10803_v40 = vadd.f32 %v7611_v23, %v17809_v44  ;;  %v7613_v14 = vpop.f32.mrb[55].mxu0  ;;  %10338 = vmatprep.mubr.msk.f32.mxu1 %vm8218_vm6, %v8189_v11  ;;  %v17100_v31 = vpop.permute.xlu1 %8032 }
 0x9f5   : > { %v7837_v0 = vadd.f32 %v10803_v40, %v17006_v46  ;;  %v17812_v40 = vld [vmem:[#allocation47_spill] sm:$0xff] }
 0x9f6   : > { %v7616_v20 = vpop.f32.mrb[56].mxu0 }
 0x9f7   : > { %v8190_v29 = vmul.f32 %v8158_v25, %v7837_v0  ;;  %v10804_v30 = vadd.f32 %v7616_v20, %v17810_v3  ;;  %v7618_v57 = vpop.f32.mrb[57].mxu0  ;;  %v17110_v0 = vpop.permute.xlu1 %8578 }
 0x9f9   : > { %v7842_v58 = vadd.f32 %v10804_v30, %v17017_v4  ;;  %10339 = vmatmul.mubr.msk.f32.gmra.mrb[118].mxu1 %vm8218_vm6, %v8190_v29  ;;  %v8129_v4 = vsub.f32 1.0, %v8097_v45  ;;  %v17116_v29 = vpop.permute.xlu0 %8593  ;;  %v8099_v30 = vand.u32 2147483647, %v8067_v27  ;;  %v8068_v45 = vsub.f32 %v17062_v33, %v16905_v63 }
 0x9fb   : > { %v8191_v46 = vmul.f32 %v8159_v62, %v7842_v58  ;;  %v8161_v20 = vmax.f32 %v8129_v4, 0.0  ;;  %v17119_v57 = vpop.permute.xlu1 %8588  ;;  %v8131_v54 = vsub.f32 1.0, %v8099_v30 }
 0x9fc   : > { %v7621_v52 = vpop.f32.mrb[58].mxu0 }
 0x9fd   : > { %v10805_v17 = vadd.f32 %v7621_v52, %v17811_v59  ;;  %v7623_v38 = vpop.f32.mrb[59].mxu0  ;;  %10341 = vmatprep.mubr.msk.f32.mxu1 %vm8218_vm6, %v8191_v46  ;;  %v17125_v52 = vpop.permute.xlu0 %8603 }
 0x9ff   : > { %v7847_v11 = vadd.f32 %v10805_v17, %v17014_v47  ;;  %v8130_v47 = vsub.f32 1.0, %v8098_v13  ;;  %v17127_v17 = vpop.permute.xlu1 %8598 }
 0xa00   : > { %v7626_v23 = vpop.f32.mrb[60].mxu0 }
 0xa01   : > { %v8192_v44 = vmul.f32 %v8160_v37, %v7847_v11  ;;  %v10806_v14 = vadd.f32 %v7626_v23, %v17812_v40  ;;  %v7628_v25 = vpop.f32.mrb[61].mxu0  ;;  %v8162_v21 = vmax.f32 %v8130_v47, 0.0  ;;  %v8163_v37 = vmax.f32 %v8131_v54, 0.0  ;;  %v17134_v23 = vpop.permute.xlu0 %8613 }
 0xa03   : > { %v7852_v36 = vadd.f32 %v10806_v14, %v17025_v61  ;;  %10342 = vmatmul.mubr.msk.f32.gmra.mrb[120].mxu1 %vm8218_vm6, %v8192_v44  ;;  %v17136_v44 = vpop.permute.xlu1 %8608 }
 0xa05   : > { %v8193_v22 = vmul.f32 %v8161_v20, %v7852_v36  ;;  %v7631_v3 = vpop.f32.mrb[62].mxu0  ;;  %v17143_v36 = vpop.permute.xlu0 %8623 }
 0xa06   : > { %v10807_v62 = vadd.f32 %v7631_v3, %v16719_v18  ;;  %v7633_v58 = vpop.f32.mrb[63].mxu0  ;;  %v8100_v18 = vand.u32 2147483647, %v8068_v45 }
 0xa07   : > { %10344 = vmatprep.mubr.msk.f32.mxu1 %vm8218_vm6, %v8193_v22  ;;  %v17145_v22 = vpop.permute.xlu1 %8618 }
 0xa08   : > { %v7857_v61 = vadd.f32 %v10807_v62, %v17022_v8  ;;  %v8069_v8 = vsub.f32 %v17073_v60, %v16905_v63  ;;  %v8132_v11 = vsub.f32 1.0, %v8100_v18 }
 0xa09   : > { %v7636_v59 = vpop.f32.mrb[64].mxu0 }
 0xa0a   : > { %v8194_v46 = vmul.f32 %v8162_v21, %v7857_v61  ;;  %v10808_v38 = vadd.f32 %v7636_v59, %v16722_v34  ;;  %v7638_v48 = vpop.f32.mrb[65].mxu0  ;;  %v8101_v34 = vand.u32 2147483647, %v8069_v8  ;;  %v8164_v13 = vmax.f32 %v8132_v11, 0.0 }
 0xa0b   : > { %v17154_v45 = vpop.permute.xlu1 %8628 }
 0xa0c   : > { %10345 = vmatmul.mubr.msk.f32.gmra.mrb[122].mxu1 %vm8218_vm6, %v8194_v46  ;;  %v7862_v4 = vadd.f32 %v10808_v38, %v17033_v5  ;;  %v8070_v5 = vsub.f32 %v17069_v9, %v16905_v63  ;;  %v8133_v60 = vsub.f32 1.0, %v8101_v34  ;;  %v17152_v9 = vpop.permute.xlu0 %8633 }
 0xa0e   : > { %v8195_v33 = vmul.f32 %v8163_v37, %v7862_v4  ;;  %v7641_v40 = vpop.f32.mrb[66].mxu0  ;;  %v8165_v62 = vmax.f32 %v8133_v60, 0.0 }
 0xa0f   : > { %v10809_v14 = vadd.f32 %v7641_v40, %v16737_v1  ;;  %v7643_v25 = vpop.f32.mrb[67].mxu0  ;;  %v8102_v1 = vand.u32 2147483647, %v8070_v5  ;;  %v17163_v37 = vpop.permute.xlu1 %8638 }
 0xa10   : > { %10347 = vmatprep.mubr.msk.f32.mxu1 %vm8218_vm6, %v8195_v33 }
 0xa11   : > { %v7867_v20 = vadd.f32 %v10809_v14, %v17030_v15  ;;  %v8071_v15 = vsub.f32 %v17084_v50, %v16905_v63  ;;  %v8134_v61 = vsub.f32 1.0, %v8102_v1  ;;  %v17161_v50 = vpop.permute.xlu0 %8643 }
 0xa12   : > { %v7646_v47 = vpop.f32.mrb[68].mxu0 }
 0xa13   : > { %v8196_v27 = vmul.f32 %v8164_v13, %v7867_v20  ;;  %v10810_v3 = vadd.f32 %v7646_v47, %v16763_v12  ;;  %v7648_v30 = vpop.f32.mrb[69].mxu0  ;;  %v8103_v12 = vand.u32 2147483647, %v8071_v15  ;;  %v8166_v38 = vmax.f32 %v8134_v61, 0.0  ;;  %v17172_v14 = vpop.permute.xlu1 %8648 }
 0xa15   : > { %10348 = vmatmul.mubr.msk.f32.gmra.mrb[124].mxu1 %vm8218_vm6, %v8196_v27  ;;  %v7872_v58 = vadd.f32 %v10810_v3, %v17041_v53  ;;  %v8072_v53 = vsub.f32 %v17081_v19, %v16905_v63  ;;  %v8135_v18 = vsub.f32 1.0, %v8103_v12  ;;  %v17170_v19 = vpop.permute.xlu0 %8653 }
 0xa17   : > { %v8197_v21 = vmul.f32 %v8165_v62, %v7872_v58  ;;  %v7651_v54 = vpop.f32.mrb[70].mxu0  ;;  %v8167_v40 = vmax.f32 %v8135_v18, 0.0  ;;  %v17181_v3 = vpop.permute.xlu1 %8658 }
 0xa18   : > { %v10811_v46 = vadd.f32 %v7651_v54, %v16776_v24  ;;  %v7653_v59 = vpop.f32.mrb[71].mxu0  ;;  %v8104_v24 = vand.u32 2147483647, %v8072_v53 }
 0xa19   : > { %10350 = vmatprep.mubr.msk.f32.mxu1 %vm8218_vm6, %v8197_v21  ;;  %v17176_v47 = vpop.permute.xlu0 %8663 }
 0xa1a   : > { %v7877_v48 = vadd.f32 %v10811_v46, %v17038_v32  ;;  %v8073_v32 = vsub.f32 %v17092_v2, %v16905_v63  ;;  %v8136_v13 = vsub.f32 1.0, %v8104_v24  ;;  %v8074_v2 = vsub.f32 %v17089_v42, %v16905_v63 }
 0xa1b   : > { %v7656_v8 = vpop.f32.mrb[72].mxu0  ;;  %v17190_v42 = vpop.permute.xlu1 %8668 }
 0xa1c   : > { %v8198_v4 = vmul.f32 %v8166_v38, %v7877_v48  ;;  %v10812_v33 = vadd.f32 %v7656_v8, %v16796_v55  ;;  %v7658_v11 = vpop.f32.mrb[73].mxu0  ;;  %v8105_v55 = vand.u32 2147483647, %v8073_v32  ;;  %v8168_v27 = vmax.f32 %v8136_v13, 0.0 }
 0xa1d   : > { %v17185_v61 = vpop.permute.xlu0 %8673 }
 0xa1e   : > { %10351 = vmatmul.mubr.msk.f32.gmra.mrb[126].mxu1 %vm8218_vm6, %v8198_v4  ;;  %v7882_v34 = vadd.f32 %v10812_v33, %v17049_v28  ;;  %v8137_v30 = vsub.f32 1.0, %v8105_v55 }
 0xa1f   : > { %v17196_v4 = vpop.permute.xlu1 %8678 }
 0xa20   : > { %v8199_v25 = vmul.f32 %v8167_v40, %v7882_v34  ;;  %v7661_v20 = vpop.f32.mrb[74].mxu0  ;;  %v8169_v21 = vmax.f32 %v8137_v30, 0.0 }
 0xa21   : > { %v10813_v5 = vadd.f32 %v7661_v20, %v16806_v49  ;;  %v7663_v60 = vpop.f32.mrb[75].mxu0  ;;  %v8106_v49 = vand.u32 2147483647, %v8074_v2  ;;  %v17194_v53 = vpop.permute.xlu0 %8683 }
 0xa22   : > { %10353 = vmatprep.mubr.msk.f32.mxu1 %vm8218_vm6, %v8199_v25 }
 0xa23   : > { %v7887_v28 = vadd.f32 %v10813_v5, %v17046_v26  ;;  %v8075_v26 = vsub.f32 %v17100_v31, %v16905_v63  ;;  %v8138_v46 = vsub.f32 1.0, %v8106_v49  ;;  %v8076_v31 = vsub.f32 %v17098_v7, %v16905_v63  ;;  %v17205_v25 = vpop.permute.xlu1 %8688  ;;  %v11050_v49 = vld [vmem:[%s11709_s17 + $0x8] sm:$0xff] }
 0xa24   : > { %v7666_v62 = vpop.f32.mrb[76].mxu0 }
 0xa25   : > { %v8200_v1 = vmul.f32 %v8168_v27, %v7887_v28  ;;  %v10814_v58 = vadd.f32 %v7666_v62, %v16824_v43  ;;  %v7668_v15 = vpop.f32.mrb[77].mxu0  ;;  %v8107_v43 = vand.u32 2147483647, %v8075_v26  ;;  %v8170_v18 = vmax.f32 %v8138_v46, 0.0  ;;  %v17203_v34 = vpop.permute.xlu0 %8693 }
 0xa27   : > { %10354 = vmatmul.mubr.msk.f32.gmra.mrb[128].mxu1 %vm8218_vm6, %v8200_v1  ;;  %v7892_v54 = vadd.f32 %v10814_v58, %v17059_v6  ;;  %v8139_v8 = vsub.f32 1.0, %v8107_v43  ;;  %v17212_v5 = vpop.permute.xlu1 %8698 }
 0xa29   : > { %v8201_v12 = vmul.f32 %v8169_v21, %v7892_v54  ;;  %v7671_v59 = vpop.f32.mrb[78].mxu0  ;;  %v8171_v32 = vmax.f32 %v8139_v8, 0.0  ;;  %v17209_v63 = vpop.permute.xlu0 %8703 }
 0xa2a   : > { %v10815_v38 = vadd.f32 %v7671_v59, %v16834_v51  ;;  %v7673_v48 = vpop.f32.mrb[79].mxu0  ;;  %v8108_v51 = vand.u32 2147483647, %v8076_v31 }
 0xa2b   : > { %10356 = vmatprep.mubr.msk.f32.mxu1 %vm8218_vm6, %v8201_v12  ;;  %v17218_v2 = vpop.permute.xlu1 %8708  ;;  %v11051_v12 = vld [vmem:[%s11709_s17] sm:$0xff] }
 0xa2c   : > { %v7897_v6 = vadd.f32 %v10815_v38, %v17056_v41  ;;  %v8140_v20 = vsub.f32 1.0, %v8108_v51 }
 0xa2d   : > { %v7676_v11 = vpop.f32.mrb[80].mxu0 }
 0xa2e   : > { %v8202_v33 = vmul.f32 %v8170_v18, %v7897_v6  ;;  %v10816_v24 = vadd.f32 %v7676_v11, %v16850_v16  ;;  %v7678_v40 = vpop.f32.mrb[81].mxu0  ;;  %v8172_v60 = vmax.f32 %v8140_v20, 0.0  ;;  %v11052_v6 = vld [vmem:[%s11709_s17 + $0x18] sm:$0xff]  ;;  %v11053_v11 = vld [vmem:[%s11709_s17 + $0x10] sm:$0xff] }
 0xa2f   : > { %v17222_v1 = vpop.permute.xlu1 %8718 }
 0xa30   : > { %10357 = vmatmul.mubr.msk.f32.gmra.mrb[130].mxu1 %vm8218_vm6, %v8202_v33  ;;  %v7902_v13 = vadd.f32 %v10816_v24, %v17076_v56  ;;  %v17215_v56 = vpop.permute.xlu0 %8713 }
 0xa32   : > { %v8203_v41 = vmul.f32 %v8171_v32, %v7902_v13 }
 0xa33   : > { %v17226_v62 = vpop.permute.xlu1 %8728 }
 0xa34   : > { %10359 = vmatprep.mubr.msk.f32.mxu1 %vm8218_vm6, %v8203_v41  ;;  %v17220_v30 = vpop.permute.xlu0 %8723  ;;  %v11054_v41 = vld [vmem:[%s11709_s17 + $0x28] sm:$0xff] }
 0xa37   : > { %v8803_v15 = vpop.permute.xlu1 %8802 }
 0xa38   : > { %v7681_v55 = vpop.f32.mrb[82].mxu0  ;;  %v8960_v46 = vmul.f32 %v11051_v12, %v8803_v15 }
 0xa39   : > { %v10817_v16 = vadd.f32 %v7681_v55, %v16862_v39  ;;  %v7683_v7 = vpop.f32.mrb[83].mxu0  ;;  %v17224_v39 = vpop.permute.xlu0 %8733 }
 0xa3a   : > { %v11055_v7 = vld [vmem:[%s11709_s17 + $0x20] sm:$0xff] }
 0xa3b   : > { %v7907_v27 = vadd.f32 %v10817_v16, %v17071_v35  ;;  %v8813_v38 = vpop.permute.xlu1 %8812 }
 0xa3c   : > { %v8962_v24 = vmul.f32 %v11053_v11, %v8813_v38 }
 0xa3d   : > { %v8204_v28 = vmul.f32 %v8172_v60, %v7907_v27  ;;  %v8808_v58 = vpop.permute.xlu0 %8807 }
 0xa3e   : > { %v8961_v21 = vmul.f32 %v11050_v49, %v8808_v58 }
 0xa3f   : > { %10360 = vmatmul.mubr.msk.f32.gmra.mrb[132].mxu1 %vm8218_vm6, %v8204_v28  ;;  %v8823_v55 = vpop.permute.xlu1 %8822 }
 0xa40   : > { %v8964_v60 = vmul.f32 %v11055_v7, %v8823_v55 }
 0xa41   : > { %v8818_v59 = vpop.permute.xlu0 %8817 }
 0xa42   : > { %v8963_v31 = vmul.f32 %v11052_v6, %v8818_v59 }
 0xa43   : > { %v8833_v49 = vpop.permute.xlu1 %8832 }
 0xa45   : > { %v8828_v51 = vpop.permute.xlu0 %8827 }
 0xa46   : > { %v8965_v20 = vmul.f32 %v11054_v41, %v8828_v51  ;;  %v11061_v41 = vld [vmem:[%s11709_s17 + $0x50] sm:$0xff] }
 0xa49   : > { %v8838_v58 = vpop.permute.xlu0 %8837 }
 0xa5b   : > { %v10316_v35 = vpop.f32.mrb[102].mxu1 }
 0xa5c   : > { %v8737_v54 = vmul.f32 %v10316_v35, %v17107_v10  ;;  %v8385_v26 = vpop.f32.mrb[103].mxu1 }
 0xa5d   : > { %v8736_v43 = vmul.f32 %v17110_v0, %v8385_v26  ;;  %v11057_v26 = vld [vmem:[%s11709_s17 + $0x30] sm:$0xff] }
 0xa5e   : > { %v8993_v48 = vadd.f32 %v8961_v21, %v8737_v54 }
 0xa5f   : > { %v8992_v18 = vadd.f32 %v8960_v46, %v8736_v43  ;;  %v10319_v10 = vpop.f32.mrb[104].mxu1  ;;  %v8848_v43 = vpop.permute.xlu0 %8847 }
 0xa60   : > { %9026 = vst.msk [vmem:[%s17234_s22 + $0x8] sm:$0xff] %vm9024_vm8, %v8993_v48  ;;  %v8739_v8 = vmul.f32 %v10319_v10, %v17116_v29  ;;  %v8395_v33 = vpop.f32.mrb[105].mxu1  ;;  %v11058_v48 = vld [vmem:[%s11709_s17 + $0x48] sm:$0xff] }
 0xa61   : > { %9025 = vst.msk [vmem:[%s17234_s22] sm:$0xff] %vm9024_vm8, %v8992_v18  ;;  %v8738_v0 = vmul.f32 %v17119_v57, %v8395_v33  ;;  %v8969_v18 = vmul.f32 %v11058_v48, %v8848_v43 }
 0xa62   : > { %v8995_v40 = vadd.f32 %v8963_v31, %v8739_v8  ;;  %v11059_v31 = vld [vmem:[%s11709_s17 + $0x40] sm:$0xff] }
 0xa63   : > { %v8994_v32 = vadd.f32 %v8962_v24, %v8738_v0  ;;  %v10322_v13 = vpop.f32.mrb[106].mxu1  ;;  %v8858_v24 = vpop.permute.xlu0 %8857 }
 0xa64   : > { %9028 = vst.msk [vmem:[%s17234_s22 + $0x18] sm:$0xff] %vm9024_vm8, %v8995_v40  ;;  %v8741_v29 = vmul.f32 %v10322_v13, %v17125_v52  ;;  %v8405_v16 = vpop.f32.mrb[107].mxu1  ;;  %v11056_v52 = vld [vmem:[%s11709_s17 + $0x38] sm:$0xff] }
 0xa65   : > { %9027 = vst.msk [vmem:[%s17234_s22 + $0x10] sm:$0xff] %vm9024_vm8, %v8994_v32  ;;  %v8740_v57 = vmul.f32 %v17127_v17, %v8405_v16  ;;  %v8967_v35 = vmul.f32 %v11056_v52, %v8838_v58  ;;  %v8966_v17 = vmul.f32 %v11057_v26, %v8833_v49  ;;  %v11060_v40 = vld [vmem:[%s11709_s17 + $0x58] sm:$0xff]  ;;  %v11063_v58 = vld [vmem:[%s11709_s17 + $0x60] sm:$0xff] }
 0xa66   : > { %v8997_v27 = vadd.f32 %v8965_v20, %v8741_v29  ;;  %v8971_v51 = vmul.f32 %v11060_v40, %v8858_v24  ;;  %v11068_v40 = vld [vmem:[%s11709_s17 + $0x98] sm:$0xff] }
 0xa67   : > { %v8996_v28 = vadd.f32 %v8964_v60, %v8740_v57  ;;  %v8868_v16 = vpop.permute.xlu0 %8867  ;;  %v11062_v60 = vld [vmem:[%s11709_s17 + $0x68] sm:$0xff] }
 0xa68   : > { %9030 = vst.msk [vmem:[%s17234_s22 + $0x28] sm:$0xff] %vm9024_vm8, %v8997_v27  ;;  %v8973_v57 = vmul.f32 %v11062_v60, %v8868_v16  ;;  %v11070_v16 = vld [vmem:[%s11709_s17 + $0xa8] sm:$0xff] }
 0xa69   : > { %9029 = vst.msk [vmem:[%s17234_s22 + $0x20] sm:$0xff] %vm9024_vm8, %v8996_v28 }
 0xa6b   : > { %v8878_v49 = vpop.permute.xlu0 %8877 }
 0xa6f   : > { %v8888_v48 = vpop.permute.xlu0 %8887 }
 0xa73   : > { %v8898_v24 = vpop.permute.xlu0 %8897 }
 0xa74   : > { %v10325_v15 = vpop.f32.mrb[108].mxu1 }
 0xa75   : > { %v8743_v21 = vmul.f32 %v10325_v15, %v17134_v23  ;;  %v8415_v54 = vpop.f32.mrb[109].mxu1  ;;  %v8843_v23 = vpop.permute.xlu1 %8842 }
 0xa76   : > { %v8742_v12 = vmul.f32 %v17136_v44, %v8415_v54  ;;  %v8968_v44 = vmul.f32 %v11059_v31, %v8843_v23  ;;  %v11064_v54 = vld [vmem:[%s11709_s17 + $0x78] sm:$0xff]  ;;  %v11066_v23 = vld [vmem:[%s11709_s17 + $0x88] sm:$0xff] }
 0xa77   : > { %v8999_v46 = vadd.f32 %v8967_v35, %v8743_v21  ;;  %v8975_v26 = vmul.f32 %v11064_v54, %v8878_v49  ;;  %v11073_v54 = vld [vmem:[%s11709_s17 + $0xb0] sm:$0xff] }
 0xa78   : > { %v8998_v59 = vadd.f32 %v8966_v17, %v8742_v12 }
 0xa79   : > { %9032 = vst.msk [vmem:[%s17234_s22 + $0x38] sm:$0xff] %vm9024_vm8, %v8999_v46  ;;  %v11065_v46 = vld [vmem:[%s11709_s17 + $0x70] sm:$0xff] }
 0xa7a   : > { %9031 = vst.msk [vmem:[%s17234_s22 + $0x30] sm:$0xff] %vm9024_vm8, %v8998_v59 }
 0xa87   : > { %v10328_v38 = vpop.f32.mrb[110].mxu1 }
 0xa88   : > { %v8745_v10 = vmul.f32 %v10328_v38, %v17143_v36  ;;  %v8425_v6 = vpop.f32.mrb[111].mxu1  ;;  %v8853_v36 = vpop.permute.xlu1 %8852 }
 0xa89   : > { %v8744_v8 = vmul.f32 %v17145_v22, %v8425_v6  ;;  %v8970_v22 = vmul.f32 %v11061_v41, %v8853_v36 }
 0xa8a   : > { %v9001_v33 = vadd.f32 %v8969_v18, %v8745_v10  ;;  %v8977_v10 = vmul.f32 %v11066_v23, %v8888_v48  ;;  %v11075_v48 = vld [vmem:[%s11709_s17 + $0xc0] sm:$0xff] }
 0xa8b   : > { %v9000_v11 = vadd.f32 %v8968_v44, %v8744_v8  ;;  %v11067_v44 = vld [vmem:[%s11709_s17 + $0x80] sm:$0xff] }
 0xa8c   : > { %9034 = vst.msk [vmem:[%s17234_s22 + $0x48] sm:$0xff] %vm9024_vm8, %v9001_v33 }
 0xa8d   : > { %9033 = vst.msk [vmem:[%s17234_s22 + $0x40] sm:$0xff] %vm9024_vm8, %v9000_v11 }
 0xa9b   : > { %v10331_v0 = vpop.f32.mrb[112].mxu1 }
 0xa9c   : > { %v8747_v32 = vmul.f32 %v10331_v0, %v17152_v9  ;;  %v8435_v13 = vpop.f32.mrb[113].mxu1  ;;  %v8863_v9 = vpop.permute.xlu1 %8862 }
 0xa9d   : > { %v8746_v20 = vmul.f32 %v17154_v45, %v8435_v13  ;;  %v8972_v45 = vmul.f32 %v11063_v58, %v8863_v9  ;;  %v11069_v13 = vld [vmem:[%s11709_s17 + $0x90] sm:$0xff]  ;;  %v11071_v9 = vld [vmem:[%s11709_s17 + $0xa0] sm:$0xff] }
 0xa9e   : > { %v9003_v55 = vadd.f32 %v8971_v51, %v8747_v32  ;;  %v8979_v51 = vmul.f32 %v11068_v40, %v8898_v24 }
 0xa9f   : > { %v9002_v29 = vadd.f32 %v8970_v22, %v8746_v20 }
 0xaa0   : > { %9036 = vst.msk [vmem:[%s17234_s22 + $0x58] sm:$0xff] %vm9024_vm8, %v9003_v55  ;;  %v8908_v55 = vpop.permute.xlu0 %8907 }
 0xaa1   : > { %9035 = vst.msk [vmem:[%s17234_s22 + $0x50] sm:$0xff] %vm9024_vm8, %v9002_v29 }
 0xaae   : > { %v10334_v7 = vpop.f32.mrb[114].mxu1 }
 0xaaf   : > { %v8749_v27 = vmul.f32 %v10334_v7, %v17161_v50  ;;  %v8445_v28 = vpop.f32.mrb[115].mxu1  ;;  %v8873_v50 = vpop.permute.xlu1 %8872  ;;  %v8981_v7 = vmul.f32 %v11070_v16, %v8908_v55 }
 0xab0   : > { %v8748_v15 = vmul.f32 %v17163_v37, %v8445_v28  ;;  %v8974_v37 = vmul.f32 %v11065_v46, %v8873_v50 }
 0xab1   : > { %v9005_v52 = vadd.f32 %v8973_v57, %v8749_v27 }
 0xab2   : > { %v9004_v35 = vadd.f32 %v8972_v45, %v8748_v15  ;;  %v8918_v45 = vpop.permute.xlu0 %8917 }
 0xab3   : > { %9038 = vst.msk [vmem:[%s17234_s22 + $0x68] sm:$0xff] %vm9024_vm8, %v9005_v52  ;;  %v11072_v52 = vld [vmem:[%s11709_s17 + $0xb8] sm:$0xff] }
 0xab4   : > { %9037 = vst.msk [vmem:[%s17234_s22 + $0x60] sm:$0xff] %vm9024_vm8, %v9004_v35  ;;  %v8983_v35 = vmul.f32 %v11072_v52, %v8918_v45 }
 0xac1   : > { %v10337_v21 = vpop.f32.mrb[116].mxu1 }
 0xac2   : > { %v8751_v17 = vmul.f32 %v10337_v21, %v17170_v19  ;;  %v8455_v12 = vpop.f32.mrb[117].mxu1  ;;  %v8883_v19 = vpop.permute.xlu1 %8882 }
 0xac3   : > { %v8750_v59 = vmul.f32 %v17172_v14, %v8455_v12  ;;  %v8976_v14 = vmul.f32 %v11067_v44, %v8883_v19  ;;  %v8928_v12 = vpop.permute.xlu0 %8927 }
 0xac4   : > { %v9007_v43 = vadd.f32 %v8975_v26, %v8751_v17 }
 0xac5   : > { %v9006_v38 = vadd.f32 %v8974_v37, %v8750_v59  ;;  %v11074_v37 = vld [vmem:[%s11709_s17 + $0xc8] sm:$0xff] }
 0xac6   : > { %9040 = vst.msk [vmem:[%s17234_s22 + $0x78] sm:$0xff] %vm9024_vm8, %v9007_v43  ;;  %v8985_v59 = vmul.f32 %v11074_v37, %v8928_v12 }
 0xac7   : > { %9039 = vst.msk [vmem:[%s17234_s22 + $0x70] sm:$0xff] %vm9024_vm8, %v9006_v38  ;;  %v8938_v19 = vpop.permute.xlu0 %8937 }
 0xacb   : > { %v8948_v40 = vpop.permute.xlu0 %8947 }
 0xacc   : > { %v10340_v18 = vpop.f32.mrb[118].mxu1 }
 0xacd   : > { %v8753_v6 = vmul.f32 %v10340_v18, %v17176_v47  ;;  %v8465_v31 = vpop.f32.mrb[119].mxu1  ;;  %v8893_v47 = vpop.permute.xlu1 %8892 }
 0xace   : > { %v8752_v8 = vmul.f32 %v17181_v3, %v8465_v31  ;;  %v8978_v3 = vmul.f32 %v11069_v13, %v8893_v47  ;;  %v11076_v31 = vld [vmem:[%s11709_s17 + $0xd8] sm:$0xff]  ;;  %v11078_v47 = vld [vmem:[%s11709_s17 + $0xe8] sm:$0xff] }
 0xacf   : > { %v9009_v33 = vadd.f32 %v8977_v10, %v8753_v6  ;;  %v8987_v44 = vmul.f32 %v11076_v31, %v8938_v19  ;;  %v8958_v55 = vpop.permute.xlu0 %8957 }
 0xad0   : > { %v9008_v11 = vadd.f32 %v8976_v14, %v8752_v8 }
 0xad1   : > { %9042 = vst.msk [vmem:[%s17234_s22 + $0x88] sm:$0xff] %vm9024_vm8, %v9009_v33  ;;  %v11077_v33 = vld [vmem:[%s11709_s17 + $0xd0] sm:$0xff] }
 0xad2   : > { %9041 = vst.msk [vmem:[%s17234_s22 + $0x80] sm:$0xff] %vm9024_vm8, %v9008_v11 }
 0xad6   : > { %v10343_v0 = vpop.f32.mrb[120].mxu1 }
 0xad7   : > { %v8755_v36 = vmul.f32 %v10343_v0, %v17185_v61  ;;  %v8475_v32 = vpop.f32.mrb[121].mxu1  ;;  %v8903_v61 = vpop.permute.xlu1 %8902 }
 0xad8   : > { %v8754_v41 = vmul.f32 %v17190_v42, %v8475_v32  ;;  %v8980_v42 = vmul.f32 %v11071_v9, %v8903_v61 }
 0xad9   : > { %v9011_v22 = vadd.f32 %v8979_v51, %v8755_v36  ;;  %v8989_v36 = vmul.f32 %v11078_v47, %v8948_v40 }
 0xada   : > { %v9010_v20 = vadd.f32 %v8978_v3, %v8754_v41  ;;  %v11079_v3 = vld [vmem:[%s11709_s17 + $0xe0] sm:$0xff] }
 0xadb   : > { %9044 = vst.msk [vmem:[%s17234_s22 + $0x98] sm:$0xff] %vm9024_vm8, %v9011_v22 }
 0xadc   : > { %9043 = vst.msk [vmem:[%s17234_s22 + $0x90] sm:$0xff] %vm9024_vm8, %v9010_v20 }
 0xadf   : > { %v10346_v29 = vpop.f32.mrb[122].mxu1 }
 0xae0   : > { %v8757_v60 = vmul.f32 %v10346_v29, %v17194_v53  ;;  %v8485_v57 = vpop.f32.mrb[123].mxu1  ;;  %v8913_v53 = vpop.permute.xlu1 %8912 }
 0xae1   : > { %v8756_v27 = vmul.f32 %v17196_v4, %v8485_v57  ;;  %v8982_v4 = vmul.f32 %v11073_v54, %v8913_v53  ;;  %v11081_v57 = vld [vmem:[%s11709_s17 + $0xf0] sm:$0xff] }
 0xae2   : > { %v9013_v28 = vadd.f32 %v8981_v7, %v8757_v60  ;;  %v11080_v7 = vld [vmem:[%s11709_s17 + $0xf8] sm:$0xff] }
 0xae3   : > { %v9012_v58 = vadd.f32 %v8980_v42, %v8756_v27  ;;  %v8991_v61 = vmul.f32 %v11080_v7, %v8958_v55 }
 0xae4   : > { %9046 = vst.msk [vmem:[%s17234_s22 + $0xa8] sm:$0xff] %vm9024_vm8, %v9013_v28 }
 0xae5   : > { %9045 = vst.msk [vmem:[%s17234_s22 + $0xa0] sm:$0xff] %vm9024_vm8, %v9012_v58 }
 0xae8   : > { %v10349_v15 = vpop.f32.mrb[124].mxu1 }
 0xae9   : > { %v8759_v49 = vmul.f32 %v10349_v15, %v17203_v34  ;;  %v8495_v21 = vpop.f32.mrb[125].mxu1  ;;  %v8923_v34 = vpop.permute.xlu1 %8922 }
 0xaea   : > { %v8758_v26 = vmul.f32 %v17205_v25, %v8495_v21  ;;  %v8984_v25 = vmul.f32 %v11075_v48, %v8923_v34 }
 0xaeb   : > { %v9015_v50 = vadd.f32 %v8983_v35, %v8759_v49 }
 0xaec   : > { %v9014_v17 = vadd.f32 %v8982_v4, %v8758_v26 }
 0xaed   : > { %9048 = vst.msk [vmem:[%s17234_s22 + $0xb8] sm:$0xff] %vm9024_vm8, %v9015_v50 }
 0xaee   : > { %9047 = vst.msk [vmem:[%s17234_s22 + $0xb0] sm:$0xff] %vm9024_vm8, %v9014_v17 }
 0xaf1   : > { %v10352_v46 = vpop.f32.mrb[126].mxu1 }
 0xaf2   : > { %v8761_v43 = vmul.f32 %v10352_v46, %v17209_v63  ;;  %v8505_v38 = vpop.f32.mrb[127].mxu1  ;;  %v8933_v63 = vpop.permute.xlu1 %8932 }
 0xaf3   : > { %v8760_v18 = vmul.f32 %v17212_v5, %v8505_v38  ;;  %v8986_v5 = vmul.f32 %v11077_v33, %v8933_v63 }
 0xaf4   : > { %v9017_v23 = vadd.f32 %v8985_v59, %v8761_v43 }
 0xaf5   : > { %v9016_v10 = vadd.f32 %v8984_v25, %v8760_v18 }
 0xaf6   : > { %9050 = vst.msk [vmem:[%s17234_s22 + $0xc8] sm:$0xff] %vm9024_vm8, %v9017_v23 }
 0xaf7   : > { %9049 = vst.msk [vmem:[%s17234_s22 + $0xc0] sm:$0xff] %vm9024_vm8, %v9016_v10 }
 0xafa   : > { %v10355_v6 = vpop.f32.mrb[128].mxu1 }
 0xafb   : > { %v8763_v14 = vmul.f32 %v10355_v6, %v17215_v56  ;;  %v8515_v8 = vpop.f32.mrb[129].mxu1  ;;  %v8943_v56 = vpop.permute.xlu1 %8942 }
 0xafc   : > { %v8762_v11 = vmul.f32 %v17218_v2, %v8515_v8  ;;  %v8988_v2 = vmul.f32 %v11079_v3, %v8943_v56 }
 0xafd   : > { %v9019_v24 = vadd.f32 %v8987_v44, %v8763_v14 }
 0xafe   : > { %v9018_v0 = vadd.f32 %v8986_v5, %v8762_v11 }
 0xaff   : > { %9052 = vst.msk [vmem:[%s17234_s22 + $0xd8] sm:$0xff] %vm9024_vm8, %v9019_v24  ;;  %v8953_v29 = vpop.permute.xlu1 %8952 }
 0xb00   : > { %9051 = vst.msk [vmem:[%s17234_s22 + $0xd0] sm:$0xff] %vm9024_vm8, %v9018_v0  ;;  %v8990_v9 = vmul.f32 %v11081_v57, %v8953_v29 }
 0xb03   : > { %v10358_v51 = vpop.f32.mrb[130].mxu1 }
 0xb04   : > { %v8765_v32 = vmul.f32 %v10358_v51, %v17220_v30  ;;  %v8525_v13 = vpop.f32.mrb[131].mxu1 }
 0xb05   : > { %v8764_v41 = vmul.f32 %v17222_v1, %v8525_v13 }
 0xb06   : > { %v9021_v22 = vadd.f32 %v8989_v36, %v8765_v32 }
 0xb07   : > { %v9020_v20 = vadd.f32 %v8988_v2, %v8764_v41 }
 0xb08   : > { %9054 = vst.msk [vmem:[%s17234_s22 + $0xe8] sm:$0xff] %vm9024_vm8, %v9021_v22 }
 0xb09   : > { %9053 = vst.msk [vmem:[%s17234_s22 + $0xe0] sm:$0xff] %vm9024_vm8, %v9020_v20 }
 0xb12   : > { %v10361_v16 = vpop.f32.mrb[132].mxu1 }
 0xb13   : > { %v8767_v30 = vmul.f32 %v10361_v16, %v17224_v39  ;;  %v8535_v60 = vpop.f32.mrb[133].mxu1 }
 0xb14   : > { %v8766_v1 = vmul.f32 %v17226_v62, %v8535_v60 }
 0xb15   : > { %v9023_v42 = vadd.f32 %v8991_v61, %v8767_v30 }
 0xb16   : > { %v9022_v27 = vadd.f32 %v8990_v9, %v8766_v1 }
 0xb17   : > { %9056 = vst.msk [vmem:[%s17234_s22 + $0xf8] sm:$0xff] %vm9024_vm8, %v9023_v42 }
 0xb18   : > { %9055 = vst.msk [vmem:[%s17234_s22 + $0xf0] sm:$0xff] %vm9024_vm8, %v9022_v27 }
 0xb19 PF: > { %s23_s25 = sadd.s32 1, %s11088_s25  }
 0xb1a   : > { %p20_p4 = scmp.ge.s32.totalorder %s23_s25, 4  }
 0xb1c   :  { %22 = sbr.rel (!%p20_p4) target bundleno = 1 (0x1), region = 121 }

</bundles_post_ra>
